<compile_context>
chip_gen: v5e
topology: v5e:2x2
jax: 0.10.0
libtpu: 0.0.40
codegen_flags: <defaults>
</compile_context>

<pallas_src>
import functools

import jax
import jax.numpy as jnp
from jax.experimental import pallas as pl
from jax.experimental.pallas import tpu as pltpu


# ---------------------------------------------------------------------------
# Pallas kernel: both DBHead branches for one (batch, row-tile) block.
# ---------------------------------------------------------------------------
def _db_head_kernel(x_ref, hal_ref, w1_ref, s1_ref, b1_ref,
                    w2_ref, s2_ref, b2_ref, w3_ref, b3_ref, out_ref,
                    *, Ht, W, C, Cm):
    """
    x_ref  : (Ht, W+2, C)      bf16  W-padded NHWC rows of this tile (no H halo)
    hal_ref: (2, W+2, C)       bf16  row above / row below this tile (zeros at edges)
    w1_ref : (3, C, 3*2*Cm)    bf16  3x3 conv; per dy the 3 dx taps x both branches
                                     concatenated along Cout
    s1,b1  : (1, 2*Cm)         f32   fused conv-bias + BN scale/shift
    w2_ref : (2*Cm, 8*Cm)      bf16  branch-block-diagonal fused ConvTranspose(2,2)
    s2,b2  : (1, 8*Cm)         f32
    w3_ref : (8*Cm, 32)        bf16  branch+subpixel block-diagonal final ConvTranspose
    b3_ref : (1, 32)           f32
    out_ref: (Ht*W, 32)        bf16  32 = branch(2) x ky(2) x kx(2) x ky'(2) x kx'(2)
    """
    Cmb = 2 * Cm   # stage-1 output channels (both branches concatenated)

    # Assemble the (Ht+2)-row halo'd tile in VMEM (leading-axis concat only).
    hal = hal_ref[...]
    xt = jnp.concatenate([hal[0:1], x_ref[...], hal[1:2]], axis=0)     # (Ht+2,W+2,C)

    # ---- stage 1: 3x3 conv (padding=1) + BN + ReLU, both branches fused ----
    acc = jnp.zeros((Ht, W, Cmb), jnp.float32)
    for dy in range(3):                     # 3 taps; each t consumed immediately
        lhs = xt[dy:dy + Ht].reshape(Ht * (W + 2), C)                  # bf16
        t = jnp.dot(lhs, w1_ref[dy], preferred_element_type=jnp.float32)
        t = t.reshape(Ht, W + 2, 3 * Cmb)
        for dx in range(3):
            acc = acc + t[:, dx:dx + W, dx * Cmb:(dx + 1) * Cmb]
    h1 = jnp.maximum(acc.reshape(Ht * W, Cmb) * s1_ref[...] + b1_ref[...], 0.0)

    # ---- stages 2-3 (both branches at once, block-diagonal weights) ----
    r2 = jnp.dot(h1.astype(jnp.bfloat16), w2_ref[...],
                 preferred_element_type=jnp.float32)                   # (HtW, 8Cm)
    h2 = jnp.maximum(r2 * s2_ref[...] + b2_ref[...], 0.0)
    r3 = jnp.dot(h2.astype(jnp.bfloat16), w3_ref[...],
                 preferred_element_type=jnp.float32)                   # (HtW, 32)
    out_ref[...] = jax.nn.sigmoid(r3 + b3_ref[...]).astype(out_ref.dtype)


# ---------------------------------------------------------------------------
# Parameter packing: fold/concat PyTorch-layout weights into kernel operands.
# ---------------------------------------------------------------------------
def _pack_params(params):
    bin_, thr = params["binarize"], params["thresh"]
    Cm = bin_["w1"].shape[-1]
    bf = jnp.bfloat16

    # stage 1: concat branches along Cout, then the 3 dx taps along Cout per dy
    w1c = jnp.concatenate([bin_["w1"], thr["w1"]], axis=-1)            # (3,3,C,2Cm)
    w1r = jnp.concatenate([w1c[:, dx] for dx in range(3)], axis=-1)    # (3,C,6Cm)
    s1 = jnp.concatenate([bin_["s1"], thr["s1"]], axis=-1)             # (1,2Cm)
    b1 = jnp.concatenate([bin_["b1"], thr["b1"]], axis=-1)

    def w2_fused(w2):  # (2,2,Cm,Cm) -> (Cm, 4Cm), column group g = 2*ky+kx
        return jnp.concatenate(
            [w2[ky, kx] for ky in range(2) for kx in range(2)], axis=-1)

    z2 = jnp.zeros((Cm, 4 * Cm), jnp.float32)
    w2bd = jnp.concatenate(
        [jnp.concatenate([w2_fused(bin_["w2"]), z2], axis=-1),
         jnp.concatenate([z2, w2_fused(thr["w2"])], axis=-1)], axis=0)  # (2Cm,8Cm)
    s2bd = jnp.concatenate([jnp.tile(bin_["s2"], (1, 4)),
                            jnp.tile(thr["s2"], (1, 4))], axis=-1)      # (1,8Cm)
    b2bd = jnp.concatenate([jnp.tile(bin_["b2"], (1, 4)),
                            jnp.tile(thr["b2"], (1, 4))], axis=-1)

    def w3_blockdiag(w3):  # (2,2,Cm,1) -> (4Cm,16); out col = g*4 + (2*ky'+kx')
        cols = w3.reshape(4, Cm).T                                      # (Cm,4)
        blk = jnp.zeros((4 * Cm, 16), w3.dtype)
        for g in range(4):
            blk = blk.at[g * Cm:(g + 1) * Cm, g * 4:(g + 1) * 4].set(cols)
        return blk

    z3 = jnp.zeros((4 * Cm, 16), jnp.float32)
    w3bd = jnp.concatenate(
        [jnp.concatenate([w3_blockdiag(bin_["w3"]), z3], axis=-1),
         jnp.concatenate([z3, w3_blockdiag(thr["w3"])], axis=-1)], axis=0)  # (8Cm,32)
    b3bd = jnp.concatenate([jnp.broadcast_to(bin_["b3"], (1, 16)),
                            jnp.broadcast_to(thr["b3"], (1, 16))], axis=-1)  # (1,32)

    return dict(w1r=w1r.astype(bf), s1=s1, b1=b1,
                w2bd=w2bd.astype(bf), s2bd=s2bd, b2bd=b2bd,
                w3bd=w3bd.astype(bf), b3bd=b3bd)


# ---------------------------------------------------------------------------
# Per-step VMEM footprint model -> row-tile selection.
# ---------------------------------------------------------------------------
def _step_vmem_bytes(Ht, W, C, Cm):
    Cmb = 2 * Cm
    HtW = Ht * W
    b = 2 * Ht * (W + 2) * C * 2            # main input tile (double buffered)
    b += 2 * 2 * (W + 2) * C * 2            # halo rows (double buffered)
    b += (Ht + 2) * (W + 2) * C * 2         # in-kernel halo'd tile copy
    b += Ht * (W + 2) * 3 * Cmb * 4         # stage-1 per-dy matmul result
    b += HtW * Cmb * 4                      # acc
    b += HtW * Cmb * (4 + 2)                # h1 f32 + bf16 cast
    b += HtW * 4 * Cmb * (4 + 2)            # h2 f32 + bf16 cast
    b += HtW * 32 * 4                       # r3
    b += 2 * HtW * 32 * 2                   # output block bf16 (double buffered)
    return b


def _pick_row_tile(H, W, C, Cm, N, budget_bytes):
    divisors = [d for d in range(H, 0, -1) if H % d == 0]
    feasible = [d for d in divisors if _step_vmem_bytes(d, W, C, Cm) <= budget_bytes]
    if not feasible:
        return 1
    for d in feasible:                       # prefer even step count (megacore balance)
        if (N * (H // d)) % 2 == 0:
            return d
    return feasible[0]


# ---------------------------------------------------------------------------
# Forward wrapper (eval mode): y = cat((shrink, thresh), dim=1) in NCHW.
# ---------------------------------------------------------------------------
def db_head_forward(x_nchw, params, row_tile=None,
                    vmem_limit_bytes=48 * 1024 * 1024):
    N, C, H, W = x_nchw.shape
    Cm = C // 4
    kp = _pack_params(params)

    if row_tile is None:
        Ht = _pick_row_tile(H, W, C, Cm, N, vmem_limit_bytes // 2)
    else:
        Ht = row_tile
    assert H % Ht == 0, (H, Ht)
    Hn = H // Ht

    # NCHW -> NHWC (C on lanes), bf16, W-only zero pad (one fused XLA pass).
    x = jnp.transpose(x_nchw, (0, 2, 3, 1)).astype(jnp.bfloat16)
    xw = jnp.pad(x, ((0, 0), (0, 0), (1, 1), (0, 0)))                  # (N,H,W+2,C)

    # Tiny halo side input: row above / below each tile (zeros at image borders).
    zrow = jnp.zeros((N, 1, W + 2, C), jnp.bfloat16)
    tops = jnp.concatenate([zrow, xw[:, Ht - 1::Ht][:, :Hn - 1]], axis=1)
    bots = jnp.concatenate([xw[:, Ht::Ht][:, :Hn - 1], zrow], axis=1)
    hal = jnp.stack([tops, bots], axis=2)                              # (N,Hn,2,W+2,C)

    kern = functools.partial(_db_head_kernel, Ht=Ht, W=W, C=C, Cm=Cm)

    def wspec(arr):  # whole-array (weight) block, constant index -> fetched once
        return pl.BlockSpec(arr.shape, lambda n, t: tuple(0 for _ in arr.shape))

    flops = 2 * N * H * W * (C * 9 * 2 * Cm + 2 * Cm * 8 * Cm + 8 * Cm * 32)
    bytes_accessed = int(xw.size * 2 + hal.size * 2 + N * H * W * 32 * 2)
    cost = pl.CostEstimate(flops=int(flops), transcendentals=int(N * H * W * 32),
                           bytes_accessed=bytes_accessed)

    out = pl.pallas_call(
        kern,
        out_shape=jax.ShapeDtypeStruct((N, Hn, Ht * W, 32), jnp.bfloat16),
        grid=(N, Hn),
        in_specs=[
            pl.BlockSpec((None, Ht, W + 2, C), lambda n, t: (n, t, 0, 0)),
            pl.BlockSpec((None, None, 2, W + 2, C), lambda n, t: (n, t, 0, 0, 0)),
            wspec(kp["w1r"]), wspec(kp["s1"]), wspec(kp["b1"]),
            wspec(kp["w2bd"]), wspec(kp["s2bd"]), wspec(kp["b2bd"]),
            wspec(kp["w3bd"]), wspec(kp["b3bd"]),
        ],
        out_specs=pl.BlockSpec((None, None, Ht * W, 32), lambda n, t: (n, t, 0, 0)),
        compiler_params=pltpu.CompilerParams(
            dimension_semantics=("parallel", "parallel"),
            vmem_limit_bytes=vmem_limit_bytes),
        cost_estimate=cost,
    )(xw, hal, kp["w1r"], kp["s1"], kp["b1"], kp["w2bd"], kp["s2bd"],
      kp["b2bd"], kp["w3bd"], kp["b3bd"])

    # Sub-pixel interleave (one XLA transpose pass on the bf16 output);
    # channel = (b, ky, kx, ky', kx').
    y = out.reshape(N, Hn, Ht, W, 2, 2, 2, 2, 2)
    y = jnp.transpose(y, (0, 4, 1, 2, 5, 7, 3, 6, 8))
    return y.reshape(N, 2, 4 * H, 4 * W).astype(jnp.float32)


# ---------------------------------------------------------------------------
# Pure-JAX f32 reference (for verification only).
# ---------------------------------------------------------------------------
def _ref_upsample2(h, w):  # h:(N,Y,X,Ci), w:(2,2,Ci,Co) -> (N,2Y,2X,Co)
    N, Y, X, _ = h.shape
    r = jnp.einsum("nyxc,ijcd->nyixjd", h, w)
    return r.reshape(N, 2 * Y, 2 * X, w.shape[-1])


def _ref_branch(x_nhwc, p):
    dn = ("NHWC", "HWIO", "NHWC")
    h = jax.lax.conv_general_dilated(x_nhwc, p["w1"], (1, 1), "SAME",
                                     dimension_numbers=dn)
    h = jnp.maximum(h * p["s1"] + p["b1"], 0.0)
    h = _ref_upsample2(h, p["w2"])
    h = jnp.maximum(h * p["s2"] + p["b2"], 0.0)
    h = _ref_upsample2(h, p["w3"]) + p["b3"]
    return jax.nn.sigmoid(h[..., 0])


def db_head_reference(x_nchw, params):
    x = jnp.transpose(x_nchw, (0, 2, 3, 1)).astype(jnp.float32)
    return jnp.stack([_ref_branch(x, params["binarize"]),
                      _ref_branch(x, params["thresh"])], axis=1)


# ---------------------------------------------------------------------------
# Deterministic synthetic parameters matching DBHead.__init__ shapes.
# ---------------------------------------------------------------------------
def init_dbhead_params(key, in_channels, eps=1e-5):
    C = in_channels
    Cm = C // 4
    keys = jax.random.split(key, 12)

    def kaiming(k, shape, fan_in):
        return jax.random.normal(k, shape, jnp.float32) * jnp.sqrt(2.0 / fan_in)

    bn_scale = 1.0 / jnp.sqrt(1.0 + eps)    # running_var=1, gamma=1
    bn_beta = 1e-4                           # BN bias filled with 0.0001

    def make_branch(ks, conv1_has_bias):
        # Conv2d weight (Cm, C, 3, 3) -> (3, 3, C, Cm)
        w1 = jnp.transpose(kaiming(ks[0], (Cm, C, 3, 3), C * 9), (2, 3, 1, 0))
        b1c = (jax.random.normal(ks[1], (Cm,), jnp.float32) * 0.05
               if conv1_has_bias else jnp.zeros((Cm,), jnp.float32))
        s1 = jnp.full((1, Cm), bn_scale, jnp.float32)
        b1 = (b1c * bn_scale + bn_beta).reshape(1, Cm).astype(jnp.float32)
        # ConvTranspose2d weight (Cm, Cm, 2, 2) -> (2, 2, Cm_in, Cm_out)
        w2 = jnp.transpose(kaiming(ks[2], (Cm, Cm, 2, 2), Cm * 4), (2, 3, 0, 1))
        b2c = jax.random.normal(ks[3], (Cm,), jnp.float32) * 0.05
        s2 = jnp.full((1, Cm), bn_scale, jnp.float32)
        b2 = (b2c * bn_scale + bn_beta).reshape(1, Cm).astype(jnp.float32)
        # ConvTranspose2d weight (Cm, 1, 2, 2) -> (2, 2, Cm, 1)
        w3 = jnp.transpose(kaiming(ks[4], (Cm, 1, 2, 2), 4), (2, 3, 0, 1))
        b3 = jax.random.normal(ks[5], (1, 1), jnp.float32) * 0.05
        return dict(w1=w1, s1=s1, b1=b1, w2=w2, s2=s2, b2=b2, w3=w3, b3=b3)

    return dict(binarize=make_branch(keys[0:6], conv1_has_bias=True),
                thresh=make_branch(keys[6:12], conv1_has_bias=False))


if __name__ == "__main__":
    key = jax.random.PRNGKey(0)
    kx, kp = jax.random.split(key)
    N, C, H, W = 2, 16, 16, 16              # in_channels=16 -> inner Cm=4
    x = jax.random.normal(kx, (N, C, H, W), jnp.float32)
    params = init_dbhead_params(kp, C)

    y_ref = db_head_reference(x, params)    # f32 reference

    # row_tile=8 exercises the 2x2 grid + non-trivial halo rows; None = auto-pick.
    for rt in (8, None):
        fwd = jax.jit(functools.partial(db_head_forward, row_tile=rt))
        y = fwd(x, params)
        jax.block_until_ready(y)

        assert y.shape == (N, 2, 4 * H, 4 * W), y.shape
        assert bool(jnp.all(jnp.isfinite(y)))
        assert bool(jnp.all((y >= 0.0) & (y <= 1.0)))     # sigmoid outputs
        max_err = float(jnp.max(jnp.abs(y - y_ref)))
        assert max_err < 0.1, (rt, max_err)               # bf16 matmul tolerance

    print("KERNEL_OK")
</pallas_src>

<mosaic_0001>
module attributes {stable_mosaic.version = 11 : i64} {
  func.func @_db_head_kernel(%arg0: i32, %arg1: i32, %arg2: memref<1x8x18x16xbf16, #tpu.memory_space<vmem>>, %arg3: memref<1x1x2x18x16xbf16, #tpu.memory_space<vmem>>, %arg4: memref<3x16x24xbf16, #tpu.memory_space<vmem>>, %arg5: memref<1x8xf32, #tpu.memory_space<vmem>>, %arg6: memref<1x8xf32, #tpu.memory_space<vmem>>, %arg7: memref<8x32xbf16, #tpu.memory_space<vmem>>, %arg8: memref<1x32xf32, #tpu.memory_space<vmem>>, %arg9: memref<1x32xf32, #tpu.memory_space<vmem>>, %arg10: memref<32x32xbf16, #tpu.memory_space<vmem>>, %arg11: memref<1x32xf32, #tpu.memory_space<vmem>>, %arg12: memref<1x1x128x32xbf16, #tpu.memory_space<vmem>>) attributes {dimension_semantics = [#tpu.dimension_semantics<parallel>, #tpu.dimension_semantics<parallel>], iteration_bounds = array<i64: 2, 2>, scalar_prefetch = 0 : i64, scratch_operands = 0 : i64, tpu.core_type = #tpu.core_type<tc>, window_params = [{transform_indices = @transform_0, window_bounds = array<i64: 1, 8, 18, 16>}, {transform_indices = @transform_1, window_bounds = array<i64: 1, 1, 2, 18, 16>}, {pipeline_mode = #tpu.pipeline_mode<synchronous>, transform_indices = @transform_2, window_bounds = array<i64: 3, 16, 24>}, {pipeline_mode = #tpu.pipeline_mode<synchronous>, transform_indices = @transform_3, window_bounds = array<i64: 1, 8>}, {pipeline_mode = #tpu.pipeline_mode<synchronous>, transform_indices = @transform_4, window_bounds = array<i64: 1, 8>}, {pipeline_mode = #tpu.pipeline_mode<synchronous>, transform_indices = @transform_5, window_bounds = array<i64: 8, 32>}, {pipeline_mode = #tpu.pipeline_mode<synchronous>, transform_indices = @transform_6, window_bounds = array<i64: 1, 32>}, {pipeline_mode = #tpu.pipeline_mode<synchronous>, transform_indices = @transform_7, window_bounds = array<i64: 1, 32>}, {pipeline_mode = #tpu.pipeline_mode<synchronous>, transform_indices = @transform_8, window_bounds = array<i64: 32, 32>}, {pipeline_mode = #tpu.pipeline_mode<synchronous>, transform_indices = @transform_9, window_bounds = array<i64: 1, 32>}, {transform_indices = @transform_10, window_bounds = array<i64: 1, 1, 128, 32>}]} {
    %c0 = arith.constant 0 : index
    %c0_0 = arith.constant 0 : index
    %c0_1 = arith.constant 0 : index
    %c0_2 = arith.constant 0 : index
    %c0_3 = arith.constant 0 : index
    %0 = vector.load %arg3[%c0, %c0_0, %c0_1, %c0_2, %c0_3] : memref<1x1x2x18x16xbf16, #tpu.memory_space<vmem>>, vector<1x1x2x18x16xbf16>
    %1 = vector.shape_cast %0 : vector<1x1x2x18x16xbf16> to vector<2x18x16xbf16>
    %2 = vector.extract_strided_slice %1 {offsets = [0, 0, 0], sizes = [1, 18, 16], strides = [1, 1, 1]} : vector<2x18x16xbf16> to vector<1x18x16xbf16>
    %c0_4 = arith.constant 0 : index
    %c0_5 = arith.constant 0 : index
    %c0_6 = arith.constant 0 : index
    %c0_7 = arith.constant 0 : index
    %3 = vector.load %arg2[%c0_4, %c0_5, %c0_6, %c0_7] : memref<1x8x18x16xbf16, #tpu.memory_space<vmem>>, vector<1x8x18x16xbf16>
    %4 = vector.shape_cast %3 : vector<1x8x18x16xbf16> to vector<8x18x16xbf16>
    %5 = vector.extract_strided_slice %1 {offsets = [1, 0, 0], sizes = [1, 18, 16], strides = [1, 1, 1]} : vector<2x18x16xbf16> to vector<1x18x16xbf16>
    %6 = tpu.concatenate %2, %4, %5 in 0 : vector<1x18x16xbf16>, vector<8x18x16xbf16>, vector<1x18x16xbf16> -> vector<10x18x16xbf16>
    %cst = arith.constant 0.000000e+00 : f32
    %7 = vector.broadcast %cst : f32 to vector<8x16x8xf32>
    %8 = vector.extract_strided_slice %6 {offsets = [0, 0, 0], sizes = [8, 18, 16], strides = [1, 1, 1]} : vector<10x18x16xbf16> to vector<8x18x16xbf16>
    %9 = vector.shape_cast %8 : vector<8x18x16xbf16> to vector<144x16xbf16>
    %c0_8 = arith.constant 0 : index
    %c0_9 = arith.constant 0 : index
    %c0_10 = arith.constant 0 : index
    %10 = vector.load %arg4[%c0_8, %c0_9, %c0_10] : memref<3x16x24xbf16, #tpu.memory_space<vmem>>, vector<1x16x24xbf16>
    %11 = vector.shape_cast %10 : vector<1x16x24xbf16> to vector<16x24xbf16>
    %cst_11 = arith.constant dense<0.000000e+00> : vector<144x24xf32>
    %12 = tpu.matmul %9, %11, %cst_11 {dimension_numbers = #tpu.dot_dimension_numbers<[1], [0], [0], [1], [0, 0, 1, 1], [], []>} : vector<144x16xbf16>, vector<16x24xbf16>, vector<144x24xf32> -> vector<144x24xf32>
    %13 = vector.shape_cast %12 : vector<144x24xf32> to vector<8x18x24xf32>
    %14 = vector.extract_strided_slice %13 {offsets = [0, 0, 0], sizes = [8, 16, 8], strides = [1, 1, 1]} : vector<8x18x24xf32> to vector<8x16x8xf32>
    %15 = arith.addf %7, %14 : vector<8x16x8xf32>
    %16 = vector.extract_strided_slice %13 {offsets = [0, 1, 8], sizes = [8, 16, 8], strides = [1, 1, 1]} : vector<8x18x24xf32> to vector<8x16x8xf32>
    %17 = arith.addf %15, %16 : vector<8x16x8xf32>
    %18 = vector.extract_strided_slice %13 {offsets = [0, 2, 16], sizes = [8, 16, 8], strides = [1, 1, 1]} : vector<8x18x24xf32> to vector<8x16x8xf32>
    %19 = arith.addf %17, %18 : vector<8x16x8xf32>
    %20 = vector.extract_strided_slice %6 {offsets = [1, 0, 0], sizes = [8, 18, 16], strides = [1, 1, 1]} : vector<10x18x16xbf16> to vector<8x18x16xbf16>
    %21 = vector.shape_cast %20 : vector<8x18x16xbf16> to vector<144x16xbf16>
    %c1 = arith.constant 1 : index
    %c0_12 = arith.constant 0 : index
    %c0_13 = arith.constant 0 : index
    %22 = vector.load %arg4[%c1, %c0_12, %c0_13] : memref<3x16x24xbf16, #tpu.memory_space<vmem>>, vector<1x16x24xbf16>
    %23 = vector.shape_cast %22 : vector<1x16x24xbf16> to vector<16x24xbf16>
    %cst_14 = arith.constant dense<0.000000e+00> : vector<144x24xf32>
    %24 = tpu.matmul %21, %23, %cst_14 {dimension_numbers = #tpu.dot_dimension_numbers<[1], [0], [0], [1], [0, 0, 1, 1], [], []>} : vector<144x16xbf16>, vector<16x24xbf16>, vector<144x24xf32> -> vector<144x24xf32>
    %25 = vector.shape_cast %24 : vector<144x24xf32> to vector<8x18x24xf32>
    %26 = vector.extract_strided_slice %25 {offsets = [0, 0, 0], sizes = [8, 16, 8], strides = [1, 1, 1]} : vector<8x18x24xf32> to vector<8x16x8xf32>
    %27 = arith.addf %19, %26 : vector<8x16x8xf32>
    %28 = vector.extract_strided_slice %25 {offsets = [0, 1, 8], sizes = [8, 16, 8], strides = [1, 1, 1]} : vector<8x18x24xf32> to vector<8x16x8xf32>
    %29 = arith.addf %27, %28 : vector<8x16x8xf32>
    %30 = vector.extract_strided_slice %25 {offsets = [0, 2, 16], sizes = [8, 16, 8], strides = [1, 1, 1]} : vector<8x18x24xf32> to vector<8x16x8xf32>
    %31 = arith.addf %29, %30 : vector<8x16x8xf32>
    %32 = vector.extract_strided_slice %6 {offsets = [2, 0, 0], sizes = [8, 18, 16], strides = [1, 1, 1]} : vector<10x18x16xbf16> to vector<8x18x16xbf16>
    %33 = vector.shape_cast %32 : vector<8x18x16xbf16> to vector<144x16xbf16>
    %c2 = arith.constant 2 : index
    %c0_15 = arith.constant 0 : index
    %c0_16 = arith.constant 0 : index
    %34 = vector.load %arg4[%c2, %c0_15, %c0_16] : memref<3x16x24xbf16, #tpu.memory_space<vmem>>, vector<1x16x24xbf16>
    %35 = vector.shape_cast %34 : vector<1x16x24xbf16> to vector<16x24xbf16>
    %cst_17 = arith.constant dense<0.000000e+00> : vector<144x24xf32>
    %36 = tpu.matmul %33, %35, %cst_17 {dimension_numbers = #tpu.dot_dimension_numbers<[1], [0], [0], [1], [0, 0, 1, 1], [], []>} : vector<144x16xbf16>, vector<16x24xbf16>, vector<144x24xf32> -> vector<144x24xf32>
    %37 = vector.shape_cast %36 : vector<144x24xf32> to vector<8x18x24xf32>
    %38 = vector.extract_strided_slice %37 {offsets = [0, 0, 0], sizes = [8, 16, 8], strides = [1, 1, 1]} : vector<8x18x24xf32> to vector<8x16x8xf32>
    %39 = arith.addf %31, %38 : vector<8x16x8xf32>
    %40 = vector.extract_strided_slice %37 {offsets = [0, 1, 8], sizes = [8, 16, 8], strides = [1, 1, 1]} : vector<8x18x24xf32> to vector<8x16x8xf32>
    %41 = arith.addf %39, %40 : vector<8x16x8xf32>
    %42 = vector.extract_strided_slice %37 {offsets = [0, 2, 16], sizes = [8, 16, 8], strides = [1, 1, 1]} : vector<8x18x24xf32> to vector<8x16x8xf32>
    %43 = arith.addf %41, %42 : vector<8x16x8xf32>
    %44 = vector.shape_cast %43 : vector<8x16x8xf32> to vector<128x8xf32>
    %c0_18 = arith.constant 0 : index
    %c0_19 = arith.constant 0 : index
    %45 = vector.load %arg5[%c0_18, %c0_19] : memref<1x8xf32, #tpu.memory_space<vmem>>, vector<1x8xf32>
    %46 = vector.broadcast %45 : vector<1x8xf32> to vector<128x8xf32>
    %47 = arith.mulf %44, %46 : vector<128x8xf32>
    %c0_20 = arith.constant 0 : index
    %c0_21 = arith.constant 0 : index
    %48 = vector.load %arg6[%c0_20, %c0_21] : memref<1x8xf32, #tpu.memory_space<vmem>>, vector<1x8xf32>
    %49 = vector.broadcast %48 : vector<1x8xf32> to vector<128x8xf32>
    %50 = arith.addf %47, %49 : vector<128x8xf32>
    %cst_22 = arith.constant 0.000000e+00 : f32
    %51 = vector.broadcast %cst_22 : f32 to vector<128x8xf32>
    %52 = arith.maximumf %50, %51 : vector<128x8xf32>
    %53 = arith.truncf %52 : vector<128x8xf32> to vector<128x8xbf16>
    %c0_23 = arith.constant 0 : index
    %c0_24 = arith.constant 0 : index
    %54 = vector.load %arg7[%c0_23, %c0_24] : memref<8x32xbf16, #tpu.memory_space<vmem>>, vector<8x32xbf16>
    %cst_25 = arith.constant dense<0.000000e+00> : vector<128x32xf32>
    %55 = tpu.matmul %53, %54, %cst_25 {dimension_numbers = #tpu.dot_dimension_numbers<[1], [0], [0], [1], [0, 0, 1, 1], [], []>} : vector<128x8xbf16>, vector<8x32xbf16>, vector<128x32xf32> -> vector<128x32xf32>
    %c0_26 = arith.constant 0 : index
    %c0_27 = arith.constant 0 : index
    %56 = vector.load %arg8[%c0_26, %c0_27] : memref<1x32xf32, #tpu.memory_space<vmem>>, vector<1x32xf32>
    %57 = vector.broadcast %56 : vector<1x32xf32> to vector<128x32xf32>
    %58 = arith.mulf %55, %57 : vector<128x32xf32>
    %c0_28 = arith.constant 0 : index
    %c0_29 = arith.constant 0 : index
    %59 = vector.load %arg9[%c0_28, %c0_29] : memref<1x32xf32, #tpu.memory_space<vmem>>, vector<1x32xf32>
    %60 = vector.broadcast %59 : vector<1x32xf32> to vector<128x32xf32>
    %61 = arith.addf %58, %60 : vector<128x32xf32>
    %cst_30 = arith.constant 0.000000e+00 : f32
    %62 = vector.broadcast %cst_30 : f32 to vector<128x32xf32>
    %63 = arith.maximumf %61, %62 : vector<128x32xf32>
    %64 = arith.truncf %63 : vector<128x32xf32> to vector<128x32xbf16>
    %c0_31 = arith.constant 0 : index
    %c0_32 = arith.constant 0 : index
    %65 = vector.load %arg10[%c0_31, %c0_32] : memref<32x32xbf16, #tpu.memory_space<vmem>>, vector<32x32xbf16>
    %cst_33 = arith.constant dense<0.000000e+00> : vector<128x32xf32>
    %66 = tpu.matmul %64, %65, %cst_33 {dimension_numbers = #tpu.dot_dimension_numbers<[1], [0], [0], [1], [0, 0, 1, 1], [], []>} : vector<128x32xbf16>, vector<32x32xbf16>, vector<128x32xf32> -> vector<128x32xf32>
    %c0_34 = arith.constant 0 : index
    %c0_35 = arith.constant 0 : index
    %67 = vector.load %arg11[%c0_34, %c0_35] : memref<1x32xf32, #tpu.memory_space<vmem>>, vector<1x32xf32>
    %68 = vector.broadcast %67 : vector<1x32xf32> to vector<128x32xf32>
    %69 = arith.addf %66, %68 : vector<128x32xf32>
    %70 = arith.negf %69 : vector<128x32xf32>
    %71 = math.exp %70 : vector<128x32xf32>
    %cst_36 = arith.constant 1.000000e+00 : f32
    %72 = vector.broadcast %cst_36 : f32 to vector<128x32xf32>
    %73 = arith.addf %72, %71 : vector<128x32xf32>
    %74 = arith.divf %72, %73 : vector<128x32xf32>
    %75 = arith.truncf %74 : vector<128x32xf32> to vector<128x32xbf16>
    %c0_37 = arith.constant 0 : index
    %c0_38 = arith.constant 0 : index
    %c0_39 = arith.constant 0 : index
    %c0_40 = arith.constant 0 : index
    %76 = vector.load %arg12[%c0_37, %c0_38, %c0_39, %c0_40] : memref<1x1x128x32xbf16, #tpu.memory_space<vmem>>, vector<1x1x128x32xbf16>
    %77 = vector.shape_cast %76 : vector<1x1x128x32xbf16> to vector<128x32xbf16>
    %78 = vector.shape_cast %75 : vector<128x32xbf16> to vector<1x1x128x32xbf16>
    tpu.vector_store %arg12[%c0_37, %c0_38, %c0_39, %c0_40], %78 {strides = array<i32>} : memref<1x1x128x32xbf16, #tpu.memory_space<vmem>>, vector<1x1x128x32xbf16>,
    return
  }
  func.func @transform_0(%arg0: i32, %arg1: i32) -> (i32, i32, i32, i32) {
    %c0_i32 = arith.constant 0 : i32
    %c0_i32_0 = arith.constant 0 : i32
    %c0_i32_1 = arith.constant 0 : i32
    return %arg0, %arg1, %c0_i32, %c0_i32_0 : i32, i32, i32, i32
  }
  func.func @transform_1(%arg0: i32, %arg1: i32) -> (i32, i32, i32, i32, i32) {
    %c0_i32 = arith.constant 0 : i32
    %c0_i32_0 = arith.constant 0 : i32
    %c0_i32_1 = arith.constant 0 : i32
    %c0_i32_2 = arith.constant 0 : i32
    return %arg0, %arg1, %c0_i32, %c0_i32_0, %c0_i32_1 : i32, i32, i32, i32, i32
  }
  func.func @transform_2(%arg0: i32, %arg1: i32) -> (i32, i32, i32) {
    %c0_i32 = arith.constant 0 : i32
    %c0_i32_0 = arith.constant 0 : i32
    %c0_i32_1 = arith.constant 0 : i32
    %c0_i32_2 = arith.constant 0 : i32
    return %c0_i32, %c0_i32_0, %c0_i32_1 : i32, i32, i32
  }
  func.func @transform_3(%arg0: i32, %arg1: i32) -> (i32, i32) {
    %c0_i32 = arith.constant 0 : i32
    %c0_i32_0 = arith.constant 0 : i32
    %c0_i32_1 = arith.constant 0 : i32
    return %c0_i32, %c0_i32_0 : i32, i32
  }
  func.func @transform_4(%arg0: i32, %arg1: i32) -> (i32, i32) {
    %c0_i32 = arith.constant 0 : i32
    %c0_i32_0 = arith.constant 0 : i32
    %c0_i32_1 = arith.constant 0 : i32
    return %c0_i32, %c0_i32_0 : i32, i32
  }
  func.func @transform_5(%arg0: i32, %arg1: i32) -> (i32, i32) {
    %c0_i32 = arith.constant 0 : i32
    %c0_i32_0 = arith.constant 0 : i32
    %c0_i32_1 = arith.constant 0 : i32
    return %c0_i32, %c0_i32_0 : i32, i32
  }
  func.func @transform_6(%arg0: i32, %arg1: i32) -> (i32, i32) {
    %c0_i32 = arith.constant 0 : i32
    %c0_i32_0 = arith.constant 0 : i32
    %c0_i32_1 = arith.constant 0 : i32
    return %c0_i32, %c0_i32_0 : i32, i32
  }
  func.func @transform_7(%arg0: i32, %arg1: i32) -> (i32, i32) {
    %c0_i32 = arith.constant 0 : i32
    %c0_i32_0 = arith.constant 0 : i32
    %c0_i32_1 = arith.constant 0 : i32
    return %c0_i32, %c0_i32_0 : i32, i32
  }
  func.func @transform_8(%arg0: i32, %arg1: i32) -> (i32, i32) {
    %c0_i32 = arith.constant 0 : i32
    %c0_i32_0 = arith.constant 0 : i32
    %c0_i32_1 = arith.constant 0 : i32
    return %c0_i32, %c0_i32_0 : i32, i32
  }
  func.func @transform_9(%arg0: i32, %arg1: i32) -> (i32, i32) {
    %c0_i32 = arith.constant 0 : i32
    %c0_i32_0 = arith.constant 0 : i32
    %c0_i32_1 = arith.constant 0 : i32
    return %c0_i32, %c0_i32_0 : i32, i32
  }
  func.func @transform_10(%arg0: i32, %arg1: i32) -> (i32, i32, i32, i32) {
    %c0_i32 = arith.constant 0 : i32
    %c0_i32_0 = arith.constant 0 : i32
    %c0_i32_1 = arith.constant 0 : i32
    return %arg0, %arg1, %c0_i32, %c0_i32_0 : i32, i32, i32, i32
  }
}

</mosaic_0001>

<bundles_post_ra>
// kernel: db_head_forward.1
= control target key start
LH: loop header
LB: loop body
LE: loop exit
PB: predicated region body
PF: predicated region fallthrough
CT: control target
= control target key end

     0   :  { %s5481_s13 = smov 0   ;;  %s5483_s14 = smov 0   ;;  %s9159_s0 = inlined_call_operand.vmem [shape: bf16[2,16,18,16], index: 0, kind: input, shape index: {}]   ;;  %s9160_s1 = inlined_call_operand.vmem [shape: bf16[2,2,2,18,16], index: 1, kind: input, shape index: {}]   ;;  %s9161_s2 = inlined_call_operand.vmem [shape: bf16[3,16,24], index: 2, kind: input, shape index: {}]   ;;  %s9162_s3 = inlined_call_operand.vmem [shape: f32[1,8], index: 3, kind: input, shape index: {}]   ;;  %s9163_s4 = inlined_call_operand.vmem [shape: f32[1,8], index: 4, kind: input, shape index: {}]   ;;  %s9164_s5 = inlined_call_operand.vmem [shape: bf16[8,32], index: 5, kind: input, shape index: {}]   ;;  %s9165_s6 = inlined_call_operand.vmem [shape: f32[1,32], index: 6, kind: input, shape index: {}]   ;;  %s9166_s7 = inlined_call_operand.vmem [shape: f32[1,32], index: 7, kind: input, shape index: {}]   ;;  %s9167_s8 = inlined_call_operand.vmem [shape: bf16[32,32], index: 8, kind: input, shape index: {}]   ;;  %s9168_s9 = inlined_call_operand.vmem [shape: f32[1,32], index: 9, kind: input, shape index: {}]   ;;  %s9169_s10 = inlined_call_operand.vmem [shape: bf16[2,2,128,32], index: 10, kind: output, shape index: {}]  }
   0x1   :  { %s5485_s15 = smov 0   ;;  %s5487_s16 = smov 0  }
   0x2   :  { %s5489_s17 = smov 0  }
   0x3 LB: > { %s29_s18 = sadd.s32 1, %s5414_s15  ;;  %s32_s19 = sadd.s32 1, %s5418_s16  ;;  %s5422_s17 = sphi %s5489_s17, %s20_s17   ;;  %s5418_s16 = sphi %s5487_s16, %s10300_s16   ;;  %s5414_s15 = sphi %s5485_s15, %s10299_s15   ;;  %s5410_s14 = sphi %s5483_s14, %s10298_s14   ;;  %s5406_s13 = sphi %s5481_s13, %s10297_s13  }
   0x4   : > { %p30_p0 = scmp.ge.s32.totalorder %s29_s18, 2  ;;  %p5141_p1 = scmp.ge.s32.totalorder %s5422_s17, 1 }
   0x5   : > { %p350_p2 = scmp.lt.s32.totalorder %s5422_s17, 5 }
   0x6   : > { %s10302_s18 = smov (%p30_p0, %s29_s18), 0  ;;  %s10304_s19 = smov (!%p30_p0, %s32_s19), %s5418_s16 }
   0x7   : > { %p351_p3 = pnand %p5141_p1, %p350_p2  ;;  %p34_p4 = scmp.ge.s32.totalorder %s10304_s19, 2 }
   0x9   : > { %s10306_s19 = smov (%p34_p4, %s10304_s19), 0  ;;  %354 = sbr.rel (%p351_p3) target bundleno = 1647 (0x66f), region = 60 }
   0xe   : > { %v5257_v0 = vld [vmem:[%s9161_s2] sm:$0xff]  ;;  %p407_p5 = scmp.lt.s32.totalorder %s5410_s14, 1  ;;  %p419_p6 = scmp.lt.s32.totalorder %s5406_s13, 1  ;;  %vm514_vm0 = vcmask 1040384   ;;  %vm518_vm1 = vcmask 1041409   ;;  %vm522_vm2 = vcmask 1042434  }
   0xf   : > { %s5142_s22 = sshll.u32 %s5406_s13, 3  ;;  %904 = vmatpush.bf16.msra.mxu0 %v5257_v0  ;;  %5262 = vmatpush.bf16.msra.mxu1 %v5257_v0  ;;  %vm526_vm3 = vcmask 1043459   ;;  %vm878_vm4 = vcmask 130048   ;;  %vm1135_vm5 = vmor %vm514_vm0, %vm522_vm2  ;;  %vm1136_vm6 = vcmask 1044484   ;;  %vm1138_vm8 = vcmask 1046534  }
  0x10   : > { %s10308_s14 = smov (!%p407_p5, %s5410_s14), 1  ;;  %s10310_s13 = smov (!%p419_p6, %s5406_s13), 1  ;;  %5263 = vmatpush.bf16.msra.mxu2 %v5257_v0  ;;  %vm1137_vm7 = vmor %vm1135_vm5, %vm1136_vm6  ;;  %vm4473_vm10 = vcmask 1043456   ;;  %vm4448_vm11 = vcmask 64512   ;;  %vm4610_vm12 = vcmask 261120  }
  0x11   : > { %s5268_s23 = smul.u32 12, %s10308_s14  ;;  %p409_p7 = scmp.lt.s32.totalorder %s5142_s22, 15  ;;  %vm5875_vm9 = vmor %vm1137_vm7, %vm1138_vm8 }
  0x12   : > { %s5267_s24 = smul.u32 6, %s10310_s13  ;;  %s5146_s29 = sshll.u32 %s10308_s14, 5 }
  0x13   : > { %s10312_s22 = smov (!%p409_p7, %s5142_s22), 15  ;;  %s5266_s26 = smul.u32 48, %s10308_s14 }
  0x14   : > { %s423_s25 = sadd.s32 %s5268_s23, %s5267_s24  ;;  %s5265_s28 = smul.u32 3, %s10312_s22 }
  0x15   : > { %s5144_s27 = sshll.u32 %s423_s25, 2 }
  0x16   : > { %s5524_s11 = scalar_lea.vmem %s9160_s1, %s5144_s27  ;;  %s413_s12 = sadd.s32 %s5266_s26, %s5265_s28 }
  0x17   : > { %v436_v1 = vld [vmem:[%s5524_s11] sm:$0xf]  ;;  %v437_v2 = vld [vmem:[%s5524_s11 + $0x4] sm:$0xf]  ;;  %s5143_s20 = sshll.u32 %s413_s12, 2  ;;  %s5424_s26 = smov 112  }
  0x18   : > { %v490_v3 = vrot.slane %v436_v1, 3  ;;  %v491_v4 = vrot.slane %v437_v2, 3  ;;  %s5536_s23 = scalar_lea.vmem %s9159_s0, %s5143_s20  ;;  %v438_v20 = vld [vmem:[%s5524_s11 + $0x8] sm:$0x1]  ;;  %s5425_s27 = smov 120  }
  0x19   : > { %v442_v19 = vld [vmem:[%s5536_s23] sm:$0xf]  ;;  %v443_v22 = vld [vmem:[%s5536_s23 + $0x4] sm:$0xf]  ;;  %v492_v23 = vrot.slane %v438_v20, 3 }
  0x1a   : > { %v517_v5 = vsel %vm514_vm0, %v436_v1, %v490_v3  ;;  %v519_v6 = vsel %vm518_vm1, %v436_v1, %v490_v3  ;;  %v523_v7 = vsel %vm522_vm2, %v436_v1, %v490_v3  ;;  %v527_v8 = vsel %vm526_vm3, %v436_v1, %v490_v3  ;;  %v445_v39 = vld [vmem:[%s5536_s23 + $0xc] sm:$0xf]  ;;  %v444_v40 = vld [vmem:[%s5536_s23 + $0x8] sm:$0x1]  ;;  %v446_v42 = vld [vmem:[%s5536_s23 + $0x10] sm:$0xf] }
  0x1b   : > { %v521_v9 = vrot.slane %v519_v6, 1  ;;  %v525_v10 = vrot.slane %v523_v7, 2  ;;  %v529_v11 = vrot.slane %v527_v8, 3  ;;  %v532_v12 = vsel %vm514_vm0, %v437_v2, %v491_v4  ;;  %736 = vst [vmem:[#allocation1] ss:$9 sm:$0xff] %v517_v5 }
  0x1c   : > { %v533_v13 = vsel %vm518_vm1, %v437_v2, %v491_v4  ;;  %v536_v14 = vsel %vm522_vm2, %v437_v2, %v491_v4  ;;  %v539_v15 = vsel %vm526_vm3, %v437_v2, %v491_v4  ;;  %747 = vst [vmem:[#allocation1 + $0x4] ss:$9 sm:$0xff] %v532_v12  ;;  %v493_v21 = vrot.slane %v442_v19, 3  ;;  %v448_v59 = vld [vmem:[%s5536_s23 + $0x18] sm:$0xf] }
  0x1d   : > { %v535_v16 = vrot.slane %v533_v13, 1  ;;  %v538_v17 = vrot.slane %v536_v14, 2  ;;  %739 = vst [vmem:[#allocation1 + $0x1] ss:$9 sm:$0xff] %v521_v9  ;;  %v541_v18 = vrot.slane %v539_v15, 3  ;;  %v494_v24 = vrot.slane %v443_v22, 3 }
  0x1e   : > { %742 = vst [vmem:[#allocation1 + $0x2] ss:$9 sm:$0xff] %v525_v10  ;;  %v5545_v25 = vsel %vm518_vm1, %v442_v19, %v493_v21  ;;  %v5548_v26 = vsel %vm522_vm2, %v442_v19, %v493_v21  ;;  %v544_v27 = vsel %vm514_vm0, %v438_v20, %v492_v23  ;;  %v5552_v28 = vsel %vm526_vm3, %v442_v19, %v493_v21  ;;  %v447_v60 = vld [vmem:[%s5536_s23 + $0x14] sm:$0x1]  ;;  %v449_v2 = vld [vmem:[%s5536_s23 + $0x1c] sm:$0xf] }
  0x1f   : > { %745 = vst [vmem:[#allocation1 + $0x3] ss:$9 sm:$0xff] %v529_v11  ;;  %v5555_v29 = vsel %vm514_vm0, %v442_v19, %v493_v21  ;;  %v9175_v30 = vrot.slane %v5545_v25, 1  ;;  %v9174_v32 = vrot.slane %v5548_v26, 2  ;;  %v5560_v33 = vsel %vm518_vm1, %v443_v22, %v494_v24  ;;  %v451_v15 = vld [vmem:[%s5536_s23 + $0x24] sm:$0xf] }
  0x20   : > { %750 = vst [vmem:[#allocation1 + $0x5] ss:$9 sm:$0xff] %v535_v16  ;;  %v9173_v34 = vrot.slane %v5552_v28, 3  ;;  %v5565_v35 = vsel %vm522_vm2, %v443_v22, %v494_v24  ;;  %v5569_v36 = vsel %vm514_vm0, %v443_v22, %v494_v24  ;;  %v9172_v37 = vrot.slane %v5560_v33, 1  ;;  %v450_v16 = vld [vmem:[%s5536_s23 + $0x20] sm:$0x1] }
  0x21   : > { %753 = vst [vmem:[#allocation1 + $0x6] ss:$9 sm:$0xff] %v538_v17  ;;  %v9171_v38 = vrot.slane %v5565_v35, 2  ;;  %v496_v41 = vrot.slane %v445_v39, 3  ;;  %v5588_v43 = vsel %vm526_vm3, %v443_v22, %v494_v24  ;;  %v495_v44 = vrot.slane %v444_v40, 3 }
  0x22   : > { %756 = vst [vmem:[#allocation1 + $0x7] ss:$9 sm:$0xff] %v541_v18  ;;  %v497_v45 = vrot.slane %v446_v42, 3  ;;  %v9170_v46 = vrot.slane %v5588_v43, 3  ;;  %v499_v61 = vrot.slane %v448_v59, 3  ;;  %v498_v0 = vrot.slane %v447_v60, 3 }
  0x23   : > { %v575_v47 = vsel %vm518_vm1, %v445_v39, %v496_v41  ;;  %v578_v48 = vsel %vm522_vm2, %v445_v39, %v496_v41  ;;  %v5594_v49 = vsel %vm514_vm0, %v444_v40, %v495_v44  ;;  %v581_v50 = vsel %vm526_vm3, %v445_v39, %v496_v41 }
  0x24   : > { %v5598_v52 = vsel %vm514_vm0, %v445_v39, %v496_v41  ;;  %v5600_v53 = vrot.slane %v575_v47, 1  ;;  %v5602_v54 = vrot.slane %v578_v48, 2  ;;  %v587_v55 = vsel %vm518_vm1, %v446_v42, %v497_v45 }
  0x25   : > { %v5608_v56 = vrot.slane %v581_v50, 3  ;;  %v5613_v57 = vsel %vm514_vm0, %v446_v42, %v497_v45  ;;  %v5615_v58 = vrot.slane %v587_v55, 1  ;;  %v590_v62 = vsel %vm522_vm2, %v446_v42, %v497_v45  ;;  %v453_v55 = vld [vmem:[%s5536_s23 + $0x2c] sm:$0x1] }
  0x26   : > { %v593_v63 = vsel %vm526_vm3, %v446_v42, %v497_v45  ;;  %v5626_v1 = vrot.slane %v590_v62, 2  ;;  %v602_v4 = vsel %vm518_vm1, %v448_v59, %v499_v61  ;;  %v605_v5 = vsel %vm522_vm2, %v448_v59, %v499_v61  ;;  %v452_v45 = vld [vmem:[%s5536_s23 + $0x28] sm:$0xf] }
  0x27   : > { %v5629_v3 = vrot.slane %v593_v63, 3  ;;  %v5634_v7 = vsel %vm514_vm0, %v447_v60, %v498_v0  ;;  %v608_v8 = vsel %vm526_vm3, %v448_v59, %v499_v61  ;;  %v500_v9 = vrot.slane %v449_v2, 3 }
  0x28   : > { %v5638_v10 = vsel %vm514_vm0, %v448_v59, %v499_v61  ;;  %v5640_v11 = vrot.slane %v602_v4, 1  ;;  %v5643_v12 = vrot.slane %v605_v5, 2  ;;  %v5647_v13 = vrot.slane %v608_v8, 3  ;;  %v5258_v5 = vld [vmem:[%s9161_s2 + $0x8] sm:$0xff] }
  0x29   : > { %v757_v31 = vld [vmem:[#allocation1] sm:$0xff]  ;;  %v5652_v14 = vsel %vm514_vm0, %v449_v2, %v500_v9  ;;  %v614_v17 = vsel %vm518_vm1, %v449_v2, %v500_v9  ;;  %v502_v18 = vrot.slane %v451_v15, 3  ;;  %v617_v19 = vsel %vm522_vm2, %v449_v2, %v500_v9  ;;  %2013 = vmatpush.bf16.msrb.mxu1 %v5258_v5 }
  0x2a   : > { %5152 = vmatmul.msk.bf16.vlgmr.msra.gmra.mxu0 %vm878_vm4, %v757_v31  ;;  %758 = vst [vmem:[#allocation1] ss:$9 sm:$0xff] %v544_v27  ;;  %v620_v20 = vsel %vm526_vm3, %v449_v2, %v500_v9  ;;  %v501_v21 = vrot.slane %v450_v16, 3  ;;  %v5663_v22 = vrot.slane %v614_v17, 1  ;;  %v5665_v23 = vrot.slane %v617_v19, 2 }
  0x2b   : > { %759 = vst [vmem:[#allocation1 + $0x1] ss:$9 sm:$0xff] %v5555_v29  ;;  %v5667_v24 = vrot.slane %v620_v20, 3  ;;  %v629_v27 = vsel %vm518_vm1, %v451_v15, %v502_v18  ;;  %v632_v39 = vsel %vm522_vm2, %v451_v15, %v502_v18  ;;  %v635_v41 = vsel %vm526_vm3, %v451_v15, %v502_v18  ;;  %v455_v19 = vld [vmem:[%s5536_s23 + $0x34] sm:$0xf] }
  0x2c   : > { %761 = vst [vmem:[#allocation1 + $0x2] ss:$9 sm:$0xff] %v9175_v30  ;;  %v5672_v40 = vsel %vm514_vm0, %v450_v16, %v501_v21  ;;  %v5677_v42 = vsel %vm514_vm0, %v451_v15, %v502_v18  ;;  %v5679_v44 = vrot.slane %v629_v27, 1  ;;  %v5683_v47 = vrot.slane %v632_v39, 2  ;;  %v457_v27 = vld [vmem:[%s5536_s23 + $0x3c] sm:$0xf] }
  0x2d   : > { %763 = vst [vmem:[#allocation1 + $0x3] ss:$9 sm:$0xff] %v9174_v32  ;;  %v5687_v48 = vrot.slane %v635_v41, 3  ;;  %v503_v50 = vrot.slane %v452_v45, 3  ;;  %v504_v63 = vrot.slane %v453_v55, 3  ;;  %v506_v21 = vrot.slane %v455_v19, 3 }
  0x2e   : > { %765 = vst [vmem:[#allocation1 + $0x4] ss:$9 sm:$0xff] %v9173_v34  ;;  %v456_v39 = vld [vmem:[%s5536_s23 + $0x38] sm:$0x1] }
  0x2f   : > { %766 = vst [vmem:[#allocation1 + $0x5] ss:$9 sm:$0xff] %v5569_v36  ;;  %v641_v59 = vsel %vm518_vm1, %v452_v45, %v503_v50  ;;  %v644_v61 = vsel %vm522_vm2, %v452_v45, %v503_v50  ;;  %v647_v62 = vsel %vm526_vm3, %v452_v45, %v503_v50  ;;  %v5700_v0 = vsel %vm514_vm0, %v452_v45, %v503_v50 }
  0x30   : > { %768 = vst [vmem:[#allocation1 + $0x6] ss:$9 sm:$0xff] %v9172_v37  ;;  %v5702_v2 = vrot.slane %v641_v59, 1  ;;  %v5704_v4 = vrot.slane %v644_v61, 2  ;;  %v5715_v16 = vsel %vm514_vm0, %v453_v55, %v504_v63  ;;  %v668_v41 = vsel %vm518_vm1, %v455_v19, %v506_v21 }
  0x31   : > { %770 = vst [vmem:[#allocation1 + $0x7] ss:$9 sm:$0xff] %v9171_v38  ;;  %v508_v45 = vrot.slane %v457_v27, 3  ;;  %v671_v55 = vsel %vm522_vm2, %v455_v19, %v506_v21  ;;  %v674_v59 = vsel %vm526_vm3, %v455_v19, %v506_v21  ;;  %v507_v61 = vrot.slane %v456_v39, 3 }
  0x32   : > { %9428 = vst [vmem:[#allocation2_spill] sm:$0xff] %v5667_v24  ;;  %v5744_v63 = vrot.slane %v668_v41, 1  ;;  %v5746_v5 = vrot.slane %v671_v55, 2  ;;  %v459_v55 = vld [vmem:[%s5536_s23 + $0x44] sm:$0x1] }
  0x33   : > { %9429 = vst [vmem:[#allocation3_spill] sm:$0xff] %v5672_v40  ;;  %v689_v41 = vsel %vm526_vm3, %v457_v27, %v508_v45  ;;  %v510_v34 = vrot.slane %v459_v55, 3 }
  0x34   : > { %9430 = vst [vmem:[#allocation4_spill] sm:$0xff] %v5677_v42 }
  0x35   : > { %9431 = vst [vmem:[#allocation5_spill] sm:$0xff] %v5679_v44 }
  0x36   : > { %9432 = vst [vmem:[#allocation6_spill] sm:$0xff] %v5683_v47 }
  0x37   : > { %9433 = vst [vmem:[#allocation7_spill] sm:$0xff] %v5687_v48 }
  0x38   : > { %v771_v51 = vld [vmem:[#allocation1] sm:$0xff]  ;;  %9434 = vst [vmem:[#allocation8_spill] sm:$0xff] %v5700_v0 }
  0x39   : > { %773 = vst [vmem:[#allocation1] ss:$9 sm:$0xff] %v9170_v46  ;;  %v5776_v46 = vrot.slane %v689_v41, 3  ;;  %v5794_v41 = vsel %vm514_vm0, %v459_v55, %v510_v34 }
  0x3a   : > { %5153 = vmatmul.msk.bf16.gmra.mxu0 %vm878_vm4, %v771_v51  ;;  %774 = vst [vmem:[#allocation1 + $0x1] ss:$9 sm:$0xff] %v5594_v49  ;;  %v454_v51 = vld [vmem:[%s5536_s23 + $0x30] sm:$0xf] }
  0x3b   : > { %775 = vst [vmem:[#allocation1 + $0x2] ss:$9 sm:$0xff] %v5598_v52  ;;  %v505_v60 = vrot.slane %v454_v51, 3 }
  0x3c   : > { %777 = vst [vmem:[#allocation1 + $0x3] ss:$9 sm:$0xff] %v5600_v53 }
  0x3d   : > { %779 = vst [vmem:[#allocation1 + $0x4] ss:$9 sm:$0xff] %v5602_v54  ;;  %v656_v8 = vsel %vm518_vm1, %v454_v51, %v505_v60  ;;  %v659_v15 = vsel %vm522_vm2, %v454_v51, %v505_v60  ;;  %v5719_v17 = vsel %vm514_vm0, %v454_v51, %v505_v60 }
  0x3e   : > { %781 = vst [vmem:[#allocation1 + $0x5] ss:$9 sm:$0xff] %v5608_v56  ;;  %v5721_v18 = vrot.slane %v656_v8, 1  ;;  %v5725_v20 = vrot.slane %v659_v15, 2  ;;  %v683_v8 = vsel %vm518_vm1, %v457_v27, %v508_v45  ;;  %v5758_v15 = vsel %vm514_vm0, %v457_v27, %v508_v45 }
  0x3f   : > { %782 = vst [vmem:[#allocation1 + $0x6] ss:$9 sm:$0xff] %v5613_v57 }
  0x40   : > { %784 = vst [vmem:[#allocation1 + $0x7] ss:$9 sm:$0xff] %v5615_v58 }
  0x41   : > { %9435 = vst [vmem:[#allocation9_spill] sm:$0xff] %v5702_v2 }
  0x42   : > { %9436 = vst [vmem:[#allocation10_spill] sm:$0xff] %v5704_v4 }
  0x43   : > { %9438 = vst [vmem:[#allocation12_spill] sm:$0xff] %v5715_v16 }
  0x44   : > { %9439 = vst [vmem:[#allocation13_spill] sm:$0xff] %v5719_v17 }
  0x45   : > { %9440 = vst [vmem:[#allocation14_spill] sm:$0xff] %v5721_v18 }
  0x46   : > { %9441 = vst [vmem:[#allocation15_spill] sm:$0xff] %v5725_v20 }
  0x47   : > { %v785_v6 = vld [vmem:[#allocation1] sm:$0xff]  ;;  %9444 = vst [vmem:[#allocation18_spill] sm:$0xff] %v5744_v63 }
  0x48   : > { %787 = vst [vmem:[#allocation1] ss:$9 sm:$0xff] %v5626_v1 }
  0x49   : > { %789 = vst [vmem:[#allocation1 + $0x1] ss:$9 sm:$0xff] %v5629_v3 }
  0x4a   : > { %5154 = vmatmul.msk.bf16.gmra.mxu0 %vm878_vm4, %v785_v6  ;;  %790 = vst [vmem:[#allocation1 + $0x2] ss:$9 sm:$0xff] %v5634_v7  ;;  %v5709_v6 = vrot.slane %v647_v62, 3  ;;  %v5742_v62 = vsel %vm514_vm0, %v455_v19, %v506_v21  ;;  %v5760_v19 = vrot.slane %v683_v8, 1  ;;  %v458_v21 = vld [vmem:[%s5536_s23 + $0x40] sm:$0xf] }
  0x4b   : > { %791 = vst [vmem:[#allocation1 + $0x3] ss:$9 sm:$0xff] %v5638_v10  ;;  %v460_v8 = vld [vmem:[%s5536_s23 + $0x48] sm:$0xf] }
  0x4c   : > { %793 = vst [vmem:[#allocation1 + $0x4] ss:$9 sm:$0xff] %v5640_v11 }
  0x4d   : > { %795 = vst [vmem:[#allocation1 + $0x5] ss:$9 sm:$0xff] %v5643_v12 }
  0x4e   : > { %797 = vst [vmem:[#allocation1 + $0x6] ss:$9 sm:$0xff] %v5647_v13 }
  0x4f   : > { %798 = vst [vmem:[#allocation1 + $0x7] ss:$9 sm:$0xff] %v5652_v14 }
  0x50   : > { %9437 = vst [vmem:[#allocation11_spill] sm:$0xff] %v5709_v6 }
  0x51   : > { %9443 = vst [vmem:[#allocation17_spill] sm:$0xff] %v5742_v62 }
  0x52   : > { %9445 = vst [vmem:[#allocation19_spill] sm:$0xff] %v5746_v5 }
  0x53   : > { %9448 = vst [vmem:[#allocation22_spill] sm:$0xff] %v5758_v15 }
  0x54   : > { %9449 = vst [vmem:[#allocation23_spill] sm:$0xff] %v5760_v19 }
  0x55   : > { %9451 = vst [vmem:[#allocation25_spill] sm:$0xff] %v5776_v46 }
  0x56   : > { %v799_v31 = vld [vmem:[#allocation1] sm:$0xff]  ;;  %9456 = vst [vmem:[#allocation30_spill] sm:$0xff] %v5794_v41 }
  0x57   : > { %801 = vst [vmem:[#allocation1] ss:$9 sm:$0xff] %v5663_v22 }
  0x58   : > { %803 = vst [vmem:[#allocation1 + $0x1] ss:$9 sm:$0xff] %v5665_v23 }
  0x59   : > { %805 = vst [vmem:[#allocation1 + $0x2] ss:$9 sm:$0xff] %v5667_v24 }
  0x5a   : > { %5155 = vmatmul.msk.bf16.gmra.mxu0 %vm878_vm4, %v799_v31  ;;  %806 = vst [vmem:[#allocation1 + $0x3] ss:$9 sm:$0xff] %v5672_v40  ;;  %v662_v31 = vsel %vm526_vm3, %v454_v51, %v505_v60  ;;  %v5748_v60 = vrot.slane %v674_v59, 3 }
  0x5b   : > { %807 = vst [vmem:[#allocation1 + $0x4] ss:$9 sm:$0xff] %v5677_v42  ;;  %v5737_v50 = vrot.slane %v662_v31, 3  ;;  %v509_v31 = vrot.slane %v458_v21, 3 }
  0x5c   : > { %809 = vst [vmem:[#allocation1 + $0x5] ss:$9 sm:$0xff] %v5679_v44 }
  0x5d   : > { %811 = vst [vmem:[#allocation1 + $0x6] ss:$9 sm:$0xff] %v5683_v47  ;;  %v698_v38 = vsel %vm522_vm2, %v458_v21, %v509_v31  ;;  %v5781_v32 = vsel %vm514_vm0, %v458_v21, %v509_v31 }
  0x5e   : > { %813 = vst [vmem:[#allocation1 + $0x7] ss:$9 sm:$0xff] %v5687_v48 }
  0x5f   : > { %9442 = vst [vmem:[#allocation16_spill] sm:$0xff] %v5737_v50 }
  0x60   : > { %9446 = vst [vmem:[#allocation20_spill] sm:$0xff] %v5748_v60 }
  0x61   : > { %9452 = vst [vmem:[#allocation26_spill] sm:$0xff] %v5781_v32 }
  0x65   : > { %v814_v9 = vld [vmem:[#allocation1] sm:$0xff] }
  0x66   : > { %815 = vst [vmem:[#allocation1] ss:$9 sm:$0xff] %v5700_v0 }
  0x67   : > { %817 = vst [vmem:[#allocation1 + $0x1] ss:$9 sm:$0xff] %v5702_v2 }
  0x68   : > { %819 = vst [vmem:[#allocation1 + $0x2] ss:$9 sm:$0xff] %v5704_v4 }
  0x69   : > { %821 = vst [vmem:[#allocation1 + $0x3] ss:$9 sm:$0xff] %v5709_v6 }
  0x6a   : > { %822 = vst [vmem:[#allocation1 + $0x4] ss:$9 sm:$0xff] %v5715_v16  ;;  %5156 = vmatmul.msk.bf16.gmra.mxu0 %vm878_vm4, %v814_v9  ;;  %v5754_v9 = vsel %vm514_vm0, %v456_v39, %v507_v61  ;;  %v686_v39 = vsel %vm522_vm2, %v457_v27, %v508_v45  ;;  %v695_v61 = vsel %vm518_vm1, %v458_v21, %v509_v31  ;;  %v511_v27 = vrot.slane %v460_v8, 3 }
  0x6b   : > { %823 = vst [vmem:[#allocation1 + $0x5] ss:$9 sm:$0xff] %v5719_v17  ;;  %v5772_v59 = vrot.slane %v686_v39, 2  ;;  %v5783_v30 = vrot.slane %v695_v61, 1  ;;  %v5786_v45 = vrot.slane %v698_v38, 2 }
  0x6c   : > { %825 = vst [vmem:[#allocation1 + $0x6] ss:$9 sm:$0xff] %v5721_v18  ;;  %v713_v34 = vsel %vm522_vm2, %v460_v8, %v511_v27  ;;  %v716_v55 = vsel %vm526_vm3, %v460_v8, %v511_v27 }
  0x6d   : > { %827 = vst [vmem:[#allocation1 + $0x7] ss:$9 sm:$0xff] %v5725_v20 }
  0x6e   : > { %9447 = vst [vmem:[#allocation21_spill] sm:$0xff] %v5754_v9 }
  0x6f   : > { %9450 = vst [vmem:[#allocation24_spill] sm:$0xff] %v5772_v59 }
  0x70   : > { %9453 = vst [vmem:[#allocation27_spill] sm:$0xff] %v5783_v30 }
  0x71   : > { %9454 = vst [vmem:[#allocation28_spill] sm:$0xff] %v5786_v45 }
  0x74   : > { %v828_v51 = vld [vmem:[#allocation1] sm:$0xff] }
  0x75   : > { %830 = vst [vmem:[#allocation1] ss:$9 sm:$0xff] %v5737_v50 }
  0x76   : > { %831 = vst [vmem:[#allocation1 + $0x1] ss:$9 sm:$0xff] %v5742_v62 }
  0x77   : > { %833 = vst [vmem:[#allocation1 + $0x2] ss:$9 sm:$0xff] %v5744_v63 }
  0x78   : > { %835 = vst [vmem:[#allocation1 + $0x3] ss:$9 sm:$0xff] %v5746_v5 }
  0x79   : > { %837 = vst [vmem:[#allocation1 + $0x4] ss:$9 sm:$0xff] %v5748_v60 }
  0x7a   : > { %838 = vst [vmem:[#allocation1 + $0x5] ss:$9 sm:$0xff] %v5754_v9  ;;  %5157 = vmatmul.msk.bf16.gmra.mxu0 %vm878_vm4, %v828_v51  ;;  %v701_v51 = vsel %vm526_vm3, %v458_v21, %v509_v31  ;;  %v5798_v21 = vsel %vm514_vm0, %v460_v8, %v511_v27  ;;  %v710_v31 = vsel %vm518_vm1, %v460_v8, %v511_v27 }
  0x7b   : > { %839 = vst [vmem:[#allocation1 + $0x6] ss:$9 sm:$0xff] %v5758_v15  ;;  %v5789_v39 = vrot.slane %v701_v51, 3  ;;  %v5808_v61 = vrot.slane %v710_v31, 1  ;;  %v462_v51 = vld [vmem:[%s5536_s23 + $0x50] sm:$0x1] }
  0x7c   : > { %841 = vst [vmem:[#allocation1 + $0x7] ss:$9 sm:$0xff] %v5760_v19 }
  0x7d   : > { %9455 = vst [vmem:[#allocation29_spill] sm:$0xff] %v5789_v39 }
  0x7e   : > { %9457 = vst [vmem:[#allocation31_spill] sm:$0xff] %v5798_v21 }
  0x7f   : > { %9458 = vst [vmem:[#allocation32_spill] sm:$0xff] %v5808_v61 }
  0x83   : > { %v842_v37 = vld [vmem:[#allocation1] sm:$0xff] }
  0x84   : > { %5158 = vmatmul.msk.bf16.vlgmr.msra.gmra.mxu1 %vm878_vm4, %v842_v37  ;;  %844 = vst [vmem:[#allocation1] ss:$9 sm:$0xff] %v5772_v59  ;;  %v461_v37 = vld [vmem:[%s5536_s23 + $0x4c] sm:$0xf] }
  0x85   : > { %846 = vst [vmem:[#allocation1 + $0x1] ss:$9 sm:$0xff] %v5776_v46  ;;  %v512_v38 = vrot.slane %v461_v37, 3  ;;  %v513_v46 = vrot.slane %v462_v51, 3 }
  0x86   : > { %847 = vst [vmem:[#allocation1 + $0x2] ss:$9 sm:$0xff] %v5781_v32  ;;  %v5814_v32 = vrot.slane %v716_v55, 3 }
  0x87   : > { %849 = vst [vmem:[#allocation1 + $0x3] ss:$9 sm:$0xff] %v5783_v30  ;;  %v5811_v30 = vrot.slane %v713_v34, 2  ;;  %v5819_v59 = vsel %vm514_vm0, %v461_v37, %v512_v38  ;;  %v5833_v31 = vsel %vm514_vm0, %v462_v51, %v513_v46  ;;  %v9468_v46 = vrot.slane %v5552_v28, 3 }
  0x88   : > { %851 = vst [vmem:[#allocation1 + $0x4] ss:$9 sm:$0xff] %v5786_v45  ;;  %v722_v45 = vsel %vm518_vm1, %v461_v37, %v512_v38  ;;  %v9475_v28 = vrot.slane %v5588_v43, 3 }
  0x89   : > { %853 = vst [vmem:[#allocation1 + $0x5] ss:$9 sm:$0xff] %v5789_v39  ;;  %v5821_v19 = vrot.slane %v722_v45, 1 }
  0x8a   : > { %854 = vst [vmem:[#allocation1 + $0x6] ss:$9 sm:$0xff] %v5794_v41  ;;  %v725_v41 = vsel %vm522_vm2, %v461_v37, %v512_v38 }
  0x8b   : > { %855 = vst [vmem:[#allocation1 + $0x7] ss:$9 sm:$0xff] %v5798_v21  ;;  %v728_v21 = vsel %vm526_vm3, %v461_v37, %v512_v38  ;;  %v5825_v8 = vrot.slane %v725_v41, 2  ;;  %v9467_v41 = vrot.slane %v5548_v26, 2 }
  0x8c   : > { %9459 = vst [vmem:[#allocation33_spill] sm:$0xff] %v5811_v30  ;;  %v5828_v27 = vrot.slane %v728_v21, 3  ;;  %v9469_v21 = vrot.slane %v5560_v33, 1 }
  0x8d   : > { %9460 = vst [vmem:[#allocation34_spill] sm:$0xff] %v5814_v32 }
  0x8e   : > { %9461 = vst [vmem:[#allocation35_spill] sm:$0xff] %v5819_v59 }
  0x8f   : > { %9462 = vst [vmem:[#allocation36_spill] sm:$0xff] %v5821_v19 }
  0x90   : > { %9463 = vst [vmem:[#allocation37_spill] sm:$0xff] %v5825_v8 }
  0x91   : > { %9464 = vst [vmem:[#allocation38_spill] sm:$0xff] %v5828_v27 }
  0x92   : > { %v856_v39 = vld [vmem:[#allocation1] sm:$0xff]  ;;  %9465 = vst [vmem:[#allocation39_spill] sm:$0xff] %v5833_v31 }
  0x93   : > { %858 = vst [vmem:[#allocation1] ss:$9 sm:$0xff] %v5808_v61  ;;  %5159 = vmatmul.msk.bf16.vlgmr.msra.gmra.mxu2 %vm878_vm4, %v856_v39  ;;  %v9466_v39 = vrot.slane %v5545_v25, 1 }
  0x94   : > { %860 = vst [vmem:[#allocation1 + $0x1] ss:$9 sm:$0xff] %v5811_v30 }
  0x95   : > { %862 = vst [vmem:[#allocation1 + $0x2] ss:$9 sm:$0xff] %v5814_v32 }
  0x96   : > { %863 = vst [vmem:[#allocation1 + $0x3] ss:$9 sm:$0xff] %v5819_v59 }
  0x97   : > { %865 = vst [vmem:[#allocation1 + $0x4] ss:$9 sm:$0xff] %v5821_v19 }
  0x98   : > { %867 = vst [vmem:[#allocation1 + $0x5] ss:$9 sm:$0xff] %v5825_v8 }
  0x99   : > { %869 = vst [vmem:[#allocation1 + $0x6] ss:$9 sm:$0xff] %v5828_v27 }
  0x9a   : > { %870 = vst [vmem:[#allocation1 + $0x7] ss:$9 sm:$0xff] %v5833_v31 }
  0xa1   : > { %v871_v45 = vld [vmem:[#allocation1] sm:$0xff] }
  0xa2   : > { %1888 = vst [vmem:[#allocation1] ss:$9 sm:$0xff] %v5555_v29  ;;  %v9471_v29 = vrot.slane %v5565_v35, 2 }
  0xa3   : > { %1890 = vst [vmem:[#allocation1 + $0x1] ss:$9 sm:$0xff] %v9466_v39  ;;  %5160 = vmatmul.msk.bf16.gmra.mxu2 %vm878_vm4, %v871_v45 }
  0xa4   : > { %1892 = vst [vmem:[#allocation1 + $0x2] ss:$9 sm:$0xff] %v9467_v41 }
  0xa5   : > { %1894 = vst [vmem:[#allocation1 + $0x3] ss:$9 sm:$0xff] %v9468_v46 }
  0xa6   : > { %1896 = vst [vmem:[#allocation1 + $0x4] ss:$9 sm:$0xff] %v5569_v36 }
  0xa7   : > { %1898 = vst [vmem:[#allocation1 + $0x5] ss:$9 sm:$0xff] %v9469_v21  ;;  %v5850_v37 = vpop.f32.mrf.mxu0 }
  0xa8   : > { %9470 = vst [vmem:[#allocation40_spill] sm:$0xff] %v5850_v37  ;;  %v5855_v25 = vrot.slane %v5850_v37, 6  ;;  %v5858_v38 = vrot.slane %v5850_v37, 4  ;;  %v5861_v26 = vrot.slane %v5850_v37, 2  ;;  %v5161_v55 = vrot.slane %v5850_v37, 9 }
  0xa9   : > { %1900 = vst [vmem:[#allocation1 + $0x6] ss:$9 sm:$0xff] %v9471_v29 }
  0xaa   : > { %9472 = vst [vmem:[#allocation41_spill] sm:$0xff] %v5855_v25  ;;  %1600 = vrot.lane.b32.xlu0 %v5855_v25, %s5424_s26  ;;  %1598 = vrot.lane.b32.xlu2 %v5858_v38, %s5424_s26  ;;  %v1145_v33 = vrot.slane %v5858_v38, 7  ;;  %v1142_v35 = vrot.slane %v5861_v26, 7  ;;  %v1148_v45 = vrot.slane %v5855_v25, 7 }
  0xab   : > { %9473 = vst [vmem:[#allocation42_spill] sm:$0xff] %v5858_v38  ;;  %1596 = vrot.lane.b32.xlu1 %v5861_v26, %s5424_s26 }
  0xac   : > { %9474 = vst [vmem:[#allocation43_spill] sm:$0xff] %v5861_v26  ;;  %v1147_v43 = vrot.slane %v1145_v33, 2  ;;  %v1143_v41 = vsel %vm5875_vm9, %v5161_v55, %v1142_v35 }
  0xad   : > { %1902 = vst [vmem:[#allocation1 + $0x7] ss:$9 sm:$0xff] %v9475_v28 }
  0xae   : > { %v1149_v21 = vsel %vm5875_vm9, %v1147_v43, %v1148_v45 }
  0xaf   : > { %v5879_v34 = vpop.f32.mrf.mxu0 }
  0xb0   : > { %9478 = vst [vmem:[#allocation44_spill] sm:$0xff] %v5879_v34  ;;  %v5884_v39 = vrot.slane %v5879_v34, 2  ;;  %v1151_v46 = vrot.slane %v5879_v34, 7 }
  0xb2   : > { %9479 = vst [vmem:[#allocation45_spill] sm:$0xff] %v5884_v39  ;;  %1340 = vrot.lane.b32.xlu0 %v1143_v41, %s5425_s27  ;;  %1604 = vrot.lane.b32.xlu2 %v5884_v39, %s5424_s26  ;;  %v1153_v29 = vrot.slane %v1151_v46, 2  ;;  %v1154_v28 = vrot.slane %v5884_v39, 7 }
  0xb3   : > { %1344 = vrot.lane.b32.xlu1 %v1149_v21, %s5425_s27 }
  0xb4   : > { %v1903_v51 = vld [vmem:[#allocation1] sm:$0xff]  ;;  %v1155_v55 = vsel %vm5875_vm9, %v1153_v29, %v1154_v28 }
  0xb5   : > { %5175 = vmatmul.msk.bf16.vlgmr.msrb.gmra.mxu1 %vm878_vm4, %v1903_v51  ;;  %1904 = vst [vmem:[#allocation1] ss:$9 sm:$0xff] %v5594_v49  ;;  %v1144_v49 = vrot.slane %v1142_v35, 2  ;;  %v5914_v35 = vrot.slane %v5879_v34, 4  ;;  %v1156_v51 = vrot.slane %v1154_v28, 2 }
  0xb6   : > { %1905 = vst [vmem:[#allocation1 + $0x1] ss:$9 sm:$0xff] %v5598_v52 }
  0xb7   : > { %1906 = vst [vmem:[#allocation1 + $0x2] ss:$9 sm:$0xff] %v5600_v53  ;;  %v1146_v43 = vsel %vm5875_vm9, %v1144_v49, %v1145_v33  ;;  %v1157_v41 = vrot.slane %v5914_v35, 7  ;;  %v5919_v33 = vrot.slane %v5879_v34, 6  ;;  %v5934_v28 = vpop.f32.mrf.mxu0 }
  0xb8   : > { %1907 = vst [vmem:[#allocation1 + $0x3] ss:$9 sm:$0xff] %v5602_v54 }
  0xb9   : > { %1908 = vst [vmem:[#allocation1 + $0x4] ss:$9 sm:$0xff] %v5608_v56  ;;  %v1158_v49 = vsel %vm5875_vm9, %v1156_v51, %v1157_v41  ;;  %v1159_v29 = vrot.slane %v1157_v41, 2  ;;  %v9196_v51 = vrot.slane %v5934_v28, 2 }
  0xba   : > { %1909 = vst [vmem:[#allocation1 + $0x5] ss:$9 sm:$0xff] %v5613_v57  ;;  %1342 = vrot.lane.b32.xlu0 %v1146_v43, %s5425_s27  ;;  %1348 = vrot.lane.b32.xlu2 %v1155_v55, %s5425_s27  ;;  %v1160_v43 = vrot.slane %v5919_v33, 7  ;;  %v5940_v55 = vrot.slane %v5934_v28, 4 }
  0xbb   : > { %1910 = vst [vmem:[#allocation1 + $0x6] ss:$9 sm:$0xff] %v5615_v58  ;;  %1602 = vrot.lane.b32.xlu1 %v5879_v34, %s5424_s26 }
  0xbc   : > { %1911 = vst [vmem:[#allocation1 + $0x7] ss:$9 sm:$0xff] %v5626_v1 }
  0xbd   : > { %9480 = vst [vmem:[#allocation46_spill] sm:$0xff] %v5914_v35 }
  0xbe   : > { %9481 = vst [vmem:[#allocation47_spill] sm:$0xff] %v5919_v33 }
  0xbf   : > { %9482 = vst [vmem:[#allocation48_spill] sm:$0xff] %v5934_v28 }
  0xc0   : > { %9483 = vst [vmem:[#allocation49_spill] sm:$0xff] %v5940_v55 }
  0xc2   : > { %1606 = vrot.lane.b32.xlu0 %v5914_v35, %s5424_s26  ;;  %1350 = vrot.lane.b32.xlu2 %v1158_v49, %s5425_s27  ;;  %v1161_v49 = vsel %vm5875_vm9, %v1159_v29, %v1160_v43  ;;  %v1167_v35 = vrot.slane %v5940_v55, 7  ;;  %v5957_v29 = vrot.slane %v5934_v28, 6 }
  0xc3   : > { %v1912_v21 = vld [vmem:[#allocation1] sm:$0xff]  ;;  %1608 = vrot.lane.b32.xlu1 %v5919_v33, %s5424_s26  ;;  %v5162_v33 = vrot.slane %v9196_v51, 9 }
  0xc4   : > { %1913 = vst [vmem:[#allocation1] ss:$9 sm:$0xff] %v5629_v3 }
  0xc5   : > { %5176 = vmatmul.msk.bf16.gmra.mxu1 %vm878_vm4, %v1912_v21  ;;  %1914 = vst [vmem:[#allocation1 + $0x1] ss:$9 sm:$0xff] %v5634_v7  ;;  %v1150_v21 = vrot.slane %v1148_v45, 2  ;;  %v1168_v45 = vsel %vm5875_vm9, %v5162_v33, %v1167_v35  ;;  %v1163_v33 = vrot.slane %v5934_v28, 7 }
  0xc6   : > { %1915 = vst [vmem:[#allocation1 + $0x2] ss:$9 sm:$0xff] %v5638_v10 }
  0xc7   : > { %1916 = vst [vmem:[#allocation1 + $0x3] ss:$9 sm:$0xff] %v5640_v11  ;;  %v1152_v41 = vsel %vm5875_vm9, %v1150_v21, %v1151_v46  ;;  %v1169_v21 = vrot.slane %v1167_v35, 2 }
  0xc8   : > { %1917 = vst [vmem:[#allocation1 + $0x4] ss:$9 sm:$0xff] %v5643_v12 }
  0xc9   : > { %1918 = vst [vmem:[#allocation1 + $0x5] ss:$9 sm:$0xff] %v5647_v13 }
  0xca   : > { %1919 = vst [vmem:[#allocation1 + $0x6] ss:$9 sm:$0xff] %v5652_v14  ;;  %1352 = vrot.lane.b32.xlu0 %v1161_v49, %s5425_s27  ;;  %1610 = vrot.lane.b32.xlu2 %v5934_v28, %s5424_s26  ;;  %v1170_v49 = vrot.slane %v5957_v29, 7 }
  0xcb   : > { %1920 = vst [vmem:[#allocation1 + $0x7] ss:$9 sm:$0xff] %v5663_v22  ;;  %1346 = vrot.lane.b32.xlu1 %v1152_v41, %s5425_s27  ;;  %v1162_v41 = vrot.slane %v1160_v43, 2 }
  0xcc   : > { %9484 = vst [vmem:[#allocation50_spill] sm:$0xff] %v5957_v29 }
  0xcd   : > { %v1164_v35 = vsel %vm5875_vm9, %v1162_v41, %v1163_v33 }
  0xd2   : > { %1612 = vrot.lane.b32.xlu0 %v5940_v55, %s5424_s26  ;;  %1356 = vrot.lane.b32.xlu2 %v1168_v45, %s5425_s27  ;;  %v1921_v46 = vld [vmem:[#allocation1] sm:$0xff]  ;;  %v5972_v45 = vpop.f32.mrf.mxu0 }
  0xd3   : > { %1614 = vrot.lane.b32.xlu1 %v5957_v29, %s5424_s26  ;;  %1922 = vst [vmem:[#allocation1] ss:$9 sm:$0xff] %v5665_v23  ;;  %v5986_v43 = vrot.slane %v5972_v45, 2  ;;  %v5992_v51 = vrot.slane %v5972_v45, 4  ;;  %v1173_v33 = vrot.slane %v5972_v45, 7  ;;  %v1172_v29 = vrot.slane %v1170_v49, 2 }
  0xd4   : > { %1923 = vst [vmem:[#allocation1 + $0x1] ss:$9 sm:$0xff] %v5667_v24 }
  0xd5   : > { %5177 = vmatmul.msk.bf16.gmra.mxu1 %vm878_vm4, %v1921_v46  ;;  %1924 = vst [vmem:[#allocation1 + $0x2] ss:$9 sm:$0xff] %v5672_v40  ;;  %v1171_v46 = vsel %vm5875_vm9, %v1169_v21, %v1170_v49  ;;  %v5989_v21 = vrot.slane %v5972_v45, 6  ;;  %v1176_v41 = vrot.slane %v5986_v43, 7  ;;  %v1179_v28 = vrot.slane %v5992_v51, 7  ;;  %v9573_v40 = vld [vmem:[#allocation31_spill] sm:$0xff] }
  0xd6   : > { %1925 = vst [vmem:[#allocation1 + $0x3] ss:$9 sm:$0xff] %v5677_v42  ;;  %v1174_v25 = vsel %vm5875_vm9, %v1172_v29, %v1173_v33 }
  0xd7   : > { %1926 = vst [vmem:[#allocation1 + $0x4] ss:$9 sm:$0xff] %v5679_v44  ;;  %v1181_v49 = vrot.slane %v1179_v28, 2  ;;  %v9566_v44 = vld [vmem:[#allocation27_spill] sm:$0xff] }
  0xd8   : > { %9485 = vst [vmem:[#allocation51_spill] sm:$0xff] %v5972_v45 }
  0xd9   : > { %1927 = vst [vmem:[#allocation1 + $0x5] ss:$9 sm:$0xff] %v5683_v47 }
  0xda   : > { %1358 = vrot.lane.b32.xlu0 %v1171_v46, %s5425_s27  ;;  %1616 = vrot.lane.b32.xlu2 %v5972_v45, %s5424_s26  ;;  %1928 = vst [vmem:[#allocation1 + $0x6] ss:$9 sm:$0xff] %v5687_v48  ;;  %v1178_v46 = vrot.slane %v1176_v41, 2 }
  0xdb   : > { %1354 = vrot.lane.b32.xlu1 %v1164_v35, %s5425_s27  ;;  %1929 = vst [vmem:[#allocation1 + $0x7] ss:$9 sm:$0xff] %v5700_v0  ;;  %v1175_v35 = vrot.slane %v1173_v33, 2 }
  0xdc   : > { %9486 = vst [vmem:[#allocation52_spill] sm:$0xff] %v5986_v43  ;;  %v1180_v55 = vsel %vm5875_vm9, %v1178_v46, %v1179_v28  ;;  %v1182_v46 = vrot.slane %v5989_v21, 7 }
  0xdd   : > { %9487 = vst [vmem:[#allocation53_spill] sm:$0xff] %v5989_v21  ;;  %v1177_v45 = vsel %vm5875_vm9, %v1175_v35, %v1176_v41  ;;  %v6016_v41 = vpop.f32.mrf.mxu0 }
  0xde   : > { %9488 = vst [vmem:[#allocation54_spill] sm:$0xff] %v5992_v51  ;;  %v1183_v28 = vsel %vm5875_vm9, %v1181_v49, %v1182_v46  ;;  %v1185_v29 = vrot.slane %v6016_v41, 7 }
  0xdf   : > { %9489 = vst [vmem:[#allocation55_spill] sm:$0xff] %v6016_v41 }
  0xe0   : > { %v1187_v33 = vrot.slane %v1185_v29, 2 }
  0xe2   : > { %1622 = vrot.lane.b32.xlu2 %v5989_v21, %s5424_s26  ;;  %1618 = vrot.lane.b32.xlu0 %v5986_v43, %s5424_s26  ;;  %v1930_v43 = vld [vmem:[#allocation1] sm:$0xff] }
  0xe3   : > { %1620 = vrot.lane.b32.xlu1 %v5992_v51, %s5424_s26  ;;  %1931 = vst [vmem:[#allocation1] ss:$9 sm:$0xff] %v5702_v2 }
  0xe4   : > { %1932 = vst [vmem:[#allocation1 + $0x1] ss:$9 sm:$0xff] %v5704_v4 }
  0xe5   : > { %5178 = vmatmul.msk.bf16.gmra.mxu1 %vm878_vm4, %v1930_v43  ;;  %1933 = vst [vmem:[#allocation1 + $0x2] ss:$9 sm:$0xff] %v5709_v6 }
  0xe6   : > { %1934 = vst [vmem:[#allocation1 + $0x3] ss:$9 sm:$0xff] %v5715_v16 }
  0xe7   : > { %1935 = vst [vmem:[#allocation1 + $0x4] ss:$9 sm:$0xff] %v5719_v17 }
  0xe8   : > { %1936 = vst [vmem:[#allocation1 + $0x5] ss:$9 sm:$0xff] %v5721_v18 }
  0xe9   : > { %1937 = vst [vmem:[#allocation1 + $0x6] ss:$9 sm:$0xff] %v5725_v20 }
  0xea   : > { %1364 = vrot.lane.b32.xlu0 %v1180_v55, %s5425_s27  ;;  %1362 = vrot.lane.b32.xlu2 %v1177_v45, %s5425_s27  ;;  %v6020_v55 = vrot.slane %v6016_v41, 6  ;;  %1938 = vst [vmem:[#allocation1 + $0x7] ss:$9 sm:$0xff] %v5737_v50  ;;  %v1184_v45 = vrot.slane %v1182_v46, 2  ;;  %v6046_v46 = vpop.f32.mrf.mxu0 }
  0xeb   : > { %1360 = vrot.lane.b32.xlu1 %v1174_v25, %s5425_s27  ;;  %v981_v25 = vrot.slane %v6016_v41, 2  ;;  %9491 = vst [vmem:[#allocation57_spill] sm:$0xff] %v6046_v46 }
  0xec   : > { %9490 = vst [vmem:[#allocation56_spill] sm:$0xff] %v6020_v55  ;;  %v1186_v35 = vsel %vm5875_vm9, %v1184_v45, %v1185_v29  ;;  %v1192_v51 = vrot.slane %v6020_v55, 7  ;;  %v6050_v29 = vrot.slane %v6046_v46, 4 }
  0xed   : > { %v1188_v43 = vrot.slane %v981_v25, 7 }
  0xee   : > { %9492 = vst [vmem:[#allocation58_spill] sm:$0xff] %v6050_v29 }
  0xef   : > { %v1189_v49 = vsel %vm5875_vm9, %v1187_v33, %v1188_v43  ;;  %v1194_v43 = vrot.slane %v1192_v51, 2  ;;  %v1195_v33 = vrot.slane %v6046_v46, 7 }
  0xf2   : > { %1624 = vrot.lane.b32.xlu0 %v6016_v41, %s5424_s26  ;;  %1628 = vrot.lane.b32.xlu2 %v6020_v55, %s5424_s26 }
  0xf3   : > { %1366 = vrot.lane.b32.xlu1 %v1183_v28, %s5425_s27  ;;  %v9205_v28 = vrot.slane %v6016_v41, 4  ;;  %v1197_v41 = vrot.slane %v1195_v33, 2 }
  0xf5   : > { %v5163_v21 = vrot.slane %v9205_v28, 9  ;;  %v1201_v28 = vrot.slane %v6050_v29, 7 }
  0xf7   : > { %v1193_v45 = vsel %vm5875_vm9, %v5163_v21, %v1192_v51  ;;  %v1196_v21 = vsel %vm5875_vm9, %v1194_v43, %v1195_v33  ;;  %v1203_v55 = vrot.slane %v1201_v28, 2 }
  0xfa   : > { %1368 = vrot.lane.b32.xlu2 %v1186_v35, %s5425_s27  ;;  %1370 = vrot.lane.b32.xlu0 %v1189_v49, %s5425_s27  ;;  %v6063_v35 = vrot.slane %v6046_v46, 2  ;;  %v6066_v49 = vrot.slane %v6046_v46, 6 }
  0xfb   : > { %1626 = vrot.lane.b32.xlu1 %v981_v25, %s5424_s26 }
  0xfc   : > { %9494 = vst [vmem:[#allocation60_spill] sm:$0xff] %v6063_v35  ;;  %v1198_v51 = vrot.slane %v6063_v35, 7 }
  0xfd   : > { %9495 = vst [vmem:[#allocation61_spill] sm:$0xff] %v6066_v49 }
 0x102   : > { %1630 = vrot.lane.b32.xlu0 %v6046_v46, %s5424_s26  ;;  %1634 = vrot.lane.b32.xlu2 %v6050_v29, %s5424_s26  ;;  %v1204_v46 = vrot.slane %v6066_v49, 7  ;;  %v1199_v29 = vsel %vm5875_vm9, %v1197_v41, %v1198_v51 }
 0x103   : > { %1372 = vrot.lane.b32.xlu1 %v1193_v45, %s5425_s27 }
 0x104   : > { %v6059_v25 = vpop.permute.xlu2 %1598  ;;  %v1205_v43 = vsel %vm5875_vm9, %v1203_v55, %v1204_v46 }
 0x105   : > { %9493 = vst [vmem:[#allocation59_spill] sm:$0xff] %v6059_v25  ;;  %v1200_v25 = vrot.slane %v1198_v51, 2  ;;  %v1206_v51 = vrot.slane %v1204_v46, 2 }
 0x10a   : > { %1636 = vrot.lane.b32.xlu0 %v6066_v49, %s5424_s26  ;;  %1374 = vrot.lane.b32.xlu2 %v1196_v21, %s5425_s27  ;;  %v1202_v21 = vsel %vm5875_vm9, %v1200_v25, %v1201_v28  ;;  %v6101_v28 = vpop.f32.mrf.mxu1 }
 0x10b   : > { %1632 = vrot.lane.b32.xlu1 %v6063_v35, %s5424_s26  ;;  %v6089_v35 = vpop.f32.mrf.mxu0  ;;  %9500 = vst [vmem:[#allocation66_spill] sm:$0xff] %v6101_v28 }
 0x10c   : > { %v6077_v45 = vpop.permute.xlu2 %1604  ;;  %9497 = vst [vmem:[#allocation63_spill] sm:$0xff] %v6089_v35  ;;  %v6094_v33 = vrot.slane %v6089_v35, 2  ;;  %v988_v55 = vrot.slane %v6089_v35, 4 }
 0x10d   : > { %9496 = vst [vmem:[#allocation62_spill] sm:$0xff] %v6077_v45  ;;  %v6114_v45 = vrot.slane %v6101_v28, 4 }
 0x10e   : > { %9499 = vst [vmem:[#allocation65_spill] sm:$0xff] %v6094_v33  ;;  %v1210_v41 = vrot.slane %v6094_v33, 7 }
 0x10f   : > { %9504 = vst [vmem:[#allocation70_spill] sm:$0xff] %v6114_v45  ;;  %v1279_v46 = vrot.slane %v6114_v45, 7 }
 0x110   : > { %v1212_v34 = vrot.slane %v1210_v41, 2 }
 0x112   : > { %1380 = vrot.lane.b32.xlu2 %v1205_v43, %s5425_s27  ;;  %1376 = vrot.lane.b32.xlu0 %v1199_v29, %s5425_s27  ;;  %v1207_v43 = vrot.slane %v6089_v35, 7 }
 0x113   : > { %1378 = vrot.lane.b32.xlu1 %v1202_v21, %s5425_s27  ;;  %v6111_v21 = vrot.slane %v6101_v28, 2  ;;  %v6157_v38 = vpop.f32.mrf.mxu0 }
 0x114   : > { %v6091_v49 = vpop.permute.xlu2 %1348  ;;  %v1209_v26 = vrot.slane %v1207_v43, 2  ;;  %v1208_v37 = vsel %vm5875_vm9, %v1206_v51, %v1207_v43  ;;  %v6131_v51 = vrot.slane %v6101_v28, 6  ;;  %9513 = vst [vmem:[#allocation79_spill] sm:$0xff] %v6157_v38  ;;  %v6190_v17 = vrot.slane %v6157_v38, 6 }
 0x115   : > { %9498 = vst [vmem:[#allocation64_spill] sm:$0xff] %v6091_v49  ;;  %v1213_v49 = vrot.slane %v988_v55, 7  ;;  %v1276_v39 = vrot.slane %v6111_v21, 7 }
 0x116   : > { %9503 = vst [vmem:[#allocation69_spill] sm:$0xff] %v6111_v21 }
 0x117   : > { %9506 = vst [vmem:[#allocation72_spill] sm:$0xff] %v6131_v51 }
 0x118   : > { %9521 = vst [vmem:[#allocation86_spill] sm:$0xff] %v6190_v17 }
 0x11a   : > { %1642 = vrot.lane.b32.xlu0 %v988_v55, %s5424_s26  ;;  %1640 = vrot.lane.b32.xlu2 %v6094_v33, %s5424_s26  ;;  %v1211_v55 = vsel %vm5875_vm9, %v1209_v26, %v1210_v41  ;;  %v1282_v26 = vrot.slane %v6131_v51, 7 }
 0x11b   : > { %1638 = vrot.lane.b32.xlu1 %v6089_v35, %s5424_s26 }
 0x11c   : > { %v6105_v29 = vpop.permute.xlu0 %1600  ;;  %v6107_v25 = vpop.permute.xlu2 %1350 }
 0x11d   : > { %9501 = vst [vmem:[#allocation67_spill] sm:$0xff] %v6105_v29  ;;  %v6116_v33 = vpop.permute.xlu1 %1596  ;;  %v1281_v29 = vrot.slane %v1279_v46, 2 }
 0x11e   : > { %9502 = vst [vmem:[#allocation68_spill] sm:$0xff] %v6107_v25  ;;  %v1214_v25 = vsel %vm5875_vm9, %v1212_v34, %v1213_v49 }
 0x11f   : > { %9505 = vst [vmem:[#allocation71_spill] sm:$0xff] %v6116_v33  ;;  %v9218_v33 = vrot.slane %v6101_v28, 7  ;;  %v1283_v41 = vsel %vm5875_vm9, %v1281_v29, %v1282_v26  ;;  %v6159_v29 = vpop.f32.mrf.mxu1 }
 0x120   : > { %9514 = vst [vmem:[#allocation80_spill] sm:$0xff] %v6159_v29  ;;  %v9520_v50 = vrot.slane %v6159_v29, 2 }
 0x122   : > { %1382 = vrot.lane.b32.xlu0 %v1208_v37, %s5425_s27  ;;  %1386 = vrot.lane.b32.xlu2 %v1214_v25, %s5425_s27  ;;  %v1278_v37 = vrot.slane %v1276_v39, 2  ;;  %v1275_v25 = vrot.slane %v9218_v33, 2  ;;  %v1288_v20 = vrot.slane %v9520_v50, 7 }
 0x123   : > { %1384 = vrot.lane.b32.xlu1 %v1211_v55, %s5425_s27 }
 0x124   : > { %v6133_v43 = vpop.permute.xlu0 %1340  ;;  %v6135_v34 = vpop.permute.xlu2 %1610  ;;  %v1280_v55 = vsel %vm5875_vm9, %v1278_v37, %v1279_v46  ;;  %v6162_v46 = vrot.slane %v6157_v38, 4  ;;  %v6165_v37 = vrot.slane %v6157_v38, 2 }
 0x125   : > { %9507 = vst [vmem:[#allocation73_spill] sm:$0xff] %v6133_v43  ;;  %v6137_v49 = vpop.permute.xlu1 %1344 }
 0x126   : > { %9508 = vst [vmem:[#allocation74_spill] sm:$0xff] %v6135_v34  ;;  %v1277_v34 = vsel %vm5875_vm9, %v1275_v25, %v1276_v39  ;;  %v9226_v39 = vrot.slane %v6089_v35, 6  ;;  %v1285_v25 = vrot.slane %v6159_v29, 7  ;;  %v9230_v35 = vrot.slane %v6159_v29, 4 }
 0x127   : > { %9509 = vst [vmem:[#allocation75_spill] sm:$0xff] %v6137_v49 }
 0x128   : > { %9515 = vst [vmem:[#allocation81_spill] sm:$0xff] %v6162_v46 }
 0x129   : > { %9516 = vst [vmem:[#allocation82_spill] sm:$0xff] %v6165_v37 }
 0x12a   : > { %1430 = vrot.lane.b32.xlu0 %v1283_v41, %s5425_s27  ;;  %1428 = vrot.lane.b32.xlu2 %v1280_v55, %s5425_s27 }
 0x12b   : > { %1426 = vrot.lane.b32.xlu1 %v1277_v34, %s5425_s27  ;;  %v1217_v34 = vrot.slane %v6157_v38, 7 }
 0x12c   : > { %v6151_v43 = vpop.permute.xlu0 %1342  ;;  %v6153_v33 = vpop.permute.xlu2 %1356 }
 0x12d   : > { %9510 = vst [vmem:[#allocation76_spill] sm:$0xff] %v6151_v43  ;;  %v6155_v49 = vpop.permute.xlu1 %1602  ;;  %v1287_v43 = vrot.slane %v1285_v25, 2 }
 0x12e   : > { %9511 = vst [vmem:[#allocation77_spill] sm:$0xff] %v6153_v33  ;;  %v5164_v33 = vrot.slane %v9226_v39, 9  ;;  %v6196_v39 = vrot.slane %v6159_v29, 6 }
 0x12f   : > { %9512 = vst [vmem:[#allocation78_spill] sm:$0xff] %v6155_v49 }
 0x130   : > { %v1218_v18 = vsel %vm5875_vm9, %v5164_v33, %v1217_v34  ;;  %9522 = vst [vmem:[#allocation87_spill] sm:$0xff] %v6196_v39 }
 0x132   : > { %1648 = vrot.lane.b32.xlu0 %v6162_v46, %s5424_s26  ;;  %1646 = vrot.lane.b32.xlu2 %v6165_v37, %s5424_s26 }
 0x133   : > { %1644 = vrot.lane.b32.xlu1 %v6157_v38, %s5424_s26 }
 0x134   : > { %v6176_v41 = vpop.permute.xlu0 %1606  ;;  %v6178_v55 = vpop.permute.xlu2 %1616 }
 0x135   : > { %9517 = vst [vmem:[#allocation83_spill] sm:$0xff] %v6176_v41  ;;  %v6183_v49 = vpop.permute.xlu1 %1608 }
 0x136   : > { %9518 = vst [vmem:[#allocation84_spill] sm:$0xff] %v6178_v55  ;;  %v1289_v55 = vsel %vm5875_vm9, %v1287_v43, %v1288_v20  ;;  %v5167_v20 = vrot.slane %v9230_v35, 9  ;;  %v1292_v43 = vrot.slane %v6196_v39, 7  ;;  %v6221_v35 = vpop.f32.mrf.mxu2 }
 0x137   : > { %9519 = vst [vmem:[#allocation85_spill] sm:$0xff] %v6183_v49  ;;  %v1220_v49 = vrot.slane %v6165_v37, 7  ;;  %v1284_v37 = vrot.slane %v1282_v26, 2 }
 0x138   : > { %9526 = vst [vmem:[#allocation91_spill] sm:$0xff] %v6221_v35 }
 0x139   : > { %v1222_v41 = vrot.slane %v1220_v49, 2 }
 0x13a   : > { %1388 = vrot.lane.b32.xlu0 %v1218_v18, %s5425_s27  ;;  %1434 = vrot.lane.b32.xlu2 %v1289_v55, %s5425_s27  ;;  %v1223_v18 = vrot.slane %v6162_v46, 7  ;;  %v1293_v55 = vsel %vm5875_vm9, %v5167_v20, %v1292_v43  ;;  %v6229_v20 = vrot.slane %v6221_v35, 2 }
 0x13b   : > { %1650 = vrot.lane.b32.xlu1 %v6190_v17, %s5424_s26 }
 0x13c   : > { %v6203_v50 = vpop.permute.xlu0 %1352  ;;  %v6205_v33 = vpop.permute.xlu2 %1622  ;;  %v1224_v16 = vsel %vm5875_vm9, %v1222_v41, %v1223_v18  ;;  %9529 = vst [vmem:[#allocation94_spill] sm:$0xff] %v6229_v20  ;;  %v1225_v41 = vrot.slane %v1223_v18, 2  ;;  %v1295_v18 = vrot.slane %v6221_v35, 7 }
 0x13d   : > { %9523 = vst [vmem:[#allocation88_spill] sm:$0xff] %v6203_v50  ;;  %v6207_v38 = vpop.permute.xlu1 %1346 }
 0x13e   : > { %9524 = vst [vmem:[#allocation89_spill] sm:$0xff] %v6205_v33  ;;  %v1286_v33 = vsel %vm5875_vm9, %v1284_v37, %v1285_v25  ;;  %v1226_v37 = vrot.slane %v6190_v17, 7  ;;  %v1219_v25 = vrot.slane %v1217_v34, 2  ;;  %v6247_v34 = vrot.slane %v6221_v35, 4 }
 0x13f   : > { %9525 = vst [vmem:[#allocation90_spill] sm:$0xff] %v6207_v38 }
 0x140   : > { %9532 = vst [vmem:[#allocation97_spill] sm:$0xff] %v6247_v34  ;;  %v1301_v38 = vrot.slane %v6247_v34, 7 }
 0x142   : > { %1436 = vrot.lane.b32.xlu0 %v1293_v55, %s5425_s27  ;;  %1392 = vrot.lane.b32.xlu2 %v1224_v16, %s5425_s27  ;;  %v6234_v55 = vpop.f32.mrf.mxu0  ;;  %v1227_v16 = vsel %vm5875_vm9, %v1225_v41, %v1226_v37 }
 0x143   : > { %1432 = vrot.lane.b32.xlu1 %v1286_v33, %s5425_s27  ;;  %9531 = vst [vmem:[#allocation96_spill] sm:$0xff] %v6234_v55  ;;  %v1298_v33 = vrot.slane %v6229_v20, 7 }
 0x144   : > { %v6224_v26 = vpop.permute.xlu0 %1612  ;;  %v6226_v46 = vpop.permute.xlu2 %1362 }
 0x145   : > { %9527 = vst [vmem:[#allocation92_spill] sm:$0xff] %v6224_v26  ;;  %v6231_v50 = vpop.permute.xlu1 %1614  ;;  %v1221_v26 = vsel %vm5875_vm9, %v1219_v25, %v1220_v49  ;;  %v1300_v25 = vrot.slane %v1298_v33, 2 }
 0x146   : > { %9528 = vst [vmem:[#allocation93_spill] sm:$0xff] %v6226_v46  ;;  %v6254_v46 = vrot.slane %v6234_v55, 2 }
 0x147   : > { %9530 = vst [vmem:[#allocation95_spill] sm:$0xff] %v6231_v50  ;;  %v1294_v50 = vrot.slane %v1292_v43, 2  ;;  %v1229_v43 = vrot.slane %v6234_v55, 7 }
 0x148   : > { %9535 = vst [vmem:[#allocation100_spill] sm:$0xff] %v6254_v46 }
 0x149   : > { %v1231_v2 = vrot.slane %v1229_v43, 2 }
 0x14a   : > { %1394 = vrot.lane.b32.xlu0 %v1227_v16, %s5425_s27  ;;  %1652 = vrot.lane.b32.xlu2 %v6234_v55, %s5424_s26  ;;  %v1297_v16 = vrot.slane %v1295_v18, 2 }
 0x14b   : > { %1390 = vrot.lane.b32.xlu1 %v1221_v26, %s5425_s27  ;;  %v1302_v26 = vsel %vm5875_vm9, %v1300_v25, %v1301_v38 }
 0x14c   : > { %v6249_v17 = vpop.permute.xlu0 %1358  ;;  %v6251_v41 = vpop.permute.xlu2 %1628  ;;  %v1299_v6 = vsel %vm5875_vm9, %v1297_v16, %v1298_v33 }
 0x14d   : > { %9533 = vst [vmem:[#allocation98_spill] sm:$0xff] %v6249_v17  ;;  %v6256_v49 = vpop.permute.xlu1 %1354  ;;  %v1232_v17 = vrot.slane %v6254_v46, 7 }
 0x14e   : > { %9534 = vst [vmem:[#allocation99_spill] sm:$0xff] %v6251_v41  ;;  %v1296_v41 = vsel %vm5875_vm9, %v1294_v50, %v1295_v18  ;;  %v6280_v50 = vrot.slane %v6221_v35, 6  ;;  %v1228_v18 = vrot.slane %v1226_v37, 2  ;;  %v6295_v37 = vpop.f32.mrf.mxu0 }
 0x14f   : > { %9536 = vst [vmem:[#allocation101_spill] sm:$0xff] %v6256_v49  ;;  %v6271_v49 = vrot.slane %v6234_v55, 4  ;;  %v1234_v16 = vrot.slane %v1232_v17, 2 }
 0x150   : > { %9541 = vst [vmem:[#allocation106_spill] sm:$0xff] %v6280_v50  ;;  %v1230_v0 = vsel %vm5875_vm9, %v1228_v18, %v1229_v43 }
 0x151   : > { %9537 = vst [vmem:[#allocation102_spill] sm:$0xff] %v6271_v49 }
 0x152   : > { %1442 = vrot.lane.b32.xlu0 %v1302_v26, %s5425_s27  ;;  %1440 = vrot.lane.b32.xlu2 %v1299_v6, %s5425_s27  ;;  %v1235_v6 = vrot.slane %v6271_v49, 7  ;;  %9543 = vst [vmem:[#allocation108_spill] sm:$0xff] %v6295_v37 }
 0x153   : > { %1438 = vrot.lane.b32.xlu1 %v1296_v41, %s5425_s27  ;;  %v6283_v41 = vpop.f32.mrf.mxu2 }
 0x154   : > { %v6273_v25 = vpop.permute.xlu0 %1618  ;;  %v6275_v4 = vpop.permute.xlu2 %1368  ;;  %9542 = vst [vmem:[#allocation107_spill] sm:$0xff] %v6283_v41  ;;  %v1236_v26 = vsel %vm5875_vm9, %v1234_v16, %v1235_v6  ;;  %v6299_v16 = vrot.slane %v6283_v41, 2 }
 0x155   : > { %9538 = vst [vmem:[#allocation103_spill] sm:$0xff] %v6273_v25  ;;  %v6277_v33 = vpop.permute.xlu1 %1620  ;;  %v1233_v25 = vsel %vm5875_vm9, %v1231_v2, %v1232_v17  ;;  %v6306_v17 = vrot.slane %v6295_v37, 2 }
 0x156   : > { %9539 = vst [vmem:[#allocation104_spill] sm:$0xff] %v6275_v4  ;;  %v1304_v4 = vrot.slane %v6280_v50, 7 }
 0x157   : > { %9540 = vst [vmem:[#allocation105_spill] sm:$0xff] %v6277_v33  ;;  %v1307_v33 = vrot.slane %v6283_v41, 7 }
 0x158   : > { %9544 = vst [vmem:[#allocation109_spill] sm:$0xff] %v6299_v16  ;;  %v1306_v43 = vrot.slane %v1304_v4, 2 }
 0x159   : > { %9547 = vst [vmem:[#allocation112_spill] sm:$0xff] %v6306_v17  ;;  %v1309_v18 = vrot.slane %v1307_v33, 2 }
 0x15a   : > { %1400 = vrot.lane.b32.xlu0 %v1236_v26, %s5425_s27  ;;  %1398 = vrot.lane.b32.xlu2 %v1233_v25, %s5425_s27  ;;  %v1939_v26 = vld [vmem:[#allocation1] sm:$0xff]  ;;  %v1303_v25 = vrot.slane %v1301_v38, 2 }
 0x15b   : > { %1396 = vrot.lane.b32.xlu1 %v1230_v0, %s5425_s27  ;;  %5179 = vmatmul.msk.bf16.gmra.mxu1 %vm878_vm4, %v1939_v26  ;;  %1940 = vst [vmem:[#allocation1] ss:$9 sm:$0xff] %v5742_v62  ;;  %v1310_v0 = vrot.slane %v6299_v16, 7  ;;  %v9554_v26 = vld [vmem:[#allocation24_spill] sm:$0xff] }
 0x15c   : > { %v6301_v48 = vpop.permute.xlu0 %1364  ;;  %v6303_v2 = vpop.permute.xlu2 %1634  ;;  %1941 = vst [vmem:[#allocation1 + $0x1] ss:$9 sm:$0xff] %v5744_v63  ;;  %v1305_v38 = vsel %vm5875_vm9, %v1303_v25, %v1304_v4  ;;  %v9552_v4 = vld [vmem:[#allocation23_spill] sm:$0xff] }
 0x15d   : > { %9545 = vst [vmem:[#allocation110_spill] sm:$0xff] %v6301_v48  ;;  %v6308_v47 = vpop.permute.xlu1 %1360  ;;  %v1242_v48 = vrot.slane %v6306_v17, 7  ;;  %v1312_v62 = vrot.slane %v1310_v0, 2 }
 0x15e   : > { %9546 = vst [vmem:[#allocation111_spill] sm:$0xff] %v6303_v2  ;;  %v1308_v2 = vsel %vm5875_vm9, %v1306_v43, %v1307_v33  ;;  %v6328_v33 = vrot.slane %v6295_v37, 4 }
 0x15f   : > { %9548 = vst [vmem:[#allocation113_spill] sm:$0xff] %v6308_v47  ;;  %v1311_v47 = vsel %vm5875_vm9, %v1309_v18, %v1310_v0  ;;  %v1244_v25 = vrot.slane %v1242_v48, 2 }
 0x160   : > { %1942 = vst [vmem:[#allocation1 + $0x2] ss:$9 sm:$0xff] %v5746_v5 }
 0x161   : > { %1943 = vst [vmem:[#allocation1 + $0x3] ss:$9 sm:$0xff] %v5748_v60  ;;  %v1237_v60 = vrot.slane %v1235_v6, 2 }
 0x162   : > { %1446 = vrot.lane.b32.xlu2 %v1308_v2, %s5425_s27  ;;  %1448 = vrot.lane.b32.xlu0 %v1311_v47, %s5425_s27  ;;  %1944 = vst [vmem:[#allocation1 + $0x4] ss:$9 sm:$0xff] %v5754_v9  ;;  %v5165_v47 = vrot.slane %v6295_v37, 9  ;;  %v6341_v9 = vpop.f32.mrf.mxu2 }
 0x163   : > { %9549 = vst [vmem:[#allocation114_spill] sm:$0xff] %v6328_v33  ;;  %1444 = vrot.lane.b32.xlu1 %v1305_v38, %s5425_s27  ;;  %v9556_v38 = vrot.slane %v6234_v55, 6 }
 0x164   : > { %1945 = vst [vmem:[#allocation1 + $0x5] ss:$9 sm:$0xff] %v5758_v15  ;;  %v6332_v43 = vpop.permute.xlu0 %1624  ;;  %v6334_v18 = vpop.permute.xlu2 %1374  ;;  %v1245_v15 = vrot.slane %v6328_v33, 7 }
 0x165   : > { %9550 = vst [vmem:[#allocation115_spill] sm:$0xff] %v6332_v43  ;;  %v6337_v2 = vpop.permute.xlu1 %1366  ;;  %v1238_v5 = vrot.slane %v9556_v38, 7  ;;  %v9247_v38 = vrot.slane %v6283_v41, 4  ;;  %v6366_v43 = vrot.slane %v6295_v37, 6 }
 0x166   : > { %9551 = vst [vmem:[#allocation116_spill] sm:$0xff] %v6334_v18  ;;  %v1243_v18 = vsel %vm5875_vm9, %v5165_v47, %v1242_v48 }
 0x167   : > { %1946 = vst [vmem:[#allocation1 + $0x6] ss:$9 sm:$0xff] %v9552_v4  ;;  %v1317_v4 = vrot.slane %v6341_v9, 7  ;;  %v1239_v6 = vsel %vm5875_vm9, %v1237_v60, %v1238_v5  ;;  %v9562_v5 = vrot.slane %v6283_v41, 6  ;;  %v1248_v0 = vrot.slane %v6366_v43, 7 }
 0x168   : > { %9553 = vst [vmem:[#allocation117_spill] sm:$0xff] %v6337_v2  ;;  %v1246_v2 = vsel %vm5875_vm9, %v1244_v25, %v1245_v15 }
 0x169   : > { %1947 = vst [vmem:[#allocation1 + $0x7] ss:$9 sm:$0xff] %v9554_v26  ;;  %v6353_v26 = vrot.slane %v6341_v9, 2  ;;  %v1319_v48 = vrot.slane %v1317_v4, 2  ;;  %v5168_v60 = vrot.slane %v9562_v5, 9 }
 0x16a   : > { %9555 = vst [vmem:[#allocation118_spill] sm:$0xff] %v6341_v9  ;;  %1404 = vrot.lane.b32.xlu2 %v1243_v18, %s5425_s27  ;;  %1406 = vrot.lane.b32.xlu0 %v1246_v2, %s5425_s27 }
 0x16b   : > { %9557 = vst [vmem:[#allocation119_spill] sm:$0xff] %v6353_v26  ;;  %1402 = vrot.lane.b32.xlu1 %v1239_v6, %s5425_s27  ;;  %v1320_v18 = vrot.slane %v6353_v26, 7  ;;  %v1313_v6 = vrot.slane %v9247_v38, 7  ;;  %v1318_v5 = vsel %vm5875_vm9, %v5168_v60, %v1317_v4  ;;  %v9570_v60 = vld [vmem:[#allocation30_spill] sm:$0xff] }
 0x16c   : > { %v6361_v47 = vpop.permute.xlu0 %1370  ;;  %v6363_v25 = vpop.permute.xlu2 %1380  ;;  %9560 = vst [vmem:[#allocation122_spill] sm:$0xff] %v6366_v43 }
 0x16d   : > { %9558 = vst [vmem:[#allocation120_spill] sm:$0xff] %v6361_v47  ;;  %v6368_v63 = vpop.permute.xlu1 %1626  ;;  %v9563_v47 = vld [vmem:[#allocation25_spill] sm:$0xff]  ;;  %v1321_v37 = vsel %vm5875_vm9, %v1319_v48, %v1320_v18  ;;  %v1314_v48 = vsel %vm5875_vm9, %v1312_v62, %v1313_v6  ;;  %v1250_v6 = vrot.slane %v1248_v0, 2 }
 0x16e   : > { %9559 = vst [vmem:[#allocation121_spill] sm:$0xff] %v6363_v25  ;;  %v9564_v25 = vld [vmem:[#allocation26_spill] sm:$0xff] }
 0x16f   : > { %9561 = vst [vmem:[#allocation123_spill] sm:$0xff] %v6368_v63  ;;  %v6380_v63 = vpop.f32.mrf.mxu0 }
 0x170   : > { %v1948_v2 = vld [vmem:[#allocation1] sm:$0xff]  ;;  %9565 = vst [vmem:[#allocation124_spill] sm:$0xff] %v6380_v63  ;;  %v1251_v38 = vrot.slane %v6380_v63, 7 }
 0x171   : > { %5180 = vmatmul.msk.bf16.gmra.mxu1 %vm878_vm4, %v1948_v2  ;;  %1949 = vst [vmem:[#allocation1] ss:$9 sm:$0xff] %v9563_v47  ;;  %v6388_v2 = vrot.slane %v6380_v63, 2  ;;  %v9568_v47 = vld [vmem:[#allocation28_spill] sm:$0xff] }
 0x172   : > { %1950 = vst [vmem:[#allocation1 + $0x1] ss:$9 sm:$0xff] %v9564_v25  ;;  %1452 = vrot.lane.b32.xlu2 %v1318_v5, %s5425_s27  ;;  %1454 = vrot.lane.b32.xlu0 %v1321_v37, %s5425_s27  ;;  %v1253_v4 = vrot.slane %v1251_v38, 2  ;;  %v6410_v5 = vrot.slane %v6341_v9, 6 }
 0x173   : > { %1951 = vst [vmem:[#allocation1 + $0x2] ss:$9 sm:$0xff] %v9566_v44  ;;  %v9569_v44 = vld [vmem:[#allocation29_spill] sm:$0xff]  ;;  %1450 = vrot.lane.b32.xlu1 %v1314_v48, %s5425_s27  ;;  %v1254_v37 = vrot.slane %v6388_v2, 7  ;;  %v1247_v48 = vrot.slane %v1245_v15, 2  ;;  %v6427_v15 = vrot.slane %v6380_v63, 4 }
 0x174   : > { %9567 = vst [vmem:[#allocation125_spill] sm:$0xff] %v6388_v2  ;;  %v6398_v25 = vpop.permute.xlu0 %1630  ;;  %v6400_v42 = vpop.permute.xlu2 %1640 }
 0x175   : > { %1952 = vst [vmem:[#allocation1 + $0x3] ss:$9 sm:$0xff] %v9568_v47  ;;  %v6404_v47 = vrot.slane %v6341_v9, 4  ;;  %v6406_v62 = vpop.permute.xlu1 %1372 }
 0x176   : > { %1953 = vst [vmem:[#allocation1 + $0x4] ss:$9 sm:$0xff] %v9569_v44  ;;  %v6423_v44 = vpop.f32.mrf.mxu2 }
 0x177   : > { %1954 = vst [vmem:[#allocation1 + $0x5] ss:$9 sm:$0xff] %v9570_v60  ;;  %v1326_v60 = vrot.slane %v6410_v5, 7 }
 0x178   : > { %9571 = vst [vmem:[#allocation126_spill] sm:$0xff] %v6398_v25  ;;  %v1255_v25 = vsel %vm5875_vm9, %v1253_v4, %v1254_v37 }
 0x179   : > { %9572 = vst [vmem:[#allocation127_spill] sm:$0xff] %v6400_v42  ;;  %v1252_v42 = vsel %vm5875_vm9, %v1250_v6, %v1251_v38  ;;  %v1328_v24 = vrot.slane %v1326_v60, 2 }
 0x17a   : > { %1955 = vst [vmem:[#allocation1 + $0x6] ss:$9 sm:$0xff] %v9573_v40  ;;  %v1323_v40 = vrot.slane %v6404_v47, 7  ;;  %1410 = vrot.lane.b32.xlu2 %v1252_v42, %s5425_s27  ;;  %1412 = vrot.lane.b32.xlu0 %v1255_v25, %s5425_s27  ;;  %v6437_v42 = vrot.slane %v6380_v63, 6  ;;  %v1322_v25 = vrot.slane %v1320_v18, 2 }
 0x17b   : > { %9574 = vst [vmem:[#allocation128_spill] sm:$0xff] %v6404_v47 }
 0x17c   : > { %9575 = vst [vmem:[#allocation129_spill] sm:$0xff] %v6406_v62  ;;  %v1249_v62 = vsel %vm5875_vm9, %v1247_v48, %v1248_v0  ;;  %v6429_v4 = vpop.permute.xlu0 %1636  ;;  %v6431_v38 = vpop.permute.xlu2 %1386  ;;  %v1329_v0 = vrot.slane %v6423_v44, 7  ;;  %v1324_v18 = vsel %vm5875_vm9, %v1322_v25, %v1323_v40 }
 0x17d   : > { %9576 = vst [vmem:[#allocation130_spill] sm:$0xff] %v6410_v5  ;;  %1408 = vrot.lane.b32.xlu1 %v1249_v62, %s5425_s27  ;;  %v6433_v6 = vpop.permute.xlu1 %1632 }
 0x17e   : > { %1956 = vst [vmem:[#allocation1 + $0x7] ss:$9 sm:$0xff] %v5808_v61  ;;  %v1325_v61 = vrot.slane %v1323_v40, 2  ;;  %v6467_v40 = vrot.slane %v6423_v44, 4 }
 0x17f   : > { %9577 = vst [vmem:[#allocation131_spill] sm:$0xff] %v6423_v44 }
 0x180   : > { %9578 = vst [vmem:[#allocation132_spill] sm:$0xff] %v6427_v15  ;;  %v1327_v62 = vsel %vm5875_vm9, %v1325_v61, %v1326_v60 }
 0x181   : > { %9579 = vst [vmem:[#allocation133_spill] sm:$0xff] %v6429_v4  ;;  %v1257_v4 = vrot.slane %v6427_v15, 7 }
 0x182   : > { %9580 = vst [vmem:[#allocation134_spill] sm:$0xff] %v6431_v38  ;;  %v1330_v38 = vsel %vm5875_vm9, %v1328_v24, %v1329_v0  ;;  %1458 = vrot.lane.b32.xlu2 %v1327_v62, %s5425_s27  ;;  %v6459_v24 = vrot.slane %v6423_v44, 2 }
 0x183   : > { %9581 = vst [vmem:[#allocation135_spill] sm:$0xff] %v6433_v6  ;;  %v1260_v6 = vrot.slane %v6437_v42, 7  ;;  %1460 = vrot.lane.b32.xlu0 %v1330_v38, %s5425_s27  ;;  %v1259_v25 = vrot.slane %v1257_v4, 2 }
 0x184   : > { %9582 = vst [vmem:[#allocation136_spill] sm:$0xff] %v6437_v42  ;;  %v6461_v61 = vpop.permute.xlu0 %1376  ;;  %v6463_v60 = vpop.permute.xlu2 %1428 }
 0x185   : > { %v1957_v48 = vld [vmem:[#allocation1] sm:$0xff]  ;;  %1456 = vrot.lane.b32.xlu1 %v1324_v18, %s5425_s27  ;;  %9584 = vst [vmem:[#allocation138_spill] sm:$0xff] %v6459_v24  ;;  %v6469_v38 = vpop.permute.xlu1 %1378  ;;  %v1262_v62 = vrot.slane %v1260_v6, 2 }
 0x186   : > { %5181 = vmatmul.msk.bf16.gmra.mxu1 %vm878_vm4, %v1957_v48  ;;  %1958 = vst [vmem:[#allocation1] ss:$9 sm:$0xff] %v5811_v30  ;;  %v6454_v48 = vpop.f32.mrf.mxu0  ;;  %v9597_v30 = vrot.slane %v6101_v28, 7 }
 0x187   : > { %1959 = vst [vmem:[#allocation1 + $0x1] ss:$9 sm:$0xff] %v5814_v32  ;;  %v1263_v18 = vrot.slane %v6454_v48, 7  ;;  %v463_v32 = vld [vmem:[%s5536_s23 + $0x54] sm:$0xf] }
 0x188   : > { %1960 = vst [vmem:[#allocation1 + $0x2] ss:$9 sm:$0xff] %v5819_v59  ;;  %v1332_v59 = vrot.slane %v6459_v24, 7 }
 0x189   : > { %1961 = vst [vmem:[#allocation1 + $0x3] ss:$9 sm:$0xff] %v5821_v19  ;;  %v9257_v19 = vrot.slane %v6423_v44, 6 }
 0x18a   : > { %9583 = vst [vmem:[#allocation137_spill] sm:$0xff] %v6454_v48 }
 0x18b   : > { %1962 = vst [vmem:[#allocation1 + $0x4] ss:$9 sm:$0xff] %v5825_v8  ;;  %v1256_v8 = vrot.slane %v1254_v37, 2  ;;  %v6486_v37 = vrot.slane %v6454_v48, 4 }
 0x18c   : > { %9585 = vst [vmem:[#allocation139_spill] sm:$0xff] %v6461_v61  ;;  %v1261_v61 = vsel %vm5875_vm9, %v1259_v25, %v1260_v6  ;;  %v6488_v6 = vpop.permute.xlu0 %1642  ;;  %v6490_v25 = vpop.permute.xlu2 %1646 }
 0x18d   : > { %9586 = vst [vmem:[#allocation140_spill] sm:$0xff] %v6463_v60  ;;  %v1264_v60 = vsel %vm5875_vm9, %v1262_v62, %v1263_v18  ;;  %1416 = vrot.lane.b32.xlu2 %v1261_v61, %s5425_s27  ;;  %v6493_v62 = vrot.slane %v6454_v48, 6  ;;  %v6495_v18 = vpop.permute.xlu1 %1638 }
 0x18e   : > { %1963 = vst [vmem:[#allocation1 + $0x5] ss:$9 sm:$0xff] %v5828_v27  ;;  %v1335_v27 = vrot.slane %v6467_v40, 7  ;;  %1418 = vrot.lane.b32.xlu0 %v1264_v60, %s5425_s27  ;;  %v1331_v60 = vrot.slane %v1329_v0, 2  ;;  %v9260_v0 = vrot.slane %v6454_v48, 2 }
 0x18f   : > { %9587 = vst [vmem:[#allocation141_spill] sm:$0xff] %v6467_v40 }
 0x190   : > { %9588 = vst [vmem:[#allocation142_spill] sm:$0xff] %v6469_v38  ;;  %v1258_v38 = vsel %vm5875_vm9, %v1256_v8, %v1257_v4  ;;  %v1337_v61 = vrot.slane %v1335_v27, 2  ;;  %v1338_v8 = vrot.slane %v9257_v19, 7  ;;  %v1334_v4 = vrot.slane %v1332_v59, 2 }
 0x191   : > { %1964 = vst [vmem:[#allocation1 + $0x6] ss:$9 sm:$0xff] %v5833_v31  ;;  %1414 = vrot.lane.b32.xlu1 %v1258_v38, %s5425_s27  ;;  %v1267_v31 = vrot.slane %v6486_v37, 7  ;;  %v1333_v19 = vsel %vm5875_vm9, %v1331_v60, %v1332_v59 }
 0x192   : > { %9589 = vst [vmem:[#allocation143_spill] sm:$0xff] %v6486_v37  ;;  %v1339_v38 = vsel %vm5875_vm9, %v1337_v61, %v1338_v8 }
 0x193   : > { %9590 = vst [vmem:[#allocation144_spill] sm:$0xff] %v6488_v6  ;;  %v1336_v6 = vsel %vm5875_vm9, %v1334_v4, %v1335_v27  ;;  %v1269_v4 = vrot.slane %v1267_v31, 2 }
 0x194   : > { %9591 = vst [vmem:[#allocation145_spill] sm:$0xff] %v6490_v25  ;;  %v1270_v25 = vrot.slane %v6493_v62, 7  ;;  %v6513_v61 = vpop.permute.xlu2 %1434 }
 0x195   : > { %9592 = vst [vmem:[#allocation146_spill] sm:$0xff] %v6493_v62  ;;  %1464 = vrot.lane.b32.xlu2 %v1336_v6, %s5425_s27  ;;  %v6515_v27 = vpop.permute.xlu1 %1384  ;;  %v1855_v6 = vrot.slane %v463_v32, 3 }
 0x196   : > { %9593 = vst [vmem:[#allocation147_spill] sm:$0xff] %v6495_v18  ;;  %1466 = vrot.lane.b32.xlu0 %v1339_v38, %s5425_s27  ;;  %v6511_v18 = vpop.permute.xlu0 %1382  ;;  %v1272_v8 = vrot.slane %v1270_v25, 2  ;;  %v5166_v38 = vrot.slane %v9260_v0, 9 }
 0x197   : > { %9594 = vst [vmem:[#allocation148_spill] sm:$0xff] %v6511_v18  ;;  %v6527_v60 = vsel %vm514_vm0, %v463_v32, %v1855_v6 }
 0x198   : > { %9595 = vst [vmem:[#allocation149_spill] sm:$0xff] %v6513_v61  ;;  %v1274_v59 = vsel %vm5875_vm9, %v1272_v8, %v9597_v30  ;;  %v1268_v0 = vsel %vm5875_vm9, %v5166_v38, %v1267_v31  ;;  %v6561_v61 = vsel %vm522_vm2, %v463_v32, %v1855_v6 }
 0x199   : > { %1462 = vrot.lane.b32.xlu1 %v1333_v19, %s5425_s27  ;;  %9596 = vst [vmem:[#allocation150_spill] sm:$0xff] %v6515_v27  ;;  %v1271_v19 = vsel %vm5875_vm9, %v1269_v4, %v1270_v25 }
 0x19a   : > { %1965 = vst [vmem:[#allocation1 + $0x7] ss:$9 sm:$0xff] %v6527_v60 }
 0x19c   : > { %v6537_v8 = vpop.permute.xlu2 %1392 }
 0x19d   : > { %1422 = vrot.lane.b32.xlu2 %v1271_v19, %s5425_s27  ;;  %9599 = vst [vmem:[#allocation152_spill] sm:$0xff] %v6537_v8  ;;  %v6539_v25 = vpop.permute.xlu1 %1426  ;;  %v464_v19 = vld [vmem:[%s5536_s23 + $0x58] sm:$0xf] }
 0x19e   : > { %1424 = vrot.lane.b32.xlu0 %v1274_v59, %s5425_s27  ;;  %v6535_v30 = vpop.permute.xlu0 %1430  ;;  %9600 = vst [vmem:[#allocation153_spill] sm:$0xff] %v6539_v25  ;;  %v9601_v59 = vrot.slane %v6234_v55, 6  ;;  %v6558_v25 = vsel %vm518_vm1, %v463_v32, %v1855_v6  ;;  %v9266_v55 = vrot.slane %v6561_v61, 2 }
 0x19f   : > { %9598 = vst [vmem:[#allocation151_spill] sm:$0xff] %v6535_v30  ;;  %v465_v30 = vld [vmem:[%s5536_s23 + $0x5c] sm:$0x1] }
 0x1a1   : > { %1420 = vrot.lane.b32.xlu1 %v1268_v0, %s5425_s27  ;;  %v1966_v4 = vld [vmem:[#allocation1] sm:$0xff] }
 0x1a2   : > { %5182 = vmatmul.msk.bf16.gmra.mxu1 %vm878_vm4, %v1966_v4  ;;  %v9264_v4 = vrot.slane %v6558_v25, 1  ;;  %1970 = vst [vmem:[#allocation1 + $0x1] ss:$9 sm:$0xff] %v9266_v55 }
 0x1a4   : > { %v6551_v0 = vpop.permute.xlu2 %1652  ;;  %1968 = vst [vmem:[#allocation1] ss:$9 sm:$0xff] %v9264_v4 }
 0x1a5   : > { %1658 = vrot.lane.b32.xlu2 %v9601_v59, %s5424_s26  ;;  %9603 = vst [vmem:[#allocation155_spill] sm:$0xff] %v6551_v0  ;;  %v6553_v38 = vpop.permute.xlu1 %1644  ;;  %v6564_v59 = vsel %vm526_vm3, %v463_v32, %v1855_v6 }
 0x1a6   : > { %1654 = vrot.lane.b32.xlu0 %v6254_v46, %s5424_s26  ;;  %v6549_v31 = vpop.permute.xlu0 %1648  ;;  %9604 = vst [vmem:[#allocation156_spill] sm:$0xff] %v6553_v38  ;;  %v1856_v46 = vrot.slane %v464_v19, 3 }
 0x1a7   : > { %9602 = vst [vmem:[#allocation154_spill] sm:$0xff] %v6549_v31  ;;  %v1857_v31 = vrot.slane %v465_v30, 3 }
 0x1a8   : > { %v6570_v38 = vsel %vm514_vm0, %v464_v19, %v1856_v46  ;;  %v6576_v0 = vsel %vm522_vm2, %v464_v19, %v1856_v46  ;;  %v6579_v32 = vsel %vm526_vm3, %v464_v19, %v1856_v46 }
 0x1a9   : > { %1656 = vrot.lane.b32.xlu1 %v6271_v49, %s5424_s26  ;;  %v6573_v49 = vsel %vm518_vm1, %v464_v19, %v1856_v46  ;;  %v9268_v46 = vrot.slane %v6579_v32, 3  ;;  %v9605_v19 = vrot.slane %v6564_v59, 3  ;;  %1973 = vst [vmem:[#allocation1 + $0x3] ss:$9 sm:$0xff] %v6570_v38  ;;  %v6604_v8 = vsel %vm514_vm0, %v465_v30, %v1857_v31 }
 0x1aa   : > { %v9609_v55 = vrot.slane %v6573_v49, 1  ;;  %1980 = vst [vmem:[#allocation1 + $0x7] ss:$9 sm:$0xff] %v6604_v8 }
 0x1ab   : > { %1972 = vst [vmem:[#allocation1 + $0x2] ss:$9 sm:$0xff] %v9605_v19 }
 0x1ac   : > { %1975 = vst [vmem:[#allocation1 + $0x4] ss:$9 sm:$0xff] %v9609_v55 }
 0x1ad   : > { %1664 = vrot.lane.b32.xlu2 %v6366_v43, %s5424_s26  ;;  %v6601_v6 = vpop.permute.xlu1 %1650  ;;  %v9610_v43 = vrot.slane %v6576_v0, 2  ;;  %1979 = vst [vmem:[#allocation1 + $0x6] ss:$9 sm:$0xff] %v9268_v46 }
 0x1ae   : > { %1660 = vrot.lane.b32.xlu0 %v6306_v17, %s5424_s26  ;;  %v6596_v4 = vpop.permute.xlu0 %1388  ;;  %v6598_v17 = vpop.permute.xlu2 %1440  ;;  %9608 = vst [vmem:[#allocation159_spill] sm:$0xff] %v6601_v6 }
 0x1af   : > { %9606 = vst [vmem:[#allocation157_spill] sm:$0xff] %v6596_v4 }
 0x1b0   : > { %9607 = vst [vmem:[#allocation158_spill] sm:$0xff] %v6598_v17 }
 0x1b1   : > { %1662 = vrot.lane.b32.xlu1 %v6328_v33, %s5424_s26  ;;  %1977 = vst [vmem:[#allocation1 + $0x5] ss:$9 sm:$0xff] %v9610_v43 }
 0x1b5   : > { %1670 = vrot.lane.b32.xlu2 %v6427_v15, %s5424_s26  ;;  %v6623_v31 = vpop.permute.xlu1 %1432 }
 0x1b6   : > { %1666 = vrot.lane.b32.xlu0 %v6380_v63, %s5424_s26  ;;  %v6619_v30 = vpop.permute.xlu0 %1436  ;;  %v6621_v55 = vpop.permute.xlu2 %1398  ;;  %9613 = vst [vmem:[#allocation162_spill] sm:$0xff] %v6623_v31 }
 0x1b7   : > { %9611 = vst [vmem:[#allocation160_spill] sm:$0xff] %v6619_v30 }
 0x1b8   : > { %9612 = vst [vmem:[#allocation161_spill] sm:$0xff] %v6621_v55  ;;  %v1981_v43 = vld [vmem:[#allocation1] sm:$0xff] }
 0x1b9   : > { %1668 = vrot.lane.b32.xlu1 %v6388_v2, %s5424_s26  ;;  %5183 = vmatmul.msk.bf16.gmra.mxu1 %vm878_vm4, %v1981_v43  ;;  %2992 = vst [vmem:[#allocation1] ss:$9 sm:$0xff] %v5598_v52 }
 0x1ba   : > { %2994 = vst [vmem:[#allocation1 + $0x1] ss:$9 sm:$0xff] %v5600_v53 }
 0x1bb   : > { %2996 = vst [vmem:[#allocation1 + $0x2] ss:$9 sm:$0xff] %v5602_v54 }
 0x1bc   : > { %2998 = vst [vmem:[#allocation1 + $0x3] ss:$9 sm:$0xff] %v5608_v56 }
 0x1bd   : > { %1676 = vrot.lane.b32.xlu2 %v6486_v37, %s5424_s26  ;;  %3000 = vst [vmem:[#allocation1 + $0x4] ss:$9 sm:$0xff] %v5613_v57  ;;  %v6641_v52 = vpop.permute.xlu1 %1390 }
 0x1be   : > { %1672 = vrot.lane.b32.xlu0 %v6437_v42, %s5424_s26  ;;  %v6636_v19 = vpop.permute.xlu0 %1394  ;;  %v6638_v43 = vpop.permute.xlu2 %1446  ;;  %9616 = vst [vmem:[#allocation165_spill] sm:$0xff] %v6641_v52 }
 0x1bf   : > { %9614 = vst [vmem:[#allocation163_spill] sm:$0xff] %v6636_v19 }
 0x1c0   : > { %9615 = vst [vmem:[#allocation164_spill] sm:$0xff] %v6638_v43 }
 0x1c1   : > { %1674 = vrot.lane.b32.xlu1 %v6454_v48, %s5424_s26  ;;  %3002 = vst [vmem:[#allocation1 + $0x5] ss:$9 sm:$0xff] %v5615_v58 }
 0x1c2   : > { %3004 = vst [vmem:[#allocation1 + $0x6] ss:$9 sm:$0xff] %v5626_v1 }
 0x1c3   : > { %3006 = vst [vmem:[#allocation1 + $0x7] ss:$9 sm:$0xff] %v5629_v3  ;;  %v9623_v3 = vrot.slane %v6159_v29, 2 }
 0x1c5   : > { %1682 = vrot.lane.b32.xlu2 %v6111_v21, %s5424_s26  ;;  %v6656_v56 = vpop.permute.xlu1 %1438 }
 0x1c6   : > { %1678 = vrot.lane.b32.xlu0 %v6493_v62, %s5424_s26  ;;  %v6652_v53 = vpop.permute.xlu0 %1442  ;;  %v6654_v54 = vpop.permute.xlu2 %1404  ;;  %9619 = vst [vmem:[#allocation168_spill] sm:$0xff] %v6656_v56 }
 0x1c7   : > { %9617 = vst [vmem:[#allocation166_spill] sm:$0xff] %v6652_v53 }
 0x1c8   : > { %9618 = vst [vmem:[#allocation167_spill] sm:$0xff] %v6654_v54 }
 0x1c9   : > { %1680 = vrot.lane.b32.xlu1 %v6101_v28, %s5424_s26 }
 0x1cd   : > { %1688 = vrot.lane.b32.xlu2 %v6159_v29, %s5424_s26  ;;  %v6668_v1 = vpop.permute.xlu1 %1396 }
 0x1ce   : > { %1684 = vrot.lane.b32.xlu0 %v6114_v45, %s5424_s26  ;;  %v6664_v57 = vpop.permute.xlu0 %1400  ;;  %v6666_v58 = vpop.permute.xlu2 %1452  ;;  %9622 = vst [vmem:[#allocation171_spill] sm:$0xff] %v6668_v1 }
 0x1cf   : > { %9620 = vst [vmem:[#allocation169_spill] sm:$0xff] %v6664_v57 }
 0x1d0   : > { %9621 = vst [vmem:[#allocation170_spill] sm:$0xff] %v6666_v58 }
 0x1d1   : > { %1686 = vrot.lane.b32.xlu1 %v6131_v51, %s5424_s26 }
 0x1d5   : > { %1694 = vrot.lane.b32.xlu2 %v6221_v35, %s5424_s26  ;;  %v6681_v17 = vpop.permute.xlu1 %1444 }
 0x1d6   : > { %1690 = vrot.lane.b32.xlu0 %v9623_v3, %s5424_s26  ;;  %v6677_v46 = vpop.permute.xlu0 %1448  ;;  %v6679_v43 = vpop.permute.xlu2 %1410  ;;  %9626 = vst [vmem:[#allocation174_spill] sm:$0xff] %v6681_v17 }
 0x1d7   : > { %9624 = vst [vmem:[#allocation172_spill] sm:$0xff] %v6677_v46  ;;  %v9630_v46 = vrot.slane %v6283_v41, 4 }
 0x1d8   : > { %9625 = vst [vmem:[#allocation173_spill] sm:$0xff] %v6679_v43 }
 0x1d9   : > { %1692 = vrot.lane.b32.xlu1 %v6196_v39, %s5424_s26 }
 0x1dd   : > { %1700 = vrot.lane.b32.xlu2 %v6280_v50, %s5424_s26  ;;  %v6693_v35 = vpop.permute.xlu1 %1402 }
 0x1de   : > { %1696 = vrot.lane.b32.xlu0 %v6229_v20, %s5424_s26  ;;  %v6689_v3 = vpop.permute.xlu0 %1406  ;;  %v6691_v58 = vpop.permute.xlu2 %1458  ;;  %9629 = vst [vmem:[#allocation177_spill] sm:$0xff] %v6693_v35 }
 0x1df   : > { %9627 = vst [vmem:[#allocation175_spill] sm:$0xff] %v6689_v3 }
 0x1e0   : > { %9628 = vst [vmem:[#allocation176_spill] sm:$0xff] %v6691_v58 }
 0x1e1   : > { %1698 = vrot.lane.b32.xlu1 %v6247_v34, %s5424_s26 }
 0x1e5   : > { %1706 = vrot.lane.b32.xlu2 %v9630_v46, %s5424_s26  ;;  %v6706_v20 = vpop.permute.xlu1 %1450 }
 0x1e6   : > { %1702 = vrot.lane.b32.xlu0 %v6283_v41, %s5424_s26  ;;  %v6704_v53 = vpop.permute.xlu0 %1454  ;;  %9633 = vst [vmem:[#allocation180_spill] sm:$0xff] %v6706_v20 }
 0x1e7   : > { %v6702_v50 = vpop.permute.xlu2 %1416  ;;  %9632 = vst [vmem:[#allocation179_spill] sm:$0xff] %v6704_v53 }
 0x1e8   : > { %9631 = vst [vmem:[#allocation178_spill] sm:$0xff] %v6702_v50 }
 0x1e9   : > { %1704 = vrot.lane.b32.xlu1 %v6299_v16, %s5424_s26  ;;  %v6720_v16 = vpop.f32.mrf.mxu1 }
 0x1ea   : > { %v6723_v53 = vrot.slane %v6720_v16, 2  ;;  %v6740_v30 = vrot.slane %v6720_v16, 6 }
 0x1ec   : > { %v2252_v17 = vrot.slane %v6740_v30, 7 }
 0x1ed   : > { %1712 = vrot.lane.b32.xlu2 %v6404_v47, %s5424_s26 }
 0x1ee   : > { %1708 = vrot.lane.b32.xlu0 %v6341_v9, %s5424_s26  ;;  %v6714_v58 = vpop.permute.xlu0 %1412  ;;  %v2254_v51 = vrot.slane %v2252_v17, 2 }
 0x1ef   : > { %9634 = vst [vmem:[#allocation181_spill] sm:$0xff] %v6714_v58  ;;  %v6716_v46 = vpop.permute.xlu2 %1464  ;;  %v6718_v41 = vpop.permute.xlu1 %1408 }
 0x1f0   : > { %9635 = vst [vmem:[#allocation182_spill] sm:$0xff] %v6716_v46  ;;  %v2246_v46 = vrot.slane %v6723_v53, 7 }
 0x1f1   : > { %1710 = vrot.lane.b32.xlu1 %v6353_v26, %s5424_s26  ;;  %9636 = vst [vmem:[#allocation183_spill] sm:$0xff] %v6718_v41  ;;  %v5184_v26 = vrot.slane %v6720_v16, 9  ;;  %v6752_v34 = vpop.f32.mrf.mxu1 }
 0x1f2   : > { %v2248_v31 = vrot.slane %v2246_v46, 2  ;;  %v6768_v62 = vrot.slane %v6752_v34, 2 }
 0x1f4   : > { %v2258_v29 = vrot.slane %v6768_v62, 7 }
 0x1f5   : > { %1718 = vrot.lane.b32.xlu2 %v6459_v24, %s5424_s26  ;;  %v6745_v24 = vrot.slane %v6720_v16, 4 }
 0x1f6   : > { %1714 = vrot.lane.b32.xlu0 %v6410_v5, %s5424_s26  ;;  %v6733_v47 = vpop.permute.xlu0 %1460  ;;  %v2247_v5 = vsel %vm5875_vm9, %v5184_v26, %v2246_v46 }
 0x1f7   : > { %9637 = vst [vmem:[#allocation184_spill] sm:$0xff] %v6733_v47  ;;  %v6735_v9 = vpop.permute.xlu2 %1422  ;;  %v6737_v20 = vpop.permute.xlu1 %1456  ;;  %v2249_v47 = vrot.slane %v6745_v24, 7 }
 0x1f8   : > { %9638 = vst [vmem:[#allocation185_spill] sm:$0xff] %v6735_v9  ;;  %v2260_v9 = vrot.slane %v2258_v29, 2 }
 0x1f9   : > { %1716 = vrot.lane.b32.xlu1 %v6423_v44, %s5424_s26  ;;  %9639 = vst [vmem:[#allocation186_spill] sm:$0xff] %v6737_v20  ;;  %v9640_v20 = vrot.slane %v6423_v44, 6  ;;  %v2251_v45 = vrot.slane %v2249_v47, 2  ;;  %v6780_v48 = vpop.f32.mrf.mxu1 }
 0x1fa   : > { %9644 = vst [vmem:[#allocation190_spill] sm:$0xff] %v6780_v48  ;;  %v6807_v50 = vrot.slane %v6780_v48, 6 }
 0x1fb   : > { %v2253_v46 = vsel %vm5875_vm9, %v2251_v45, %v2252_v17 }
 0x1fc   : > { %9649 = vst [vmem:[#allocation195_spill] sm:$0xff] %v6807_v50 }
 0x1fd   : > { %2444 = vrot.lane.b32.xlu2 %v2247_v5, %s5425_s27  ;;  %v6765_v5 = vrot.slane %v6752_v34, 4 }
 0x1fe   : > { %1720 = vrot.lane.b32.xlu0 %v6467_v40, %s5424_s26  ;;  %v2255_v40 = vrot.slane %v6752_v34, 7 }
 0x1ff   : > { %v6759_v26 = vpop.permute.xlu2 %1658  ;;  %v2261_v28 = vrot.slane %v6765_v5, 7 }
 0x200   : > { %v6757_v56 = vpop.permute.xlu0 %1418  ;;  %9642 = vst [vmem:[#allocation188_spill] sm:$0xff] %v6759_v26  ;;  %v2256_v44 = vsel %vm5875_vm9, %v2254_v51, %v2255_v40  ;;  %v2257_v21 = vrot.slane %v2255_v40, 2  ;;  %v9295_v40 = vrot.slane %v6780_v48, 2 }
 0x201   : > { %1722 = vrot.lane.b32.xlu1 %v9640_v20, %s5424_s26  ;;  %9641 = vst [vmem:[#allocation187_spill] sm:$0xff] %v6757_v56  ;;  %v2250_v20 = vsel %vm5875_vm9, %v2248_v31, %v2249_v47  ;;  %v6784_v47 = vrot.slane %v6752_v34, 6  ;;  %v2263_v45 = vrot.slane %v2261_v28, 2 }
 0x203   : > { %v6761_v39 = vpop.permute.xlu1 %1414  ;;  %v2264_v17 = vrot.slane %v6784_v47, 7 }
 0x204   : > { %9643 = vst [vmem:[#allocation189_spill] sm:$0xff] %v6761_v39 }
 0x205   : > { %2450 = vrot.lane.b32.xlu2 %v2256_v44, %s5425_s27 }
 0x206   : > { %2446 = vrot.lane.b32.xlu0 %v2250_v20, %s5425_s27  ;;  %v6791_v20 = vrot.slane %v6780_v48, 4 }
 0x207   : > { %v6788_v51 = vpop.permute.xlu2 %1664 }
 0x208   : > { %v6786_v31 = vpop.permute.xlu0 %1466  ;;  %9646 = vst [vmem:[#allocation192_spill] sm:$0xff] %v6788_v51  ;;  %v2271_v37 = vrot.slane %v6791_v20, 7 }
 0x209   : > { %2448 = vrot.lane.b32.xlu1 %v2253_v46, %s5425_s27  ;;  %9645 = vst [vmem:[#allocation191_spill] sm:$0xff] %v6786_v31  ;;  %v2259_v46 = vsel %vm5875_vm9, %v2257_v21, %v2258_v29  ;;  %v2265_v31 = vsel %vm5875_vm9, %v2263_v45, %v2264_v17  ;;  %v5185_v29 = vrot.slane %v9295_v40, 9 }
 0x20a   : > { %9647 = vst [vmem:[#allocation193_spill] sm:$0xff] %v6791_v20  ;;  %v2273_v15 = vrot.slane %v2271_v37, 2 }
 0x20b   : > { %v6793_v44 = vpop.permute.xlu1 %1462 }
 0x20c   : > { %9648 = vst [vmem:[#allocation194_spill] sm:$0xff] %v6793_v44  ;;  %v2262_v44 = vsel %vm5875_vm9, %v2260_v9, %v2261_v28  ;;  %v2267_v9 = vrot.slane %v6780_v48, 7  ;;  %v2274_v28 = vrot.slane %v6807_v50, 7 }
 0x20d   : > { %2456 = vrot.lane.b32.xlu2 %v2265_v31, %s5425_s27  ;;  %v2266_v31 = vrot.slane %v2264_v17, 2 }
 0x20e   : > { %2452 = vrot.lane.b32.xlu0 %v2259_v46, %s5425_s27  ;;  %v6820_v46 = vpop.f32.mrf.mxu1 }
 0x20f   : > { %v6812_v21 = vpop.permute.xlu2 %1670  ;;  %9653 = vst [vmem:[#allocation199_spill] sm:$0xff] %v6820_v46  ;;  %v6823_v2 = vrot.slane %v6820_v46, 2  ;;  %v2268_v40 = vsel %vm5875_vm9, %v2266_v31, %v2267_v9 }
 0x210   : > { %v6810_v39 = vpop.permute.xlu0 %1424  ;;  %9651 = vst [vmem:[#allocation197_spill] sm:$0xff] %v6812_v21 }
 0x211   : > { %2454 = vrot.lane.b32.xlu1 %v2262_v44, %s5425_s27  ;;  %9650 = vst [vmem:[#allocation196_spill] sm:$0xff] %v6810_v39  ;;  %v2275_v44 = vsel %vm5875_vm9, %v2273_v15, %v2274_v28  ;;  %v2272_v39 = vsel %vm5875_vm9, %v5185_v29, %v2271_v37  ;;  %v2280_v17 = vrot.slane %v6823_v2, 7  ;;  %v2276_v37 = vrot.slane %v2274_v28, 2 }
 0x212   : > { %9654 = vst [vmem:[#allocation200_spill] sm:$0xff] %v6823_v2  ;;  %v6843_v29 = vrot.slane %v6820_v46, 4 }
 0x213   : > { %v6816_v45 = vpop.permute.xlu1 %1420  ;;  %v2282_v31 = vrot.slane %v2280_v17, 2 }
 0x214   : > { %9652 = vst [vmem:[#allocation198_spill] sm:$0xff] %v6816_v45  ;;  %v2277_v45 = vrot.slane %v6820_v46, 7 }
 0x215   : > { %2462 = vrot.lane.b32.xlu2 %v2275_v44, %s5425_s27  ;;  %9658 = vst [vmem:[#allocation204_spill] sm:$0xff] %v6843_v29  ;;  %v2283_v44 = vrot.slane %v6843_v29, 7 }
 0x216   : > { %2458 = vrot.lane.b32.xlu0 %v2268_v40, %s5425_s27  ;;  %v6845_v9 = vpop.f32.mrf.mxu1  ;;  %v2279_v40 = vrot.slane %v2277_v45, 2 }
 0x217   : > { %v6838_v51 = vpop.permute.xlu2 %1676  ;;  %9659 = vst [vmem:[#allocation205_spill] sm:$0xff] %v6845_v9  ;;  %v2284_v28 = vsel %vm5875_vm9, %v2282_v31, %v2283_v44  ;;  %v2289_v41 = vrot.slane %v6845_v9, 7  ;;  %v9661_v42 = vrot.slane %v6845_v9, 2 }
 0x218   : > { %v6836_v21 = vpop.permute.xlu0 %1654  ;;  %9656 = vst [vmem:[#allocation202_spill] sm:$0xff] %v6838_v51  ;;  %v2278_v51 = vsel %vm5875_vm9, %v2276_v37, %v2277_v45  ;;  %v2281_v33 = vsel %vm5875_vm9, %v2279_v40, %v2280_v17  ;;  %v6876_v40 = vrot.slane %v6845_v9, 6 }
 0x219   : > { %2460 = vrot.lane.b32.xlu1 %v2272_v39, %s5425_s27  ;;  %9655 = vst [vmem:[#allocation201_spill] sm:$0xff] %v6836_v21  ;;  %v6850_v39 = vrot.slane %v6820_v46, 6  ;;  %v2291_v56 = vrot.slane %v2289_v41, 2  ;;  %v2292_v45 = vrot.slane %v9661_v42, 7 }
 0x21a   : > { %9666 = vst [vmem:[#allocation211_spill] sm:$0xff] %v6876_v40 }
 0x21b   : > { %v6840_v15 = vpop.permute.xlu1 %1656  ;;  %9660 = vst [vmem:[#allocation206_spill] sm:$0xff] %v6850_v39  ;;  %v2286_v43 = vrot.slane %v6850_v39, 7 }
 0x21c   : > { %9657 = vst [vmem:[#allocation203_spill] sm:$0xff] %v6840_v15 }
 0x21d   : > { %2468 = vrot.lane.b32.xlu2 %v2284_v28, %s5425_s27  ;;  %v2288_v58 = vrot.slane %v2286_v43, 2  ;;  %v2293_v28 = vsel %vm5875_vm9, %v2291_v56, %v2292_v45  ;;  %v9299_v56 = vrot.slane %v6845_v9, 4 }
 0x21e   : > { %2464 = vrot.lane.b32.xlu0 %v2278_v51, %s5425_s27  ;;  %v2285_v51 = vrot.slane %v2283_v44, 2  ;;  %v6873_v17 = vpop.f32.mrf.mxu1 }
 0x21f   : > { %v6867_v31 = vpop.permute.xlu2 %1682  ;;  %9665 = vst [vmem:[#allocation210_spill] sm:$0xff] %v6873_v17  ;;  %v2299_v42 = vrot.slane %v6873_v17, 7  ;;  %v2290_v44 = vsel %vm5875_vm9, %v2288_v58, %v2289_v41  ;;  %v6900_v58 = vrot.slane %v6873_v17, 6  ;;  %v6904_v63 = vrot.slane %v6873_v17, 4 }
 0x220   : > { %v6865_v37 = vpop.permute.xlu0 %1660  ;;  %9663 = vst [vmem:[#allocation208_spill] sm:$0xff] %v6867_v31  ;;  %v2296_v31 = vrot.slane %v6876_v40, 7 }
 0x221   : > { %2466 = vrot.lane.b32.xlu1 %v2281_v33, %s5425_s27  ;;  %9662 = vst [vmem:[#allocation207_spill] sm:$0xff] %v6865_v37  ;;  %v2287_v33 = vsel %vm5875_vm9, %v2285_v51, %v2286_v43  ;;  %v5186_v51 = vrot.slane %v9299_v56, 9  ;;  %v2305_v3 = vrot.slane %v6904_v63, 7 }
 0x222   : > { %v2298_v41 = vrot.slane %v2296_v31, 2  ;;  %9671 = vst [vmem:[#allocation216_spill] sm:$0xff] %v6900_v58 }
 0x223   : > { %v6869_v54 = vpop.permute.xlu1 %1662  ;;  %9672 = vst [vmem:[#allocation217_spill] sm:$0xff] %v6904_v63 }
 0x224   : > { %9664 = vst [vmem:[#allocation209_spill] sm:$0xff] %v6869_v54  ;;  %v2300_v54 = vsel %vm5875_vm9, %v2298_v41, %v2299_v42 }
 0x225   : > { %2474 = vrot.lane.b32.xlu2 %v2293_v28, %s5425_s27  ;;  %v6897_v28 = vrot.slane %v6873_v17, 2 }
 0x226   : > { %2470 = vrot.lane.b32.xlu0 %v2287_v33, %s5425_s27  ;;  %v2301_v33 = vrot.slane %v2299_v42, 2 }
 0x227   : > { %v6890_v37 = vpop.permute.xlu2 %1688  ;;  %9670 = vst [vmem:[#allocation215_spill] sm:$0xff] %v6897_v28 }
 0x228   : > { %v6888_v45 = vpop.permute.xlu0 %1666  ;;  %9668 = vst [vmem:[#allocation213_spill] sm:$0xff] %v6890_v37  ;;  %v2297_v37 = vsel %vm5875_vm9, %v5186_v51, %v2296_v31 }
 0x229   : > { %2472 = vrot.lane.b32.xlu1 %v2290_v44, %s5425_s27  ;;  %9667 = vst [vmem:[#allocation212_spill] sm:$0xff] %v6888_v45  ;;  %v2302_v44 = vrot.slane %v6897_v28, 7  ;;  %v6906_v45 = vpop.f32.mrf.mxu1 }
 0x22a   : > { %9673 = vst [vmem:[#allocation218_spill] sm:$0xff] %v6906_v45  ;;  %v2311_v57 = vrot.slane %v6906_v45, 7  ;;  %v6930_v42 = vrot.slane %v6906_v45, 2 }
 0x22b   : > { %v6892_v43 = vpop.permute.xlu1 %1668  ;;  %v2303_v56 = vsel %vm5875_vm9, %v2301_v33, %v2302_v44  ;;  %v2304_v51 = vrot.slane %v2302_v44, 2 }
 0x22c   : > { %9669 = vst [vmem:[#allocation214_spill] sm:$0xff] %v6892_v43  ;;  %v2308_v43 = vrot.slane %v6900_v58, 7 }
 0x22d   : > { %2480 = vrot.lane.b32.xlu2 %v2303_v56, %s5425_s27  ;;  %v5259_v56 = vld [vmem:[%s9161_s2 + $0x10] sm:$0xff]  ;;  %9677 = vst [vmem:[#allocation222_spill] sm:$0xff] %v6930_v42  ;;  %v2306_v41 = vsel %vm5875_vm9, %v2304_v51, %v2305_v3 }
 0x22e   : > { %2476 = vrot.lane.b32.xlu0 %v2297_v37, %s5425_s27  ;;  %v2310_v33 = vrot.slane %v2308_v43, 2  ;;  %v2307_v37 = vrot.slane %v2305_v3, 2  ;;  %3117 = vmatpush.bf16.msrb.mxu2 %v5259_v56  ;;  %v9300_v56 = vrot.slane %v6906_v45, 6 }
 0x22f   : > { %v6921_v21 = vpop.permute.xlu2 %1694 }
 0x230   : > { %v6919_v15 = vpop.permute.xlu0 %1672  ;;  %9675 = vst [vmem:[#allocation220_spill] sm:$0xff] %v6921_v21  ;;  %v2312_v44 = vsel %vm5875_vm9, %v2310_v33, %v2311_v57  ;;  %v2309_v21 = vsel %vm5875_vm9, %v2307_v37, %v2308_v43  ;;  %v2313_v33 = vrot.slane %v2311_v57, 2 }
 0x231   : > { %2478 = vrot.lane.b32.xlu1 %v2300_v54, %s5425_s27  ;;  %9674 = vst [vmem:[#allocation219_spill] sm:$0xff] %v6919_v15  ;;  %v6932_v54 = vpop.f32.mrf.mxu1  ;;  %v2314_v15 = vrot.slane %v6930_v42, 7 }
 0x232   : > { %9678 = vst [vmem:[#allocation223_spill] sm:$0xff] %v6932_v54  ;;  %v2321_v43 = vrot.slane %v6932_v54, 7  ;;  %v6961_v6 = vrot.slane %v6932_v54, 2  ;;  %v6976_v19 = vrot.slane %v6932_v54, 6 }
 0x233   : > { %v6923_v31 = vpop.permute.xlu1 %1674  ;;  %v2316_v37 = vrot.slane %v2314_v15, 2  ;;  %v2315_v57 = vsel %vm5875_vm9, %v2313_v33, %v2314_v15 }
 0x234   : > { %9676 = vst [vmem:[#allocation221_spill] sm:$0xff] %v6923_v31  ;;  %v9301_v31 = vrot.slane %v6906_v45, 4 }
 0x235   : > { %2486 = vrot.lane.b32.xlu2 %v2312_v44, %s5425_s27  ;;  %9683 = vst [vmem:[#allocation228_spill] sm:$0xff] %v6961_v6 }
 0x236   : > { %2482 = vrot.lane.b32.xlu0 %v2306_v41, %s5425_s27  ;;  %v5187_v41 = vrot.slane %v9300_v56, 9  ;;  %v2317_v44 = vrot.slane %v9301_v31, 7  ;;  %9684 = vst [vmem:[#allocation229_spill] sm:$0xff] %v6976_v19 }
 0x237   : > { %v6948_v3 = vpop.permute.xlu2 %1700 }
 0x238   : > { %v6946_v55 = vpop.permute.xlu0 %1678  ;;  %9680 = vst [vmem:[#allocation225_spill] sm:$0xff] %v6948_v3  ;;  %v2322_v56 = vsel %vm5875_vm9, %v5187_v41, %v2321_v43  ;;  %v2318_v31 = vsel %vm5875_vm9, %v2316_v37, %v2317_v44  ;;  %v2330_v37 = vrot.slane %v6976_v19, 7 }
 0x239   : > { %2484 = vrot.lane.b32.xlu1 %v2309_v21, %s5425_s27  ;;  %9679 = vst [vmem:[#allocation224_spill] sm:$0xff] %v6946_v55  ;;  %v6958_v21 = vrot.slane %v6932_v54, 4  ;;  %v6963_v55 = vpop.f32.mrf.mxu1 }
 0x23a   : > { %v6984_v41 = vrot.slane %v6963_v55, 2 }
 0x23b   : > { %v6950_v51 = vpop.permute.xlu1 %1680  ;;  %9682 = vst [vmem:[#allocation227_spill] sm:$0xff] %v6958_v21  ;;  %v2327_v3 = vrot.slane %v6958_v21, 7 }
 0x23c   : > { %9681 = vst [vmem:[#allocation226_spill] sm:$0xff] %v6950_v51  ;;  %v2324_v51 = vrot.slane %v6961_v6, 7  ;;  %v2336_v35 = vrot.slane %v6984_v41, 7 }
 0x23d   : > { %2492 = vrot.lane.b32.xlu2 %v2322_v56, %s5425_s27  ;;  %9687 = vst [vmem:[#allocation232_spill] sm:$0xff] %v6984_v41  ;;  %v2323_v56 = vrot.slane %v2321_v43, 2  ;;  %v2329_v26 = vrot.slane %v2327_v3, 2  ;;  %v2333_v43 = vrot.slane %v6963_v55, 7 }
 0x23e   : > { %2488 = vrot.lane.b32.xlu0 %v2315_v57, %s5425_s27  ;;  %v2326_v44 = vrot.slane %v2324_v51, 2 }
 0x23f   : > { %v6981_v33 = vpop.permute.xlu2 %1706  ;;  %v2325_v4 = vsel %vm5875_vm9, %v2323_v56, %v2324_v51  ;;  %v2338_v51 = vrot.slane %v2336_v35, 2 }
 0x240   : > { %v6979_v15 = vpop.permute.xlu0 %1684  ;;  %9686 = vst [vmem:[#allocation231_spill] sm:$0xff] %v6981_v33  ;;  %v2328_v33 = vsel %vm5875_vm9, %v2326_v44, %v2327_v3  ;;  %v3007_v44 = vld [vmem:[#allocation1] sm:$0xff] }
 0x241   : > { %2490 = vrot.lane.b32.xlu1 %v2318_v31, %s5425_s27  ;;  %9685 = vst [vmem:[#allocation230_spill] sm:$0xff] %v6979_v15  ;;  %v2331_v31 = vsel %vm5875_vm9, %v2329_v26, %v2330_v37  ;;  %v7002_v15 = vpop.f32.mrf.mxu1  ;;  %5198 = vmatmul.msk.bf16.vlgmr.msrb.gmra.mxu2 %vm878_vm4, %v3007_v44 }
 0x242   : > { %9690 = vst [vmem:[#allocation235_spill] sm:$0xff] %v7002_v15  ;;  %v7013_v52 = vrot.slane %v7002_v15, 2 }
 0x243   : > { %v6986_v57 = vpop.permute.xlu1 %1686  ;;  %3008 = vst [vmem:[#allocation1] ss:$9 sm:$0xff] %v5634_v7 }
 0x244   : > { %9688 = vst [vmem:[#allocation233_spill] sm:$0xff] %v6986_v57  ;;  %v7000_v57 = vrot.slane %v6963_v55, 4 }
 0x245   : > { %2498 = vrot.lane.b32.xlu2 %v2331_v31, %s5425_s27  ;;  %v2332_v31 = vrot.slane %v2330_v37, 2  ;;  %9694 = vst [vmem:[#allocation239_spill] sm:$0xff] %v7013_v52 }
 0x246   : > { %2494 = vrot.lane.b32.xlu0 %v2325_v4, %s5425_s27  ;;  %9689 = vst [vmem:[#allocation234_spill] sm:$0xff] %v7000_v57  ;;  %v2335_v4 = vrot.slane %v2333_v43, 2  ;;  %v2339_v3 = vrot.slane %v7000_v57, 7 }
 0x247   : > { %v7007_v26 = vpop.permute.xlu2 %1712  ;;  %3009 = vst [vmem:[#allocation1 + $0x1] ss:$9 sm:$0xff] %v5638_v10  ;;  %v2334_v37 = vsel %vm5875_vm9, %v2332_v31, %v2333_v43 }
 0x248   : > { %v7005_v56 = vpop.permute.xlu0 %1690  ;;  %9692 = vst [vmem:[#allocation237_spill] sm:$0xff] %v7007_v26  ;;  %v2340_v18 = vsel %vm5875_vm9, %v2338_v51, %v2339_v3  ;;  %v9302_v26 = vrot.slane %v6963_v55, 6 }
 0x249   : > { %2496 = vrot.lane.b32.xlu1 %v2328_v33, %s5425_s27  ;;  %9691 = vst [vmem:[#allocation236_spill] sm:$0xff] %v7005_v56  ;;  %v2337_v33 = vsel %vm5875_vm9, %v2335_v4, %v2336_v35  ;;  %v7038_v35 = vrot.slane %v7002_v15, 4  ;;  %v7051_v4 = vrot.slane %v7002_v15, 6  ;;  %v9709_v56 = vld [vmem:[#allocation4_spill] sm:$0xff] }
 0x24a   : > { %3010 = vst [vmem:[#allocation1 + $0x2] ss:$9 sm:$0xff] %v5640_v11  ;;  %v7040_v11 = vpop.f32.mrf.mxu1 }
 0x24b   : > { %v7009_v1 = vpop.permute.xlu1 %1692  ;;  %3011 = vst [vmem:[#allocation1 + $0x3] ss:$9 sm:$0xff] %v5643_v12  ;;  %v2342_v12 = vrot.slane %v9302_v26, 7  ;;  %v7054_v31 = vrot.slane %v7040_v11, 2 }
 0x24c   : > { %9693 = vst [vmem:[#allocation238_spill] sm:$0xff] %v7009_v1  ;;  %v2346_v1 = vrot.slane %v7013_v52, 7  ;;  %v9737_v52 = vld [vmem:[#allocation10_spill] sm:$0xff] }
 0x24d   : > { %2504 = vrot.lane.b32.xlu2 %v2340_v18, %s5425_s27  ;;  %3012 = vst [vmem:[#allocation1 + $0x4] ss:$9 sm:$0xff] %v5647_v13  ;;  %v2341_v18 = vrot.slane %v2339_v3, 2  ;;  %v5188_v13 = vrot.slane %v7002_v15, 9  ;;  %v2358_v26 = vrot.slane %v7054_v31, 7 }
 0x24e   : > { %2500 = vrot.lane.b32.xlu0 %v2334_v37, %s5425_s27  ;;  %3013 = vst [vmem:[#allocation1 + $0x5] ss:$9 sm:$0xff] %v5652_v14  ;;  %v2348_v51 = vrot.slane %v2346_v1, 2  ;;  %v2349_v14 = vrot.slane %v7038_v35, 7 }
 0x24f   : > { %v7034_v10 = vpop.permute.xlu2 %1718  ;;  %9697 = vst [vmem:[#allocation242_spill] sm:$0xff] %v7038_v35  ;;  %v2343_v3 = vsel %vm5875_vm9, %v2341_v18, %v2342_v12 }
 0x250   : > { %v7032_v7 = vpop.permute.xlu0 %1696  ;;  %9696 = vst [vmem:[#allocation241_spill] sm:$0xff] %v7034_v10  ;;  %v2350_v44 = vsel %vm5875_vm9, %v2348_v51, %v2349_v14  ;;  %v2351_v10 = vrot.slane %v2349_v14, 2 }
 0x251   : > { %2502 = vrot.lane.b32.xlu1 %v2337_v33, %s5425_s27  ;;  %9695 = vst [vmem:[#allocation240_spill] sm:$0xff] %v7032_v7  ;;  %v2352_v33 = vrot.slane %v7051_v4, 7 }
 0x252   : > { %9698 = vst [vmem:[#allocation243_spill] sm:$0xff] %v7040_v11 }
 0x253   : > { %v7042_v43 = vpop.permute.xlu1 %1698  ;;  %3014 = vst [vmem:[#allocation1 + $0x6] ss:$9 sm:$0xff] %v5663_v22  ;;  %v2355_v22 = vrot.slane %v7040_v11, 7  ;;  %v2353_v14 = vsel %vm5875_vm9, %v2351_v10, %v2352_v33 }
 0x254   : > { %9699 = vst [vmem:[#allocation244_spill] sm:$0xff] %v7042_v43  ;;  %v9708_v43 = vld [vmem:[#allocation3_spill] sm:$0xff] }
 0x255   : > { %3015 = vst [vmem:[#allocation1 + $0x7] ss:$9 sm:$0xff] %v5665_v23  ;;  %2510 = vrot.lane.b32.xlu2 %v2350_v44, %s5425_s27  ;;  %v2347_v23 = vsel %vm5875_vm9, %v5188_v13, %v2346_v1  ;;  %v2357_v37 = vrot.slane %v2355_v22, 2  ;;  %v7075_v44 = vrot.slane %v7040_v11, 6  ;;  %v7077_v1 = vpop.f32.mrf.mxu1 }
 0x256   : > { %9700 = vst [vmem:[#allocation245_spill] sm:$0xff] %v7051_v4  ;;  %2506 = vrot.lane.b32.xlu0 %v2343_v3, %s5425_s27  ;;  %v2354_v3 = vrot.slane %v2352_v33, 2 }
 0x257   : > { %9701 = vst [vmem:[#allocation246_spill] sm:$0xff] %v7054_v31  ;;  %v7070_v12 = vpop.permute.xlu2 %2444  ;;  %v2359_v13 = vsel %vm5875_vm9, %v2357_v37, %v2358_v26 }
 0x258   : > { %v7068_v18 = vpop.permute.xlu0 %1702  ;;  %9704 = vst [vmem:[#allocation249_spill] sm:$0xff] %v7075_v44 }
 0x259   : > { %2508 = vrot.lane.b32.xlu1 %v2347_v23, %s5425_s27  ;;  %9702 = vst [vmem:[#allocation247_spill] sm:$0xff] %v7068_v18  ;;  %v9706_v23 = vld [vmem:[#allocation2_spill] sm:$0xff]  ;;  %v7084_v18 = vrot.slane %v7040_v11, 4 }
 0x25a   : > { %9705 = vst [vmem:[#allocation250_spill] sm:$0xff] %v7077_v1 }
 0x25b   : > { %v7072_v51 = vpop.permute.xlu1 %1704  ;;  %9707 = vst [vmem:[#allocation2_spill] sm:$0xff] %v7084_v18  ;;  %v2361_v37 = vrot.slane %v7084_v18, 7 }
 0x25c   : > { %9703 = vst [vmem:[#allocation248_spill] sm:$0xff] %v7072_v51  ;;  %v3016_v7 = vld [vmem:[#allocation1] sm:$0xff]  ;;  %v2364_v51 = vrot.slane %v7075_v44, 7  ;;  %v9308_v44 = vrot.slane %v7077_v1, 2 }
 0x25d   : > { %5199 = vmatmul.msk.bf16.gmra.mxu2 %vm878_vm4, %v3016_v7  ;;  %3017 = vst [vmem:[#allocation1] ss:$9 sm:$0xff] %v9706_v23  ;;  %2516 = vrot.lane.b32.xlu2 %v2359_v13, %s5425_s27  ;;  %v2356_v7 = vsel %vm5875_vm9, %v2354_v3, %v2355_v22  ;;  %v9710_v23 = vld [vmem:[#allocation5_spill] sm:$0xff]  ;;  %v2360_v13 = vrot.slane %v2358_v26, 2  ;;  %v2367_v22 = vrot.slane %v7077_v1, 7  ;;  %v9715_v3 = vld [vmem:[#allocation8_spill] sm:$0xff] }
 0x25e   : > { %3018 = vst [vmem:[#allocation1 + $0x1] ss:$9 sm:$0xff] %v9708_v43  ;;  %2512 = vrot.lane.b32.xlu0 %v2353_v14, %s5425_s27  ;;  %v9711_v43 = vld [vmem:[#allocation6_spill] sm:$0xff]  ;;  %v2366_v15 = vrot.slane %v2364_v51, 2  ;;  %v2363_v27 = vrot.slane %v2361_v37, 2 }
 0x25f   : > { %3019 = vst [vmem:[#allocation1 + $0x2] ss:$9 sm:$0xff] %v9709_v56  ;;  %v7101_v33 = vpop.permute.xlu2 %2450  ;;  %v9713_v56 = vld [vmem:[#allocation7_spill] sm:$0xff] }
 0x260   : > { %3020 = vst [vmem:[#allocation1 + $0x3] ss:$9 sm:$0xff] %v9710_v23  ;;  %v7099_v10 = vpop.permute.xlu0 %1708  ;;  %v9716_v23 = vld [vmem:[#allocation9_spill] sm:$0xff]  ;;  %v2368_v26 = vsel %vm5875_vm9, %v2366_v15, %v2367_v22 }
 0x261   : > { %2514 = vrot.lane.b32.xlu1 %v2356_v7, %s5425_s27  ;;  %3021 = vst [vmem:[#allocation1 + $0x4] ss:$9 sm:$0xff] %v9711_v43  ;;  %v7110_v7 = vrot.slane %v7077_v1, 6  ;;  %v7112_v43 = vpop.f32.mrf.mxu1 }
 0x262   : > { %9712 = vst [vmem:[#allocation3_spill] sm:$0xff] %v7099_v10  ;;  %v7115_v10 = vrot.slane %v7077_v1, 4 }
 0x263   : > { %3022 = vst [vmem:[#allocation1 + $0x5] ss:$9 sm:$0xff] %v9713_v56  ;;  %v7104_v14 = vpop.permute.xlu1 %1710  ;;  %v2362_v56 = vsel %vm5875_vm9, %v2360_v13, %v2361_v37  ;;  %v5189_v13 = vrot.slane %v9308_v44, 9 }
 0x264   : > { %9714 = vst [vmem:[#allocation4_spill] sm:$0xff] %v7104_v14  ;;  %v2374_v14 = vrot.slane %v7110_v7, 7 }
 0x265   : > { %3023 = vst [vmem:[#allocation1 + $0x6] ss:$9 sm:$0xff] %v9715_v3  ;;  %2522 = vrot.lane.b32.xlu2 %v2368_v26, %s5425_s27  ;;  %v2365_v3 = vsel %vm5875_vm9, %v2363_v27, %v2364_v51  ;;  %v7139_v27 = vrot.slane %v7112_v43, 4 }
 0x266   : > { %3024 = vst [vmem:[#allocation1 + $0x7] ss:$9 sm:$0xff] %v9716_v23  ;;  %2518 = vrot.lane.b32.xlu0 %v2362_v56, %s5425_s27  ;;  %v2371_v23 = vrot.slane %v7115_v10, 7  ;;  %v2376_v22 = vrot.slane %v2374_v14, 2  ;;  %v2377_v56 = vrot.slane %v7112_v43, 7 }
 0x267   : > { %9717 = vst [vmem:[#allocation5_spill] sm:$0xff] %v7110_v7  ;;  %v7131_v37 = vpop.permute.xlu2 %2456  ;;  %v2383_v44 = vrot.slane %v7139_v27, 7 }
 0x268   : > { %9718 = vst [vmem:[#allocation6_spill] sm:$0xff] %v7112_v43  ;;  %v7129_v31 = vpop.permute.xlu0 %1714  ;;  %v2373_v26 = vrot.slane %v2371_v23, 2 }
 0x269   : > { %9719 = vst [vmem:[#allocation7_spill] sm:$0xff] %v7115_v10  ;;  %2520 = vrot.lane.b32.xlu1 %v2365_v3, %s5425_s27  ;;  %v7141_v51 = vpop.f32.mrf.mxu1  ;;  %v7144_v3 = vrot.slane %v7112_v43, 2 }
 0x26a   : > { %9720 = vst [vmem:[#allocation8_spill] sm:$0xff] %v7129_v31  ;;  %v2372_v31 = vsel %vm5875_vm9, %v5189_v13, %v2371_v23  ;;  %v2375_v7 = vsel %vm5875_vm9, %v2373_v26, %v2374_v14  ;;  %v7162_v23 = vrot.slane %v7112_v43, 6 }
 0x26b   : > { %v7133_v15 = vpop.permute.xlu1 %1716  ;;  %9722 = vst [vmem:[#allocation251_spill] sm:$0xff] %v7139_v27  ;;  %v2380_v10 = vrot.slane %v7144_v3, 7 }
 0x26c   : > { %9721 = vst [vmem:[#allocation9_spill] sm:$0xff] %v7133_v15  ;;  %v2378_v15 = vsel %vm5875_vm9, %v2376_v22, %v2377_v56  ;;  %v2379_v22 = vrot.slane %v2377_v56, 2  ;;  %v2389_v56 = vrot.slane %v7141_v51, 7 }
 0x26d   : > { %9723 = vst [vmem:[#allocation252_spill] sm:$0xff] %v7141_v51  ;;  %2528 = vrot.lane.b32.xlu2 %v2378_v15, %s5425_s27  ;;  %v2382_v27 = vrot.slane %v2380_v10, 2  ;;  %v2386_v15 = vrot.slane %v7162_v23, 7 }
 0x26e   : > { %9724 = vst [vmem:[#allocation253_spill] sm:$0xff] %v7144_v3  ;;  %2524 = vrot.lane.b32.xlu0 %v2372_v31, %s5425_s27  ;;  %v2385_v31 = vrot.slane %v2383_v44, 2  ;;  %v2381_v14 = vsel %vm5875_vm9, %v2379_v22, %v2380_v10  ;;  %v9331_v10 = vrot.slane %v7141_v51, 4 }
 0x26f   : > { %v7159_v18 = vpop.permute.xlu2 %2462  ;;  %9727 = vst [vmem:[#allocation256_spill] sm:$0xff] %v7162_v23  ;;  %v2384_v26 = vsel %vm5875_vm9, %v2382_v27, %v2383_v44  ;;  %v2388_v44 = vrot.slane %v2386_v15, 2  ;;  %v2391_v23 = vrot.slane %v2389_v56, 2 }
 0x270   : > { %v7157_v1 = vpop.permute.xlu0 %1720  ;;  %9726 = vst [vmem:[#allocation255_spill] sm:$0xff] %v7159_v18  ;;  %v5190_v27 = vrot.slane %v9331_v10, 9  ;;  %v9740_v18 = vld [vmem:[#allocation12_spill] sm:$0xff] }
 0x271   : > { %2526 = vrot.lane.b32.xlu1 %v2375_v7, %s5425_s27  ;;  %9725 = vst [vmem:[#allocation254_spill] sm:$0xff] %v7157_v1  ;;  %v7167_v11 = vpop.f32.mrf.mxu1  ;;  %v2387_v7 = vsel %vm5875_vm9, %v2385_v31, %v2386_v15  ;;  %v2390_v35 = vsel %vm5875_vm9, %v2388_v44, %v2389_v56 }
 0x272   : > { %9729 = vst [vmem:[#allocation258_spill] sm:$0xff] %v7167_v11  ;;  %v2399_v10 = vrot.slane %v7167_v11, 7 }
 0x273   : > { %v7164_v13 = vpop.permute.xlu1 %1722 }
 0x274   : > { %9728 = vst [vmem:[#allocation257_spill] sm:$0xff] %v7164_v13  ;;  %v7180_v13 = vrot.slane %v7141_v51, 6 }
 0x275   : > { %2534 = vrot.lane.b32.xlu2 %v2387_v7, %s5425_s27 }
 0x276   : > { %2530 = vrot.lane.b32.xlu0 %v2381_v14, %s5425_s27  ;;  %9730 = vst [vmem:[#allocation259_spill] sm:$0xff] %v7180_v13  ;;  %v7189_v14 = vrot.slane %v7167_v11, 2  ;;  %v2396_v1 = vrot.slane %v7180_v13, 7  ;;  %v7209_v13 = vrot.slane %v7167_v11, 4 }
 0x277   : > { %v7186_v31 = vpop.permute.xlu2 %2468 }
 0x278   : > { %v7184_v22 = vpop.permute.xlu0 %2446  ;;  %9731 = vst [vmem:[#allocation260_spill] sm:$0xff] %v7186_v31  ;;  %v2402_v43 = vrot.slane %v7189_v14, 7  ;;  %v2397_v4 = vsel %vm5875_vm9, %v5190_v27, %v2396_v1  ;;  %v9739_v31 = vld [vmem:[#allocation11_spill] sm:$0xff] }
 0x279   : > { %2532 = vrot.lane.b32.xlu1 %v2384_v26, %s5425_s27  ;;  %9732 = vst [vmem:[#allocation261_spill] sm:$0xff] %v7189_v14  ;;  %v9733_v26 = vrot.slane %v7141_v51, 2 }
 0x27a   : > { %9734 = vst [vmem:[#allocation262_spill] sm:$0xff] %v7209_v13  ;;  %v2404_v56 = vrot.slane %v2402_v43, 2 }
 0x27b   : > { %v7191_v7 = vpop.permute.xlu1 %2448  ;;  %v2392_v3 = vrot.slane %v9733_v26, 7  ;;  %v7211_v26 = vpop.f32.mrf.mxu1 }
 0x27c   : > { %9735 = vst [vmem:[#allocation263_spill] sm:$0xff] %v7211_v26 }
 0x27d   : > { %2540 = vrot.lane.b32.xlu2 %v2397_v4, %s5425_s27  ;;  %v2393_v15 = vsel %vm5875_vm9, %v2391_v23, %v2392_v3  ;;  %v2398_v4 = vrot.slane %v2396_v1, 2  ;;  %v2405_v3 = vrot.slane %v7209_v13, 7  ;;  %v3025_v23 = vld [vmem:[#allocation1] sm:$0xff]  ;;  %v2411_v13 = vrot.slane %v7211_v26, 7 }
 0x27e   : > { %2536 = vrot.lane.b32.xlu0 %v2390_v35, %s5425_s27  ;;  %v2401_v35 = vrot.slane %v2399_v10, 2  ;;  %5200 = vmatmul.msk.bf16.gmra.mxu2 %vm878_vm4, %v3025_v23  ;;  %3026 = vst [vmem:[#allocation1] ss:$9 sm:$0xff] %v9737_v52 }
 0x27f   : > { %v7216_v27 = vpop.permute.xlu2 %2474  ;;  %v2406_v51 = vsel %vm5875_vm9, %v2404_v56, %v2405_v3  ;;  %3027 = vst [vmem:[#allocation1 + $0x1] ss:$9 sm:$0xff] %v9739_v31  ;;  %v2400_v1 = vsel %vm5875_vm9, %v2398_v4, %v2399_v10  ;;  %v9741_v56 = vld [vmem:[#allocation13_spill] sm:$0xff]  ;;  %v9745_v10 = vld [vmem:[#allocation15_spill] sm:$0xff]  ;;  %v2407_v23 = vrot.slane %v2405_v3, 2 }
 0x280   : > { %v7214_v44 = vpop.permute.xlu0 %2452  ;;  %9736 = vst [vmem:[#allocation264_spill] sm:$0xff] %v7216_v27  ;;  %v2403_v27 = vsel %vm5875_vm9, %v2401_v35, %v2402_v43  ;;  %v9742_v43 = vld [vmem:[#allocation14_spill] sm:$0xff] }
 0x281   : > { %2538 = vrot.lane.b32.xlu1 %v2393_v15, %s5425_s27  ;;  %v7226_v15 = vrot.slane %v7167_v11, 6  ;;  %3028 = vst [vmem:[#allocation1 + $0x2] ss:$9 sm:$0xff] %v9740_v18  ;;  %v7247_v18 = vrot.slane %v7211_v26, 2 }
 0x282   : > { %3029 = vst [vmem:[#allocation1 + $0x3] ss:$9 sm:$0xff] %v9741_v56  ;;  %v9749_v56 = vld [vmem:[#allocation16_spill] sm:$0xff] }
 0x283   : > { %v7218_v14 = vpop.permute.xlu1 %2454  ;;  %9738 = vst [vmem:[#allocation10_spill] sm:$0xff] %v7226_v15  ;;  %v2408_v52 = vrot.slane %v7226_v15, 7  ;;  %v7249_v4 = vpop.f32.mrf.mxu1  ;;  %v9750_v15 = vld [vmem:[#allocation17_spill] sm:$0xff] }
 0x284   : > { %3030 = vst [vmem:[#allocation1 + $0x4] ss:$9 sm:$0xff] %v9742_v43  ;;  %v2414_v43 = vrot.slane %v7247_v18, 7  ;;  %v7257_v11 = vrot.slane %v7249_v4, 2  ;;  %v2421_v3 = vrot.slane %v7249_v4, 7 }
 0x285   : > { %2546 = vrot.lane.b32.xlu2 %v2406_v51, %s5425_s27  ;;  %3031 = vst [vmem:[#allocation1 + $0x5] ss:$9 sm:$0xff] %v9745_v10  ;;  %v2409_v10 = vsel %vm5875_vm9, %v2407_v23, %v2408_v52 }
 0x286   : > { %2542 = vrot.lane.b32.xlu0 %v2400_v1, %s5425_s27  ;;  %9746 = vst [vmem:[#allocation13_spill] sm:$0xff] %v7247_v18  ;;  %v2413_v1 = vrot.slane %v2411_v13, 2  ;;  %v2424_v18 = vrot.slane %v7257_v11, 7 }
 0x287   : > { %v7243_v35 = vpop.permute.xlu2 %2480  ;;  %9747 = vst [vmem:[#allocation14_spill] sm:$0xff] %v7249_v4 }
 0x288   : > { %v7241_v31 = vpop.permute.xlu0 %2458  ;;  %9744 = vst [vmem:[#allocation12_spill] sm:$0xff] %v7243_v35  ;;  %v2415_v35 = vsel %vm5875_vm9, %v2413_v1, %v2414_v43  ;;  %v9350_v1 = vrot.slane %v7211_v26, 6 }
 0x289   : > { %2544 = vrot.lane.b32.xlu1 %v2403_v27, %s5425_s27  ;;  %9743 = vst [vmem:[#allocation11_spill] sm:$0xff] %v7241_v31  ;;  %v2410_v27 = vrot.slane %v2408_v52, 2  ;;  %v2416_v31 = vrot.slane %v2414_v43, 2 }
 0x28a   : > { %3032 = vst [vmem:[#allocation1 + $0x6] ss:$9 sm:$0xff] %v9749_v56  ;;  %v2423_v56 = vrot.slane %v2421_v3, 2 }
 0x28b   : > { %v7251_v51 = vpop.permute.xlu1 %2460  ;;  %3033 = vst [vmem:[#allocation1 + $0x7] ss:$9 sm:$0xff] %v9750_v15  ;;  %v2412_v15 = vsel %vm5875_vm9, %v2410_v27, %v2411_v13  ;;  %v5191_v13 = vrot.slane %v9350_v1, 9  ;;  %v7283_v27 = vrot.slane %v7249_v4, 6 }
 0x28c   : > { %9748 = vst [vmem:[#allocation15_spill] sm:$0xff] %v7251_v51 }
 0x28d   : > { %9751 = vst [vmem:[#allocation16_spill] sm:$0xff] %v7257_v11  ;;  %2552 = vrot.lane.b32.xlu2 %v2415_v35, %s5425_s27  ;;  %v7288_v11 = vrot.slane %v7249_v4, 4  ;;  %v2430_v43 = vrot.slane %v7283_v27, 7 }
 0x28e   : > { %2548 = vrot.lane.b32.xlu0 %v2409_v10, %s5425_s27  ;;  %v9755_v10 = vrot.slane %v7211_v26, 4  ;;  %9756 = vst [vmem:[#allocation267_spill] sm:$0xff] %v7283_v27  ;;  %v7298_v26 = vpop.f32.mrf.mxu1 }
 0x28f   : > { %v7273_v23 = vpop.permute.xlu2 %2486  ;;  %9757 = vst [vmem:[#allocation268_spill] sm:$0xff] %v7288_v11  ;;  %v2427_v1 = vrot.slane %v7288_v11, 7  ;;  %v2432_v27 = vrot.slane %v2430_v43, 2  ;;  %v9765_v11 = vld [vmem:[#allocation19_spill] sm:$0xff] }
 0x290   : > { %v7271_v52 = vpop.permute.xlu0 %2464  ;;  %9753 = vst [vmem:[#allocation265_spill] sm:$0xff] %v7273_v23  ;;  %v2417_v35 = vrot.slane %v9755_v10, 7  ;;  %v2422_v10 = vsel %vm5875_vm9, %v5191_v13, %v2421_v3  ;;  %v7309_v3 = vrot.slane %v7298_v26, 4  ;;  %v9763_v13 = vld [vmem:[#allocation18_spill] sm:$0xff] }
 0x291   : > { %2550 = vrot.lane.b32.xlu1 %v2412_v15, %s5425_s27  ;;  %9752 = vst [vmem:[#allocation17_spill] sm:$0xff] %v7271_v52  ;;  %v2425_v15 = vsel %vm5875_vm9, %v2423_v56, %v2424_v18  ;;  %v9766_v52 = vld [vmem:[#allocation20_spill] sm:$0xff] }
 0x292   : > { %v2418_v23 = vsel %vm5875_vm9, %v2416_v31, %v2417_v35  ;;  %9758 = vst [vmem:[#allocation269_spill] sm:$0xff] %v7298_v26  ;;  %v2426_v35 = vrot.slane %v2424_v18, 2 }
 0x293   : > { %v7276_v51 = vpop.permute.xlu1 %2466  ;;  %9762 = vst [vmem:[#allocation273_spill] sm:$0xff] %v7309_v3 }
 0x294   : > { %9754 = vst [vmem:[#allocation266_spill] sm:$0xff] %v7276_v51  ;;  %v3034_v51 = vld [vmem:[#allocation1] sm:$0xff]  ;;  %v2428_v18 = vsel %vm5875_vm9, %v2426_v35, %v2427_v1 }
 0x295   : > { %2558 = vrot.lane.b32.xlu2 %v2425_v15, %s5425_s27  ;;  %v2429_v15 = vrot.slane %v2427_v1, 2  ;;  %5201 = vmatmul.msk.bf16.gmra.mxu2 %vm878_vm4, %v3034_v51  ;;  %3035 = vst [vmem:[#allocation1] ss:$9 sm:$0xff] %v9763_v13  ;;  %v9767_v13 = vld [vmem:[#allocation21_spill] sm:$0xff]  ;;  %v9768_v1 = vld [vmem:[#allocation22_spill] sm:$0xff] }
 0x296   : > { %2554 = vrot.lane.b32.xlu0 %v2418_v23, %s5425_s27  ;;  %v2433_v23 = vrot.slane %v7298_v26, 7  ;;  %3036 = vst [vmem:[#allocation1 + $0x1] ss:$9 sm:$0xff] %v9765_v11 }
 0x297   : > { %v7303_v4 = vpop.permute.xlu2 %2492  ;;  %3037 = vst [vmem:[#allocation1 + $0x2] ss:$9 sm:$0xff] %v9766_v52  ;;  %v2431_v51 = vsel %vm5875_vm9, %v2429_v15, %v2430_v43  ;;  %v9771_v52 = vld [vmem:[#allocation23_spill] sm:$0xff]  ;;  %v9773_v43 = vrot.slane %v7298_v26, 6 }
 0x298   : > { %v7301_v56 = vpop.permute.xlu0 %2470  ;;  %9760 = vst [vmem:[#allocation271_spill] sm:$0xff] %v7303_v4 }
 0x299   : > { %2556 = vrot.lane.b32.xlu1 %v2422_v10, %s5425_s27  ;;  %9759 = vst [vmem:[#allocation270_spill] sm:$0xff] %v7301_v56  ;;  %v7314_v10 = vrot.slane %v7298_v26, 2  ;;  %v2439_v56 = vrot.slane %v7309_v3, 7  ;;  %v2442_v15 = vrot.slane %v9773_v43, 7  ;;  %v9774_v3 = vld [vmem:[#allocation24_spill] sm:$0xff] }
 0x29a   : > { %3038 = vst [vmem:[#allocation1 + $0x3] ss:$9 sm:$0xff] %v9767_v13 }
 0x29b   : > { %v7305_v31 = vpop.permute.xlu1 %2472  ;;  %9764 = vst [vmem:[#allocation18_spill] sm:$0xff] %v7314_v10  ;;  %v2436_v11 = vrot.slane %v7314_v10, 7  ;;  %v2441_v4 = vrot.slane %v2439_v56, 2  ;;  %v9775_v10 = vld [vmem:[#allocation25_spill] sm:$0xff] }
 0x29c   : > { %9761 = vst [vmem:[#allocation272_spill] sm:$0xff] %v7305_v31  ;;  %v2434_v31 = vsel %vm5875_vm9, %v2432_v27, %v2433_v23 }
 0x29d   : > { %2564 = vrot.lane.b32.xlu2 %v2434_v31, %s5425_s27  ;;  %3039 = vst [vmem:[#allocation1 + $0x4] ss:$9 sm:$0xff] %v9768_v1  ;;  %v2435_v31 = vrot.slane %v2433_v23, 2  ;;  %v2438_v13 = vrot.slane %v2436_v11, 2  ;;  %v2443_v1 = vsel %vm5875_vm9, %v2441_v4, %v2442_v15  ;;  %v9783_v15 = vld [vmem:[#allocation27_spill] sm:$0xff] }
 0x29e   : > { %2560 = vrot.lane.b32.xlu0 %v2428_v18, %s5425_s27  ;;  %3040 = vst [vmem:[#allocation1 + $0x5] ss:$9 sm:$0xff] %v9771_v52 }
 0x29f   : > { %v7334_v35 = vpop.permute.xlu2 %2498  ;;  %3041 = vst [vmem:[#allocation1 + $0x6] ss:$9 sm:$0xff] %v9774_v3  ;;  %v2440_v23 = vsel %vm5875_vm9, %v2438_v13, %v2439_v56  ;;  %v9784_v13 = vld [vmem:[#allocation28_spill] sm:$0xff] }
 0x2a0   : > { %v7332_v27 = vpop.permute.xlu0 %2476  ;;  %9770 = vst [vmem:[#allocation20_spill] sm:$0xff] %v7334_v35 }
 0x2a1   : > { %2562 = vrot.lane.b32.xlu1 %v2431_v51, %s5425_s27  ;;  %9769 = vst [vmem:[#allocation19_spill] sm:$0xff] %v7332_v27  ;;  %v2437_v51 = vsel %vm5875_vm9, %v2435_v31, %v2436_v11  ;;  %v9781_v31 = vld [vmem:[#allocation26_spill] sm:$0xff] }
 0x2a2   : > { %3042 = vst [vmem:[#allocation1 + $0x7] ss:$9 sm:$0xff] %v9775_v10 }
 0x2a3   : > { %v7337_v18 = vpop.permute.xlu1 %2478 }
 0x2a4   : > { %9772 = vst [vmem:[#allocation21_spill] sm:$0xff] %v7337_v18 }
 0x2a5   : > { %2570 = vrot.lane.b32.xlu2 %v2443_v1, %s5425_s27  ;;  %v9786_v1 = vld [vmem:[#allocation30_spill] sm:$0xff] }
 0x2a6   : > { %2566 = vrot.lane.b32.xlu0 %v2437_v51, %s5425_s27  ;;  %v9785_v51 = vld [vmem:[#allocation29_spill] sm:$0xff] }
 0x2a7   : > { %v7354_v3 = vpop.permute.xlu2 %2504 }
 0x2a8   : > { %v7352_v52 = vpop.permute.xlu0 %2482  ;;  %9777 = vst [vmem:[#allocation23_spill] sm:$0xff] %v7354_v3 }
 0x2a9   : > { %2568 = vrot.lane.b32.xlu1 %v2440_v23, %s5425_s27  ;;  %9776 = vst [vmem:[#allocation22_spill] sm:$0xff] %v7352_v52  ;;  %v3043_v4 = vld [vmem:[#allocation1] sm:$0xff]  ;;  %v9787_v23 = vld [vmem:[#allocation31_spill] sm:$0xff] }
 0x2aa   : > { %5202 = vmatmul.msk.bf16.gmra.mxu2 %vm878_vm4, %v3043_v4  ;;  %3044 = vst [vmem:[#allocation1] ss:$9 sm:$0xff] %v9781_v31  ;;  %v9788_v4 = vld [vmem:[#allocation32_spill] sm:$0xff]  ;;  %v9789_v31 = vld [vmem:[#allocation33_spill] sm:$0xff] }
 0x2ab   : > { %v7356_v10 = vpop.permute.xlu1 %2484  ;;  %3045 = vst [vmem:[#allocation1 + $0x1] ss:$9 sm:$0xff] %v9783_v15 }
 0x2ac   : > { %9778 = vst [vmem:[#allocation24_spill] sm:$0xff] %v7356_v10 }
 0x2ad   : > { %2704 = vrot.lane.b32.xlu2 %v6740_v30, %s5424_s26  ;;  %3046 = vst [vmem:[#allocation1 + $0x2] ss:$9 sm:$0xff] %v9784_v13 }
 0x2ae   : > { %2700 = vrot.lane.b32.xlu0 %v6723_v53, %s5424_s26  ;;  %3047 = vst [vmem:[#allocation1 + $0x3] ss:$9 sm:$0xff] %v9785_v51 }
 0x2af   : > { %v7366_v56 = vpop.permute.xlu2 %2510  ;;  %3048 = vst [vmem:[#allocation1 + $0x4] ss:$9 sm:$0xff] %v9786_v1 }
 0x2b0   : > { %v7364_v11 = vpop.permute.xlu0 %2488  ;;  %9780 = vst [vmem:[#allocation274_spill] sm:$0xff] %v7366_v56 }
 0x2b1   : > { %2702 = vrot.lane.b32.xlu1 %v6745_v24, %s5424_s26  ;;  %9779 = vst [vmem:[#allocation25_spill] sm:$0xff] %v7364_v11 }
 0x2b2   : > { %3049 = vst [vmem:[#allocation1 + $0x5] ss:$9 sm:$0xff] %v9787_v23 }
 0x2b3   : > { %v7370_v43 = vpop.permute.xlu1 %2490  ;;  %3050 = vst [vmem:[#allocation1 + $0x6] ss:$9 sm:$0xff] %v9788_v4 }
 0x2b4   : > { %9782 = vst [vmem:[#allocation26_spill] sm:$0xff] %v7370_v43 }
 0x2b5   : > { %2710 = vrot.lane.b32.xlu2 %v6765_v5, %s5424_s26  ;;  %3051 = vst [vmem:[#allocation1 + $0x7] ss:$9 sm:$0xff] %v9789_v31 }
 0x2b6   : > { %2706 = vrot.lane.b32.xlu0 %v6752_v34, %s5424_s26 }
 0x2b7   : > { %v7387_v13 = vpop.permute.xlu2 %2516 }
 0x2b8   : > { %v7385_v15 = vpop.permute.xlu0 %2494  ;;  %9791 = vst [vmem:[#allocation28_spill] sm:$0xff] %v7387_v13 }
 0x2b9   : > { %2708 = vrot.lane.b32.xlu1 %v6768_v62, %s5424_s26  ;;  %9790 = vst [vmem:[#allocation27_spill] sm:$0xff] %v7385_v15 }
 0x2bb   : > { %v7389_v51 = vpop.permute.xlu1 %2496 }
 0x2bc   : > { %9792 = vst [vmem:[#allocation29_spill] sm:$0xff] %v7389_v51  ;;  %v9815_v51 = vld [vmem:[#allocation36_spill] sm:$0xff] }
 0x2bd   : > { %2716 = vrot.lane.b32.xlu2 %v6791_v20, %s5424_s26  ;;  %v9900_v20 = vld [vmem:[#allocation41_spill] sm:$0xff] }
 0x2be   : > { %2712 = vrot.lane.b32.xlu0 %v6784_v47, %s5424_s26 }
 0x2bf   : > { %v7399_v23 = vpop.permute.xlu2 %2522 }
 0x2c0   : > { %v7397_v1 = vpop.permute.xlu0 %2500  ;;  %9794 = vst [vmem:[#allocation31_spill] sm:$0xff] %v7399_v23 }
 0x2c1   : > { %2714 = vrot.lane.b32.xlu1 %v6780_v48, %s5424_s26  ;;  %9793 = vst [vmem:[#allocation30_spill] sm:$0xff] %v7397_v1 }
 0x2c3   : > { %v7401_v4 = vpop.permute.xlu1 %2502 }
 0x2c4   : > { %9795 = vst [vmem:[#allocation32_spill] sm:$0xff] %v7401_v4 }
 0x2c5   : > { %2722 = vrot.lane.b32.xlu2 %v6823_v2, %s5424_s26 }
 0x2c6   : > { %2718 = vrot.lane.b32.xlu0 %v6807_v50, %s5424_s26  ;;  %v9880_v50 = vld [vmem:[#allocation42_spill] sm:$0xff] }
 0x2c7   : > { %v7411_v26 = vpop.permute.xlu2 %2528 }
 0x2c8   : > { %v7409_v31 = vpop.permute.xlu0 %2506  ;;  %9797 = vst [vmem:[#allocation275_spill] sm:$0xff] %v7411_v26  ;;  %v9802_v26 = vrot.slane %v6845_v9, 2 }
 0x2c9   : > { %2720 = vrot.lane.b32.xlu1 %v6820_v46, %s5424_s26  ;;  %9796 = vst [vmem:[#allocation33_spill] sm:$0xff] %v7409_v31  ;;  %v7469_v31 = vpop.f32.mrf.mxu2 }
 0x2cb   : > { %v7413_v13 = vpop.permute.xlu1 %2508 }
 0x2cc   : > { %9798 = vst [vmem:[#allocation276_spill] sm:$0xff] %v7413_v13 }
 0x2cd   : > { %2728 = vrot.lane.b32.xlu2 %v6845_v9, %s5424_s26 }
 0x2ce   : > { %2724 = vrot.lane.b32.xlu0 %v6843_v29, %s5424_s26 }
 0x2cf   : > { %v7423_v56 = vpop.permute.xlu2 %2534 }
 0x2d0   : > { %v7421_v23 = vpop.permute.xlu0 %2512  ;;  %9800 = vst [vmem:[#allocation278_spill] sm:$0xff] %v7423_v56 }
 0x2d1   : > { %2726 = vrot.lane.b32.xlu1 %v6850_v39, %s5424_s26  ;;  %9799 = vst [vmem:[#allocation277_spill] sm:$0xff] %v7421_v23 }
 0x2d3   : > { %v7425_v3 = vpop.permute.xlu1 %2514 }
 0x2d4   : > { %9801 = vst [vmem:[#allocation279_spill] sm:$0xff] %v7425_v3 }
 0x2d5   : > { %2734 = vrot.lane.b32.xlu2 %v6873_v17, %s5424_s26 }
 0x2d6   : > { %2730 = vrot.lane.b32.xlu0 %v9802_v26, %s5424_s26 }
 0x2d7   : > { %v7436_v4 = vpop.permute.xlu2 %2540 }
 0x2d8   : > { %v7434_v13 = vpop.permute.xlu0 %2518  ;;  %9804 = vst [vmem:[#allocation281_spill] sm:$0xff] %v7436_v4  ;;  %v9809_v4 = vrot.slane %v6906_v45, 4 }
 0x2d9   : > { %2732 = vrot.lane.b32.xlu1 %v6876_v40, %s5424_s26  ;;  %9803 = vst [vmem:[#allocation280_spill] sm:$0xff] %v7434_v13  ;;  %v9845_v40 = vrot.slane %v6561_v61, 2  ;;  %v9849_v61 = vrot.slane %v6573_v49, 1 }
 0x2db   : > { %v7438_v35 = vpop.permute.xlu1 %2520 }
 0x2dc   : > { %9805 = vst [vmem:[#allocation282_spill] sm:$0xff] %v7438_v35 }
 0x2dd   : > { %2740 = vrot.lane.b32.xlu2 %v6900_v58, %s5424_s26 }
 0x2de   : > { %2736 = vrot.lane.b32.xlu0 %v6897_v28, %s5424_s26  ;;  %v9847_v28 = vrot.slane %v6564_v59, 3 }
 0x2df   : > { %v7448_v56 = vpop.permute.xlu2 %2546 }
 0x2e0   : > { %v7446_v26 = vpop.permute.xlu0 %2524  ;;  %9807 = vst [vmem:[#allocation284_spill] sm:$0xff] %v7448_v56  ;;  %v9813_v56 = vld [vmem:[#allocation34_spill] sm:$0xff] }
 0x2e1   : > { %2738 = vrot.lane.b32.xlu1 %v6904_v63, %s5424_s26  ;;  %9806 = vst [vmem:[#allocation283_spill] sm:$0xff] %v7446_v26  ;;  %v3052_v26 = vld [vmem:[#allocation1] sm:$0xff] }
 0x2e2   : > { %5203 = vmatmul.msk.bf16.gmra.mxu2 %vm878_vm4, %v3052_v26  ;;  %3053 = vst [vmem:[#allocation1] ss:$9 sm:$0xff] %v9813_v56  ;;  %v9817_v56 = vld [vmem:[#allocation38_spill] sm:$0xff]  ;;  %v9820_v26 = vld [vmem:[#allocation39_spill] sm:$0xff] }
 0x2e3   : > { %v7450_v3 = vpop.permute.xlu1 %2526  ;;  %3055 = vst [vmem:[#allocation1 + $0x2] ss:$9 sm:$0xff] %v9815_v51 }
 0x2e4   : > { %9808 = vst [vmem:[#allocation285_spill] sm:$0xff] %v7450_v3  ;;  %v9814_v3 = vld [vmem:[#allocation35_spill] sm:$0xff] }
 0x2e5   : > { %2746 = vrot.lane.b32.xlu2 %v9809_v4, %s5424_s26  ;;  %3054 = vst [vmem:[#allocation1 + $0x1] ss:$9 sm:$0xff] %v9814_v3  ;;  %v9816_v4 = vld [vmem:[#allocation37_spill] sm:$0xff] }
 0x2e6   : > { %2742 = vrot.lane.b32.xlu0 %v6906_v45, %s5424_s26  ;;  %3056 = vst [vmem:[#allocation1 + $0x3] ss:$9 sm:$0xff] %v9816_v4  ;;  %v9822_v4 = vrot.slane %v6558_v25, 1 }
 0x2e7   : > { %v7461_v13 = vpop.permute.xlu2 %2552  ;;  %3057 = vst [vmem:[#allocation1 + $0x4] ss:$9 sm:$0xff] %v9817_v56 }
 0x2e8   : > { %v7459_v35 = vpop.permute.xlu0 %2530  ;;  %9811 = vst [vmem:[#allocation287_spill] sm:$0xff] %v7461_v13  ;;  %v7477_v13 = vrot.slane %v7469_v31, 2 }
 0x2e9   : > { %2744 = vrot.lane.b32.xlu1 %v6930_v42, %s5424_s26  ;;  %9810 = vst [vmem:[#allocation286_spill] sm:$0xff] %v7459_v35 }
 0x2ea   : > { %3058 = vst [vmem:[#allocation1 + $0x5] ss:$9 sm:$0xff] %v9820_v26 }
 0x2eb   : > { %v7463_v23 = vpop.permute.xlu1 %2532  ;;  %3059 = vst [vmem:[#allocation1 + $0x6] ss:$9 sm:$0xff] %v6527_v60 }
 0x2ec   : > { %9812 = vst [vmem:[#allocation288_spill] sm:$0xff] %v7463_v23  ;;  %v3350_v23 = vrot.slane %v7477_v13, 7 }
 0x2ed   : > { %2752 = vrot.lane.b32.xlu2 %v6958_v21, %s5424_s26  ;;  %3060 = vst [vmem:[#allocation1 + $0x7] ss:$9 sm:$0xff] %v9822_v4  ;;  %v7494_v21 = vrot.slane %v7469_v31, 4 }
 0x2ee   : > { %2748 = vrot.lane.b32.xlu0 %v6932_v54, %s5424_s26  ;;  %v3352_v56 = vrot.slane %v3350_v23, 2 }
 0x2ef   : > { %v7484_v51 = vpop.permute.xlu2 %2558  ;;  %v3353_v4 = vrot.slane %v7494_v21, 7 }
 0x2f0   : > { %v7482_v3 = vpop.permute.xlu0 %2536  ;;  %9819 = vst [vmem:[#allocation35_spill] sm:$0xff] %v7484_v51  ;;  %v7510_v51 = vrot.slane %v7469_v31, 6 }
 0x2f1   : > { %2750 = vrot.lane.b32.xlu1 %v6961_v6, %s5424_s26  ;;  %9818 = vst [vmem:[#allocation34_spill] sm:$0xff] %v7482_v3  ;;  %v5207_v3 = vrot.slane %v7469_v31, 9 }
 0x2f3   : > { %v7487_v35 = vpop.permute.xlu1 %2538 }
 0x2f4   : > { %9821 = vst [vmem:[#allocation36_spill] sm:$0xff] %v7487_v35  ;;  %v3354_v35 = vsel %vm5875_vm9, %v3352_v56, %v3353_v4  ;;  %v3061_v18 = vld [vmem:[#allocation1] sm:$0xff] }
 0x2f5   : > { %2758 = vrot.lane.b32.xlu2 %v6984_v41, %s5424_s26  ;;  %v7515_v41 = vpop.f32.mrf.mxu2  ;;  %5204 = vmatmul.msk.bf16.gmra.mxu2 %vm878_vm4, %v3061_v18  ;;  %3062 = vst [vmem:[#allocation1] ss:$9 sm:$0xff] %v9845_v40  ;;  %v9850_v40 = vrot.slane %v6576_v0, 2 }
 0x2f6   : > { %2754 = vrot.lane.b32.xlu0 %v6976_v19, %s5424_s26  ;;  %v3359_v6 = vrot.slane %v7515_v41, 7  ;;  %v7533_v19 = vrot.slane %v7515_v41, 6  ;;  %3063 = vst [vmem:[#allocation1 + $0x1] ss:$9 sm:$0xff] %v9847_v28 }
 0x2f7   : > { %v7504_v60 = vpop.permute.xlu2 %2564  ;;  %3064 = vst [vmem:[#allocation1 + $0x2] ss:$9 sm:$0xff] %v6570_v38 }
 0x2f8   : > { %v7502_v26 = vpop.permute.xlu0 %2542  ;;  %9824 = vst [vmem:[#allocation38_spill] sm:$0xff] %v7504_v60  ;;  %v3351_v60 = vsel %vm5875_vm9, %v5207_v3, %v3350_v23  ;;  %v3361_v15 = vrot.slane %v3359_v6, 2  ;;  %v7538_v23 = vrot.slane %v7515_v41, 4 }
 0x2f9   : > { %2756 = vrot.lane.b32.xlu1 %v6963_v55, %s5424_s26  ;;  %9823 = vst [vmem:[#allocation37_spill] sm:$0xff] %v7502_v26  ;;  %v7525_v26 = vrot.slane %v7515_v41, 2 }
 0x2fa   : > { %9828 = vst [vmem:[#allocation291_spill] sm:$0xff] %v7533_v19 }
 0x2fb   : > { %v7506_v25 = vpop.permute.xlu1 %2544  ;;  %9830 = vst [vmem:[#allocation293_spill] sm:$0xff] %v7538_v23  ;;  %v3362_v54 = vrot.slane %v7525_v26, 7 }
 0x2fc   : > { %9825 = vst [vmem:[#allocation39_spill] sm:$0xff] %v7506_v25  ;;  %v3356_v25 = vrot.slane %v7510_v51, 7 }
 0x2fd   : > { %3550 = vrot.lane.b32.xlu2 %v3354_v35, %s5425_s27  ;;  %v3355_v35 = vrot.slane %v3353_v4, 2  ;;  %v7546_v43 = vpop.f32.mrf.mxu2  ;;  %3065 = vst [vmem:[#allocation1 + $0x3] ss:$9 sm:$0xff] %v9849_v61 }
 0x2fe   : > { %2760 = vrot.lane.b32.xlu0 %v7000_v57, %s5424_s26  ;;  %v3358_v3 = vrot.slane %v3356_v25, 2  ;;  %9831 = vst [vmem:[#allocation294_spill] sm:$0xff] %v7546_v43  ;;  %v3371_v58 = vrot.slane %v7546_v43, 7 }
 0x2ff   : > { %v7530_v1 = vpop.permute.xlu2 %2570  ;;  %3066 = vst [vmem:[#allocation1 + $0x4] ss:$9 sm:$0xff] %v9850_v40 }
 0x300   : > { %v7528_v56 = vpop.permute.xlu0 %2548  ;;  %9827 = vst [vmem:[#allocation290_spill] sm:$0xff] %v7530_v1  ;;  %v3368_v1 = vrot.slane %v7533_v19, 7  ;;  %v3360_v4 = vsel %vm5875_vm9, %v3358_v3, %v3359_v6 }
 0x301   : > { %3548 = vrot.lane.b32.xlu1 %v3351_v60, %s5425_s27  ;;  %9826 = vst [vmem:[#allocation289_spill] sm:$0xff] %v7528_v56  ;;  %v3357_v60 = vsel %vm5875_vm9, %v3355_v35, %v3356_v25  ;;  %v3363_v56 = vsel %vm5875_vm9, %v3361_v15, %v3362_v54  ;;  %v3364_v35 = vrot.slane %v3362_v54, 2 }
 0x302   : > { %v3370_v10 = vrot.slane %v3368_v1, 2  ;;  %3068 = vst [vmem:[#allocation1 + $0x6] ss:$9 sm:$0xff] %v6604_v8 }
 0x303   : > { %v7535_v57 = vpop.permute.xlu1 %2550 }
 0x304   : > { %9829 = vst [vmem:[#allocation292_spill] sm:$0xff] %v7535_v57  ;;  %v3365_v57 = vrot.slane %v7538_v23, 7  ;;  %v3372_v6 = vsel %vm5875_vm9, %v3370_v10, %v3371_v58 }
 0x305   : > { %3556 = vrot.lane.b32.xlu2 %v3363_v56, %s5425_s27 }
 0x306   : > { %3552 = vrot.lane.b32.xlu0 %v3357_v60, %s5425_s27  ;;  %v3367_v60 = vrot.slane %v3365_v57, 2  ;;  %v3366_v56 = vsel %vm5875_vm9, %v3364_v35, %v3365_v57  ;;  %v9373_v35 = vrot.slane %v7546_v43, 2 }
 0x307   : > { %v7556_v25 = vpop.permute.xlu2 %2704 }
 0x308   : > { %v7554_v42 = vpop.permute.xlu0 %2554  ;;  %v3369_v3 = vsel %vm5875_vm9, %v3367_v60, %v3368_v1  ;;  %v7589_v1 = vrot.slane %v7546_v43, 4  ;;  %v5208_v60 = vrot.slane %v9373_v35, 9 }
 0x309   : > { %3554 = vrot.lane.b32.xlu1 %v3360_v4, %s5425_s27  ;;  %9832 = vst [vmem:[#allocation295_spill] sm:$0xff] %v7554_v42 }
 0x30a   : > { %9839 = vst [vmem:[#allocation302_spill] sm:$0xff] %v7589_v1 }
 0x30b   : > { %v7558_v15 = vpop.permute.xlu1 %2556 }
 0x30c   : > { %9833 = vst [vmem:[#allocation296_spill] sm:$0xff] %v7558_v15 }
 0x30d   : > { %3562 = vrot.lane.b32.xlu2 %v3372_v6, %s5425_s27 }
 0x30e   : > { %3558 = vrot.lane.b32.xlu0 %v3366_v56, %s5425_s27  ;;  %v3375_v56 = vrot.slane %v7589_v1, 7 }
 0x30f   : > { %v7572_v4 = vpop.permute.xlu2 %2710 }
 0x310   : > { %v7570_v54 = vpop.permute.xlu0 %2560  ;;  %v3377_v45 = vrot.slane %v3375_v56, 2 }
 0x311   : > { %3560 = vrot.lane.b32.xlu1 %v3369_v3, %s5425_s27  ;;  %9834 = vst [vmem:[#allocation297_spill] sm:$0xff] %v7570_v54  ;;  %v3376_v54 = vsel %vm5875_vm9, %v5208_v60, %v3375_v56 }
 0x313   : > { %v7574_v15 = vpop.permute.xlu1 %2562 }
 0x314   : > { %9835 = vst [vmem:[#allocation298_spill] sm:$0xff] %v7574_v15  ;;  %v7612_v15 = vpop.f32.mrf.mxu2 }
 0x315   : > { %3808 = vrot.lane.b32.xlu2 %v7510_v51, %s5424_s26  ;;  %9842 = vst [vmem:[#allocation305_spill] sm:$0xff] %v7612_v15  ;;  %v3381_v42 = vrot.slane %v7612_v15, 7  ;;  %v7620_v63 = vrot.slane %v7612_v15, 2  ;;  %v7639_v27 = vrot.slane %v7612_v15, 4 }
 0x316   : > { %3804 = vrot.lane.b32.xlu0 %v7477_v13, %s5424_s26 }
 0x317   : > { %v7584_v57 = vpop.permute.xlu2 %2716  ;;  %9843 = vst [vmem:[#allocation306_spill] sm:$0xff] %v7620_v63  ;;  %v3383_v52 = vrot.slane %v3381_v42, 2  ;;  %v3384_v18 = vrot.slane %v7620_v63, 7  ;;  %v3387_v0 = vrot.slane %v7639_v27, 7 }
 0x318   : > { %v7582_v58 = vpop.permute.xlu0 %2566  ;;  %9837 = vst [vmem:[#allocation300_spill] sm:$0xff] %v7584_v57  ;;  %v9887_v57 = vld [vmem:[#allocation68_spill] sm:$0xff] }
 0x319   : > { %3806 = vrot.lane.b32.xlu1 %v7494_v21, %s5424_s26  ;;  %9836 = vst [vmem:[#allocation299_spill] sm:$0xff] %v7582_v58  ;;  %v3385_v59 = vsel %vm5875_vm9, %v3383_v52, %v3384_v18  ;;  %v3389_v40 = vrot.slane %v3387_v0, 2 }
 0x31a   : > { %9848 = vst [vmem:[#allocation309_spill] sm:$0xff] %v7639_v27 }
 0x31b   : > { %v7586_v10 = vpop.permute.xlu1 %2568 }
 0x31c   : > { %9838 = vst [vmem:[#allocation301_spill] sm:$0xff] %v7586_v10  ;;  %v7608_v10 = vrot.slane %v7546_v43, 6  ;;  %v7654_v38 = vpop.f32.mrf.mxu2 }
 0x31d   : > { %3814 = vrot.lane.b32.xlu2 %v7538_v23, %s5424_s26  ;;  %9852 = vst [vmem:[#allocation310_spill] sm:$0xff] %v7654_v38  ;;  %v3393_v61 = vrot.slane %v7654_v38, 7 }
 0x31e   : > { %3810 = vrot.lane.b32.xlu0 %v7515_v41, %s5424_s26  ;;  %9841 = vst [vmem:[#allocation304_spill] sm:$0xff] %v7608_v10  ;;  %v3378_v35 = vrot.slane %v7608_v10, 7 }
 0x31f   : > { %v7603_v3 = vpop.permute.xlu2 %2722 }
 0x320   : > { %v7601_v6 = vpop.permute.xlu0 %2700  ;;  %9840 = vst [vmem:[#allocation303_spill] sm:$0xff] %v7603_v3  ;;  %v3380_v39 = vrot.slane %v3378_v35, 2  ;;  %v3379_v56 = vsel %vm5875_vm9, %v3377_v45, %v3378_v35  ;;  %v3386_v35 = vrot.slane %v3384_v18, 2  ;;  %v3395_v18 = vrot.slane %v3393_v61, 2 }
 0x321   : > { %3812 = vrot.lane.b32.xlu1 %v7525_v26, %s5424_s26 }
 0x322   : > { %v3382_v49 = vsel %vm5875_vm9, %v3380_v39, %v3381_v42  ;;  %v3388_v39 = vsel %vm5875_vm9, %v3386_v35, %v3387_v0 }
 0x323   : > { %v7605_v58 = vpop.permute.xlu1 %2702 }
 0x325   : > { %3564 = vrot.lane.b32.xlu2 %v3376_v54, %s5425_s27  ;;  %v7632_v54 = vrot.slane %v7612_v15, 6 }
 0x326   : > { %3816 = vrot.lane.b32.xlu0 %v7533_v19, %s5424_s26  ;;  %v9901_v19 = vld [vmem:[#allocation90_spill] sm:$0xff] }
 0x327   : > { %v7626_v60 = vpop.permute.xlu2 %2728  ;;  %9846 = vst [vmem:[#allocation308_spill] sm:$0xff] %v7632_v54  ;;  %v3390_v28 = vrot.slane %v7632_v54, 7  ;;  %v1535_v23 = vadd.f32 %v9901_v19, %v9900_v20  ;;  %v9904_v20 = vld [vmem:[#allocation78_spill] sm:$0xff] }
 0x328   : > { %v7624_v17 = vpop.permute.xlu0 %2706  ;;  %9844 = vst [vmem:[#allocation307_spill] sm:$0xff] %v7626_v60  ;;  %v9851_v60 = vrot.slane %v6579_v32, 3 }
 0x329   : > { %3818 = vrot.lane.b32.xlu1 %v7546_v43, %s5424_s26  ;;  %v3391_v42 = vsel %vm5875_vm9, %v3389_v40, %v3390_v28 }
 0x32a   : > { %3067 = vst [vmem:[#allocation1 + $0x5] ss:$9 sm:$0xff] %v9851_v60  ;;  %v3392_v60 = vrot.slane %v3390_v28, 2 }
 0x32b   : > { %v7634_v11 = vpop.permute.xlu1 %2708 }
 0x32c   : > { %v3394_v8 = vsel %vm5875_vm9, %v3392_v60, %v3393_v61 }
 0x32d   : > { %3570 = vrot.lane.b32.xlu2 %v3385_v59, %s5425_s27 }
 0x32e   : > { %3566 = vrot.lane.b32.xlu0 %v3379_v56, %s5425_s27  ;;  %v3194_v56 = vrot.slane %v7654_v38, 2 }
 0x32f   : > { %v7665_v52 = vpop.permute.xlu2 %2734 }
 0x330   : > { %v7663_v45 = vpop.permute.xlu0 %2712  ;;  %9854 = vst [vmem:[#allocation312_spill] sm:$0xff] %v7665_v52  ;;  %v3396_v59 = vrot.slane %v3194_v56, 7 }
 0x331   : > { %3568 = vrot.lane.b32.xlu1 %v3382_v49, %s5425_s27  ;;  %9853 = vst [vmem:[#allocation311_spill] sm:$0xff] %v7663_v45  ;;  %v9902_v45 = vld [vmem:[#allocation46_spill] sm:$0xff] }
 0x332   : > { %v3397_v0 = vsel %vm5875_vm9, %v3395_v18, %v3396_v59 }
 0x333   : > { %v7667_v32 = vpop.permute.xlu1 %2714 }
 0x334   : > { %9855 = vst [vmem:[#allocation313_spill] sm:$0xff] %v7667_v32 }
 0x335   : > { %3576 = vrot.lane.b32.xlu2 %v3394_v8, %s5425_s27  ;;  %v7712_v8 = vrot.slane %v7654_v38, 6 }
 0x336   : > { %3572 = vrot.lane.b32.xlu0 %v3388_v39, %s5425_s27 }
 0x337   : > { %v7682_v52 = vpop.permute.xlu2 %2740  ;;  %9865 = vst [vmem:[#allocation323_spill] sm:$0xff] %v7712_v8 }
 0x338   : > { %v7680_v49 = vpop.permute.xlu0 %2718  ;;  %9857 = vst [vmem:[#allocation315_spill] sm:$0xff] %v7682_v52 }
 0x339   : > { %3574 = vrot.lane.b32.xlu1 %v3391_v42, %s5425_s27  ;;  %9856 = vst [vmem:[#allocation314_spill] sm:$0xff] %v7680_v49  ;;  %v7714_v42 = vpop.f32.mrf.mxu2  ;;  %v9899_v49 = vld [vmem:[#allocation62_spill] sm:$0xff] }
 0x33a   : > { %9866 = vst [vmem:[#allocation324_spill] sm:$0xff] %v7714_v42  ;;  %v3403_v59 = vrot.slane %v7714_v42, 7  ;;  %v7732_v18 = vrot.slane %v7714_v42, 6 }
 0x33b   : > { %v7684_v29 = vpop.permute.xlu1 %2720 }
 0x33c   : > { %9858 = vst [vmem:[#allocation316_spill] sm:$0xff] %v7684_v29  ;;  %v3412_v3 = vrot.slane %v7732_v18, 7 }
 0x33d   : > { %3822 = vrot.lane.b32.xlu2 %v7608_v10, %s5424_s26  ;;  %9870 = vst [vmem:[#allocation328_spill] sm:$0xff] %v7732_v18 }
 0x33e   : > { %3578 = vrot.lane.b32.xlu0 %v3397_v0, %s5425_s27  ;;  %v3400_v0 = vrot.slane %v7712_v8, 7  ;;  %v3414_v43 = vrot.slane %v3412_v3, 2 }
 0x33f   : > { %v7695_v35 = vpop.permute.xlu2 %2746 }
 0x340   : > { %v7693_v28 = vpop.permute.xlu0 %2724  ;;  %9860 = vst [vmem:[#allocation318_spill] sm:$0xff] %v7695_v35 }
 0x341   : > { %3820 = vrot.lane.b32.xlu1 %v7589_v1, %s5424_s26  ;;  %9859 = vst [vmem:[#allocation317_spill] sm:$0xff] %v7693_v28  ;;  %v7747_v29 = vpop.f32.mrf.mxu2 }
 0x342   : > { %v3415_v46 = vrot.slane %v7747_v29, 7 }
 0x343   : > { %v7697_v60 = vpop.permute.xlu1 %2726 }
 0x344   : > { %9861 = vst [vmem:[#allocation319_spill] sm:$0xff] %v7697_v60  ;;  %v7739_v60 = vrot.slane %v7714_v42, 4 }
 0x345   : > { %3828 = vrot.lane.b32.xlu2 %v7639_v27, %s5424_s26  ;;  %v3405_v27 = vrot.slane %v3403_v59, 2 }
 0x346   : > { %3824 = vrot.lane.b32.xlu0 %v7612_v15, %s5424_s26  ;;  %9873 = vst [vmem:[#allocation330_spill] sm:$0xff] %v7739_v60  ;;  %v3402_v15 = vrot.slane %v3400_v0, 2 }
 0x347   : > { %v7707_v40 = vpop.permute.xlu2 %2752 }
 0x348   : > { %v7705_v61 = vpop.permute.xlu0 %2730  ;;  %9863 = vst [vmem:[#allocation321_spill] sm:$0xff] %v7707_v40  ;;  %v7723_v40 = vrot.slane %v7714_v42, 2 }
 0x349   : > { %3826 = vrot.lane.b32.xlu1 %v7620_v63, %s5424_s26  ;;  %9862 = vst [vmem:[#allocation320_spill] sm:$0xff] %v7705_v61  ;;  %v7833_v63 = vpop.f32.mrf.mxu2 }
 0x34a   : > { %9867 = vst [vmem:[#allocation325_spill] sm:$0xff] %v7723_v40  ;;  %v3406_v10 = vrot.slane %v7723_v40, 7  ;;  %v7839_v28 = vrot.slane %v7833_v63, 4 }
 0x34b   : > { %v7709_v39 = vpop.permute.xlu1 %2732 }
 0x34c   : > { %9864 = vst [vmem:[#allocation322_spill] sm:$0xff] %v7709_v39 }
 0x34d   : > { %3834 = vrot.lane.b32.xlu2 %v3194_v56, %s5424_s26 }
 0x34e   : > { %3830 = vrot.lane.b32.xlu0 %v7632_v54, %s5424_s26  ;;  %v9872_v54 = vrot.slane %v7654_v38, 4 }
 0x34f   : > { %v7729_v52 = vpop.permute.xlu2 %2758 }
 0x350   : > { %v7727_v35 = vpop.permute.xlu0 %2736  ;;  %9869 = vst [vmem:[#allocation327_spill] sm:$0xff] %v7729_v52  ;;  %v5209_v56 = vrot.slane %v9872_v54, 9  ;;  %v3407_v52 = vsel %vm5875_vm9, %v3405_v27, %v3406_v10  ;;  %v3404_v54 = vsel %vm5875_vm9, %v3402_v15, %v3403_v59  ;;  %v3416_v59 = vsel %vm5875_vm9, %v3414_v43, %v3415_v46 }
 0x351   : > { %3832 = vrot.lane.b32.xlu1 %v7654_v38, %s5424_s26  ;;  %9868 = vst [vmem:[#allocation326_spill] sm:$0xff] %v7727_v35  ;;  %v3417_v43 = vrot.slane %v3415_v46, 2 }
 0x352   : > { %v3401_v35 = vsel %vm5875_vm9, %v5209_v56, %v3400_v0  ;;  %v3408_v56 = vrot.slane %v3406_v10, 2 }
 0x353   : > { %v7734_v39 = vpop.permute.xlu1 %2738 }
 0x354   : > { %9871 = vst [vmem:[#allocation329_spill] sm:$0xff] %v7734_v39  ;;  %v3409_v39 = vrot.slane %v7739_v60, 7 }
 0x355   : > { %3584 = vrot.lane.b32.xlu2 %v3407_v52, %s5425_s27  ;;  %v7763_v52 = vrot.slane %v7747_v29, 2 }
 0x356   : > { %3580 = vrot.lane.b32.xlu0 %v3401_v35, %s5425_s27  ;;  %v3411_v35 = vrot.slane %v3409_v39, 2  ;;  %v3410_v15 = vsel %vm5875_vm9, %v3408_v56, %v3409_v39 }
 0x357   : > { %v7757_v0 = vpop.permute.xlu2 %3550  ;;  %9876 = vst [vmem:[#allocation333_spill] sm:$0xff] %v7763_v52 }
 0x358   : > { %v7755_v38 = vpop.permute.xlu0 %2742  ;;  %v3413_v10 = vsel %vm5875_vm9, %v3411_v35, %v3412_v3  ;;  %v9881_v3 = vld [vmem:[#allocation75_spill] sm:$0xff] }
 0x359   : > { %3582 = vrot.lane.b32.xlu1 %v3404_v54, %s5425_s27  ;;  %9874 = vst [vmem:[#allocation331_spill] sm:$0xff] %v7755_v38  ;;  %v3418_v54 = vrot.slane %v7763_v52, 7  ;;  %v9391_v38 = vrot.slane %v7747_v29, 4  ;;  %v1534_v35 = vadd.f32 %v9881_v3, %v9880_v50  ;;  %v439_v3 = vld [vmem:[%s5524_s11 + $0xc] sm:$0xf] }
 0x35b   : > { %v7759_v27 = vpop.permute.xlu1 %2744  ;;  %v3419_v61 = vsel %vm5875_vm9, %v3417_v43, %v3418_v54  ;;  %v9886_v43 = vld [vmem:[#allocation45_spill] sm:$0xff] }
 0x35c   : > { %9875 = vst [vmem:[#allocation332_spill] sm:$0xff] %v7759_v27 }
 0x35d   : > { %3590 = vrot.lane.b32.xlu2 %v3416_v59, %s5425_s27  ;;  %v3421_v59 = vrot.slane %v9391_v38, 7  ;;  %v9884_v38 = vld [vmem:[#allocation67_spill] sm:$0xff] }
 0x35e   : > { %3586 = vrot.lane.b32.xlu0 %v3410_v15, %s5425_s27  ;;  %v3420_v15 = vrot.slane %v3418_v54, 2  ;;  %v2959_v54 = vrot.slane %v439_v3, 3 }
 0x35f   : > { %v7778_v39 = vpop.permute.xlu2 %3556 }
 0x360   : > { %v7776_v27 = vpop.permute.xlu0 %2748  ;;  %9878 = vst [vmem:[#allocation335_spill] sm:$0xff] %v7778_v39 }
 0x361   : > { %3588 = vrot.lane.b32.xlu1 %v3413_v10, %s5425_s27  ;;  %9877 = vst [vmem:[#allocation334_spill] sm:$0xff] %v7776_v27  ;;  %v3422_v10 = vsel %vm5875_vm9, %v3420_v15, %v3421_v59 }
 0x363   : > { %v7780_v56 = vpop.permute.xlu1 %2750 }
 0x364   : > { %9879 = vst [vmem:[#allocation336_spill] sm:$0xff] %v7780_v56  ;;  %v1790_v56 = vadd.f32 %v9884_v38, %v1534_v35  ;;  %v9888_v38 = vld [vmem:[#allocation83_spill] sm:$0xff] }
 0x365   : > { %3836 = vrot.lane.b32.xlu2 %v7712_v8, %s5424_s26  ;;  %v1537_v8 = vadd.f32 %v9887_v57, %v9886_v43 }
 0x366   : > { %3592 = vrot.lane.b32.xlu0 %v3419_v61, %s5425_s27  ;;  %v2964_v61 = vsel %vm514_vm0, %v439_v3, %v2959_v54  ;;  %v2182_v15 = vadd.f32 %v6745_v24, %v1790_v56  ;;  %v9892_v56 = vld [vmem:[#allocation43_spill] sm:$0xff] }
 0x367   : > { %v7796_v27 = vpop.permute.xlu2 %3562  ;;  %3069 = vst [vmem:[#allocation1 + $0x7] ss:$9 sm:$0xff] %v2964_v61  ;;  %v1793_v59 = vadd.f32 %v9888_v38, %v1537_v8  ;;  %v9893_v61 = vld [vmem:[#allocation76_spill] sm:$0xff] }
 0x368   : > { %v7794_v46 = vpop.permute.xlu0 %2754  ;;  %9883 = vst [vmem:[#allocation75_spill] sm:$0xff] %v7796_v27  ;;  %v2638_v35 = vadd.f32 %v7191_v7, %v2182_v15  ;;  %v7826_v7 = vld [vmem:[%s9162_s3] ss:$0 sm:$0xff]  ;;  %v440_v15 = vld [vmem:[%s5524_s11 + $0x10] sm:$0xf]  ;;  %v9895_v38 = vld [vmem:[#allocation64_spill] sm:$0xff] }
 0x369   : > { %3594 = vrot.lane.b32.xlu1 %v3422_v10, %s5425_s27  ;;  %9882 = vst [vmem:[#allocation42_spill] sm:$0xff] %v7794_v46  ;;  %v9889_v10 = vld [vmem:[#allocation40_spill] sm:$0xff]  ;;  %v9890_v46 = vld [vmem:[#allocation73_spill] sm:$0xff]  ;;  %v2185_v8 = vadd.f32 %v6768_v62, %v1793_v59  ;;  %v441_v59 = vld [vmem:[%s5524_s11 + $0x14] sm:$0x1] }
 0x36a   : > { %v1532_v57 = vadd.f32 %v9890_v46, %v9889_v10  ;;  %v9894_v46 = vld [vmem:[#allocation44_spill] sm:$0xff] }
 0x36b   : > { %v7799_v50 = vpop.permute.xlu1 %2756  ;;  %v1536_v10 = vadd.f32 %v9895_v38, %v9894_v46  ;;  %v2641_v48 = vadd.f32 %v7218_v14, %v2185_v8  ;;  %v2968_v14 = vsel %vm522_vm2, %v439_v3, %v2959_v54  ;;  %v7860_v38 = vld [vmem:[%s9163_s4] ss:$0 sm:$0xff] }
 0x36c   : > { %9885 = vst [vmem:[#allocation67_spill] sm:$0xff] %v7799_v50  ;;  %v1533_v50 = vadd.f32 %v9893_v61, %v9892_v56  ;;  %v2960_v56 = vrot.slane %v440_v15, 3  ;;  %v9897_v61 = vld [vmem:[#allocation59_spill] sm:$0xff] }
 0x36d   : > { %3842 = vrot.lane.b32.xlu2 %v7739_v60, %s5424_s26  ;;  %v1792_v27 = vadd.f32 %v9899_v49, %v1536_v10  ;;  %v7882_v49 = vrot.slane %v7833_v63, 6  ;;  %v7902_v10 = vpop.f32.mrf.mxu2 }
 0x36e   : > { %3838 = vrot.lane.b32.xlu0 %v7714_v42, %s5424_s26  ;;  %v2894_v42 = vadd.f32 %v7556_v25, %v2638_v35  ;;  %v9407_v25 = vrot.slane %v7747_v29, 6  ;;  %v3070_v35 = vld [vmem:[#allocation1] sm:$0xff]  ;;  %v1789_v9 = vadd.f32 %v9897_v61, %v1533_v50  ;;  %v2965_v50 = vsel %vm518_vm1, %v439_v3, %v2959_v54 }
 0x36f   : > { %v3809_v24 = vpop.permute.xlu2 %3808  ;;  %5205 = vmatmul.msk.bf16.gmra.mxu2 %vm878_vm4, %v3070_v35  ;;  %v2977_v46 = vsel %vm518_vm1, %v440_v15, %v2960_v56  ;;  %v2980_v1 = vsel %vm522_vm2, %v440_v15, %v2960_v56  ;;  %v2983_v2 = vsel %vm526_vm3, %v440_v15, %v2960_v56  ;;  %vm5004_vm1 = vcmask 257024  }
 0x370   : > { %v7816_v43 = vpop.permute.xlu0 %2760  ;;  %v3286_v62 = vadd.f32 %v7494_v21, %v2894_v42  ;;  %v2967_v21 = vrot.slane %v2965_v50, 1  ;;  %v2970_v42 = vrot.slane %v2968_v14, 2  ;;  %v2982_v32 = vrot.slane %v2980_v1, 2 }
 0x371   : > { %3840 = vrot.lane.b32.xlu1 %v7723_v40, %s5424_s26  ;;  %9891 = vst [vmem:[#allocation45_spill] sm:$0xff] %v7816_v43  ;;  %v9896_v43 = vld [vmem:[#allocation71_spill] sm:$0xff]  ;;  %v2181_v39 = vadd.f32 %v6723_v53, %v1789_v9  ;;  %v1791_v9 = vadd.f32 %v9904_v20, %v1535_v23  ;;  %v9905_v1 = vrot.slane %v7747_v29, 4  ;;  %v9908_v23 = vrot.slane %v6963_v55, 6 }
 0x372   : > { %v1788_v40 = vadd.f32 %v9896_v43, %v1532_v57  ;;  %v7849_v57 = vrot.slane %v7826_v7, 4  ;;  %v2971_v43 = vsel %vm526_vm3, %v439_v3, %v2959_v54  ;;  %v3425_v3 = vrot.slane %v7833_v63, 7  ;;  %3072 = vst [vmem:[#allocation1] ss:$9 sm:$0xff] %v2967_v21 }
 0x373   : > { %v7821_v60 = vpop.permute.xlu1 %3548  ;;  %v2973_v8 = vrot.slane %v2971_v43, 3  ;;  %v2961_v54 = vrot.slane %v441_v59, 3  ;;  %v2979_v43 = vrot.slane %v2977_v46, 1  ;;  %3074 = vst [vmem:[#allocation1 + $0x1] ss:$9 sm:$0xff] %v2970_v42  ;;  %v2985_v46 = vrot.slane %v2983_v2, 3 }
 0x374   : > { %v3431_v2 = vrot.slane %v7839_v28, 7  ;;  %3081 = vst [vmem:[#allocation1 + $0x5] ss:$9 sm:$0xff] %v2982_v32  ;;  %v2183_v20 = vadd.f32 %v6740_v30, %v1791_v9 }
 0x375   : > { %3848 = vrot.lane.b32.xlu2 %v7763_v52, %s5424_s26  ;;  %v5210_v52 = vrot.slane %v9407_v25, 9  ;;  %v2180_v25 = vadd.f32 %v6720_v16, %v1788_v40  ;;  %3076 = vst [vmem:[#allocation1 + $0x2] ss:$9 sm:$0xff] %v2973_v8  ;;  %v7885_v16 = vrot.slane %v7860_v38, 4  ;;  %v2988_v53 = vsel %vm514_vm0, %v441_v59, %v2961_v54  ;;  %v9906_v40 = vld [vmem:[#allocation47_spill] sm:$0xff] }
 0x376   : > { %3844 = vrot.lane.b32.xlu0 %v7732_v18, %s5424_s26  ;;  %v2976_v18 = vsel %vm514_vm0, %v440_v15, %v2960_v56  ;;  %v7879_v56 = vrot.slane %v7833_v63, 2  ;;  %3079 = vst [vmem:[#allocation1 + $0x4] ss:$9 sm:$0xff] %v2979_v43  ;;  %v7910_v59 = vrot.slane %v7902_v10, 2 }
 0x377   : > { %v3815_v61 = vpop.permute.xlu2 %3814  ;;  %3077 = vst [vmem:[#allocation1 + $0x3] ss:$9 sm:$0xff] %v2976_v18  ;;  %v9907_v18 = vld [vmem:[#allocation101_spill] sm:$0xff] }
 0x378   : > { %v3553_v35 = vpop.permute.xlu0 %3552  ;;  %3083 = vst [vmem:[#allocation1 + $0x6] ss:$9 sm:$0xff] %v2985_v46  ;;  %v7925_v46 = vrot.slane %v7860_v38, 2 }
 0x379   : > { %3846 = vrot.lane.b32.xlu1 %v7747_v29, %s5424_s26  ;;  %v3742_v50 = vadd.f32 %v3553_v35, %v3286_v62  ;;  %v2897_v62 = vadd.f32 %v7572_v4, %v2641_v48  ;;  %v3426_v48 = vsel %vm5875_vm9, %v5210_v52, %v3425_v3  ;;  %v2636_v4 = vadd.f32 %v7070_v12, %v2180_v25 }
 0x37a   : > { %v1539_v52 = vadd.f32 %v9907_v18, %v9906_v40  ;;  %3084 = vst [vmem:[#allocation1 + $0x7] ss:$9 sm:$0xff] %v2988_v53 }
 0x37b   : > { %v7866_v14 = vpop.permute.xlu1 %3554  ;;  %v3998_v35 = vadd.f32 %v3809_v24, %v3742_v50  ;;  %v2637_v24 = vadd.f32 %v7184_v22, %v2181_v39  ;;  %v3289_v12 = vadd.f32 %v7525_v26, %v2897_v62  ;;  %v2892_v25 = vadd.f32 %v7601_v6, %v2636_v4  ;;  %v9909_v62 = vld [vmem:[#allocation85_spill] sm:$0xff] }
 0x37c   : > { %9898 = vst [vmem:[#allocation68_spill] sm:$0xff] %v7866_v14  ;;  %v9903_v14 = vld [vmem:[#allocation88_spill] sm:$0xff]  ;;  %v3427_v22 = vrot.slane %v3425_v3, 2  ;;  %v7916_v39 = vrot.slane %v7826_v7, 2  ;;  %v3433_v26 = vrot.slane %v3431_v2, 2  ;;  %v3434_v50 = vrot.slane %v7882_v49, 7 }
 0x37d   : > { %v1538_v15 = vadd.f32 %v9903_v14, %v9902_v45  ;;  %v4072_v19 = vmul.f32 %v7849_v57, %v3998_v35  ;;  %3596 = vrot.lane.b32.xlu2 %v3426_v48, %s5425_s27  ;;  %v3428_v45 = vrot.slane %v7879_v56, 7  ;;  %v2184_v6 = vadd.f32 %v6752_v34, %v1792_v27  ;;  %v9910_v48 = vld [vmem:[#allocation74_spill] sm:$0xff] }
 0x37e   : > { %3850 = vrot.lane.b32.xlu0 %v9905_v1, %s5424_s26  ;;  %v2893_v14 = vadd.f32 %v7605_v58, %v2637_v24  ;;  %v1795_v53 = vadd.f32 %v9910_v48, %v1539_v52  ;;  %v3284_v4 = vadd.f32 %v7469_v31, %v2892_v25  ;;  %v7932_v34 = vrot.slane %v7902_v10, 4 }
 0x37f   : > { %v4146_v32 = vadd.f32 %v7885_v16, %v4072_v19  ;;  %v7913_v42 = vpop.permute.xlu2 %3564  ;;  %v3430_v43 = vrot.slane %v3428_v45, 2  ;;  %v1794_v35 = vadd.f32 %v9909_v62, %v1538_v15  ;;  %v3440_v19 = vrot.slane %v7910_v59, 7 }
 0x380   : > { %v3559_v21 = vpop.permute.xlu0 %3558  ;;  %v3429_v27 = vsel %vm5875_vm9, %v3427_v22, %v3428_v45  ;;  %v2639_v15 = vadd.f32 %v7101_v33, %v2183_v20  ;;  %v3285_v40 = vadd.f32 %v7477_v13, %v2893_v14  ;;  %v3437_v31 = vrot.slane %v7902_v10, 7  ;;  %v4447_v22 = vld [vmem:[%s9164_s5] sm:$0xf] }
 0x381   : > { %2762 = vrot.lane.b32.xlu1 %v9908_v23, %s5424_s26  ;;  %v3745_v8 = vadd.f32 %v3559_v21, %v3289_v12  ;;  %v4210_v1 = vmax.f32 %v4146_v32, 0.0  ;;  %v3432_v30 = vsel %vm5875_vm9, %v3430_v43, %v3431_v2  ;;  %v2640_v9 = vadd.f32 %v7214_v44, %v2184_v6  ;;  %v3085_v52 = vld [vmem:[#allocation1] sm:$0xff] }
 0x382   : > { %v3740_v45 = vadd.f32 %v7821_v60, %v3284_v4  ;;  %v3442_v33 = vrot.slane %v3440_v19, 2  ;;  %v2895_v13 = vadd.f32 %v7624_v17, %v2639_v15  ;;  %v3741_v24 = vadd.f32 %v7757_v0, %v3285_v40  ;;  %5206 = vmatmul.msk.bf16.gmra.mxu2 %vm878_vm4, %v3085_v52  ;;  %v9916_v40 = vld [vmem:[#allocation335_spill] sm:$0xff] }
 0x383   : > { %v7918_v54 = vpop.permute.xlu1 %3560  ;;  %v4001_v3 = vadd.f32 %v3815_v61, %v3745_v8  ;;  %v3435_v61 = vsel %vm5875_vm9, %v3433_v26, %v3434_v50  ;;  %v3436_v2 = vrot.slane %v3434_v50, 2  ;;  %v3439_v25 = vrot.slane %v3437_v31, 2  ;;  %4340 = vst [vmem:[#allocation1 + $0x2] ss:$4 sm:$0xff] %v4210_v1 }
 0x384   : > { %v3443_v21 = vrot.slane %v7932_v34, 7  ;;  %v2896_v17 = vadd.f32 %v7634_v11, %v2640_v9  ;;  %v4475_v8 = vsel %vm4473_vm10, %v4447_v22, 0  ;;  %v2186_v6 = vadd.f32 %v6765_v5, %v1794_v35  ;;  %v9911_v35 = vld [vmem:[#allocation49_spill] sm:$0xff] }
 0x385   : > { %v4075_v58 = vmul.f32 %v7916_v39, %v4001_v3  ;;  %3602 = vrot.lane.b32.xlu2 %v3435_v61, %s5425_s27  ;;  %4484 = vmatpush.bf16.msrb.mxu0 %v4475_v8  ;;  %v2187_v14 = vadd.f32 %v6784_v47, %v1795_v53  ;;  %v3441_v62 = vsel %vm5875_vm9, %v3439_v25, %v3440_v19  ;;  %v3208_v20 = vrot.slane %v7902_v10, 6  ;;  %v9912_v19 = vld [vmem:[#allocation98_spill] sm:$0xff]  ;;  %v9913_v53 = vld [vmem:[#allocation68_spill] sm:$0xff] }
 0x386   : > { %3598 = vrot.lane.b32.xlu0 %v3429_v27, %s5425_s27  ;;  %v3444_v50 = vsel %vm5875_vm9, %v3442_v33, %v3443_v21  ;;  %5264 = vmatpush.bf16.msra.mxu3 %v4475_v8  ;;  %v3287_v11 = vadd.f32 %v7510_v51, %v2895_v13  ;;  %v3438_v48 = vsel %vm5875_vm9, %v3436_v2, %v3437_v31  ;;  %v7983_v27 = vrot.slane %v7826_v7, 6 }
 0x387   : > { %v4149_v18 = vadd.f32 %v7925_v46, %v4075_v58  ;;  %v7952_v12 = vpop.permute.xlu2 %3570  ;;  %v2642_v4 = vadd.f32 %v7131_v37, %v2186_v6  ;;  %v3288_v5 = vadd.f32 %v7515_v41, %v2896_v17  ;;  %v1541_v51 = vadd.f32 %v9912_v19, %v9911_v35  ;;  %v9914_v37 = vld [vmem:[#allocation11_spill] sm:$0xff]  ;;  %v9919_v17 = vld [vmem:[#allocation293_spill] sm:$0xff] }
 0x388   : > { %v3805_v23 = vpop.permute.xlu0 %3804  ;;  %v3743_v1 = vadd.f32 %v9913_v53, %v3287_v11  ;;  %v2643_v61 = vadd.f32 %v9914_v37, %v2187_v14  ;;  %v9915_v41 = vld [vmem:[#allocation311_spill] sm:$0xff]  ;;  %v3445_v13 = vrot.slane %v3443_v21, 2  ;;  %v9921_v14 = vld [vmem:[#allocation52_spill] sm:$0xff]  ;;  %v9923_v11 = vld [vmem:[#allocation193_spill] sm:$0xff] }
 0x389   : > { %3600 = vrot.lane.b32.xlu1 %v3432_v30, %s5425_s27  ;;  %v4213_v44 = vmax.f32 %v4149_v18, 0.0  ;;  %v3996_v60 = vadd.f32 %v3805_v23, %v3740_v45  ;;  %v2898_v15 = vadd.f32 %v9915_v41, %v2642_v4  ;;  %v3744_v30 = vadd.f32 %v9916_v40, %v3288_v5  ;;  %v9917_v23 = vld [vmem:[#allocation313_spill] sm:$0xff]  ;;  %v9924_v5 = vld [vmem:[#allocation75_spill] sm:$0xff]  ;;  %v9927_v40 = vld [vmem:[#allocation314_spill] sm:$0xff] }
 0x38a   : > { %v7991_v18 = vrot.slane %v7860_v38, 6  ;;  %v2899_v2 = vadd.f32 %v9917_v23, %v2643_v61  ;;  %v9925_v53 = vld [vmem:[#allocation255_spill] sm:$0xff]  ;;  %v9926_v41 = vld [vmem:[#allocation105_spill] sm:$0xff]  ;;  %v9930_v23 = vld [vmem:[#allocation200_spill] sm:$0xff] }
 0x38b   : > { %v3807_v32 = vpop.permute.xlu1 %3806  ;;  %v4070_v26 = vmul.f32 %v7826_v7, %v3996_v60  ;;  %4346 = vst [vmem:[#allocation1 + $0x21] ss:$4 sm:$0xff] %v4213_v44  ;;  %v9918_v44 = vld [vmem:[#allocation95_spill] sm:$0xff] }
 0x38c   : > { %v3997_v0 = vadd.f32 %v3807_v32, %v3741_v24  ;;  %v3446_v24 = vrot.slane %v3208_v20, 7  ;;  %v1797_v60 = vadd.f32 %v9918_v44, %v1541_v51  ;;  %v9931_v44 = vld [vmem:[#allocation302_spill] sm:$0xff] }
 0x38d   : > { %v4144_v3 = vadd.f32 %v7860_v38, %v4070_v26  ;;  %3608 = vrot.lane.b32.xlu2 %v3444_v50, %s5425_s27  ;;  %v9920_v26 = vld [vmem:[#allocation291_spill] sm:$0xff] }
 0x38e   : > { %v4071_v43 = vmul.f32 %v7916_v39, %v3997_v0  ;;  %3604 = vrot.lane.b32.xlu0 %v3438_v48, %s5425_s27  ;;  %v3290_v0 = vadd.f32 %v9919_v17, %v2898_v15  ;;  %v3447_v21 = vsel %vm5875_vm9, %v3445_v13, %v3446_v24  ;;  %v3291_v50 = vadd.f32 %v9920_v26, %v2899_v2  ;;  %v9929_v13 = vld [vmem:[#allocation120_spill] sm:$0xff]  ;;  %v9934_v17 = vld [vmem:[#allocation77_spill] sm:$0xff] }
 0x38f   : > { %v4208_v58 = vmax.f32 %v4144_v3, 0.0  ;;  %v7988_v45 = vpop.permute.xlu2 %3576  ;;  %v2189_v3 = vadd.f32 %v9923_v11, %v1797_v60 }
 0x390   : > { %v4145_v47 = vadd.f32 %v7925_v46, %v4071_v43  ;;  %v3811_v9 = vpop.permute.xlu0 %3810  ;;  %v9922_v43 = vld [vmem:[#allocation110_spill] sm:$0xff]  ;;  %v3746_v48 = vadd.f32 %v7918_v54, %v3290_v0 }
 0x391   : > { %3606 = vrot.lane.b32.xlu1 %v3441_v62, %s5425_s27  ;;  %v3999_v33 = vadd.f32 %v3811_v9, %v3743_v1  ;;  %4336 = vst [vmem:[#allocation1] ss:$4 sm:$0xff] %v4208_v58  ;;  %v1544_v62 = vadd.f32 %v9922_v43, %v9921_v14  ;;  %v2645_v1 = vadd.f32 %v9925_v53, %v2189_v3  ;;  %v9937_v3 = vld [vmem:[#allocation123_spill] sm:$0xff] }
 0x392   : > { %v4209_v31 = vmax.f32 %v4145_v47, 0.0  ;;  %v3747_v47 = vadd.f32 %v9924_v5, %v3291_v50  ;;  %v9935_v50 = vld [vmem:[#allocation260_spill] sm:$0xff] }
 0x393   : > { %v3813_v52 = vpop.permute.xlu1 %3812  ;;  %v4073_v32 = vmul.f32 %v7983_v27, %v3999_v33  ;;  %v1800_v15 = vadd.f32 %v9926_v41, %v1544_v62  ;;  %v2901_v54 = vadd.f32 %v9927_v40, %v2645_v1  ;;  %v9936_v62 = vld [vmem:[#allocation92_spill] sm:$0xff]  ;;  %v9943_v41 = vld [vmem:[#allocation205_spill] sm:$0xff] }
 0x394   : > { %v4000_v25 = vadd.f32 %v3813_v52, %v3744_v30  ;;  %4338 = vst [vmem:[#allocation1 + $0x1] ss:$4 sm:$0xff] %v4209_v31  ;;  %v9928_v52 = vld [vmem:[#allocation55_spill] sm:$0xff] }
 0x395   : > { %v4147_v8 = vadd.f32 %v7991_v18, %v4073_v32  ;;  %3854 = vrot.lane.b32.xlu2 %v7879_v56, %s5424_s26  ;;  %v1547_v24 = vadd.f32 %v9929_v13, %v9928_v52  ;;  %v2192_v2 = vadd.f32 %v9930_v23, %v1800_v15  ;;  %v3293_v60 = vadd.f32 %v9931_v44, %v2901_v54  ;;  %v9932_v32 = vld [vmem:[#allocation48_spill] sm:$0xff] }
 0x396   : > { %v4074_v22 = vmul.f32 %v7826_v7, %v4000_v25  ;;  %3610 = vrot.lane.b32.xlu0 %v3447_v21, %s5425_s27 }
 0x397   : > { %v4211_v4 = vmax.f32 %v4147_v8, 0.0  ;;  %v3823_v51 = vpop.permute.xlu2 %3822 }
 0x398   : > { %v4148_v6 = vadd.f32 %v7860_v38, %v4074_v22  ;;  %v3817_v19 = vpop.permute.xlu0 %3816  ;;  %v9933_v22 = vrot.slane %v9932_v32, 2 }
 0x399   : > { %3852 = vrot.lane.b32.xlu1 %v7833_v63, %s5424_s26  ;;  %v4002_v58 = vadd.f32 %v3817_v19, %v3746_v48  ;;  %4342 = vst [vmem:[#allocation1 + $0x3] ss:$4 sm:$0xff] %v4211_v4  ;;  %v1803_v48 = vadd.f32 %v9937_v3, %v1547_v24  ;;  %v9938_v4 = vld [vmem:[#allocation317_spill] sm:$0xff]  ;;  %v9948_v24 = vld [vmem:[#allocation15_spill] sm:$0xff] }
 0x39a   : > { %v4212_v35 = vmax.f32 %v4148_v6, 0.0  ;;  %v1540_v0 = vadd.f32 %v9934_v17, %v9933_v22  ;;  %v2648_v6 = vadd.f32 %v9935_v50, %v2192_v2  ;;  %v9940_v19 = vld [vmem:[#allocation113_spill] sm:$0xff]  ;;  %v9951_v50 = vld [vmem:[#allocation300_spill] sm:$0xff] }
 0x39b   : > { %v3819_v37 = vpop.permute.xlu1 %3818  ;;  %v4076_v30 = vmul.f32 %v7849_v57, %v4002_v58  ;;  %v9941_v58 = vld [vmem:[#allocation190_spill] sm:$0xff]  ;;  %v2195_v15 = vadd.f32 %v9943_v41, %v1803_v48 }
 0x39c   : > { %v4003_v61 = vadd.f32 %v3819_v37, %v3747_v47  ;;  %4344 = vst [vmem:[#allocation1 + $0x20] ss:$4 sm:$0xff] %v4212_v35  ;;  %v1796_v11 = vadd.f32 %v9936_v62, %v1540_v0  ;;  %v2904_v5 = vadd.f32 %v9938_v4, %v2648_v6  ;;  %v9939_v35 = vld [vmem:[#allocation50_spill] sm:$0xff]  ;;  %v9942_v37 = vrot.slane %v9941_v58, 2  ;;  %v9952_v62 = vld [vmem:[#allocation320_spill] sm:$0xff]  ;;  %v9954_v4 = vld [vmem:[#allocation117_spill] sm:$0xff] }
 0x39d   : > { %v4150_v9 = vadd.f32 %v7885_v16, %v4076_v30  ;;  %3860 = vrot.lane.b32.xlu2 %v7902_v10, %s5424_s26  ;;  %v1542_v53 = vadd.f32 %v9940_v19, %v9939_v35  ;;  %v9945_v30 = vld [vmem:[#allocation51_spill] sm:$0xff]  ;;  %v9953_v48 = vld [vmem:[#allocation54_spill] sm:$0xff] }
 0x39e   : > { %v4077_v31 = vmul.f32 %v7983_v27, %v4003_v61  ;;  %3856 = vrot.lane.b32.xlu0 %v7839_v28, %s5424_s26  ;;  %v2188_v61 = vadd.f32 %v9942_v37, %v1796_v11  ;;  %v9958_v37 = vld [vmem:[#allocation199_spill] sm:$0xff] }
 0x39f   : > { %v4214_v25 = vmax.f32 %v4150_v9, 0.0  ;;  %v3829_v26 = vpop.permute.xlu2 %3828 }
 0x3a0   : > { %v4151_v33 = vadd.f32 %v7991_v18, %v4077_v31  ;;  %v3567_v21 = vpop.permute.xlu0 %3566  ;;  %v9946_v31 = vld [vmem:[#allocation93_spill] sm:$0xff]  ;;  %v2644_v23 = vadd.f32 %v9948_v24, %v2188_v61 }
 0x3a1   : > { %3858 = vrot.lane.b32.xlu1 %v7882_v49, %s5424_s26  ;;  %v3749_v14 = vadd.f32 %v3567_v21, %v3293_v60  ;;  %4348 = vst [vmem:[#allocation1 + $0x22] ss:$4 sm:$0xff] %v4214_v25  ;;  %v1543_v9 = vadd.f32 %v9946_v31, %v9945_v30  ;;  %v4351_v44 = vld.sshfl [vmem:[#allocation1] sm:$0xff pattern:$0x73625140] }
 0x3a2   : > { %v4215_v8 = vmax.f32 %v4151_v33, 0.0  ;;  %v9947_v33 = vld [vmem:[#allocation84_spill] sm:$0xff]  ;;  %v2900_v6 = vadd.f32 %v9951_v50, %v2644_v23  ;;  %v9963_v30 = vld [vmem:[#allocation17_spill] sm:$0xff] }
 0x3a3   : > { %v8036_v43 = vpop.permute.xlu1 %3568  ;;  %v4005_v47 = vadd.f32 %v3823_v51, %v3749_v14  ;;  %v9944_v51 = vld [vmem:[#allocation306_spill] sm:$0xff]  ;;  %v1798_v13 = vadd.f32 %v9947_v33, %v1542_v53  ;;  %v9956_v53 = vld [vmem:[#allocation53_spill] sm:$0xff] }
 0x3a4   : > { %4350 = vst [vmem:[#allocation1 + $0x23] ss:$4 sm:$0xff] %v4215_v8  ;;  %v3296_v54 = vadd.f32 %v9944_v51, %v2904_v5  ;;  %v9950_v8 = vld [vmem:[#allocation103_spill] sm:$0xff]  ;;  %v1545_v5 = vadd.f32 %v9954_v4, %v9953_v48  ;;  %v9964_v33 = vld [vmem:[#allocation242_spill] sm:$0xff]  ;;  %v9966_v23 = vld [vmem:[#allocation89_spill] sm:$0xff] }
 0x3a5   : > { %v4079_v1 = vmul.f32 %v7916_v39, %v4005_v47  ;;  %3866 = vrot.lane.b32.xlu2 %v3208_v20, %s5424_s26  ;;  %v9949_v20 = vld [vmem:[#allocation264_spill] sm:$0xff]  ;;  %v1799_v21 = vadd.f32 %v9950_v8, %v1543_v9  ;;  %v9955_v47 = vld [vmem:[#allocation195_spill] sm:$0xff] }
 0x3a6   : > { %3862 = vrot.lane.b32.xlu0 %v7910_v59, %s5424_s26  ;;  %v2651_v60 = vadd.f32 %v9949_v20, %v2195_v15  ;;  %v2190_v35 = vadd.f32 %v9955_v47, %v1798_v13  ;;  %v9959_v15 = vld [vmem:[#allocation294_spill] sm:$0xff] }
 0x3a7   : > { %v4153_v40 = vadd.f32 %v7925_v46, %v4079_v1  ;;  %v3835_v25 = vpop.permute.xlu2 %3834  ;;  %v9957_v1 = vld [vmem:[#allocation104_spill] sm:$0xff]  ;;  %v2191_v61 = vadd.f32 %v9958_v37, %v1799_v21  ;;  %v9965_v13 = vld [vmem:[#allocation310_spill] sm:$0xff] }
 0x3a8   : > { %v3573_v2 = vpop.permute.xlu0 %3572  ;;  %v2907_v11 = vadd.f32 %v9952_v62, %v2651_v60  ;;  %v1546_v58 = vadd.f32 %v9957_v1, %v9956_v53  ;;  %v2646_v31 = vadd.f32 %v9963_v30, %v2190_v35  ;;  %v9968_v60 = vld [vmem:[#allocation266_spill] sm:$0xff]  ;;  %v9969_v21 = vld [vmem:[#allocation316_spill] sm:$0xff]  ;;  %v8095_v53 = vpop.f32.mrf.mxu2  ;;  %v9973_v1 = vrot.slane %v9928_v52, 4 }
 0x3a9   : > { %3864 = vrot.lane.b32.xlu1 %v7932_v34, %s5424_s26  ;;  %v4217_v32 = vmax.f32 %v4153_v40, 0.0  ;;  %v3752_v22 = vadd.f32 %v3573_v2, %v3296_v54  ;;  %v9960_v40 = vrot.slane %v9959_v15, 2  ;;  %v9962_v54 = vld [vmem:[#allocation245_spill] sm:$0xff]  ;;  %v1801_v2 = vadd.f32 %v9966_v23, %v1545_v5  ;;  %v9971_v5 = vld [vmem:[#allocation204_spill] sm:$0xff]  ;;  %v9972_v35 = vld [vmem:[#allocation206_spill] sm:$0xff] }
 0x3aa   : > { %v3299_v24 = vadd.f32 %v9965_v13, %v2907_v11  ;;  %v2902_v50 = vadd.f32 %v9969_v21, %v2646_v31  ;;  %v9975_v15 = vld [vmem:[#allocation304_spill] sm:$0xff]  ;;  %v9977_v31 = vld [vmem:[#allocation305_spill] sm:$0xff]  ;;  %v9978_v23 = vld [vmem:[#allocation243_spill] sm:$0xff]  ;;  %v8120_v21 = vrot.slane %v8095_v53, 6 }
 0x3ab   : > { %v4352_v17 = vld.sshfl [vmem:[#allocation1 + $0x20] sm:$0xff pattern:$0x73625140]  ;;  %v8061_v0 = vpop.permute.xlu1 %3574  ;;  %v4008_v3 = vadd.f32 %v3829_v26, %v3752_v22  ;;  %4354 = vst [vmem:[#allocation1 + $0x1] ss:$4 sm:$0xff] %v4217_v32  ;;  %v3292_v51 = vadd.f32 %v9960_v40, %v2900_v6  ;;  %v9961_v26 = vld [vmem:[#allocation239_spill] sm:$0xff]  ;;  %v2647_v32 = vadd.f32 %v9968_v60, %v2191_v61  ;;  %v2193_v47 = vadd.f32 %v9971_v5, %v1801_v2 }
 0x3ac   : > { %v4439_v14 = vpack.c.bf16 %v4352_v17, %v4351_v44  ;;  %v9967_v44 = vld [vmem:[#allocation115_spill] sm:$0xff]  ;;  %v8102_v61 = vrot.slane %v8095_v53, 2  ;;  %v3294_v40 = vadd.f32 %v9975_v15, %v2902_v50  ;;  %v9979_v52 = vld [vmem:[#allocation2_spill] sm:$0xff]  ;;  %v9980_v2 = vld [vmem:[#allocation272_spill] sm:$0xff]  ;;  %9983 = vst [vmem:[#allocation83_spill] sm:$0xff] %v8120_v21 }
 0x3ad   : > { %v4082_v19 = vmul.f32 %v7826_v7, %v4008_v3  ;;  %2768 = vrot.lane.b32.xlu2 %v9962_v54, %s5424_s26  ;;  %v1802_v20 = vadd.f32 %v9967_v44, %v1546_v58  ;;  %v3748_v22 = vadd.f32 %v7913_v42, %v3292_v51  ;;  %v9970_v3 = vld [vmem:[#allocation303_spill] sm:$0xff]  ;;  %v9974_v58 = vld [vmem:[#allocation129_spill] sm:$0xff] }
 0x3ae   : > { %5215 = vmatmul.msk.bf16.vlgmr.msrb.gmra.mxu0 %vm4448_vm11, %v4439_v14  ;;  %2764 = vrot.lane.b32.xlu0 %v9961_v26, %s5424_s26  ;;  %v2903_v48 = vadd.f32 %v9970_v3, %v2647_v32  ;;  %v1548_v37 = vadd.f32 %v9974_v58, %v9973_v1  ;;  %v9981_v32 = vld [vmem:[#allocation246_spill] sm:$0xff]  ;;  %v9984_v5 = vld [vmem:[#allocation99_spill] sm:$0xff]  ;;  %v9987_v15 = vld [vmem:[#allocation309_spill] sm:$0xff] }
 0x3af   : > { %v4156_v9 = vadd.f32 %v7860_v38, %v4082_v19  ;;  %v8089_v8 = vpop.permute.xlu2 %3584  ;;  %v2194_v19 = vadd.f32 %v9972_v35, %v1802_v20  ;;  %v3750_v20 = vadd.f32 %v8036_v43, %v3294_v40  ;;  %v5211_v43 = vrot.slane %v8095_v53, 9  ;;  %v9985_v35 = vld [vmem:[#allocation307_spill] sm:$0xff] }
 0x3b0   : > { %v3579_v17 = vpop.permute.xlu0 %3578 }
 0x3b1   : > { %2766 = vrot.lane.b32.xlu1 %v9964_v33, %s5424_s26  ;;  %v4220_v6 = vmax.f32 %v4156_v9, 0.0  ;;  %v3755_v14 = vadd.f32 %v3579_v17, %v3299_v24  ;;  %v3295_v9 = vadd.f32 %v9977_v31, %v2903_v48  ;;  %v2650_v44 = vadd.f32 %v9980_v2, %v2194_v19 }
 0x3b3   : > { %v3821_v62 = vpop.permute.xlu1 %3820  ;;  %4357 = vst [vmem:[#allocation1 + $0x20] ss:$4 sm:$0xff] %v4220_v6  ;;  %v4011_v11 = vadd.f32 %v3835_v25, %v3755_v14  ;;  %v9976_v25 = vld [vmem:[#allocation270_spill] sm:$0xff]  ;;  %v3751_v50 = vadd.f32 %v7952_v12, %v3295_v9  ;;  %v2906_v19 = vadd.f32 %v9985_v35, %v2650_v44  ;;  %v8141_v9 = vpop.f32.mrf.mxu2 }
 0x3b4   : > { %v4004_v4 = vadd.f32 %v3821_v62, %v3748_v22  ;;  %v2649_v30 = vadd.f32 %v9976_v25, %v2193_v47  ;;  %v9982_v22 = vld [vmem:[#allocation319_spill] sm:$0xff]  ;;  %v1804_v47 = vadd.f32 %v9984_v5, %v1548_v37  ;;  %v3456_v37 = vrot.slane %v8120_v21, 7 }
 0x3b5   : > { %v4085_v51 = vmul.f32 %v7983_v27, %v4011_v11  ;;  %2774 = vrot.lane.b32.xlu2 %v9979_v52, %s5424_s26  ;;  %v3450_v11 = vrot.slane %v8102_v61, 7  ;;  %v10017_v52 = vld [vmem:[#allocation332_spill] sm:$0xff] }
 0x3b6   : > { %v4078_v42 = vmul.f32 %v7826_v7, %v4004_v4  ;;  %2770 = vrot.lane.b32.xlu0 %v9978_v23, %s5424_s26  ;;  %v2905_v17 = vadd.f32 %v9982_v22, %v2649_v30  ;;  %v9988_v30 = vrot.slane %v9943_v41, 4  ;;  %v9991_v22 = vld [vmem:[#allocation60_spill] sm:$0xff] }
 0x3b7   : > { %v4159_v60 = vadd.f32 %v7991_v18, %v4085_v51  ;;  %v8123_v62 = vpop.permute.xlu2 %3590  ;;  %v3451_v25 = vsel %vm5875_vm9, %v5211_v43, %v3450_v11 }
 0x3b8   : > { %v4152_v24 = vadd.f32 %v7860_v38, %v4078_v42  ;;  %v3825_v14 = vpop.permute.xlu0 %3824  ;;  %v8130_v42 = vrot.slane %v8095_v53, 4  ;;  %v3297_v40 = vadd.f32 %v9987_v15, %v2905_v17  ;;  %v2196_v31 = vadd.f32 %v9988_v30, %v1804_v47  ;;  %v9992_v17 = vld [vmem:[#allocation142_spill] sm:$0xff] }
 0x3b9   : > { %2772 = vrot.lane.b32.xlu1 %v9981_v32, %s5424_s26  ;;  %v4223_v3 = vmax.f32 %v4159_v60, 0.0  ;;  %v4006_v48 = vadd.f32 %v3825_v14, %v3750_v20  ;;  %v9990_v20 = vld [vmem:[#allocation249_spill] sm:$0xff]  ;;  %v9993_v14 = vld [vmem:[#allocation250_spill] sm:$0xff]  ;;  %v8161_v15 = vrot.slane %v8141_v9, 2 }
 0x3ba   : > { %v4216_v6 = vmax.f32 %v4152_v24, 0.0  ;;  %9986 = vst [vmem:[#allocation40_spill] sm:$0xff] %v8130_v42  ;;  %v9989_v24 = vld [vmem:[#allocation308_spill] sm:$0xff]  ;;  %v3453_v60 = vrot.slane %v8130_v42, 7 }
 0x3bb   : > { %v3827_v4 = vpop.permute.xlu1 %3826  ;;  %4360 = vst [vmem:[#allocation1 + $0x23] ss:$4 sm:$0xff] %v4223_v3  ;;  %v4080_v1 = vmul.f32 %v7849_v57, %v4006_v48  ;;  %v3298_v2 = vadd.f32 %v9989_v24, %v2906_v19  ;;  %v9994_v3 = vld [vmem:[#allocation19_spill] sm:$0xff] }
 0x3bc   : > { %4353 = vst [vmem:[#allocation1] ss:$4 sm:$0xff] %v4216_v6  ;;  %v4007_v12 = vadd.f32 %v3827_v4, %v3751_v50  ;;  %v1551_v50 = vadd.f32 %v9992_v17, %v9991_v22  ;;  %v3753_v6 = vadd.f32 %v8061_v0, %v3297_v40  ;;  %v2652_v48 = vadd.f32 %v9994_v3, %v2196_v31  ;;  %v9998_v31 = vld [vmem:[#allocation322_spill] sm:$0xff] }
 0x3bd   : > { %v4154_v51 = vadd.f32 %v7885_v16, %v4080_v1  ;;  %3612 = vrot.lane.b32.xlu2 %v3451_v25, %s5425_s27  ;;  %v8156_v4 = vrot.slane %v8141_v9, 4  ;;  %v3754_v43 = vadd.f32 %v7988_v45, %v3298_v2  ;;  %v3452_v1 = vrot.slane %v3450_v11, 2  ;;  %9996 = vst [vmem:[#allocation43_spill] sm:$0xff] %v8161_v15  ;;  %v9997_v25 = vld [vmem:[#allocation111_spill] sm:$0xff] }
 0x3be   : > { %v4081_v58 = vmul.f32 %v7983_v27, %v4007_v12  ;;  %2776 = vrot.lane.b32.xlu0 %v9990_v20, %s5424_s26  ;;  %v3459_v0 = vrot.slane %v8141_v9, 7  ;;  %v1807_v30 = vadd.f32 %v9997_v25, %v1551_v50  ;;  %v2908_v45 = vadd.f32 %v9998_v31, %v2652_v48  ;;  %v10004_v31 = vld [vmem:[#allocation22_spill] sm:$0xff] }
 0x3bf   : > { %v4218_v41 = vmax.f32 %v4154_v51, 0.0  ;;  %9995 = vst [vmem:[#allocation73_spill] sm:$0xff] %v8156_v4  ;;  %v3837_v35 = vpop.permute.xlu2 %3836  ;;  %v3455_v51 = vrot.slane %v3453_v60, 2  ;;  %v3454_v11 = vsel %vm5875_vm9, %v3452_v1, %v3453_v60  ;;  %v3465_v17 = vrot.slane %v8156_v4, 7  ;;  %v10001_v60 = vld [vmem:[#allocation215_spill] sm:$0xff] }
 0x3c0   : > { %v4155_v44 = vadd.f32 %v7991_v18, %v4081_v58  ;;  %v3831_v47 = vpop.permute.xlu0 %3830  ;;  %v3458_v58 = vrot.slane %v3456_v37, 2 }
 0x3c1   : > { %2778 = vrot.lane.b32.xlu1 %v9993_v14, %s5424_s26  ;;  %4355 = vst [vmem:[#allocation1 + $0x2] ss:$4 sm:$0xff] %v4218_v41  ;;  %v4009_v19 = vadd.f32 %v3831_v47, %v3753_v6  ;;  %v9999_v6 = vld [vmem:[#allocation63_spill] sm:$0xff]  ;;  %v10000_v41 = vld [vmem:[#allocation150_spill] sm:$0xff]  ;;  %v3457_v48 = vsel %vm5875_vm9, %v3455_v51, %v3456_v37  ;;  %v8183_v47 = vrot.slane %v8141_v9, 6 }
 0x3c2   : > { %v4219_v5 = vmax.f32 %v4155_v44, 0.0  ;;  %v3460_v22 = vsel %vm5875_vm9, %v3458_v58, %v3459_v0  ;;  %v1554_v3 = vadd.f32 %v10000_v41, %v9999_v6  ;;  %v10006_v41 = vld [vmem:[#allocation329_spill] sm:$0xff] }
 0x3c3   : > { %v3833_v12 = vpop.permute.xlu1 %3832  ;;  %v4083_v24 = vmul.f32 %v7916_v39, %v4009_v19  ;;  %10002 = vst [vmem:[#allocation76_spill] sm:$0xff] %v8183_v47 }
 0x3c4   : > { %4356 = vst [vmem:[#allocation1 + $0x3] ss:$4 sm:$0xff] %v4219_v5  ;;  %v4010_v40 = vadd.f32 %v3833_v12, %v3754_v43  ;;  %v3462_v43 = vrot.slane %v8161_v15, 7  ;;  %v2199_v5 = vadd.f32 %v10001_v60, %v1807_v30  ;;  %v10003_v12 = vrot.slane %v9965_v13, 4 }
 0x3c5   : > { %v4157_v44 = vadd.f32 %v7925_v46, %v4083_v24  ;;  %3618 = vrot.lane.b32.xlu2 %v3460_v22, %s5425_s27  ;;  %v3467_v30 = vrot.slane %v3465_v17, 2  ;;  %v3468_v13 = vrot.slane %v8183_v47, 7 }
 0x3c6   : > { %v4084_v2 = vmul.f32 %v7849_v57, %v4010_v40  ;;  %3614 = vrot.lane.b32.xlu0 %v3454_v11, %s5425_s27  ;;  %v3300_v1 = vadd.f32 %v10003_v12, %v2908_v45  ;;  %v2655_v24 = vadd.f32 %v10004_v31, %v2199_v5  ;;  %v10005_v11 = vld [vmem:[#allocation127_spill] sm:$0xff]  ;;  %v10007_v45 = vld [vmem:[#allocation56_spill] sm:$0xff] }
 0x3c7   : > { %v4221_v19 = vmax.f32 %v4157_v44, 0.0  ;;  %v3843_v25 = vpop.permute.xlu2 %3842  ;;  %v1810_v22 = vadd.f32 %v10005_v11, %v1554_v3  ;;  %v3464_v44 = vrot.slane %v3462_v43, 2  ;;  %v10010_v3 = vld [vmem:[#allocation139_spill] sm:$0xff] }
 0x3c8   : > { %v4158_v50 = vadd.f32 %v7885_v16, %v4084_v2  ;;  %v3581_v40 = vpop.permute.xlu0 %3580  ;;  %v3461_v2 = vrot.slane %v3459_v0, 2  ;;  %v3469_v0 = vsel %vm5875_vm9, %v3467_v30, %v3468_v13  ;;  %v10014_v30 = vld [vmem:[#allocation126_spill] sm:$0xff] }
 0x3c9   : > { %3616 = vrot.lane.b32.xlu1 %v3457_v48, %s5425_s27  ;;  %4358 = vst [vmem:[#allocation1 + $0x21] ss:$4 sm:$0xff] %v4221_v19  ;;  %v3756_v37 = vadd.f32 %v3581_v40, %v3300_v1  ;;  %v2911_v48 = vadd.f32 %v10006_v41, %v2655_v24  ;;  %v10009_v1 = vld [vmem:[#allocation57_spill] sm:$0xff]  ;;  %v10011_v40 = vld [vmem:[#allocation218_spill] sm:$0xff]  ;;  %v8208_v24 = vpop.f32.mrf.mxu2 }
 0x3ca   : > { %v4222_v58 = vmax.f32 %v4158_v50, 0.0  ;;  %v10008_v50 = vld [vmem:[#allocation116_spill] sm:$0xff]  ;;  %v3463_v19 = vsel %vm5875_vm9, %v3461_v2, %v3462_v43  ;;  %v2202_v31 = vadd.f32 %v10011_v40, %v1810_v22  ;;  %10012 = vst [vmem:[#allocation44_spill] sm:$0xff] %v8208_v24  ;;  %v10013_v43 = vld [vmem:[#allocation325_spill] sm:$0xff] }
 0x3cb   : > { %v8189_v51 = vpop.permute.xlu1 %3582  ;;  %v4012_v60 = vadd.f32 %v3837_v35, %v3756_v37  ;;  %v1549_v12 = vadd.f32 %v10008_v50, %v10007_v45  ;;  %v3466_v35 = vsel %vm5875_vm9, %v3464_v44, %v3465_v17  ;;  %v3303_v2 = vadd.f32 %v10013_v43, %v2911_v48  ;;  %v10015_v41 = vld [vmem:[#allocation25_spill] sm:$0xff] }
 0x3cc   : > { %4359 = vst [vmem:[#allocation1 + $0x22] ss:$4 sm:$0xff] %v4222_v58  ;;  %v1550_v58 = vadd.f32 %v10010_v3, %v10009_v1  ;;  %v4361_v50 = vld.sshfl [vmem:[#allocation1] sm:$0xff pattern:$0x73625140]  ;;  %v3470_v17 = vrot.slane %v3468_v13, 2 }
 0x3cd   : > { %v4086_v5 = vmul.f32 %v7826_v7, %v4012_v60  ;;  %3624 = vrot.lane.b32.xlu2 %v3469_v0, %s5425_s27  ;;  %v1805_v11 = vadd.f32 %v10014_v30, %v1549_v12  ;;  %v2658_v60 = vadd.f32 %v10015_v41, %v2202_v31  ;;  %v3471_v44 = vrot.slane %v8208_v24, 7  ;;  %v10018_v12 = vld [vmem:[#allocation211_spill] sm:$0xff]  ;;  %v10020_v13 = vld [vmem:[#allocation148_spill] sm:$0xff] }
 0x3ce   : > { %3620 = vrot.lane.b32.xlu0 %v3463_v19, %s5425_s27 }
 0x3cf   : > { %v4160_v37 = vadd.f32 %v7860_v38, %v4086_v5  ;;  %v3849_v45 = vpop.permute.xlu2 %3848  ;;  %v10016_v5 = vld [vmem:[#allocation135_spill] sm:$0xff]  ;;  %v2914_v48 = vadd.f32 %v10017_v52, %v2658_v60  ;;  %v2197_v31 = vadd.f32 %v10018_v12, %v1805_v11  ;;  %v10022_v52 = vld [vmem:[#allocation58_spill] sm:$0xff]  ;;  %v10024_v60 = vld [vmem:[#allocation21_spill] sm:$0xff] }
 0x3d0   : > { %v3587_v22 = vpop.permute.xlu0 %3586  ;;  %v1806_v14 = vadd.f32 %v10016_v5, %v1550_v58 }
 0x3d1   : > { %3622 = vrot.lane.b32.xlu1 %v3466_v35, %s5425_s27  ;;  %v4224_v0 = vmax.f32 %v4160_v37, 0.0  ;;  %v3759_v1 = vadd.f32 %v3587_v22, %v3303_v2  ;;  %v3472_v37 = vsel %vm5875_vm9, %v3470_v17, %v3471_v44  ;;  %v10019_v2 = vld [vmem:[#allocation61_spill] sm:$0xff]  ;;  %v10021_v22 = vld [vmem:[#allocation210_spill] sm:$0xff]  ;;  %v2653_v11 = vadd.f32 %v10024_v60, %v2197_v31  ;;  %v10028_v31 = vld [vmem:[#allocation147_spill] sm:$0xff] }
 0x3d2   : > { %v1553_v41 = vadd.f32 %v10020_v13, %v10019_v2  ;;  %v2198_v32 = vadd.f32 %v10021_v22, %v1806_v14  ;;  %v10026_v44 = vld [vmem:[#allocation133_spill] sm:$0xff]  ;;  %v10029_v13 = vld [vmem:[#allocation326_spill] sm:$0xff] }
 0x3d3   : > { %v4362_v19 = vld.sshfl [vmem:[#allocation1 + $0x20] sm:$0xff pattern:$0x73625140]  ;;  %v8215_v3 = vpop.permute.xlu1 %3588  ;;  %v4015_v43 = vadd.f32 %v3843_v25, %v3759_v1  ;;  %4363 = vst [vmem:[#allocation1] ss:$4 sm:$0xff] %v4224_v0  ;;  %v10025_v0 = vld [vmem:[#allocation12_spill] sm:$0xff] }
 0x3d4   : > { %v4440_v35 = vpack.c.bf16 %v4362_v19, %v4361_v50  ;;  %v10023_v25 = vld [vmem:[#allocation121_spill] sm:$0xff]  ;;  %v3306_v19 = vadd.f32 %v7747_v29, %v2914_v48  ;;  %v2654_v1 = vadd.f32 %v10025_v0, %v2198_v32  ;;  %v10031_v32 = vld [vmem:[#allocation323_spill] sm:$0xff] }
 0x3d5   : > { %v4089_v30 = vmul.f32 %v7983_v27, %v4015_v43  ;;  %3870 = vrot.lane.b32.xlu2 %v8130_v42, %s5424_s26  ;;  %v1552_v58 = vadd.f32 %v10023_v25, %v10022_v52  ;;  %v10030_v48 = vld [vmem:[#allocation217_spill] sm:$0xff]  ;;  %v10032_v42 = vld [vmem:[#allocation216_spill] sm:$0xff] }
 0x3d6   : > { %5216 = vmatmul.msk.bf16.gmra.mxu0 %vm4448_vm11, %v4440_v35  ;;  %3626 = vrot.lane.b32.xlu0 %v3472_v37, %s5425_s27  ;;  %v10027_v35 = vld [vmem:[#allocation312_spill] sm:$0xff]  ;;  %v2910_v22 = vadd.f32 %v10029_v13, %v2654_v1  ;;  %v10039_v13 = vld [vmem:[#allocation315_spill] sm:$0xff] }
 0x3d7   : > { %v4163_v50 = vadd.f32 %v7991_v18, %v4089_v30  ;;  %v8239_v17 = vpop.permute.xlu2 %3596  ;;  %v1808_v5 = vadd.f32 %v10026_v44, %v1552_v58  ;;  %v2909_v43 = vadd.f32 %v10027_v35, %v2653_v11  ;;  %v1809_v30 = vadd.f32 %v10028_v31, %v1553_v41  ;;  %v10033_v44 = vld [vmem:[#allocation324_spill] sm:$0xff]  ;;  %v10034_v41 = vld [vmem:[#allocation65_spill] sm:$0xff] }
 0x3d8   : > { %v3593_v14 = vpop.permute.xlu0 %3592  ;;  %v3302_v11 = vadd.f32 %v10033_v44, %v2910_v22  ;;  %v10038_v31 = vld [vmem:[#allocation144_spill] sm:$0xff]  ;;  %v10041_v44 = vld [vmem:[#allocation222_spill] sm:$0xff] }
 0x3d9   : > { %3868 = vrot.lane.b32.xlu1 %v8102_v61, %s5424_s26  ;;  %v4227_v12 = vmax.f32 %v4163_v50, 0.0  ;;  %v3762_v37 = vadd.f32 %v3593_v14, %v3306_v19  ;;  %v2200_v25 = vadd.f32 %v10030_v48, %v1808_v5  ;;  %v3301_v60 = vadd.f32 %v10031_v32, %v2909_v43  ;;  %v10035_v50 = vld [vmem:[#allocation134_spill] sm:$0xff] }
 0x3da   : > { %v2201_v58 = vadd.f32 %v10032_v42, %v1809_v30  ;;  %v1555_v19 = vadd.f32 %v10035_v50, %v10034_v41  ;;  %v10037_v42 = vld [vmem:[#allocation265_spill] sm:$0xff]  ;;  %v3758_v43 = vadd.f32 %v8089_v8, %v3302_v11  ;;  %v10042_v11 = vld [vmem:[#allocation330_spill] sm:$0xff] }
 0x3db   : > { %v8243_v2 = vpop.permute.xlu1 %3594  ;;  %4366 = vst [vmem:[#allocation1 + $0x3] ss:$4 sm:$0xff] %v4227_v12  ;;  %v4018_v52 = vadd.f32 %v3849_v45, %v3762_v37  ;;  %v10036_v45 = vld [vmem:[#allocation24_spill] sm:$0xff]  ;;  %v3757_v14 = vadd.f32 %v8189_v51, %v3301_v60  ;;  %v10040_v51 = vld [vmem:[#allocation331_spill] sm:$0xff] }
 0x3dc   : > { %v2656_v1 = vadd.f32 %v10036_v45, %v2200_v25  ;;  %v2657_v35 = vadd.f32 %v10037_v42, %v2201_v58  ;;  %v1811_v30 = vadd.f32 %v10038_v31, %v1555_v19  ;;  %v10043_v19 = vld [vmem:[#allocation328_spill] sm:$0xff] }
 0x3dd   : > { %v4092_v0 = vmul.f32 %v7849_v57, %v4018_v52  ;;  %3876 = vrot.lane.b32.xlu2 %v8161_v15, %s5424_s26 }
 0x3de   : > { %3872 = vrot.lane.b32.xlu0 %v8120_v21, %s5424_s26  ;;  %v2912_v22 = vadd.f32 %v10039_v13, %v2656_v1  ;;  %v2913_v32 = vadd.f32 %v10040_v51, %v2657_v35  ;;  %v2203_v8 = vadd.f32 %v10041_v44, %v1811_v30  ;;  %v10046_v35 = vld [vmem:[#allocation26_spill] sm:$0xff]  ;;  %v10084_v21 = vld [vmem:[#allocation161_spill] sm:$0xff] }
 0x3df   : > { %v4166_v5 = vadd.f32 %v7885_v16, %v4092_v0  ;;  %v8265_v37 = vpop.permute.xlu2 %3602 }
 0x3e0   : > { %v3839_v12 = vpop.permute.xlu0 %3838  ;;  %v3304_v41 = vadd.f32 %v10042_v11, %v2912_v22  ;;  %v3305_v45 = vadd.f32 %v10043_v19, %v2913_v32 }
 0x3e1   : > { %3874 = vrot.lane.b32.xlu1 %v8141_v9, %s5424_s26  ;;  %v4230_v52 = vmax.f32 %v4166_v5, 0.0  ;;  %v4013_v48 = vadd.f32 %v3839_v12, %v3757_v14  ;;  %v10044_v14 = vld [vmem:[#allocation79_spill] sm:$0xff]  ;;  %v10045_v5 = vld [vmem:[#allocation165_spill] sm:$0xff] }
 0x3e2   : > { %v1557_v42 = vadd.f32 %v10045_v5, %v10044_v14  ;;  %v3760_v12 = vadd.f32 %v8215_v3, %v3304_v41  ;;  %v3761_v30 = vadd.f32 %v8123_v62, %v3305_v45  ;;  %v10050_v41 = vld [vmem:[#allocation86_spill] sm:$0xff]  ;;  %v10054_v5 = vld [vmem:[#allocation223_spill] sm:$0xff] }
 0x3e3   : > { %v3841_v25 = vpop.permute.xlu1 %3840  ;;  %4369 = vst [vmem:[#allocation1 + $0x22] ss:$4 sm:$0xff] %v4230_v52  ;;  %v4087_v0 = vmul.f32 %v7916_v39, %v4013_v48  ;;  %v10047_v48 = vld [vmem:[#allocation318_spill] sm:$0xff] }
 0x3e4   : > { %v4014_v60 = vadd.f32 %v3841_v25, %v3758_v43  ;;  %v2659_v43 = vadd.f32 %v10046_v35, %v2203_v8  ;;  %v10049_v8 = vld [vmem:[#allocation333_spill] sm:$0xff]  ;;  %v10053_v14 = vld [vmem:[#allocation6_spill] sm:$0xff] }
 0x3e5   : > { %v4161_v50 = vadd.f32 %v7925_v46, %v4087_v0  ;;  %3882 = vrot.lane.b32.xlu2 %v8208_v24, %s5424_s26  ;;  %v10048_v0 = vld [vmem:[#allocation145_spill] sm:$0xff] }
 0x3e6   : > { %v4088_v58 = vmul.f32 %v7849_v57, %v4014_v60  ;;  %3878 = vrot.lane.b32.xlu0 %v8156_v4, %s5424_s26  ;;  %v2915_v25 = vadd.f32 %v10047_v48, %v2659_v43  ;;  %v10055_v43 = vld [vmem:[#allocation5_spill] sm:$0xff]  ;;  %v10083_v4 = vld [vmem:[#allocation96_spill] sm:$0xff] }
 0x3e7   : > { %v4225_v31 = vmax.f32 %v4161_v50, 0.0  ;;  %v8288_v52 = vpop.permute.xlu2 %3608  ;;  %v10051_v50 = vld [vmem:[#allocation171_spill] sm:$0xff] }
 0x3e8   : > { %v4162_v1 = vadd.f32 %v7885_v16, %v4088_v58  ;;  %v3845_v22 = vpop.permute.xlu0 %3844  ;;  %v1813_v58 = vadd.f32 %v10048_v0, %v1557_v42  ;;  %v3307_v11 = vadd.f32 %v10049_v8, %v2915_v25  ;;  %v1560_v19 = vadd.f32 %v10051_v50, %v10050_v41  ;;  %v10057_v25 = vld [vmem:[#allocation155_spill] sm:$0xff]  ;;  %v10062_v41 = vld [vmem:[#allocation253_spill] sm:$0xff]  ;;  %v10063_v50 = vld [vmem:[#allocation256_spill] sm:$0xff] }
 0x3e9   : > { %3880 = vrot.lane.b32.xlu1 %v8183_v47, %s5424_s26  ;;  %4364 = vst [vmem:[#allocation1 + $0x1] ss:$4 sm:$0xff] %v4225_v31  ;;  %v4016_v51 = vadd.f32 %v3845_v22, %v3760_v12  ;;  %v9409_v0 = vrot.slane %v8208_v24, 2  ;;  %v1561_v47 = vadd.f32 %v10084_v21, %v10083_v4  ;;  %v10089_v4 = vld [vmem:[#allocation228_spill] sm:$0xff] }
 0x3ea   : > { %v4226_v13 = vmax.f32 %v4162_v1, 0.0  ;;  %v10052_v1 = vld [vmem:[#allocation7_spill] sm:$0xff]  ;;  %v2205_v42 = vadd.f32 %v10054_v5, %v1813_v58 }
 0x3eb   : > { %v3847_v32 = vpop.permute.xlu1 %3846  ;;  %v4090_v3 = vmul.f32 %v7826_v7, %v4016_v51  ;;  %v3763_v7 = vadd.f32 %v8243_v2, %v3307_v11  ;;  %v1816_v51 = vadd.f32 %v10057_v25, %v1560_v19  ;;  %v10061_v11 = vld [vmem:[#allocation229_spill] sm:$0xff]  ;;  %v8324_v19 = vrot.slane %v8208_v24, 4  ;;  %v10064_v5 = vld [vmem:[#allocation251_spill] sm:$0xff] }
 0x3ec   : > { %4365 = vst [vmem:[#allocation1 + $0x2] ss:$4 sm:$0xff] %v4226_v13  ;;  %v4017_v60 = vadd.f32 %v3847_v32, %v3761_v30  ;;  %v10056_v30 = vld [vmem:[#allocation27_spill] sm:$0xff]  ;;  %v10058_v32 = vld [vmem:[#allocation336_spill] sm:$0xff] }
 0x3ed   : > { %v4164_v62 = vadd.f32 %v7860_v38, %v4090_v3  ;;  %2784 = vrot.lane.b32.xlu2 %v10053_v14, %s5424_s26  ;;  %v2661_v13 = vadd.f32 %v10056_v30, %v2205_v42  ;;  %v10059_v3 = vrot.slane %v9999_v6, 6  ;;  %v10065_v6 = vld [vmem:[#allocation102_spill] sm:$0xff] }
 0x3ee   : > { %v4091_v44 = vmul.f32 %v7916_v39, %v4017_v60  ;;  %2780 = vrot.lane.b32.xlu0 %v10052_v1, %s5424_s26 }
 0x3ef   : > { %v4228_v35 = vmax.f32 %v4164_v62, 0.0  ;;  %v3855_v31 = vpop.permute.xlu2 %3854  ;;  %v2917_v60 = vadd.f32 %v10058_v32, %v2661_v13  ;;  %v2208_v62 = vadd.f32 %v10061_v11, %v1816_v51  ;;  %v5212_v51 = vrot.slane %v9409_v0, 9  ;;  %v10068_v32 = vld [vmem:[#allocation156_spill] sm:$0xff]  ;;  %v8342_v11 = vpop.f32.mrf.mxu2 }
 0x3f0   : > { %v4165_v45 = vadd.f32 %v7925_v46, %v4091_v44  ;;  %v3851_v12 = vpop.permute.xlu0 %3850  ;;  %v10060_v44 = vld [vmem:[#allocation157_spill] sm:$0xff] }
 0x3f1   : > { %2782 = vrot.lane.b32.xlu1 %v10055_v43, %s5424_s26  ;;  %4367 = vst [vmem:[#allocation1 + $0x20] ss:$4 sm:$0xff] %v4228_v35  ;;  %v4019_v22 = vadd.f32 %v3851_v12, %v3763_v7  ;;  %v1556_v8 = vadd.f32 %v10060_v44, %v10059_v3  ;;  %v3309_v42 = vadd.f32 %v7833_v63, %v2917_v60  ;;  %v10066_v7 = vld [vmem:[#allocation177_spill] sm:$0xff]  ;;  %v10070_v44 = vld [vmem:[#allocation67_spill] sm:$0xff]  ;;  %v8340_v60 = vrot.slane %v8208_v24, 6 }
 0x3f2   : > { %v4229_v38 = vmax.f32 %v4165_v45, 0.0  ;;  %v1563_v35 = vadd.f32 %v10066_v7, %v10065_v6  ;;  %v10071_v6 = vld [vmem:[#allocation81_spill] sm:$0xff]  ;;  %v10072_v7 = vld [vmem:[#allocation163_spill] sm:$0xff] }
 0x3f3   : > { %v8308_v48 = vpop.permute.xlu1 %2762  ;;  %v4093_v2 = vmul.f32 %v7983_v27, %v4019_v22 }
 0x3f4   : > { %4368 = vst [vmem:[#allocation1 + $0x21] ss:$4 sm:$0xff] %v4229_v38  ;;  %v10067_v38 = vld [vmem:[#allocation30_spill] sm:$0xff] }
 0x3f5   : > { %v4167_v58 = vadd.f32 %v7991_v18, %v4093_v2  ;;  %2790 = vrot.lane.b32.xlu2 %v10063_v50, %s5424_s26  ;;  %v2664_v12 = vadd.f32 %v10067_v38, %v2208_v62  ;;  %v1812_v2 = vadd.f32 %v10068_v32, %v1556_v8  ;;  %v8345_v62 = vrot.slane %v8342_v11, 2  ;;  %v10074_v8 = vld [vmem:[#allocation152_spill] sm:$0xff]  ;;  %v10076_v50 = vld [vmem:[#allocation234_spill] sm:$0xff] }
 0x3f6   : > { %2786 = vrot.lane.b32.xlu0 %v10062_v41, %s5424_s26  ;;  %v1559_v38 = vadd.f32 %v10072_v7, %v10071_v6  ;;  %v3478_v7 = vrot.slane %v8340_v60, 7  ;;  %v4371_v41 = vld.sshfl [vmem:[#allocation1] sm:$0xff pattern:$0x73625140] }
 0x3f7   : > { %v4231_v45 = vmax.f32 %v4167_v58, 0.0  ;;  %v3861_v13 = vpop.permute.xlu2 %3860  ;;  %v10069_v58 = vld [vmem:[#allocation188_spill] sm:$0xff]  ;;  %v2920_v63 = vadd.f32 %v10070_v44, %v2664_v12  ;;  %v10075_v44 = vrot.slane %v10011_v40, 6 }
 0x3f8   : > { %v3599_v30 = vpop.permute.xlu0 %3598  ;;  %v1819_v3 = vadd.f32 %v10069_v58, %v1563_v35  ;;  %v3481_v58 = vrot.slane %v8342_v11, 7 }
 0x3f9   : > { %2788 = vrot.lane.b32.xlu1 %v10064_v5, %s5424_s26  ;;  %4370 = vst [vmem:[#allocation1 + $0x23] ss:$4 sm:$0xff] %v4231_v45  ;;  %v3765_v22 = vadd.f32 %v3599_v30, %v3309_v42  ;;  %v3475_v42 = vrot.slane %v8324_v19, 7  ;;  %v10073_v30 = vld [vmem:[#allocation82_spill] sm:$0xff]  ;;  %v2204_v0 = vadd.f32 %v10075_v44, %v1812_v2  ;;  %v3312_v6 = vadd.f32 %v7882_v49, %v2920_v63  ;;  %v10081_v44 = vld [vmem:[#allocation271_spill] sm:$0xff]  ;;  %v10082_v63 = vld [vmem:[#allocation33_spill] sm:$0xff] }
 0x3fa   : > { %v1558_v32 = vadd.f32 %v10074_v8, %v10073_v30  ;;  %v3483_v2 = vrot.slane %v3481_v58, 2  ;;  %v10080_v8 = vld [vmem:[#allocation159_spill] sm:$0xff] }
 0x3fb   : > { %v8332_v25 = vpop.permute.xlu1 %3600  ;;  %v4021_v45 = vadd.f32 %v3855_v31, %v3765_v22  ;;  %v3476_v12 = vsel %vm5875_vm9, %v5212_v51, %v3475_v42  ;;  %v2211_v31 = vadd.f32 %v10076_v50, %v1819_v3  ;;  %v10077_v22 = vld [vmem:[#allocation252_spill] sm:$0xff]  ;;  %v3484_v50 = vrot.slane %v8345_v62, 7  ;;  %v10079_v3 = vld [vmem:[#allocation154_spill] sm:$0xff] }
 0x3fc   : > { %v10078_v40 = vrot.slane %v10077_v22, 2  ;;  %v1814_v30 = vadd.f32 %v10079_v3, %v1558_v32  ;;  %v2660_v49 = vadd.f32 %v10081_v44, %v2204_v0  ;;  %v10085_v32 = vld [vmem:[#allocation334_spill] sm:$0xff]  ;;  %v3480_v0 = vrot.slane %v3478_v7, 2  ;;  %v10090_v44 = vld [vmem:[#allocation201_spill] sm:$0xff] }
 0x3fd   : > { %v4095_v35 = vmul.f32 %v7916_v39, %v4021_v45  ;;  %3628 = vrot.lane.b32.xlu2 %v3476_v12, %s5425_s27  ;;  %v8365_v45 = vrot.slane %v8342_v11, 6  ;;  %v1815_v12 = vadd.f32 %v10080_v8, %v1559_v38  ;;  %v2667_v5 = vadd.f32 %v10082_v63, %v2211_v31 }
 0x3fe   : > { %2792 = vrot.lane.b32.xlu0 %v10077_v22, %s5424_s26  ;;  %v3477_v22 = vrot.slane %v3475_v42, 2  ;;  %v2916_v3 = vadd.f32 %v10085_v32, %v2660_v49  ;;  %v8382_v38 = vrot.slane %v8342_v11, 4  ;;  %v1817_v49 = vadd.f32 %v10090_v44, %v1561_v47 }
 0x3ff   : > { %v4169_v51 = vadd.f32 %v7925_v46, %v4095_v35  ;;  %v3867_v43 = vpop.permute.xlu2 %3866  ;;  %v2923_v31 = vadd.f32 %v8308_v48, %v2667_v5  ;;  %v8396_v48 = vld [vmem:[%s9162_s3] ss:$0 sm:$0xff]  ;;  %v3482_v47 = vsel %vm5875_vm9, %v3480_v0, %v3481_v58 }
 0x400   : > { %v4372_v24 = vld.sshfl [vmem:[#allocation1 + $0x20] sm:$0xff pattern:$0x73625140]  ;;  %v3605_v14 = vpop.permute.xlu0 %3604  ;;  %v3479_v5 = vsel %vm5875_vm9, %v3477_v22, %v3478_v7 }
 0x401   : > { %2794 = vrot.lane.b32.xlu1 %v10078_v40, %s5424_s26  ;;  %v4233_v35 = vmax.f32 %v4169_v51, 0.0  ;;  %v3768_v1 = vadd.f32 %v3605_v14, %v3312_v6  ;;  %v4441_v40 = vpack.c.bf16 %v4372_v24, %v4371_v41  ;;  %v3485_v14 = vsel %vm5875_vm9, %v3483_v2, %v3484_v50  ;;  %v10086_v24 = vld [vmem:[#allocation100_spill] sm:$0xff]  ;;  %v10087_v41 = vld [vmem:[#allocation169_spill] sm:$0xff]  ;;  %v10088_v6 = vld [vmem:[#allocation227_spill] sm:$0xff] }
 0x402   : > { %v1562_v42 = vadd.f32 %v10087_v41, %v10086_v24  ;;  %v2207_v21 = vadd.f32 %v10088_v6, %v1815_v12  ;;  %v2206_v51 = vadd.f32 %v10089_v4, %v1814_v30  ;;  %v10091_v2 = vld [vmem:[#allocation29_spill] sm:$0xff]  ;;  %v10092_v12 = vrot.slane %v7747_v29, 6 }
 0x403   : > { %v8376_v15 = vpop.permute.xlu1 %3606  ;;  %v4024_v8 = vadd.f32 %v3861_v13, %v3768_v1  ;;  %5217 = vmatmul.msk.bf16.gmra.mxu0 %vm4448_vm11, %v4441_v40  ;;  %4374 = vst [vmem:[#allocation1 + $0x1] ss:$4 sm:$0xff] %v4233_v35  ;;  %v3490_v13 = vrot.slane %v8365_v45, 7  ;;  %v3487_v30 = vrot.slane %v8382_v38, 7  ;;  %v10093_v40 = vld [vmem:[#allocation203_spill] sm:$0xff]  ;;  %v3315_v7 = vadd.f32 %v7932_v34, %v2923_v31  ;;  %v10095_v58 = vld [vmem:[#allocation321_spill] sm:$0xff] }
 0x404   : > { %v2662_v63 = vadd.f32 %v10091_v2, %v2206_v51  ;;  %v3308_v35 = vadd.f32 %v10092_v12, %v2916_v3  ;;  %v1818_v32 = vadd.f32 %v10093_v40, %v1562_v42  ;;  %v8416_v22 = vld [vmem:[%s9163_s4] ss:$0 sm:$0xff]  ;;  %v10094_v3 = vld [vmem:[#allocation20_spill] sm:$0xff]  ;;  %v3486_v6 = vrot.slane %v3484_v50, 2  ;;  %v10096_v12 = vld [vmem:[#allocation42_spill] sm:$0xff] }
 0x405   : > { %v4098_v1 = vmul.f32 %v8396_v48, %v4024_v8  ;;  %3634 = vrot.lane.b32.xlu2 %v3485_v14, %s5425_s27  ;;  %v8411_v8 = vpop.f32.mrf.mxu2  ;;  %v2663_v14 = vadd.f32 %v10094_v3, %v2207_v21  ;;  %v2209_v2 = vadd.f32 %v6963_v55, %v1817_v49  ;;  %v3489_v21 = vrot.slane %v3487_v30, 2 }
 0x406   : > { %3630 = vrot.lane.b32.xlu0 %v3479_v5, %s5425_s27  ;;  %v2918_v0 = vadd.f32 %v10095_v58, %v2662_v63  ;;  %v3764_v24 = vadd.f32 %v8239_v17, %v3308_v35  ;;  %v3492_v5 = vrot.slane %v3490_v13, 2  ;;  %v10098_v35 = vld [vmem:[#allocation32_spill] sm:$0xff]  ;;  %v3488_v3 = vsel %vm5875_vm9, %v3486_v6, %v3487_v30  ;;  %v10099_v58 = vld [vmem:[#allocation23_spill] sm:$0xff] }
 0x407   : > { %v4172_v29 = vadd.f32 %v8416_v22, %v4098_v1  ;;  %v8424_v42 = vpop.permute.xlu2 %2768  ;;  %v3493_v1 = vrot.slane %v8411_v8, 7  ;;  %v2919_v34 = vadd.f32 %v10096_v12, %v2663_v14  ;;  %v2665_v40 = vadd.f32 %v10098_v35, %v2209_v2 }
 0x408   : > { %v3611_v41 = vpop.permute.xlu0 %3610  ;;  %v3310_v50 = vadd.f32 %v7879_v56, %v2918_v0  ;;  %v3221_v49 = vrot.slane %v8411_v8, 2  ;;  %v3491_v56 = vsel %vm5875_vm9, %v3489_v21, %v3490_v13 }
 0x409   : > { %3632 = vrot.lane.b32.xlu1 %v3482_v47, %s5425_s27  ;;  %v4236_v4 = vmax.f32 %v4172_v29, 0.0  ;;  %v3771_v51 = vadd.f32 %v3611_v41, %v3315_v7  ;;  %v10097_v47 = vld [vmem:[#allocation232_spill] sm:$0xff]  ;;  %v3494_v55 = vsel %vm5875_vm9, %v3492_v5, %v3493_v1  ;;  %v3495_v13 = vrot.slane %v3493_v1, 2 }
 0x40a   : > { %v2210_v17 = vadd.f32 %v10097_v47, %v1818_v32  ;;  %v3766_v14 = vadd.f32 %v8332_v25, %v3310_v50  ;;  %v3496_v12 = vrot.slane %v3221_v49, 7  ;;  %v10101_v25 = vld [vmem:[#allocation45_spill] sm:$0xff] }
 0x40b   : > { %v3853_v44 = vpop.permute.xlu1 %3852  ;;  %4377 = vst [vmem:[#allocation1 + $0x20] ss:$4 sm:$0xff] %v4236_v4  ;;  %v4027_v63 = vadd.f32 %v3867_v43, %v3771_v51  ;;  %v3311_v43 = vadd.f32 %v7839_v28, %v2919_v34 }
 0x40c   : > { %v4020_v31 = vadd.f32 %v3853_v44, %v3764_v24  ;;  %v2666_v0 = vadd.f32 %v10099_v58, %v2210_v17  ;;  %v10100_v24 = vld [vmem:[#allocation327_spill] sm:$0xff]  ;;  %v3497_v17 = vsel %vm5875_vm9, %v3495_v13, %v3496_v12 }
 0x40d   : > { %v4101_v7 = vmul.f32 %v7983_v27, %v4027_v63  ;;  %3640 = vrot.lane.b32.xlu2 %v3494_v55, %s5425_s27  ;;  %v2921_v41 = vadd.f32 %v10100_v24, %v2665_v40  ;;  %v3767_v28 = vadd.f32 %v8265_v37, %v3311_v43 }
 0x40e   : > { %v4094_v29 = vmul.f32 %v8396_v48, %v4020_v31  ;;  %3636 = vrot.lane.b32.xlu0 %v3488_v3, %s5425_s27  ;;  %v2922_v34 = vadd.f32 %v10101_v25, %v2666_v0  ;;  %v10104_v25 = vld [vmem:[#allocation209_spill] sm:$0xff] }
 0x40f   : > { %v4175_v30 = vadd.f32 %v7991_v18, %v4101_v7  ;;  %v8451_v51 = vpop.permute.xlu2 %2774  ;;  %v3313_v37 = vadd.f32 %v7902_v10, %v2921_v41 }
 0x410   : > { %v4168_v32 = vadd.f32 %v8416_v22, %v4094_v29  ;;  %v3857_v4 = vpop.permute.xlu0 %3856  ;;  %v3314_v35 = vadd.f32 %v7910_v59, %v2922_v34 }
 0x411   : > { %3638 = vrot.lane.b32.xlu1 %v3491_v56, %s5425_s27  ;;  %v4239_v44 = vmax.f32 %v4175_v30, 0.0  ;;  %v4022_v5 = vadd.f32 %v3857_v4, %v3766_v14  ;;  %v3769_v40 = vadd.f32 %v8376_v15, %v3313_v37  ;;  %v10103_v4 = vld [vmem:[#allocation175_spill] sm:$0xff] }
 0x412   : > { %v4232_v6 = vmax.f32 %v4168_v32, 0.0  ;;  %v3770_v10 = vadd.f32 %v8288_v52, %v3314_v35  ;;  %v10109_v35 = vld [vmem:[#allocation181_spill] sm:$0xff] }
 0x413   : > { %v3859_v2 = vpop.permute.xlu1 %3858  ;;  %4380 = vst [vmem:[#allocation1 + $0x23] ss:$4 sm:$0xff] %v4239_v44  ;;  %v4096_v21 = vmul.f32 %v7849_v57, %v4022_v5 }
 0x414   : > { %4373 = vst [vmem:[#allocation1] ss:$4 sm:$0xff] %v4232_v6  ;;  %v4023_v31 = vadd.f32 %v3859_v2, %v3767_v28  ;;  %v10102_v6 = vld [vmem:[#allocation112_spill] sm:$0xff] }
 0x415   : > { %v4170_v47 = vadd.f32 %v7885_v16, %v4096_v21  ;;  %3886 = vrot.lane.b32.xlu2 %v8340_v60, %s5424_s26  ;;  %v1565_v44 = vadd.f32 %v10103_v4, %v10102_v6  ;;  %v10119_v6 = vld [vmem:[#allocation10_spill] sm:$0xff] }
 0x416   : > { %v4097_v63 = vmul.f32 %v7983_v27, %v4023_v31  ;;  %3642 = vrot.lane.b32.xlu0 %v3497_v17, %s5425_s27  ;;  %v10106_v31 = vld [vmem:[#allocation261_spill] sm:$0xff]  ;;  %v10108_v17 = vld [vmem:[#allocation124_spill] sm:$0xff] }
 0x417   : > { %v4234_v50 = vmax.f32 %v4170_v47, 0.0  ;;  %v8469_v3 = vpop.permute.xlu2 %3612  ;;  %v1821_v34 = vadd.f32 %v10104_v25, %v1565_v44  ;;  %v10120_v44 = vld [vmem:[#allocation136_spill] sm:$0xff] }
 0x418   : > { %v4171_v1 = vadd.f32 %v7991_v18, %v4097_v63  ;;  %v3863_v7 = vpop.permute.xlu0 %3862  ;;  %v10107_v63 = vld [vmem:[#allocation258_spill] sm:$0xff] }
 0x419   : > { %3884 = vrot.lane.b32.xlu1 %v8324_v19, %s5424_s26  ;;  %4375 = vst [vmem:[#allocation1 + $0x2] ss:$4 sm:$0xff] %v4234_v50  ;;  %v4025_v59 = vadd.f32 %v3863_v7, %v3769_v40  ;;  %v2213_v21 = vadd.f32 %v9961_v26, %v1821_v34  ;;  %v10110_v40 = vld [vmem:[#allocation274_spill] sm:$0xff]  ;;  %v9416_v26 = vrot.slane %v8411_v8, 4 }
 0x41a   : > { %v4235_v29 = vmax.f32 %v4171_v1, 0.0  ;;  %v1568_v1 = vadd.f32 %v10109_v35, %v10108_v17  ;;  %v10123_v17 = vld [vmem:[#allocation28_spill] sm:$0xff] }
 0x41b   : > { %v3865_v55 = vpop.permute.xlu1 %3864  ;;  %v4099_v32 = vmul.f32 %v7916_v39, %v4025_v59  ;;  %v2669_v50 = vadd.f32 %v10110_v40, %v2213_v21 }
 0x41c   : > { %4376 = vst [vmem:[#allocation1 + $0x3] ss:$4 sm:$0xff] %v4235_v29  ;;  %v4026_v43 = vadd.f32 %v3865_v55, %v3770_v10  ;;  %v10111_v29 = vld [vmem:[#allocation214_spill] sm:$0xff]  ;;  %v8512_v55 = vrot.slane %v8411_v8, 6 }
 0x41d   : > { %v4173_v15 = vadd.f32 %v7925_v46, %v4099_v32  ;;  %3892 = vrot.lane.b32.xlu2 %v8382_v38, %s5424_s26  ;;  %v1824_v7 = vadd.f32 %v10111_v29, %v1568_v1  ;;  %v10114_v32 = vld [vmem:[#allocation167_spill] sm:$0xff]  ;;  %v10124_v29 = vld [vmem:[#allocation221_spill] sm:$0xff] }
 0x41e   : > { %v4100_v56 = vmul.f32 %v7849_v57, %v4026_v43  ;;  %3888 = vrot.lane.b32.xlu0 %v8342_v11, %s5424_s26  ;;  %10112 = vst [vmem:[#allocation64_spill] sm:$0xff] %v8512_v55  ;;  %v10113_v43 = vld [vmem:[#allocation108_spill] sm:$0xff] }
 0x41f   : > { %v4237_v52 = vmax.f32 %v4173_v15, 0.0  ;;  %v8483_v0 = vpop.permute.xlu2 %3618  ;;  %v8517_v15 = vpop.f32.mrf.mxu2 }
 0x420   : > { %v4174_v14 = vadd.f32 %v7885_v16, %v4100_v56  ;;  %v8481_v58 = vpop.permute.xlu0 %2764  ;;  %v1564_v56 = vadd.f32 %v10114_v32, %v10113_v43  ;;  %10115 = vst [vmem:[#allocation71_spill] sm:$0xff] %v8517_v15  ;;  %v10125_v32 = vld [vmem:[#allocation235_spill] sm:$0xff] }
 0x421   : > { %3890 = vrot.lane.b32.xlu1 %v8345_v62, %s5424_s26  ;;  %4378 = vst [vmem:[#allocation1 + $0x21] ss:$4 sm:$0xff] %v4237_v52  ;;  %v10117_v52 = vld [vmem:[#allocation263_spill] sm:$0xff] }
 0x422   : > { %v4238_v30 = vmax.f32 %v4174_v14, 0.0  ;;  %v10116_v14 = vld [vmem:[#allocation262_spill] sm:$0xff] }
 0x423   : > { %v2767_v24 = vpop.permute.xlu1 %2766  ;;  %v4381_v13 = vld.sshfl [vmem:[#allocation1] sm:$0xff pattern:$0x73625140] }
 0x424   : > { %4379 = vst [vmem:[#allocation1 + $0x22] ss:$4 sm:$0xff] %v4238_v30  ;;  %v2925_v59 = vadd.f32 %v2767_v24, %v2669_v50  ;;  %v2216_v30 = vadd.f32 %v9978_v23, %v1824_v7  ;;  %v8525_v24 = vrot.slane %v8517_v15, 2  ;;  %v5213_v23 = vrot.slane %v9416_v26, 9  ;;  %v10130_v26 = vld [vmem:[#allocation173_spill] sm:$0xff] }
 0x425   : > { %3898 = vrot.lane.b32.xlu2 %v3221_v49, %s5424_s26  ;;  %v10105_v49 = vld [vmem:[#allocation259_spill] sm:$0xff]  ;;  %v3500_v50 = vrot.slane %v8512_v55, 7 }
 0x426   : > { %3894 = vrot.lane.b32.xlu0 %v8365_v45, %s5424_s26  ;;  %10118 = vst [vmem:[#allocation59_spill] sm:$0xff] %v8525_v24  ;;  %v3317_v4 = vadd.f32 %v8102_v61, %v2925_v59  ;;  %v2672_v35 = vadd.f32 %v10123_v17, %v2216_v30  ;;  %v3506_v43 = vrot.slane %v8525_v24, 7  ;;  %v8545_v30 = vrot.slane %v8517_v15, 4  ;;  %v10129_v17 = vld [vmem:[#allocation122_spill] sm:$0xff] }
 0x427   : > { %v8492_v28 = vpop.permute.xlu2 %3624 }
 0x428   : > { %v8490_v41 = vpop.permute.xlu0 %2770  ;;  %10128 = vst [vmem:[#allocation62_spill] sm:$0xff] %v8545_v30 }
 0x429   : > { %3896 = vrot.lane.b32.xlu1 %v8411_v8, %s5424_s26 }
 0x42b   : > { %v4382_v5 = vld.sshfl [vmem:[#allocation1 + $0x20] sm:$0xff pattern:$0x73625140]  ;;  %v2773_v2 = vpop.permute.xlu1 %2772 }
 0x42c   : > { %v4442_v12 = vpack.c.bf16 %v4382_v5, %v4381_v13  ;;  %v10121_v5 = vld [vmem:[#allocation187_spill] sm:$0xff]  ;;  %v2928_v61 = vadd.f32 %v2773_v2, %v2672_v35 }
 0x42d   : > { %2800 = vrot.lane.b32.xlu2 %v10106_v31, %s5424_s26  ;;  %v1571_v13 = vadd.f32 %v10121_v5, %v10120_v44  ;;  %v10126_v44 = vld [vmem:[#allocation114_spill] sm:$0xff]  ;;  %v10127_v5 = vld [vmem:[#allocation183_spill] sm:$0xff] }
 0x42e   : > { %5218 = vmatmul.msk.bf16.gmra.mxu0 %vm4448_vm11, %v4442_v12  ;;  %2796 = vrot.lane.b32.xlu0 %v10105_v49, %s5424_s26  ;;  %v10122_v12 = vld [vmem:[#allocation207_spill] sm:$0xff]  ;;  %v10142_v31 = vld [vmem:[#allocation178_spill] sm:$0xff] }
 0x42f   : > { %v3871_v47 = vpop.permute.xlu2 %3870  ;;  %v1820_v25 = vadd.f32 %v10122_v12, %v1564_v56  ;;  %v1827_v7 = vadd.f32 %v10124_v29, %v1571_v13  ;;  %v1566_v12 = vadd.f32 %v10127_v5, %v10126_v44  ;;  %v1567_v13 = vadd.f32 %v10130_v26, %v10129_v17  ;;  %v10133_v29 = vld [vmem:[#allocation192_spill] sm:$0xff]  ;;  %v10136_v44 = vld [vmem:[#allocation31_spill] sm:$0xff] }
 0x430   : > { %v8505_v37 = vpop.permute.xlu0 %2776  ;;  %v3320_v26 = vadd.f32 %v8141_v9, %v2928_v61  ;;  %v10138_v9 = vld [vmem:[#allocation125_spill] sm:$0xff] }
 0x431   : > { %2798 = vrot.lane.b32.xlu1 %v10107_v63, %s5424_s26  ;;  %v2212_v56 = vadd.f32 %v10125_v32, %v1820_v25  ;;  %v2219_v2 = vadd.f32 %v9990_v20, %v1827_v7  ;;  %v10132_v25 = vld [vmem:[#allocation13_spill] sm:$0xff]  ;;  %v1822_v32 = vadd.f32 %v10133_v29, %v1566_v12  ;;  %v3508_v20 = vrot.slane %v3506_v43, 2  ;;  %v10135_v7 = vld [vmem:[#allocation212_spill] sm:$0xff] }
 0x432   : > { %v10139_v61 = vld [vmem:[#allocation189_spill] sm:$0xff] }
 0x433   : > { %v2779_v10 = vpop.permute.xlu1 %2778  ;;  %v2675_v5 = vadd.f32 %v10136_v44, %v2219_v2 }
 0x435   : > { %2806 = vrot.lane.b32.xlu2 %v10117_v52, %s5424_s26 }
 0x436   : > { %2802 = vrot.lane.b32.xlu0 %v10116_v14, %s5424_s26 }
 0x437   : > { %v3877_v21 = vpop.permute.xlu2 %3876 }
 0x438   : > { %v3615_v34 = vpop.permute.xlu0 %3614 }
 0x439   : > { %2804 = vrot.lane.b32.xlu1 %v10119_v6, %s5424_s26  ;;  %v3773_v1 = vadd.f32 %v3615_v34, %v3317_v4  ;;  %v3501_v34 = vsel %vm5875_vm9, %v5213_v23, %v3500_v50  ;;  %v10134_v23 = vrot.slane %v10117_v52, 4  ;;  %v3509_v52 = vrot.slane %v8545_v30, 7 }
 0x43b   : > { %v8534_v40 = vpop.permute.xlu1 %3616  ;;  %v4029_v59 = vadd.f32 %v3871_v47, %v3773_v1  ;;  %v10131_v47 = vld [vmem:[#allocation276_spill] sm:$0xff]  ;;  %v3503_v1 = vrot.slane %v8517_v15, 7 }
 0x43c   : > { %v2668_v35 = vadd.f32 %v10131_v47, %v2212_v56  ;;  %v1823_v56 = vadd.f32 %v10135_v7, %v1567_v13  ;;  %v1569_v13 = vadd.f32 %v10139_v61, %v10138_v9  ;;  %v2931_v7 = vadd.f32 %v2779_v10, %v2675_v5 }
 0x43d   : > { %v4103_v4 = vmul.f32 %v7916_v39, %v4029_v59  ;;  %3644 = vrot.lane.b32.xlu2 %v3501_v34, %s5425_s27  ;;  %v3505_v6 = vrot.slane %v3503_v1, 2 }
 0x43e   : > { %2808 = vrot.lane.b32.xlu0 %v10132_v25, %s5424_s26  ;;  %v2924_v17 = vadd.f32 %v8481_v58, %v2668_v35  ;;  %v3510_v58 = vsel %vm5875_vm9, %v3508_v20, %v3509_v52  ;;  %v2214_v35 = vadd.f32 %v9964_v33, %v1822_v32  ;;  %v10143_v33 = vld [vmem:[#allocation197_spill] sm:$0xff] }
 0x43f   : > { %v4177_v59 = vadd.f32 %v7925_v46, %v4103_v4  ;;  %v3883_v47 = vpop.permute.xlu2 %3882  ;;  %v3502_v4 = vrot.slane %v3500_v50, 2  ;;  %v3507_v44 = vsel %vm5875_vm9, %v3505_v6, %v3506_v43  ;;  %v1825_v32 = vadd.f32 %v10143_v33, %v1569_v13  ;;  %v10149_v33 = vld [vmem:[#allocation246_spill] sm:$0xff] }
 0x440   : > { %v3621_v34 = vpop.permute.xlu0 %3620  ;;  %v3316_v50 = vadd.f32 %v8095_v53, %v2924_v17  ;;  %v10145_v53 = vld [vmem:[#allocation279_spill] sm:$0xff]  ;;  %v10148_v17 = vld [vmem:[#allocation76_spill] sm:$0xff] }
 0x441   : > { %2810 = vrot.lane.b32.xlu1 %v10134_v23, %s5424_s26  ;;  %v4241_v63 = vmax.f32 %v4177_v59, 0.0  ;;  %v3776_v12 = vadd.f32 %v3621_v34, %v3320_v26  ;;  %v8571_v23 = vrot.slane %v8517_v15, 6  ;;  %v2215_v59 = vadd.f32 %v9962_v54, %v1823_v56  ;;  %v8580_v26 = vpop.f32.mrf.mxu2  ;;  %v10141_v34 = vld [vmem:[#allocation132_spill] sm:$0xff]  ;;  %v10144_v54 = vld [vmem:[#allocation277_spill] sm:$0xff] }
 0x442   : > { %10140 = vst [vmem:[#allocation90_spill] sm:$0xff] %v8580_v26  ;;  %v1570_v9 = vadd.f32 %v10142_v31, %v10141_v34  ;;  %v3504_v10 = vsel %vm5875_vm9, %v3502_v4, %v3503_v1  ;;  %v2670_v20 = vadd.f32 %v10144_v54, %v2214_v35  ;;  %v10146_v31 = vld [vmem:[#allocation219_spill] sm:$0xff]  ;;  %v8598_v5 = vrot.slane %v8580_v26, 2 }
 0x443   : > { %v8567_v29 = vpop.permute.xlu1 %3622  ;;  %10137 = vst [vmem:[#allocation41_spill] sm:$0xff] %v8571_v23  ;;  %v4032_v2 = vadd.f32 %v3877_v21, %v3776_v12  ;;  %v3515_v21 = vrot.slane %v8580_v26, 7  ;;  %v2671_v56 = vadd.f32 %v10145_v53, %v2215_v59  ;;  %v3512_v6 = vrot.slane %v8571_v23, 7  ;;  %v10150_v53 = vld [vmem:[#allocation2_spill] sm:$0xff] }
 0x444   : > { %4384 = vst [vmem:[#allocation1 + $0x1] ss:$4 sm:$0xff] %v4241_v63  ;;  %v1826_v43 = vadd.f32 %v10146_v31, %v1570_v9  ;;  %v3323_v12 = vadd.f32 %v10148_v17, %v2931_v7  ;;  %v2926_v4 = vadd.f32 %v8424_v42, %v2670_v20  ;;  %v3511_v9 = vrot.slane %v3509_v52, 2  ;;  %v10151_v20 = vld [vmem:[#allocation280_spill] sm:$0xff]  ;;  %v10152_v31 = vld [vmem:[#allocation83_spill] sm:$0xff] }
 0x445   : > { %v4106_v63 = vmul.f32 %v8396_v48, %v4032_v2  ;;  %3650 = vrot.lane.b32.xlu2 %v3510_v58, %s5425_s27  ;;  %10147 = vst [vmem:[#allocation46_spill] sm:$0xff] %v8598_v5  ;;  %v2927_v61 = vadd.f32 %v8490_v41, %v2671_v56  ;;  %v3772_v58 = vadd.f32 %v8469_v3, %v3316_v50  ;;  %v3518_v41 = vrot.slane %v8598_v5, 7  ;;  %v10153_v3 = vld [vmem:[#allocation40_spill] sm:$0xff] }
 0x446   : > { %3646 = vrot.lane.b32.xlu0 %v3504_v10, %s5425_s27  ;;  %v3517_v10 = vrot.slane %v3515_v21, 2  ;;  %v2218_v7 = vadd.f32 %v10150_v53, %v1826_v43  ;;  %v3318_v50 = vadd.f32 %v10153_v3, %v2926_v4 }
 0x447   : > { %v4180_v1 = vadd.f32 %v8416_v22, %v4106_v63  ;;  %v8605_v2 = vpop.permute.xlu2 %2784  ;;  %v2217_v63 = vadd.f32 %v10149_v33, %v1825_v32  ;;  %v3319_v17 = vadd.f32 %v10152_v31, %v2927_v61  ;;  %v3513_v32 = vsel %vm5875_vm9, %v3511_v9, %v3512_v6 }
 0x448   : > { %v3627_v13 = vpop.permute.xlu0 %3626  ;;  %v3519_v43 = vsel %vm5875_vm9, %v3517_v10, %v3518_v41  ;;  %v3774_v61 = vadd.f32 %v8534_v40, %v3318_v50 }
 0x449   : > { %3648 = vrot.lane.b32.xlu1 %v3507_v44, %s5425_s27  ;;  %v4244_v35 = vmax.f32 %v4180_v1, 0.0  ;;  %v3779_v59 = vadd.f32 %v3627_v13, %v3323_v12  ;;  %v3514_v44 = vrot.slane %v3512_v6, 2  ;;  %v2673_v56 = vadd.f32 %v10151_v20, %v2217_v63  ;;  %v10154_v12 = vld [vmem:[#allocation282_spill] sm:$0xff]  ;;  %v10156_v20 = vld [vmem:[#allocation43_spill] sm:$0xff] }
 0x44a   : > { %v2674_v13 = vadd.f32 %v10154_v12, %v2218_v7  ;;  %v3775_v33 = vadd.f32 %v8483_v0, %v3319_v17 }
 0x44b   : > { %v3869_v34 = vpop.permute.xlu1 %3868  ;;  %4387 = vst [vmem:[#allocation1 + $0x20] ss:$4 sm:$0xff] %v4244_v35  ;;  %v4035_v42 = vadd.f32 %v3883_v47, %v3779_v59  ;;  %v3228_v47 = vrot.slane %v8580_v26, 4  ;;  %v3516_v4 = vsel %vm5875_vm9, %v3514_v44, %v3515_v21  ;;  %v2929_v35 = vadd.f32 %v8451_v51, %v2673_v56 }
 0x44c   : > { %v4028_v54 = vadd.f32 %v3869_v34, %v3772_v58  ;;  %v2930_v59 = vadd.f32 %v8505_v37, %v2674_v13  ;;  %v3520_v21 = vrot.slane %v3518_v41, 2 }
 0x44d   : > { %v4109_v52 = vmul.f32 %v7983_v27, %v4035_v42  ;;  %3656 = vrot.lane.b32.xlu2 %v3519_v43, %s5425_s27  ;;  %v3521_v44 = vrot.slane %v3228_v47, 7  ;;  %v10155_v42 = vld [vmem:[#allocation73_spill] sm:$0xff]  ;;  %v3321_v56 = vadd.f32 %v10156_v20, %v2929_v35  ;;  %v10162_v20 = vld [vmem:[#allocation7_spill] sm:$0xff] }
 0x44e   : > { %v4102_v1 = vmul.f32 %v8396_v48, %v4028_v54  ;;  %3652 = vrot.lane.b32.xlu0 %v3513_v32, %s5425_s27  ;;  %v3322_v51 = vadd.f32 %v10155_v42, %v2930_v59  ;;  %v10159_v42 = vld [vmem:[#allocation224_spill] sm:$0xff] }
 0x44f   : > { %v4183_v6 = vadd.f32 %v7991_v18, %v4109_v52  ;;  %v8632_v10 = vpop.permute.xlu2 %2790  ;;  %v3522_v0 = vsel %vm5875_vm9, %v3520_v21, %v3521_v44  ;;  %v3777_v41 = vadd.f32 %v8567_v29, %v3321_v56 }
 0x450   : > { %v4176_v58 = vadd.f32 %v8416_v22, %v4102_v1  ;;  %v3873_v9 = vpop.permute.xlu0 %3872  ;;  %v3778_v32 = vadd.f32 %v8492_v28, %v3322_v51 }
 0x451   : > { %3654 = vrot.lane.b32.xlu1 %v3516_v4, %s5425_s27  ;;  %v4247_v63 = vmax.f32 %v4183_v6, 0.0  ;;  %v4030_v54 = vadd.f32 %v3873_v9, %v3774_v61 }
 0x452   : > { %v4240_v34 = vmax.f32 %v4176_v58, 0.0 }
 0x453   : > { %v3875_v53 = vpop.permute.xlu1 %3874  ;;  %4390 = vst [vmem:[#allocation1 + $0x23] ss:$4 sm:$0xff] %v4247_v63  ;;  %v4104_v7 = vmul.f32 %v7849_v57, %v4030_v54  ;;  %v10157_v63 = vld [vmem:[#allocation143_spill] sm:$0xff]  ;;  %v10158_v54 = vld [vmem:[#allocation185_spill] sm:$0xff] }
 0x454   : > { %4383 = vst [vmem:[#allocation1] ss:$4 sm:$0xff] %v4240_v34  ;;  %v4031_v40 = vadd.f32 %v3875_v53, %v3775_v33  ;;  %v1573_v53 = vadd.f32 %v10158_v54, %v10157_v63  ;;  %v10171_v54 = vld [vmem:[#allocation253_spill] sm:$0xff] }
 0x455   : > { %v4178_v31 = vadd.f32 %v7885_v16, %v4104_v7  ;;  %3902 = vrot.lane.b32.xlu2 %v8517_v15, %s5424_s26 }
 0x456   : > { %v4105_v37 = vmul.f32 %v7983_v27, %v4031_v40  ;;  %3658 = vrot.lane.b32.xlu0 %v3522_v0, %s5425_s27  ;;  %v1829_v51 = vadd.f32 %v10159_v42, %v1573_v53  ;;  %v10164_v0 = vld [vmem:[#allocation69_spill] sm:$0xff]  ;;  %v10175_v42 = vld [vmem:[#allocation80_spill] sm:$0xff] }
 0x457   : > { %v4242_v3 = vmax.f32 %v4178_v31, 0.0  ;;  %v8649_v52 = vpop.permute.xlu2 %3628  ;;  %v10163_v31 = vld [vmem:[#allocation16_spill] sm:$0xff] }
 0x458   : > { %v4179_v17 = vadd.f32 %v7991_v18, %v4105_v37  ;;  %v3879_v1 = vpop.permute.xlu0 %3878  ;;  %v10161_v37 = vld [vmem:[#allocation268_spill] sm:$0xff]  ;;  %v2221_v56 = vadd.f32 %v10162_v20, %v1829_v51  ;;  %v10176_v51 = vld [vmem:[#allocation149_spill] sm:$0xff] }
 0x459   : > { %3900 = vrot.lane.b32.xlu1 %v8512_v55, %s5424_s26  ;;  %4385 = vst [vmem:[#allocation1 + $0x2] ss:$4 sm:$0xff] %v4242_v3  ;;  %v4033_v43 = vadd.f32 %v3879_v1, %v3777_v41  ;;  %v10166_v1 = vld [vmem:[#allocation285_spill] sm:$0xff]  ;;  %v1579_v20 = vadd.f32 %v10176_v51, %v10175_v42  ;;  %v10180_v51 = vld [vmem:[#allocation250_spill] sm:$0xff] }
 0x45a   : > { %v4243_v50 = vmax.f32 %v4179_v17, 0.0  ;;  %v10165_v17 = vld [vmem:[#allocation140_spill] sm:$0xff] }
 0x45b   : > { %v3881_v12 = vpop.permute.xlu1 %3880  ;;  %v4107_v58 = vmul.f32 %v7916_v39, %v4033_v43  ;;  %v1576_v41 = vadd.f32 %v10165_v17, %v10164_v0  ;;  %v10178_v17 = vld [vmem:[#allocation288_spill] sm:$0xff] }
 0x45c   : > { %4386 = vst [vmem:[#allocation1 + $0x3] ss:$4 sm:$0xff] %v4243_v50  ;;  %v4034_v13 = vadd.f32 %v3881_v12, %v3778_v32  ;;  %v2677_v32 = vadd.f32 %v10166_v1, %v2221_v56  ;;  %v10167_v12 = vld [vmem:[#allocation230_spill] sm:$0xff] }
 0x45d   : > { %v4181_v29 = vadd.f32 %v7925_v46, %v4107_v58  ;;  %3908 = vrot.lane.b32.xlu2 %v8571_v23, %s5424_s26  ;;  %v10177_v56 = vld [vmem:[#allocation202_spill] sm:$0xff] }
 0x45e   : > { %v4108_v4 = vmul.f32 %v7849_v57, %v4034_v13  ;;  %3904 = vrot.lane.b32.xlu0 %v8525_v24, %s5424_s26  ;;  %v1832_v13 = vadd.f32 %v10167_v12, %v1576_v41  ;;  %v10194_v24 = vld [vmem:[#allocation151_spill] sm:$0xff] }
 0x45f   : > { %v4245_v28 = vmax.f32 %v4181_v29, 0.0  ;;  %v8664_v59 = vpop.permute.xlu2 %3634  ;;  %v9418_v29 = vrot.slane %v8580_v26, 6 }
 0x460   : > { %v4182_v61 = vadd.f32 %v7885_v16, %v4108_v4  ;;  %v8662_v35 = vpop.permute.xlu0 %2780  ;;  %v8692_v4 = vpop.f32.mrf.mxu2  ;;  %v2224_v53 = vadd.f32 %v10171_v54, %v1832_v13 }
 0x461   : > { %3906 = vrot.lane.b32.xlu1 %v8545_v30, %s5424_s26  ;;  %4388 = vst [vmem:[#allocation1 + $0x21] ss:$4 sm:$0xff] %v4245_v28  ;;  %v8711_v12 = vrot.slane %v8692_v4, 4  ;;  %v8720_v54 = vrot.slane %v8692_v4, 2 }
 0x462   : > { %v4246_v6 = vmax.f32 %v4182_v61, 0.0  ;;  %v10168_v61 = vld [vmem:[#allocation137_spill] sm:$0xff]  ;;  %v2680_v41 = vadd.f32 %v10178_v17, %v2224_v53 }
 0x463   : > { %v2783_v34 = vpop.permute.xlu1 %2782  ;;  %v4391_v44 = vld.sshfl [vmem:[#allocation1] sm:$0xff pattern:$0x73625140]  ;;  %v10169_v28 = vrot.slane %v10168_v61, 2 }
 0x464   : > { %4389 = vst [vmem:[#allocation1 + $0x22] ss:$4 sm:$0xff] %v4246_v6  ;;  %v2933_v58 = vadd.f32 %v2783_v34, %v2677_v32  ;;  %v10170_v6 = vld [vmem:[#allocation198_spill] sm:$0xff] }
 0x465   : > { %3914 = vrot.lane.b32.xlu2 %v3228_v47, %s5424_s26  ;;  %v10160_v47 = vld [vmem:[#allocation14_spill] sm:$0xff]  ;;  %v1572_v63 = vadd.f32 %v10170_v6, %v10169_v28  ;;  %v5214_v28 = vrot.slane %v9418_v29, 9 }
 0x466   : > { %3910 = vrot.lane.b32.xlu0 %v8580_v26, %s5424_s26  ;;  %v3325_v34 = vadd.f32 %v8324_v19, %v2933_v58  ;;  %v3525_v19 = vrot.slane %v8692_v4, 7  ;;  %v10179_v58 = vld [vmem:[#allocation236_spill] sm:$0xff] }
 0x467   : > { %v8673_v33 = vpop.permute.xlu2 %3640  ;;  %v1828_v0 = vadd.f32 %v10177_v56, %v1572_v63  ;;  %v1835_v6 = vadd.f32 %v10179_v58, %v1579_v20  ;;  %v10181_v56 = vrot.slane %v10180_v51, 2  ;;  %v3531_v20 = vrot.slane %v8711_v12, 7  ;;  %v10184_v58 = vld [vmem:[#allocation146_spill] sm:$0xff] }
 0x468   : > { %v8671_v9 = vpop.permute.xlu0 %2786  ;;  %v3526_v29 = vsel %vm5875_vm9, %v5214_v28, %v3525_v19  ;;  %v8742_v28 = vrot.slane %v8692_v4, 6  ;;  %v3527_v15 = vrot.slane %v3525_v19, 2  ;;  %v10200_v19 = vld [vmem:[#allocation44_spill] sm:$0xff] }
 0x469   : > { %3912 = vrot.lane.b32.xlu1 %v8598_v5, %s5424_s26  ;;  %v2220_v17 = vadd.f32 %v10181_v56, %v1828_v0  ;;  %v10188_v0 = vld [vmem:[#allocation273_spill] sm:$0xff]  ;;  %v10191_v56 = vld [vmem:[#allocation226_spill] sm:$0xff] }
 0x46a   : > { %v10197_v5 = vld [vmem:[#allocation233_spill] sm:$0xff] }
 0x46b   : > { %v2789_v21 = vpop.permute.xlu1 %2788  ;;  %v4392_v40 = vld.sshfl [vmem:[#allocation1 + $0x20] sm:$0xff pattern:$0x73625140] }
 0x46c   : > { %v4443_v7 = vpack.c.bf16 %v4392_v40, %v4391_v44  ;;  %v10172_v44 = vld [vmem:[#allocation267_spill] sm:$0xff]  ;;  %v10173_v40 = vld [vmem:[#allocation18_spill] sm:$0xff]  ;;  %v2936_v63 = vadd.f32 %v2789_v21, %v2680_v41  ;;  %v10187_v41 = vld [vmem:[#allocation252_spill] sm:$0xff] }
 0x46d   : > { %2816 = vrot.lane.b32.xlu2 %v10161_v37, %s5424_s26  ;;  %v8727_v37 = vpop.f32.mrf.mxu2  ;;  %v10186_v21 = vld [vmem:[#allocation283_spill] sm:$0xff] }
 0x46e   : > { %5219 = vmatmul.msk.bf16.gmra.mxu0 %vm4448_vm11, %v4443_v7  ;;  %2812 = vrot.lane.b32.xlu0 %v10160_v47, %s5424_s26  ;;  %v10174_v7 = vld [vmem:[#allocation269_spill] sm:$0xff] }
 0x46f   : > { %v3887_v50 = vpop.permute.xlu2 %3886 }
 0x470   : > { %v8688_v3 = vpop.permute.xlu0 %2792 }
 0x471   : > { %2814 = vrot.lane.b32.xlu1 %v10163_v31, %s5424_s26  ;;  %v10183_v31 = vld [vmem:[#allocation153_spill] sm:$0xff] }
 0x473   : > { %v2795_v43 = vpop.permute.xlu1 %2794 }
 0x475   : > { %2822 = vrot.lane.b32.xlu2 %v10173_v40, %s5424_s26  ;;  %v10182_v40 = vld [vmem:[#allocation66_spill] sm:$0xff] }
 0x476   : > { %2818 = vrot.lane.b32.xlu0 %v10172_v44, %s5424_s26  ;;  %v10185_v44 = vld [vmem:[#allocation196_spill] sm:$0xff] }
 0x477   : > { %v3893_v32 = vpop.permute.xlu2 %3892  ;;  %v1574_v47 = vadd.f32 %v10185_v44, %v10184_v58  ;;  %v10190_v44 = vrot.slane %v10174_v7, 6  ;;  %v10192_v58 = vld [vmem:[#allocation36_spill] sm:$0xff] }
 0x478   : > { %v3631_v1 = vpop.permute.xlu0 %3630 }
 0x479   : > { %2820 = vrot.lane.b32.xlu1 %v10174_v7, %s5424_s26  ;;  %v3781_v13 = vadd.f32 %v3631_v1, %v3325_v34  ;;  %v1575_v34 = vadd.f32 %v10183_v31, %v10182_v40  ;;  %v3528_v31 = vrot.slane %v8720_v54, 7  ;;  %v10189_v40 = vld [vmem:[#allocation208_spill] sm:$0xff]  ;;  %v3533_v7 = vrot.slane %v3531_v20, 2 }
 0x47b   : > { %v8713_v61 = vpop.permute.xlu1 %3632  ;;  %v4037_v53 = vadd.f32 %v3887_v50, %v3781_v13  ;;  %v2676_v50 = vadd.f32 %v10186_v21, %v2220_v17  ;;  %v2227_v13 = vadd.f32 %v10187_v41, %v1835_v6  ;;  %v3328_v6 = vadd.f32 %v8345_v62, %v2936_v63 }
 0x47c   : > { %v1830_v17 = vadd.f32 %v10191_v56, %v1574_v47  ;;  %v3530_v63 = vrot.slane %v3528_v31, 2  ;;  %v10195_v47 = vld [vmem:[#allocation72_spill] sm:$0xff]  ;;  %v10196_v56 = vld [vmem:[#allocation162_spill] sm:$0xff]  ;;  %v10201_v41 = vrot.slane %v10200_v19, 2 }
 0x47d   : > { %v4111_v1 = vmul.f32 %v7916_v39, %v4037_v53  ;;  %3660 = vrot.lane.b32.xlu2 %v3526_v29, %s5425_s27  ;;  %v1831_v53 = vadd.f32 %v10189_v40, %v1575_v34  ;;  %v2683_v21 = vadd.f32 %v10192_v58, %v2227_v13  ;;  %v2932_v29 = vadd.f32 %v8662_v35, %v2676_v50 }
 0x47e   : > { %2824 = vrot.lane.b32.xlu0 %v10188_v0, %s5424_s26  ;;  %v8753_v0 = vrot.slane %v8727_v37, 2  ;;  %v1578_v13 = vadd.f32 %v10196_v56, %v10195_v47  ;;  %v3534_v50 = vrot.slane %v8742_v28, 7 }
 0x47f   : > { %v4185_v51 = vadd.f32 %v7925_v46, %v4111_v1  ;;  %v3899_v40 = vpop.permute.xlu2 %3898  ;;  %v2939_v58 = vadd.f32 %v2795_v43, %v2683_v21  ;;  %v3324_v55 = vadd.f32 %v10201_v41, %v2932_v29  ;;  %v10202_v43 = vld [vmem:[#allocation275_spill] sm:$0xff]  ;;  %v3532_v41 = vsel %vm5875_vm9, %v3530_v63, %v3531_v20 }
 0x480   : > { %v3637_v34 = vpop.permute.xlu0 %3636 }
 0x481   : > { %2826 = vrot.lane.b32.xlu1 %v10190_v44, %s5424_s26  ;;  %v4249_v23 = vmax.f32 %v4185_v51, 0.0  ;;  %v3784_v26 = vadd.f32 %v3637_v34, %v3328_v6  ;;  %v10193_v44 = vld [vmem:[#allocation70_spill] sm:$0xff]  ;;  %v10198_v51 = vld [vmem:[#allocation5_spill] sm:$0xff]  ;;  %v3780_v20 = vadd.f32 %v8649_v52, %v3324_v55 }
 0x482   : > { %v1577_v62 = vadd.f32 %v10194_v24, %v10193_v44  ;;  %v2222_v6 = vadd.f32 %v10198_v51, %v1830_v17  ;;  %v10199_v34 = vld [vmem:[#allocation6_spill] sm:$0xff]  ;;  %v3529_v44 = vsel %vm5875_vm9, %v3527_v15, %v3528_v31  ;;  %v10204_v17 = vld [vmem:[#allocation213_spill] sm:$0xff]  ;;  %v8782_v31 = vrot.slane %v8727_v37, 4 }
 0x483   : > { %v8755_v1 = vpop.permute.xlu1 %3638  ;;  %4394 = vst [vmem:[#allocation1 + $0x1] ss:$4 sm:$0xff] %v4249_v23  ;;  %v4040_v35 = vadd.f32 %v3893_v32, %v3784_v26  ;;  %v2223_v25 = vadd.f32 %v10199_v34, %v1831_v53  ;;  %v3535_v23 = vsel %vm5875_vm9, %v3533_v7, %v3534_v50  ;;  %v3540_v26 = vrot.slane %v8753_v0, 7  ;;  %v10205_v34 = vld [vmem:[#allocation251_spill] sm:$0xff] }
 0x484   : > { %v1833_v30 = vadd.f32 %v10197_v5, %v1577_v62  ;;  %v2678_v32 = vadd.f32 %v10202_v43, %v2222_v6  ;;  %v10203_v5 = vld [vmem:[#allocation286_spill] sm:$0xff]  ;;  %v3537_v53 = vrot.slane %v8727_v37, 7  ;;  %v1834_v15 = vadd.f32 %v10204_v17, %v1578_v13 }
 0x485   : > { %v4114_v24 = vmul.f32 %v8396_v48, %v4040_v35  ;;  %v2679_v21 = vadd.f32 %v10203_v5, %v2223_v25  ;;  %3666 = vrot.lane.b32.xlu2 %v3535_v23, %s5425_s27  ;;  %v3331_v25 = vadd.f32 %v8411_v8, %v2939_v58  ;;  %v3536_v51 = vrot.slane %v3534_v50, 2  ;;  %v10206_v23 = vld [vmem:[#allocation256_spill] sm:$0xff]  ;;  %v10207_v43 = vld [vmem:[#allocation278_spill] sm:$0xff] }
 0x486   : > { %3662 = vrot.lane.b32.xlu0 %v3529_v44, %s5425_s27  ;;  %v2934_v29 = vadd.f32 %v8605_v2, %v2678_v32  ;;  %v3542_v6 = vrot.slane %v3540_v26, 2  ;;  %v2225_v19 = vadd.f32 %v10205_v34, %v1833_v30  ;;  %v3539_v44 = vrot.slane %v3537_v53, 2 }
 0x487   : > { %v4188_v7 = vadd.f32 %v8416_v22, %v4114_v24  ;;  %v2935_v62 = vadd.f32 %v8671_v9, %v2679_v21  ;;  %v8789_v56 = vpop.permute.xlu2 %2800  ;;  %v2226_v58 = vadd.f32 %v10206_v23, %v1834_v15  ;;  %v3543_v9 = vrot.slane %v8782_v31, 7 }
 0x488   : > { %v3643_v47 = vpop.permute.xlu0 %3642  ;;  %v2681_v32 = vadd.f32 %v10207_v43, %v2225_v19  ;;  %v3326_v55 = vadd.f32 %v8340_v60, %v2934_v29  ;;  %v3235_v50 = vrot.slane %v8727_v37, 6  ;;  %v3538_v21 = vsel %vm5875_vm9, %v3536_v51, %v3537_v53 }
 0x489   : > { %3664 = vrot.lane.b32.xlu1 %v3532_v41, %s5425_s27  ;;  %v4252_v63 = vmax.f32 %v4188_v7, 0.0  ;;  %v3787_v13 = vadd.f32 %v3643_v47, %v3331_v25  ;;  %v3327_v5 = vadd.f32 %v8342_v11, %v2935_v62  ;;  %v10208_v41 = vld [vmem:[#allocation34_spill] sm:$0xff]  ;;  %v3541_v60 = vsel %vm5875_vm9, %v3539_v44, %v3540_v26 }
 0x48a   : > { %v2682_v17 = vadd.f32 %v10208_v41, %v2226_v58  ;;  %v3782_v11 = vadd.f32 %v8713_v61, %v3326_v55  ;;  %v2937_v53 = vadd.f32 %v8632_v10, %v2681_v32  ;;  %v3545_v26 = vrot.slane %v3543_v9, 2 }
 0x48b   : > { %v3885_v35 = vpop.permute.xlu1 %3884  ;;  %4397 = vst [vmem:[#allocation1 + $0x20] ss:$4 sm:$0xff] %v4252_v63  ;;  %v4043_v2 = vadd.f32 %v3899_v40, %v3787_v13  ;;  %v3544_v40 = vsel %vm5875_vm9, %v3542_v6, %v3543_v9  ;;  %v3783_v47 = vadd.f32 %v8664_v59, %v3327_v5 }
 0x48c   : > { %v4036_v24 = vadd.f32 %v3885_v35, %v3780_v20  ;;  %v2938_v7 = vadd.f32 %v8688_v3, %v2682_v17  ;;  %v3546_v35 = vrot.slane %v3235_v50, 7  ;;  %v3329_v6 = vadd.f32 %v8382_v38, %v2937_v53  ;;  %v10209_v17 = vld [vmem:[#allocation87_spill] sm:$0xff] }
 0x48d   : > { %v4117_v30 = vmul.f32 %v7983_v27, %v4043_v2  ;;  %3672 = vrot.lane.b32.xlu2 %v3544_v40, %s5425_s27 }
 0x48e   : > { %v4110_v52 = vmul.f32 %v8396_v48, %v4036_v24  ;;  %3668 = vrot.lane.b32.xlu0 %v3538_v21, %s5425_s27  ;;  %v3330_v10 = vadd.f32 %v8365_v45, %v2938_v7  ;;  %v3547_v59 = vsel %vm5875_vm9, %v3545_v26, %v3546_v35  ;;  %v3785_v24 = vadd.f32 %v8755_v1, %v3329_v6  ;;  %v10214_v35 = vld [vmem:[#allocation37_spill] sm:$0xff] }
 0x48f   : > { %v4191_v48 = vadd.f32 %v7991_v18, %v4117_v30  ;;  %v8816_v62 = vpop.permute.xlu2 %2806 }
 0x490   : > { %v4184_v15 = vadd.f32 %v8416_v22, %v4110_v52  ;;  %v3889_v29 = vpop.permute.xlu0 %3888  ;;  %v3786_v36 = vadd.f32 %v8673_v33, %v3330_v10  ;;  %v10215_v10 = vld [vmem:[#allocation225_spill] sm:$0xff] }
 0x491   : > { %3670 = vrot.lane.b32.xlu1 %v3541_v60, %s5425_s27  ;;  %v4255_v20 = vmax.f32 %v4191_v48, 0.0  ;;  %v4038_v63 = vadd.f32 %v3889_v29, %v3782_v11 }
 0x492   : > { %v4248_v25 = vmax.f32 %v4184_v15, 0.0  ;;  %v10210_v15 = vld [vmem:[#allocation168_spill] sm:$0xff] }
 0x493   : > { %v3891_v13 = vpop.permute.xlu1 %3890  ;;  %4400 = vst [vmem:[#allocation1 + $0x23] ss:$4 sm:$0xff] %v4255_v20  ;;  %v4112_v51 = vmul.f32 %v7849_v57, %v4038_v63  ;;  %v1581_v60 = vadd.f32 %v10210_v15, %v10209_v17  ;;  %v10212_v63 = vld [vmem:[#allocation97_spill] sm:$0xff]  ;;  %v10224_v15 = vld [vmem:[#allocation252_spill] sm:$0xff] }
 0x494   : > { %4393 = vst [vmem:[#allocation1] ss:$4 sm:$0xff] %v4248_v25  ;;  %v4039_v61 = vadd.f32 %v3891_v13, %v3783_v47  ;;  %v10211_v25 = vld [vmem:[#allocation220_spill] sm:$0xff]  ;;  %v10213_v13 = vld [vmem:[#allocation174_spill] sm:$0xff] }
 0x495   : > { %v4186_v34 = vadd.f32 %v7885_v16, %v4112_v51  ;;  %3918 = vrot.lane.b32.xlu2 %v8720_v54, %s5424_s26  ;;  %v1837_v29 = vadd.f32 %v10211_v25, %v1581_v60  ;;  %v1584_v26 = vadd.f32 %v10213_v13, %v10212_v63  ;;  %v10225_v60 = vrot.slane %v10224_v15, 4  ;;  %v10229_v63 = vld [vmem:[#allocation91_spill] sm:$0xff]  ;;  %v10230_v13 = vld [vmem:[#allocation158_spill] sm:$0xff] }
 0x496   : > { %v4113_v3 = vmul.f32 %v7983_v27, %v4039_v61  ;;  %3674 = vrot.lane.b32.xlu0 %v3547_v59, %s5425_s27  ;;  %v10217_v59 = vld [vmem:[#allocation160_spill] sm:$0xff]  ;;  %v10239_v15 = vld [vmem:[#allocation107_spill] sm:$0xff]  ;;  %s5145_s27 = sshll.u32 %s10310_s13, 4 }
 0x497   : > { %v4250_v44 = vmax.f32 %v4186_v34, 0.0  ;;  %v8833_v23 = vpop.permute.xlu2 %3644  ;;  %v2229_v47 = vadd.f32 %v10105_v49, %v1837_v29  ;;  %v10216_v34 = vrot.slane %v10175_v42, 4  ;;  %v10228_v29 = vld [vmem:[#allocation281_spill] sm:$0xff]  ;;  %s432_s30 = sadd.s32 %s5146_s29, %s5145_s27 }
 0x498   : > { %v4187_v19 = vadd.f32 %v7991_v18, %v4113_v3  ;;  %v3895_v38 = vpop.permute.xlu0 %3894  ;;  %v1840_v3 = vadd.f32 %v10215_v10, %v1584_v26  ;;  %v1582_v26 = vadd.f32 %v10230_v13, %v10229_v63  ;;  %v10246_v13 = vld [vmem:[#allocation248_spill] sm:$0xff]  ;;  %s5147_s12 = sshll.u32 %s432_s30, 2 }
 0x499   : > { %3916 = vrot.lane.b32.xlu1 %v8692_v4, %s5424_s26  ;;  %4395 = vst [vmem:[#allocation1 + $0x2] ss:$4 sm:$0xff] %v4250_v44  ;;  %v4041_v58 = vadd.f32 %v3895_v38, %v3785_v24  ;;  %v2685_v61 = vadd.f32 %v10214_v35, %v2229_v47  ;;  %v10218_v44 = vld [vmem:[#allocation64_spill] sm:$0xff]  ;;  %v10231_v35 = vld [vmem:[#allocation13_spill] sm:$0xff]  ;;  %s9098_s11 = scalar_lea.vmem %s9169_s10, %s5147_s12 }
 0x49a   : > { %v4251_v45 = vmax.f32 %v4187_v19, 0.0  ;;  %v1580_v19 = vadd.f32 %v10217_v59, %v10216_v34  ;;  %v2232_v24 = vadd.f32 %v10116_v14, %v1840_v3  ;;  %v10232_v3 = vld [vmem:[#allocation62_spill] sm:$0xff] }
 0x49b   : > { %v3897_v2 = vpop.permute.xlu1 %3896  ;;  %v4115_v43 = vmul.f32 %v7916_v39, %v4041_v58 }
 0x49c   : > { %4396 = vst [vmem:[#allocation1 + $0x3] ss:$4 sm:$0xff] %v4251_v45  ;;  %v4042_v9 = vadd.f32 %v3897_v2, %v3786_v36  ;;  %v10219_v45 = vld [vmem:[#allocation238_spill] sm:$0xff]  ;;  %v10220_v2 = vld [vmem:[#allocation109_spill] sm:$0xff] }
 0x49d   : > { %v4189_v1 = vadd.f32 %v7925_v46, %v4115_v43  ;;  %3924 = vrot.lane.b32.xlu2 %v8727_v37, %s5424_s26  ;;  %v1836_v38 = vadd.f32 %v10219_v45, %v1580_v19 }
 0x49e   : > { %v4116_v32 = vmul.f32 %v7849_v57, %v4042_v9  ;;  %3920 = vrot.lane.b32.xlu0 %v8711_v12, %s5424_s26  ;;  %v10221_v9 = vld [vmem:[#allocation180_spill] sm:$0xff] }
 0x49f   : > { %v4253_v33 = vmax.f32 %v4189_v1, 0.0  ;;  %v8846_v30 = vpop.permute.xlu2 %3650  ;;  %v1587_v43 = vadd.f32 %v10221_v9, %v10220_v2  ;;  %v2228_v14 = vadd.f32 %v10225_v60, %v1836_v38  ;;  %v10240_v60 = vld [vmem:[#allocation172_spill] sm:$0xff] }
 0x4a0   : > { %v4190_v5 = vadd.f32 %v7885_v16, %v4116_v32  ;;  %v2797_v52 = vpop.permute.xlu0 %2796  ;;  %v10222_v32 = vld [vmem:[#allocation289_spill] sm:$0xff] }
 0x4a1   : > { %3922 = vrot.lane.b32.xlu1 %v8742_v28, %s5424_s26  ;;  %4398 = vst [vmem:[#allocation1 + $0x21] ss:$4 sm:$0xff] %v4253_v33  ;;  %v2688_v1 = vadd.f32 %v10222_v32, %v2232_v24  ;;  %v2684_v47 = vadd.f32 %v10228_v29, %v2228_v14  ;;  %v10234_v24 = vld [vmem:[#allocation240_spill] sm:$0xff]  ;;  %v10236_v32 = vld [vmem:[#allocation261_spill] sm:$0xff]  ;;  %v1586_v14 = vadd.f32 %v10240_v60, %v10239_v15 }
 0x4a2   : > { %v4254_v55 = vmax.f32 %v4190_v5, 0.0 }
 0x4a3   : > { %v2799_v21 = vpop.permute.xlu1 %2798  ;;  %v4401_v48 = vld.sshfl [vmem:[#allocation1] sm:$0xff pattern:$0x73625140]  ;;  %v2940_v34 = vadd.f32 %v2797_v52, %v2684_v47  ;;  %v10245_v47 = vld [vmem:[#allocation46_spill] sm:$0xff] }
 0x4a4   : > { %4399 = vst [vmem:[#allocation1 + $0x22] ss:$4 sm:$0xff] %v4254_v55  ;;  %v2941_v6 = vadd.f32 %v2799_v21, %v2685_v61  ;;  %v10223_v55 = vld [vmem:[#allocation231_spill] sm:$0xff]  ;;  %v8897_v52 = vld [vmem:[%s9162_s3] ss:$0 sm:$0xff] }
 0x4a5   : > { %3930 = vrot.lane.b32.xlu2 %v3235_v50, %s5424_s26  ;;  %v1843_v21 = vadd.f32 %v10223_v55, %v1587_v43 }
 0x4a6   : > { %3926 = vrot.lane.b32.xlu0 %v8753_v0, %s5424_s26  ;;  %v3333_v49 = vadd.f32 %v10218_v44, %v2941_v6  ;;  %v1838_v44 = vadd.f32 %v10234_v24, %v1582_v26  ;;  %v1842_v26 = vadd.f32 %v10246_v13, %v1586_v14 }
 0x4a7   : > { %v8853_v41 = vpop.permute.xlu2 %3656  ;;  %v2235_v61 = vadd.f32 %v10231_v35, %v1843_v21  ;;  %v10238_v21 = vld [vmem:[#allocation258_spill] sm:$0xff] }
 0x4a8   : > { %v2803_v40 = vpop.permute.xlu0 %2802 }
 0x4a9   : > { %3928 = vrot.lane.b32.xlu1 %v8782_v31, %s5424_s26 }
 0x4ab   : > { %v2805_v11 = vpop.permute.xlu1 %2804  ;;  %v4402_v53 = vld.sshfl [vmem:[#allocation1 + $0x20] sm:$0xff pattern:$0x73625140] }
 0x4ac   : > { %v4444_v7 = vpack.c.bf16 %v4402_v53, %v4401_v48  ;;  %v2944_v42 = vadd.f32 %v2805_v11, %v2688_v1  ;;  %v10226_v53 = vld [vmem:[#allocation94_spill] sm:$0xff] }
 0x4ae   : > { %5220 = vmatmul.msk.bf16.vlgmr.msra.gmra.mxu3 %vm4448_vm11, %v4444_v7  ;;  %v10227_v7 = vld [vmem:[#allocation166_spill] sm:$0xff]  ;;  %v3336_v11 = vadd.f32 %v10232_v3, %v2944_v42  ;;  %v2230_v42 = vadd.f32 %v10238_v21, %v1838_v44  ;;  %v10253_v21 = vld [vmem:[#allocation292_spill] sm:$0xff] }
 0x4af   : > { %v3903_v20 = vpop.permute.xlu2 %3902  ;;  %v1583_v25 = vadd.f32 %v10227_v7, %v10226_v53  ;;  %v10243_v53 = vld [vmem:[#allocation164_spill] sm:$0xff] }
 0x4b0   : > { %v8860_v50 = vpop.permute.xlu0 %2808 }
 0x4b3   : > { %v2811_v51 = vpop.permute.xlu1 %2810 }
 0x4b7   : > { %v3909_v58 = vpop.permute.xlu2 %3908 }
 0x4b8   : > { %v3647_v36 = vpop.permute.xlu0 %3646 }
 0x4b9   : > { %v3789_v5 = vadd.f32 %v3647_v36, %v3333_v49  ;;  %v10235_v49 = vld [vmem:[#allocation295_spill] sm:$0xff] }
 0x4ba   : > { %v2691_v45 = vadd.f32 %v10235_v49, %v2235_v61  ;;  %v10248_v49 = vld [vmem:[#allocation263_spill] sm:$0xff] }
 0x4bb   : > { %v3649_v33 = vpop.permute.xlu1 %3648  ;;  %v4045_v17 = vadd.f32 %v3903_v20, %v3789_v5  ;;  %v10233_v20 = vld [vmem:[#allocation244_spill] sm:$0xff]  ;;  %v10237_v5 = vrot.slane %v8411_v8, 4 }
 0x4bc   : > { %v1839_v6 = vadd.f32 %v10233_v20, %v1583_v25  ;;  %v2947_v9 = vadd.f32 %v2811_v51, %v2691_v45  ;;  %v10241_v51 = vld [vmem:[#allocation284_spill] sm:$0xff]  ;;  %v10244_v25 = vld [vmem:[#allocation39_spill] sm:$0xff]  ;;  %v2234_v45 = vadd.f32 %v10248_v49, %v1842_v26  ;;  %v10255_v26 = vld [vmem:[#allocation41_spill] sm:$0xff] }
 0x4bd   : > { %v4119_v48 = vmul.f32 %v7916_v39, %v4045_v17  ;;  %v3332_v55 = vadd.f32 %v10237_v5, %v2940_v34  ;;  %v2686_v8 = vadd.f32 %v10244_v25, %v2230_v42  ;;  %v10252_v5 = vld [vmem:[#allocation287_spill] sm:$0xff] }
 0x4be   : > { %v2231_v1 = vadd.f32 %v10236_v32, %v1839_v6  ;;  %v3339_v63 = vadd.f32 %v10245_v47, %v2947_v9  ;;  %v10250_v9 = vld [vmem:[#allocation10_spill] sm:$0xff]  ;;  %v10251_v32 = vld [vmem:[#allocation71_spill] sm:$0xff] }
 0x4bf   : > { %v4193_v10 = vadd.f32 %v7925_v46, %v4119_v48  ;;  %v3915_v19 = vpop.permute.xlu2 %3914  ;;  %v3788_v3 = vadd.f32 %v8833_v23, %v3332_v55  ;;  %v2942_v6 = vadd.f32 %v8789_v56, %v2686_v8  ;;  %v2690_v56 = vadd.f32 %v10252_v5, %v2234_v45  ;;  %v8924_v55 = vld [vmem:[%s9163_s4] ss:$0 sm:$0xff] }
 0x4c0   : > { %v3653_v59 = vpop.permute.xlu0 %3652  ;;  %v2687_v48 = vadd.f32 %v10241_v51, %v2231_v1 }
 0x4c1   : > { %v4257_v38 = vmax.f32 %v4193_v10, 0.0  ;;  %v3792_v36 = vadd.f32 %v3653_v59, %v3336_v11  ;;  %v10247_v11 = vld [vmem:[#allocation247_spill] sm:$0xff]  ;;  %v3334_v23 = vadd.f32 %v10251_v32, %v2942_v6  ;;  %v2946_v14 = vadd.f32 %v8860_v50, %v2690_v56 }
 0x4c2   : > { %v2943_v35 = vadd.f32 %v2803_v40, %v2687_v48 }
 0x4c3   : > { %v3655_v2 = vpop.permute.xlu1 %3654  ;;  %4404 = vst [vmem:[#allocation1 + $0x1] ss:$4 sm:$0xff] %v4257_v38  ;;  %v4048_v43 = vadd.f32 %v3909_v58, %v3792_v36  ;;  %v10242_v58 = vld [vmem:[#allocation106_spill] sm:$0xff]  ;;  %v10249_v38 = vld [vmem:[#allocation59_spill] sm:$0xff] }
 0x4c4   : > { %v1585_v7 = vadd.f32 %v10243_v53, %v10242_v58  ;;  %v3335_v36 = vadd.f32 %v10249_v38, %v2943_v35 }
 0x4c5   : > { %v4122_v17 = vmul.f32 %v8897_v52, %v4048_v43 }
 0x4c6   : > { %v1841_v20 = vadd.f32 %v10247_v11, %v1585_v7  ;;  %v3791_v53 = vadd.f32 %v8846_v30, %v3335_v36 }
 0x4c7   : > { %v4196_v29 = vadd.f32 %v8416_v22, %v4122_v17  ;;  %v8909_v10 = vpop.permute.xlu2 %2816  ;;  %v3790_v17 = vadd.f32 %v3649_v33, %v3334_v23  ;;  %v10256_v23 = vld [vmem:[#allocation118_spill] sm:$0xff] }
 0x4c8   : > { %v3659_v61 = vpop.permute.xlu0 %3658  ;;  %v2233_v43 = vadd.f32 %v10250_v9, %v1841_v20 }
 0x4c9   : > { %v4260_v34 = vmax.f32 %v4196_v29, 0.0  ;;  %v3795_v59 = vadd.f32 %v3659_v61, %v3339_v63  ;;  %v10254_v63 = vld [vmem:[#allocation90_spill] sm:$0xff] }
 0x4ca   : > { %v2689_v42 = vadd.f32 %v10253_v21, %v2233_v43  ;;  %v3338_v13 = vadd.f32 %v10254_v63, %v2946_v14 }
 0x4cb   : > { %v3901_v24 = vpop.permute.xlu1 %3900  ;;  %4407 = vst [vmem:[#allocation1 + $0x20] ss:$4 sm:$0xff] %v4260_v34  ;;  %v4051_v22 = vadd.f32 %v3915_v19, %v3795_v59 }
 0x4cc   : > { %v4044_v44 = vadd.f32 %v3901_v24, %v3788_v3  ;;  %v2945_v7 = vadd.f32 %v8816_v62, %v2689_v42  ;;  %v3794_v34 = vadd.f32 %v8853_v41, %v3338_v13  ;;  %v10263_v13 = vld [vmem:[#allocation9_spill] sm:$0xff] }
 0x4cd   : > { %v4125_v1 = vmul.f32 %v7983_v27, %v4051_v22 }
 0x4ce   : > { %v4118_v40 = vmul.f32 %v8897_v52, %v4044_v44  ;;  %v3337_v35 = vadd.f32 %v10255_v26, %v2945_v7  ;;  %v10260_v7 = vld [vmem:[#allocation130_spill] sm:$0xff] }
 0x4cf   : > { %v4199_v60 = vadd.f32 %v7991_v18, %v4125_v1  ;;  %v8930_v58 = vpop.permute.xlu2 %2822  ;;  %v10257_v1 = vld [vmem:[#allocation179_spill] sm:$0xff] }
 0x4d0   : > { %v4192_v19 = vadd.f32 %v8924_v55, %v4118_v40  ;;  %v3905_v48 = vpop.permute.xlu0 %3904  ;;  %v3793_v3 = vadd.f32 %v3655_v2, %v3337_v35  ;;  %v1589_v5 = vadd.f32 %v10257_v1, %v10256_v23  ;;  %v10264_v35 = vrot.slane %v10239_v15, 6 }
 0x4d1   : > { %v4263_v25 = vmax.f32 %v4199_v60, 0.0  ;;  %v4046_v8 = vadd.f32 %v3905_v48, %v3790_v17  ;;  %v10258_v17 = vld [vmem:[#allocation4_spill] sm:$0xff] }
 0x4d2   : > { %v4256_v51 = vmax.f32 %v4192_v19, 0.0  ;;  %v1845_v60 = vadd.f32 %v10258_v17, %v1589_v5  ;;  %v10272_v5 = vrot.slane %v10248_v49, 6 }
 0x4d3   : > { %v3907_v29 = vpop.permute.xlu1 %3906  ;;  %4410 = vst [vmem:[#allocation1 + $0x23] ss:$4 sm:$0xff] %v4263_v25  ;;  %v4120_v33 = vmul.f32 %v7849_v57, %v4046_v8  ;;  %v10261_v25 = vld [vmem:[#allocation184_spill] sm:$0xff] }
 0x4d4   : > { %4403 = vst [vmem:[#allocation1] ss:$4 sm:$0xff] %v4256_v51  ;;  %v4047_v47 = vadd.f32 %v3907_v29, %v3791_v53  ;;  %v10259_v51 = vld [vmem:[#allocation14_spill] sm:$0xff]  ;;  %v1592_v8 = vadd.f32 %v10261_v25, %v10260_v7  ;;  %v10262_v29 = vld [vmem:[#allocation35_spill] sm:$0xff] }
 0x4d5   : > { %v4194_v61 = vadd.f32 %v7885_v16, %v4120_v33  ;;  %v2237_v48 = vadd.f32 %v10259_v51, %v1845_v60  ;;  %v10275_v60 = vld [vmem:[#allocation296_spill] sm:$0xff]  ;;  %v10277_v7 = vld [vmem:[#allocation186_spill] sm:$0xff] }
 0x4d6   : > { %v4121_v50 = vmul.f32 %v7983_v27, %v4047_v47 }
 0x4d7   : > { %v4258_v62 = vmax.f32 %v4194_v61, 0.0  ;;  %v8940_v6 = vpop.permute.xlu2 %3660  ;;  %v2693_v47 = vadd.f32 %v10262_v29, %v2237_v48  ;;  %v10265_v61 = vld [vmem:[#allocation170_spill] sm:$0xff]  ;;  %v10276_v48 = vld [vmem:[#allocation119_spill] sm:$0xff] }
 0x4d8   : > { %v4195_v30 = vadd.f32 %v7991_v18, %v4121_v50  ;;  %v3911_v20 = vpop.permute.xlu0 %3910  ;;  %v1848_v50 = vadd.f32 %v10263_v13, %v1592_v8  ;;  %v1590_v25 = vadd.f32 %v10277_v7, %v10276_v48  ;;  %v10278_v8 = vld [vmem:[#allocation273_spill] sm:$0xff]  ;;  %v10279_v13 = vld [vmem:[#allocation8_spill] sm:$0xff] }
 0x4d9   : > { %4405 = vst [vmem:[#allocation1 + $0x2] ss:$4 sm:$0xff] %v4258_v62  ;;  %v4049_v59 = vadd.f32 %v3911_v20, %v3793_v3  ;;  %v10266_v62 = vld [vmem:[#allocation267_spill] sm:$0xff] }
 0x4da   : > { %v4259_v11 = vmax.f32 %v4195_v30, 0.0  ;;  %v1588_v30 = vadd.f32 %v10265_v61, %v10264_v35  ;;  %v10280_v61 = vld [vmem:[#allocation237_spill] sm:$0xff] }
 0x4db   : > { %v3913_v24 = vpop.permute.xlu1 %3912  ;;  %v4123_v22 = vmul.f32 %v7916_v39, %v4049_v59 }
 0x4dc   : > { %4406 = vst [vmem:[#allocation1 + $0x3] ss:$4 sm:$0xff] %v4259_v11  ;;  %v4050_v44 = vadd.f32 %v3913_v24, %v3794_v34  ;;  %v2240_v11 = vadd.f32 %v10266_v62, %v1848_v50  ;;  %v10267_v34 = vld [vmem:[#allocation3_spill] sm:$0xff] }
 0x4dd   : > { %v4197_v38 = vadd.f32 %v7925_v46, %v4123_v22  ;;  %v1844_v59 = vadd.f32 %v10267_v34, %v1588_v30  ;;  %v10269_v22 = vld [vmem:[#allocation191_spill] sm:$0xff]  ;;  %v1846_v30 = vadd.f32 %v10280_v61, %v1590_v25  ;;  %v10293_v61 = vld [vmem:[#allocation18_spill] sm:$0xff] }
 0x4de   : > { %v4124_v45 = vmul.f32 %v7849_v57, %v4050_v44  ;;  %v10268_v44 = vld [vmem:[#allocation141_spill] sm:$0xff] }
 0x4df   : > { %v4261_v36 = vmax.f32 %v4197_v38, 0.0  ;;  %v8947_v41 = vpop.permute.xlu2 %3666  ;;  %v10270_v38 = vld [vmem:[#allocation38_spill] sm:$0xff] }
 0x4e0   : > { %v4198_v2 = vadd.f32 %v7885_v16, %v4124_v45  ;;  %v2813_v9 = vpop.permute.xlu0 %2812  ;;  %v1595_v45 = vadd.f32 %v10269_v22, %v10268_v44 }
 0x4e1   : > { %4408 = vst [vmem:[#allocation1 + $0x21] ss:$4 sm:$0xff] %v4261_v36 }
 0x4e2   : > { %v4262_v40 = vmax.f32 %v4198_v2, 0.0  ;;  %v2696_v2 = vadd.f32 %v10270_v38, %v2240_v11  ;;  %v10284_v38 = vld [vmem:[#allocation16_spill] sm:$0xff] }
 0x4e3   : > { %v2815_v43 = vpop.permute.xlu1 %2814  ;;  %v4411_v19 = vld.sshfl [vmem:[#allocation1] sm:$0xff pattern:$0x73625140] }
 0x4e4   : > { %4409 = vst [vmem:[#allocation1 + $0x22] ss:$4 sm:$0xff] %v4262_v40  ;;  %v2949_v26 = vadd.f32 %v2815_v43, %v2693_v47  ;;  %v10271_v43 = vld [vmem:[#allocation257_spill] sm:$0xff] }
 0x4e5   : > { %v1851_v23 = vadd.f32 %v10271_v43, %v1595_v45  ;;  %v10285_v43 = vld [vmem:[#allocation138_spill] sm:$0xff] }
 0x4e6   : > { %v3341_v20 = vadd.f32 %v8692_v4, %v2949_v26  ;;  %v10273_v4 = vld [vmem:[#allocation128_spill] sm:$0xff] }
 0x4e7   : > { %v8952_v14 = vpop.permute.xlu2 %3672  ;;  %v2243_v29 = vadd.f32 %v10278_v8, %v1851_v23  ;;  %v10286_v23 = vld [vmem:[#allocation182_spill] sm:$0xff]  ;;  %v10292_v8 = vld [vmem:[#allocation241_spill] sm:$0xff] }
 0x4e8   : > { %v2819_v32 = vpop.permute.xlu0 %2818 }
 0x4eb   : > { %v2821_v56 = vpop.permute.xlu1 %2820  ;;  %v4412_v21 = vld.sshfl [vmem:[#allocation1 + $0x20] sm:$0xff pattern:$0x73625140] }
 0x4ec   : > { %v4445_v42 = vpack.c.bf16 %v4412_v21, %v4411_v19  ;;  %v2952_v15 = vadd.f32 %v2821_v56, %v2696_v2  ;;  %v2236_v19 = vadd.f32 %v10272_v5, %v1844_v59  ;;  %v5261_v59 = vld [vmem:[%s9167_s8 + $0x8] sm:$0xff]  ;;  %v2238_v2 = vadd.f32 %v10284_v38, %v1846_v30 }
 0x4ed   : > { %4641 = vmatpush.bf16.msrb.mxu3 %v5261_v59 }
 0x4ee   : > { %5221 = vmatmul.msk.bf16.gmra.mxu3 %vm4448_vm11, %v4445_v42  ;;  %v10274_v42 = vld [vmem:[#allocation176_spill] sm:$0xff]  ;;  %v2692_v51 = vadd.f32 %v10275_v60, %v2236_v19  ;;  %v3344_v56 = vadd.f32 %v8742_v28, %v2952_v15  ;;  %v1594_v15 = vadd.f32 %v10286_v23, %v10285_v43  ;;  %v10288_v19 = vld [vmem:[#allocation131_spill] sm:$0xff]  ;;  %v10291_v60 = vld [vmem:[#allocation254_spill] sm:$0xff] }
 0x4ef   : > { %v3919_v3 = vpop.permute.xlu2 %3918  ;;  %v1591_v17 = vadd.f32 %v10274_v42, %v10273_v4  ;;  %v10282_v28 = vld [vmem:[#allocation268_spill] sm:$0xff]  ;;  %v10290_v4 = vld [vmem:[#allocation297_spill] sm:$0xff] }
 0x4f0   : > { %v8956_v53 = vpop.permute.xlu0 %2824  ;;  %v2948_v49 = vadd.f32 %v2813_v9, %v2692_v51  ;;  %v10283_v9 = vrot.slane %v10254_v63, 6  ;;  %v2694_v42 = vadd.f32 %v10290_v4, %v2238_v2  ;;  %v1850_v51 = vadd.f32 %v10291_v60, %v1594_v15 }
 0x4f1   : > { %v1847_v50 = vadd.f32 %v10279_v13, %v1591_v17 }
 0x4f2   : > { %v3340_v45 = vadd.f32 %v10283_v9, %v2948_v49  ;;  %v2242_v30 = vadd.f32 %v10293_v61, %v1850_v51 }
 0x4f3   : > { %v2827_v33 = vpop.permute.xlu1 %2826  ;;  %v2239_v22 = vadd.f32 %v10282_v28, %v1847_v50 }
 0x4f4   : > { %v3796_v25 = vadd.f32 %v8940_v6, %v3340_v45 }
 0x4f7   : > { %v3925_v26 = vpop.permute.xlu2 %3924 }
 0x4f8   : > { %v3663_v24 = vpop.permute.xlu0 %3662 }
 0x4f9   : > { %v3797_v36 = vadd.f32 %v3663_v24, %v3341_v20 }
 0x4fb   : > { %v3665_v40 = vpop.permute.xlu1 %3664  ;;  %v4053_v1 = vadd.f32 %v3919_v3, %v3797_v36  ;;  %v10281_v3 = vld [vmem:[#allocation290_spill] sm:$0xff] }
 0x4fc   : > { %v2699_v62 = vadd.f32 %v10281_v3, %v2243_v29  ;;  %v10294_v3 = vld [vmem:[#allocation269_spill] sm:$0xff] }
 0x4fd   : > { %v4127_v21 = vmul.f32 %v7916_v39, %v4053_v1  ;;  %v10287_v1 = vld [vmem:[#allocation298_spill] sm:$0xff] }
 0x4fe   : > { %v2955_v24 = vadd.f32 %v2827_v33, %v2699_v62  ;;  %v2695_v5 = vadd.f32 %v10287_v1, %v2239_v22 }
 0x4ff   : > { %v4201_v47 = vadd.f32 %v7925_v46, %v4127_v21  ;;  %v10289_v21 = vld [vmem:[#allocation194_spill] sm:$0xff]  ;;  %v3931_v49 = vpop.permute.xlu2 %3930 }
 0x500   : > { %v3669_v35 = vpop.permute.xlu0 %3668  ;;  %v1593_v33 = vadd.f32 %v10289_v21, %v10288_v19  ;;  %v3347_v63 = vadd.f32 %v8782_v31, %v2955_v24  ;;  %v2951_v48 = vadd.f32 %v2819_v32, %v2695_v5  ;;  %v10296_v24 = vld [vmem:[#allocation299_spill] sm:$0xff] }
 0x501   : > { %v4265_v11 = vmax.f32 %v4201_v47, 0.0  ;;  %v3800_v20 = vadd.f32 %v3669_v35, %v3344_v56  ;;  %v2950_v47 = vadd.f32 %v8909_v10, %v2694_v42  ;;  %v10295_v10 = vld [vmem:[#allocation301_spill] sm:$0xff] }
 0x502   : > { %v1849_v29 = vadd.f32 %v10292_v8, %v1593_v33  ;;  %v3343_v31 = vadd.f32 %v8711_v12, %v2951_v48  ;;  %v4486_v33 = vpop.f32.mrf.mxu0 }
 0x503   : > { %v3671_v34 = vpop.permute.xlu1 %3670  ;;  %4414 = vst [vmem:[#allocation1 + $0x1] ss:$4 sm:$0xff] %v4265_v11  ;;  %v4056_v44 = vadd.f32 %v3925_v26, %v3800_v20  ;;  %v3342_v6 = vadd.f32 %v8720_v54, %v2950_v47  ;;  %v2698_v20 = vadd.f32 %v10295_v10, %v2242_v30 }
 0x504   : > { %v2241_v62 = vadd.f32 %v10294_v3, %v1849_v29 }
 0x505   : > { %v4130_v36 = vmul.f32 %v8897_v52, %v4056_v44  ;;  %v3798_v28 = vadd.f32 %v3665_v40, %v3342_v6  ;;  %v2954_v9 = vadd.f32 %v8956_v53, %v2698_v20 }
 0x506   : > { %v2697_v44 = vadd.f32 %v10296_v24, %v2241_v62 }
 0x507   : > { %v4204_v17 = vadd.f32 %v8924_v55, %v4130_v36  ;;  %v3346_v40 = vadd.f32 %v8753_v0, %v2954_v9 }
 0x508   : > { %v3675_v7 = vpop.permute.xlu0 %3674  ;;  %v2953_v38 = vadd.f32 %v8930_v58, %v2697_v44 }
 0x509   : > { %v4268_v56 = vmax.f32 %v4204_v17, 0.0  ;;  %v3803_v13 = vadd.f32 %v3675_v7, %v3347_v63  ;;  %v3802_v21 = vadd.f32 %v8952_v14, %v3346_v40 }
 0x50a   : > { %v3345_v53 = vadd.f32 %v8727_v37, %v2953_v38  ;;  %v4488_v60 = vpop.f32.mrf.mxu0 }
 0x50b   : > { %v3917_v50 = vpop.permute.xlu1 %3916  ;;  %4417 = vst [vmem:[#allocation1 + $0x20] ss:$4 sm:$0xff] %v4268_v56  ;;  %v4059_v35 = vadd.f32 %v3931_v49, %v3803_v13 }
 0x50c   : > { %v4052_v26 = vadd.f32 %v3917_v50, %v3796_v25  ;;  %v3801_v1 = vadd.f32 %v3671_v34, %v3345_v53  ;;  %v9044_v25 = vld [vmem:[%s9166_s7] ss:$0 sm:$0xff] }
 0x50d   : > { %v4133_v11 = vmul.f32 %v7983_v27, %v4059_v35 }
 0x50e   : > { %v4126_v32 = vmul.f32 %v8897_v52, %v4052_v26  ;;  %v3799_v52 = vadd.f32 %v8947_v41, %v3343_v31 }
 0x50f   : > { %v4207_v22 = vadd.f32 %v7991_v18, %v4133_v11 }
 0x510   : > { %v4200_v59 = vadd.f32 %v8924_v55, %v4126_v32  ;;  %v3921_v45 = vpop.permute.xlu0 %3920 }
 0x511   : > { %v4271_v54 = vmax.f32 %v4207_v22, 0.0  ;;  %v4054_v2 = vadd.f32 %v3921_v45, %v3798_v28 }
 0x512   : > { %v4264_v12 = vmax.f32 %v4200_v59, 0.0 }
 0x513   : > { %v3923_v36 = vpop.permute.xlu1 %3922  ;;  %4420 = vst [vmem:[#allocation1 + $0x23] ss:$4 sm:$0xff] %v4271_v54  ;;  %v4128_v55 = vmul.f32 %v7849_v57, %v4054_v2 }
 0x514   : > { %4413 = vst [vmem:[#allocation1] ss:$4 sm:$0xff] %v4264_v12  ;;  %v4055_v43 = vadd.f32 %v3923_v36, %v3799_v52 }
 0x515   : > { %v4202_v15 = vadd.f32 %v7885_v16, %v4128_v55 }
 0x516   : > { %v4129_v23 = vmul.f32 %v7983_v27, %v4055_v43 }
 0x517   : > { %v4266_v58 = vmax.f32 %v4202_v15, 0.0 }
 0x518   : > { %v4203_v41 = vadd.f32 %v7991_v18, %v4129_v23  ;;  %v3927_v19 = vpop.permute.xlu0 %3926  ;;  %v5260_v18 = vld [vmem:[%s9167_s8] sm:$0xff] }
 0x519   : > { %4415 = vst [vmem:[#allocation1 + $0x2] ss:$4 sm:$0xff] %v4266_v58  ;;  %v4057_v4 = vadd.f32 %v3927_v19, %v3801_v1  ;;  %4642 = vmatpush.bf16.msrb.mxu3 %v5260_v18 }
 0x51a   : > { %v4267_v5 = vmax.f32 %v4203_v41, 0.0 }
 0x51b   : > { %v3929_v42 = vpop.permute.xlu1 %3928  ;;  %v4131_v27 = vmul.f32 %v7916_v39, %v4057_v4  ;;  %v4491_v39 = vpop.f32.mrf.mxu0 }
 0x51c   : > { %4416 = vst [vmem:[#allocation1 + $0x3] ss:$4 sm:$0xff] %v4267_v5  ;;  %v4058_v0 = vadd.f32 %v3929_v42, %v3802_v21 }
 0x51d   : > { %v4205_v34 = vadd.f32 %v7925_v46, %v4131_v27 }
 0x51e   : > { %v4132_v37 = vmul.f32 %v7849_v57, %v4058_v0  ;;  %v9036_v57 = vld [vmem:[%s9165_s6] ss:$0 sm:$0xff] }
 0x51f   : > { %v4269_v14 = vmax.f32 %v4205_v34, 0.0  ;;  %v4531_v46 = vmul.f32 %v9036_v57, %v4488_v60  ;;  %v4532_v35 = vmul.f32 %v9036_v57, %v4491_v39 }
 0x520   : > { %v4206_v17 = vadd.f32 %v7885_v16, %v4132_v37  ;;  %v4530_v16 = vmul.f32 %v9036_v57, %v4486_v33 }
 0x521   : > { %4418 = vst [vmem:[#allocation1 + $0x21] ss:$4 sm:$0xff] %v4269_v14  ;;  %v4551_v8 = vadd.f32 %v9044_v25, %v4531_v46  ;;  %v4552_v30 = vadd.f32 %v9044_v25, %v4532_v35 }
 0x522   : > { %v4270_v63 = vmax.f32 %v4206_v17, 0.0  ;;  %v4550_v29 = vadd.f32 %v9044_v25, %v4530_v16 }
 0x523   : > { %v4421_v51 = vld.sshfl [vmem:[#allocation1] sm:$0xff pattern:$0x73625140]  ;;  %v4493_v47 = vpop.f32.mrf.mxu0  ;;  %v4567_v56 = vmax.f32 %v4551_v8, 0.0  ;;  %v4568_v3 = vmax.f32 %v4552_v30, 0.0 }
 0x524   : > { %4419 = vst [vmem:[#allocation1 + $0x22] ss:$4 sm:$0xff] %v4270_v63  ;;  %v4566_v13 = vmax.f32 %v4550_v29, 0.0  ;;  %v4533_v26 = vmul.f32 %v9036_v57, %v4493_v47 }
 0x526   : > { %v4582_v50 = vpack.c.bf16 %v4567_v56, %v4566_v13  ;;  %v4553_v61 = vadd.f32 %v9044_v25, %v4533_v26  ;;  %v9086_v13 = vld [vmem:[%s9168_s9] ss:$0 sm:$0xff] }
 0x528   : > { %v4569_v31 = vmax.f32 %v4553_v61, 0.0 }
 0x52a   : > { %v4583_v62 = vpack.c.bf16 %v4569_v31, %v4568_v3 }
 0x52b   : > { %v4422_v48 = vld.sshfl [vmem:[#allocation1 + $0x20] sm:$0xff pattern:$0x73625140]  ;;  %v4496_v49 = vpop.f32.mrf.mxu0 }
 0x52c   : > { %v4446_v7 = vpack.c.bf16 %v4422_v48, %v4421_v51  ;;  %v4534_v10 = vmul.f32 %v9036_v57, %v4496_v49 }
 0x52e   : > { %5222 = vmatmul.msk.bf16.gmra.mxu3 %vm4448_vm11, %v4446_v7  ;;  %v4554_v59 = vadd.f32 %v9044_v25, %v4534_v10 }
 0x530   : > { %v4570_v44 = vmax.f32 %v4554_v59, 0.0 }
 0x531   : > { %v4511_v40 = vpop.f32.mrf.mxu3 }
 0x532   : > { %v4540_v21 = vmul.f32 %v9036_v57, %v4511_v40 }
 0x533   : > { %v4498_v32 = vpop.f32.mrf.mxu0 }
 0x534   : > { %v4535_v6 = vmul.f32 %v9036_v57, %v4498_v32  ;;  %v4560_v42 = vadd.f32 %v9044_v25, %v4540_v21 }
 0x536   : > { %v4555_v20 = vadd.f32 %v9044_v25, %v4535_v6  ;;  %v4576_v27 = vmax.f32 %v4560_v42, 0.0 }
 0x538   : > { %v4571_v24 = vmax.f32 %v4555_v20, 0.0 }
 0x539   : > { %v4513_v58 = vpop.f32.mrf.mxu3 }
 0x53a   : > { %v4584_v22 = vpack.c.bf16 %v4571_v24, %v4570_v44  ;;  %v4541_v19 = vmul.f32 %v9036_v57, %v4513_v58 }
 0x53b   : > { %v4501_v11 = vpop.f32.mrf.mxu0 }
 0x53c   : > { %v4536_v12 = vmul.f32 %v9036_v57, %v4501_v11  ;;  %v4561_v4 = vadd.f32 %v9044_v25, %v4541_v19 }
 0x53e   : > { %5231 = vmatmul.msk.bf16.vlgmr.msrb.gmra.mxu3 %vm4610_vm12, %v4582_v50  ;;  %v4556_v38 = vadd.f32 %v9044_v25, %v4536_v12  ;;  %v4577_v0 = vmax.f32 %v4561_v4, 0.0 }
 0x540   : > { %v4572_v2 = vmax.f32 %v4556_v38, 0.0  ;;  %v4587_v37 = vpack.c.bf16 %v4577_v0, %v4576_v27 }
 0x543   : > { %v4503_v28 = vpop.f32.mrf.mxu0 }
 0x544   : > { %v4537_v9 = vmul.f32 %v9036_v57, %v4503_v28 }
 0x546   : > { %v4557_v52 = vadd.f32 %v9044_v25, %v4537_v9 }
 0x548   : > { %v4573_v54 = vmax.f32 %v4557_v52, 0.0 }
 0x54a   : > { %v4585_v36 = vpack.c.bf16 %v4573_v54, %v4572_v2 }
 0x54b   : > { %v4506_v45 = vpop.f32.mrf.mxu0 }
 0x54c   : > { %v4538_v23 = vmul.f32 %v9036_v57, %v4506_v45 }
 0x54e   : > { %5232 = vmatmul.msk.bf16.gmra.mxu3 %vm4610_vm12, %v4583_v62  ;;  %v4558_v15 = vadd.f32 %v9044_v25, %v4538_v23 }
 0x550   : > { %v4574_v1 = vmax.f32 %v4558_v15, 0.0 }
 0x553   : > { %v4508_v43 = vpop.f32.mrf.mxu0 }
 0x554   : > { %v4539_v55 = vmul.f32 %v9036_v57, %v4508_v43 }
 0x556   : > { %v4559_v53 = vadd.f32 %v9044_v25, %v4539_v55 }
 0x558   : > { %v4575_v41 = vmax.f32 %v4559_v53, 0.0 }
 0x55a   : > { %v4586_v5 = vpack.c.bf16 %v4575_v41, %v4574_v1 }
 0x55e   : > { %5233 = vmatmul.msk.bf16.gmra.mxu3 %vm4610_vm12, %v4584_v22 }
 0x56e   : > { %5234 = vmatmul.msk.bf16.gmra.mxu3 %vm4610_vm12, %v4585_v36 }
 0x571   : > { %v4516_v33 = vpop.f32.mrf.mxu3 }
 0x572   : > { %v4542_v17 = vmul.f32 %v9036_v57, %v4516_v33 }
 0x574   : > { %v4562_v63 = vadd.f32 %v9044_v25, %v4542_v17 }
 0x576   : > { %v4578_v51 = vmax.f32 %v4562_v63, 0.0 }
 0x579   : > { %v4518_v18 = vpop.f32.mrf.mxu3 }
 0x57a   : > { %v4543_v34 = vmul.f32 %v9036_v57, %v4518_v18 }
 0x57c   : > { %v4563_v14 = vadd.f32 %v9044_v25, %v4543_v34 }
 0x57e   : > { %5235 = vmatmul.msk.bf16.gmra.mxu3 %vm4610_vm12, %v4586_v5  ;;  %v4579_v60 = vmax.f32 %v4563_v14, 0.0 }
 0x580   : > { %v4588_v48 = vpack.c.bf16 %v4579_v60, %v4578_v51 }
 0x58e   : > { %5236 = vmatmul.msk.bf16.gmra.mxu3 %vm4610_vm12, %v4587_v37 }
 0x59e   : > { %5237 = vmatmul.msk.bf16.gmra.mxu3 %vm4610_vm12, %v4588_v48 }
 0x5b1   : > { %v4521_v7 = vpop.f32.mrf.mxu3 }
 0x5b2   : > { %v4544_v39 = vmul.f32 %v9036_v57, %v4521_v7 }
 0x5b4   : > { %v4564_v16 = vadd.f32 %v9044_v25, %v4544_v39 }
 0x5b6   : > { %v4580_v47 = vmax.f32 %v4564_v16, 0.0 }
 0x5b9   : > { %v4523_v46 = vpop.f32.mrf.mxu3 }
 0x5ba   : > { %v4545_v8 = vmul.f32 %v9036_v57, %v4523_v46 }
 0x5bc   : > { %v4565_v29 = vadd.f32 %v9044_v25, %v4545_v8 }
 0x5be   : > { %v4581_v56 = vmax.f32 %v4565_v29, 0.0 }
 0x5c0   : > { %v4589_v50 = vpack.c.bf16 %v4581_v56, %v4580_v47 }
 0x5c1   : > { %v4644_v49 = vpop.f32.mrf.mxu3 }
 0x5c2   : > { %v4645_v26 = vadd.f32 %v9086_v13, %v4644_v49  ;;  %5238 = vmatmul.msk.bf16.gmra.mxu3 %vm4610_vm12, %v4589_v50 }
 0x5c4   : > { %v5239_v35 = vmul.f32 -1.442695, %v4645_v26 }
 0x5c6   : > { %5316 = vpow2.f32 %v5239_v35 }
 0x5c9   : > { %v4646_v57 = vpop.f32.mrf.mxu3 }
 0x5ca   : > { %v4647_v25 = vadd.f32 %v9086_v13, %v4646_v57 }
 0x5cc   : > { %v5317_v61 = vpop.eup %5316  ;;  %v5240_v30 = vmul.f32 -1.442695, %v4647_v25 }
 0x5cd   : > { %v4732_v31 = vadd.f32 1.0, %v5317_v61 }
 0x5ce   : > { %5318 = vpow2.f32 %v5240_v30 }
 0x5cf   : > { %5320 = vrcp.f32 %v4732_v31  ;;  %v4759_v24 = vand.u32 2147483648, %v4732_v31  ;;  %v4757_v22 = vand.u32 2147483647, %v4732_v31  ;;  %vm4753_vm14 = vweird.f32 %v4732_v31 }
 0x5d1   : > { %v4649_v32 = vpop.f32.mrf.mxu3  ;;  %v4760_v54 = vor.u32 1.1754944e-38, %v4759_v24  ;;  %vm4758_vm0 = vcmp.eq.f32.partialorder %v4757_v22, 8.507059e+37 }
 0x5d2   : > { %v4650_v3 = vadd.f32 %v9086_v13, %v4649_v32 }
 0x5d4   : > { %v5319_v62 = vpop.eup %5318  ;;  %v5241_v6 = vmul.f32 -1.442695, %v4650_v3 }
 0x5d5   : > { %v5321_v11 = vpop.eup %5320  ;;  %v4733_v10 = vadd.f32 1.0, %v5319_v62 }
 0x5d6   : > { %v4749_v20 = vmul.f32 %v5321_v11, %v4732_v31  ;;  %5322 = vpow2.f32 %v5241_v6  ;;  %vm4754_vm13 = vweird.f32 %v5321_v11 }
 0x5d7   : > { %5324 = vrcp.f32 %v4733_v10  ;;  %vm4755_vm15 = vmor %vm4753_vm14, %vm4754_vm13  ;;  %v4774_v53 = vand.u32 2147483648, %v4733_v10  ;;  %v4772_v1 = vand.u32 2147483647, %v4733_v10  ;;  %vm4768_vm3 = vweird.f32 %v4733_v10 }
 0x5d8   : > { %v4750_v59 = vsub.f32 1.0, %v4749_v20 }
 0x5d9   : > { %v4651_v44 = vpop.f32.mrf.mxu3  ;;  %v4775_v4 = vor.u32 1.1754944e-38, %v4774_v53  ;;  %vm4773_vm5 = vcmp.eq.f32.partialorder %v4772_v1, 8.507059e+37 }
 0x5da   : > { %v4751_v28 = vmul.f32 %v5321_v11, %v4750_v59  ;;  %v4652_v9 = vadd.f32 %v9086_v13, %v4651_v44 }
 0x5dc   : > { %v5323_v12 = vpop.eup %5322  ;;  %v4752_v45 = vadd.f32 %v5321_v11, %v4751_v28  ;;  %v5242_v52 = vmul.f32 -1.442695, %v4652_v9 }
 0x5dd   : > { %v5325_v38 = vpop.eup %5324  ;;  %v4734_v2 = vadd.f32 1.0, %v5323_v12 }
 0x5de   : > { %v4756_v36 = vsel %vm4755_vm15, %v5321_v11, %v4752_v45  ;;  %v4764_v43 = vmul.f32 %v5325_v38, %v4733_v10  ;;  %5326 = vpow2.f32 %v5242_v52  ;;  %vm4769_vm2 = vweird.f32 %v5325_v38 }
 0x5df   : > { %v4761_v55 = vsel %vm4758_vm0, %v4760_v54, %v4756_v36  ;;  %5328 = vrcp.f32 %v4734_v2  ;;  %vm4770_vm4 = vmor %vm4768_vm3, %vm4769_vm2  ;;  %v4789_v17 = vand.u32 2147483648, %v4734_v2  ;;  %v4787_v60 = vand.u32 2147483647, %v4734_v2 }
 0x5e0   : > { %v4988_v40 = vpack.c.bf16 %v4761_v55, %v4761_v55  ;;  %v4765_v23 = vsub.f32 1.0, %v4764_v43  ;;  %vm4783_vm7 = vweird.f32 %v4734_v2 }
 0x5e1   : > { %v4654_v15 = vpop.f32.mrf.mxu3  ;;  %v4790_v16 = vor.u32 1.1754944e-38, %v4789_v17  ;;  %vm4788_vm9 = vcmp.eq.f32.partialorder %v4787_v60, 8.507059e+37 }
 0x5e2   : > { %5005 = vst.msk [vmem:[%s9098_s11] sm:$0xf] %vm5004_vm1, %v4988_v40  ;;  %v4766_v41 = vmul.f32 %v5325_v38, %v4765_v23  ;;  %v4655_v58 = vadd.f32 %v9086_v13, %v4654_v15 }
 0x5e4   : > { %v5327_v5 = vpop.eup %5326  ;;  %v4767_v19 = vadd.f32 %v5325_v38, %v4766_v41  ;;  %v5243_v21 = vmul.f32 -1.442695, %v4655_v58 }
 0x5e5   : > { %v5329_v33 = vpop.eup %5328  ;;  %v4735_v42 = vadd.f32 1.0, %v5327_v5 }
 0x5e6   : > { %v4771_v0 = vsel %vm4770_vm4, %v5325_v38, %v4767_v19  ;;  %v4779_v27 = vmul.f32 %v5329_v33, %v4734_v2  ;;  %5330 = vpow2.f32 %v5243_v21  ;;  %vm4784_vm6 = vweird.f32 %v5329_v33 }
 0x5e7   : > { %v4776_v37 = vsel %vm4773_vm5, %v4775_v4, %v4771_v0  ;;  %5332 = vrcp.f32 %v4735_v42  ;;  %vm4785_vm8 = vmor %vm4783_vm7, %vm4784_vm6  ;;  %v4804_v26 = vand.u32 2147483648, %v4735_v42  ;;  %v4802_v25 = vand.u32 2147483647, %v4735_v42 }
 0x5e8   : > { %v4989_v18 = vpack.c.bf16 %v4776_v37, %v4776_v37  ;;  %v4780_v34 = vsub.f32 1.0, %v4779_v27  ;;  %vm4798_vm11 = vweird.f32 %v4735_v42 }
 0x5e9   : > { %v4656_v14 = vpop.f32.mrf.mxu3  ;;  %v4805_v62 = vor.u32 1.1754944e-38, %v4804_v26  ;;  %vm4803_vm13 = vcmp.eq.f32.partialorder %v4802_v25, 8.507059e+37 }
 0x5ea   : > { %5006 = vst.msk [vmem:[%s9098_s11 + $0x4] sm:$0xf] %vm5004_vm1, %v4989_v18  ;;  %v4781_v63 = vmul.f32 %v5329_v33, %v4780_v34  ;;  %v4657_v51 = vadd.f32 %v9086_v13, %v4656_v14 }
 0x5ec   : > { %v5331_v48 = vpop.eup %5330  ;;  %v4782_v7 = vadd.f32 %v5329_v33, %v4781_v63  ;;  %v5244_v39 = vmul.f32 -1.442695, %v4657_v51 }
 0x5ed   : > { %v5333_v46 = vpop.eup %5332  ;;  %v4736_v8 = vadd.f32 1.0, %v5331_v48 }
 0x5ee   : > { %v4786_v29 = vsel %vm4785_vm8, %v5329_v33, %v4782_v7  ;;  %v4794_v47 = vmul.f32 %v5333_v46, %v4735_v42  ;;  %5334 = vpow2.f32 %v5244_v39  ;;  %vm4799_vm10 = vweird.f32 %v5333_v46 }
 0x5ef   : > { %v4791_v56 = vsel %vm4788_vm9, %v4790_v16, %v4786_v29  ;;  %5336 = vrcp.f32 %v4736_v8  ;;  %vm4800_vm12 = vmor %vm4798_vm11, %vm4799_vm10  ;;  %v4819_v44 = vand.u32 2147483648, %v4736_v8  ;;  %v4817_v9 = vand.u32 2147483647, %v4736_v8 }
 0x5f0   : > { %v4990_v50 = vpack.c.bf16 %v4791_v56, %v4791_v56  ;;  %v4795_v49 = vsub.f32 1.0, %v4794_v47  ;;  %vm4813_vm15 = vweird.f32 %v4736_v8 }
 0x5f1   : > { %v4659_v35 = vpop.f32.mrf.mxu3  ;;  %v4820_v2 = vor.u32 1.1754944e-38, %v4819_v44  ;;  %vm4818_vm2 = vcmp.eq.f32.partialorder %v4817_v9, 8.507059e+37 }
 0x5f2   : > { %5007 = vst.msk [vmem:[%s9098_s11 + $0x8] sm:$0xf] %vm5004_vm1, %v4990_v50  ;;  %v4796_v57 = vmul.f32 %v5333_v46, %v4795_v49  ;;  %v4660_v61 = vadd.f32 %v9086_v13, %v4659_v35 }
 0x5f4   : > { %v5335_v30 = vpop.eup %5334  ;;  %v4797_v31 = vadd.f32 %v5333_v46, %v4796_v57  ;;  %v5245_v32 = vmul.f32 -1.442695, %v4660_v61 }
 0x5f5   : > { %v5337_v3 = vpop.eup %5336  ;;  %v4737_v6 = vadd.f32 1.0, %v5335_v30 }
 0x5f6   : > { %v4801_v11 = vsel %vm4800_vm12, %v5333_v46, %v4797_v31  ;;  %v4809_v10 = vmul.f32 %v5337_v3, %v4736_v8  ;;  %5338 = vpow2.f32 %v5245_v32  ;;  %vm4814_vm14 = vweird.f32 %v5337_v3 }
 0x5f7   : > { %v4806_v20 = vsel %vm4803_vm13, %v4805_v62, %v4801_v11  ;;  %5340 = vrcp.f32 %v4737_v6  ;;  %vm4815_vm0 = vmor %vm4813_vm15, %vm4814_vm14  ;;  %v4834_v15 = vand.u32 2147483648, %v4737_v6  ;;  %v4832_v58 = vand.u32 2147483647, %v4737_v6 }
 0x5f8   : > { %v4991_v59 = vpack.c.bf16 %v4806_v20, %v4806_v20  ;;  %v4810_v24 = vsub.f32 1.0, %v4809_v10  ;;  %vm4828_vm4 = vweird.f32 %v4737_v6 }
 0x5f9   : > { %v4661_v28 = vpop.f32.mrf.mxu3  ;;  %v4835_v42 = vor.u32 1.1754944e-38, %v4834_v15  ;;  %vm4833_vm6 = vcmp.eq.f32.partialorder %v4832_v58, 8.507059e+37 }
 0x5fa   : > { %5008 = vst.msk [vmem:[%s9098_s11 + $0xc] sm:$0xf] %vm5004_vm1, %v4991_v59  ;;  %v4811_v22 = vmul.f32 %v5337_v3, %v4810_v24  ;;  %v4662_v12 = vadd.f32 %v9086_v13, %v4661_v28 }
 0x5fc   : > { %v5339_v45 = vpop.eup %5338  ;;  %v4812_v52 = vadd.f32 %v5337_v3, %v4811_v22  ;;  %v5246_v38 = vmul.f32 -1.442695, %v4662_v12 }
 0x5fd   : > { %v5341_v54 = vpop.eup %5340  ;;  %v4738_v36 = vadd.f32 1.0, %v5339_v45 }
 0x5fe   : > { %v4816_v43 = vsel %vm4815_vm0, %v5337_v3, %v4812_v52  ;;  %v4824_v55 = vmul.f32 %v5341_v54, %v4737_v6  ;;  %5342 = vpow2.f32 %v5246_v38  ;;  %vm4829_vm3 = vweird.f32 %v5341_v54 }
 0x5ff   : > { %v4821_v40 = vsel %vm4818_vm2, %v4820_v2, %v4816_v43  ;;  %5344 = vrcp.f32 %v4738_v36  ;;  %vm4830_vm5 = vmor %vm4828_vm4, %vm4829_vm3  ;;  %v4849_v14 = vand.u32 2147483648, %v4738_v36  ;;  %v4847_v51 = vand.u32 2147483647, %v4738_v36 }
 0x600   : > { %v4992_v23 = vpack.c.bf16 %v4821_v40, %v4821_v40  ;;  %v4825_v53 = vsub.f32 1.0, %v4824_v55  ;;  %vm4843_vm8 = vweird.f32 %v4738_v36 }
 0x601   : > { %v4664_v41 = vpop.f32.mrf.mxu3  ;;  %v4850_v8 = vor.u32 1.1754944e-38, %v4849_v14  ;;  %vm4848_vm10 = vcmp.eq.f32.partialorder %v4847_v51, 8.507059e+37 }
 0x602   : > { %5009 = vst.msk [vmem:[%s9098_s11 + $0x10] sm:$0xf] %vm5004_vm1, %v4992_v23  ;;  %v4826_v1 = vmul.f32 %v5341_v54, %v4825_v53  ;;  %v4665_v5 = vadd.f32 %v9086_v13, %v4664_v41 }
 0x604   : > { %v5343_v19 = vpop.eup %5342  ;;  %v4827_v21 = vadd.f32 %v5341_v54, %v4826_v1  ;;  %v5247_v33 = vmul.f32 -1.442695, %v4665_v5 }
 0x605   : > { %v5345_v4 = vpop.eup %5344  ;;  %v4739_v0 = vadd.f32 1.0, %v5343_v19 }
 0x606   : > { %v4831_v27 = vsel %vm4830_vm5, %v5341_v54, %v4827_v21  ;;  %v4839_v37 = vmul.f32 %v5345_v4, %v4738_v36  ;;  %5346 = vpow2.f32 %v5247_v33  ;;  %vm4844_vm7 = vweird.f32 %v5345_v4 }
 0x607   : > { %v4836_v18 = vsel %vm4833_vm6, %v4835_v42, %v4831_v27  ;;  %5348 = vrcp.f32 %v4739_v0  ;;  %vm4845_vm9 = vmor %vm4843_vm8, %vm4844_vm7  ;;  %v4864_v35 = vand.u32 2147483648, %v4739_v0  ;;  %v4862_v61 = vand.u32 2147483647, %v4739_v0 }
 0x608   : > { %v4993_v34 = vpack.c.bf16 %v4836_v18, %v4836_v18  ;;  %v4840_v17 = vsub.f32 1.0, %v4839_v37  ;;  %vm4858_vm12 = vweird.f32 %v4739_v0 }
 0x609   : > { %v4666_v63 = vpop.f32.mrf.mxu3  ;;  %v4865_v6 = vor.u32 1.1754944e-38, %v4864_v35  ;;  %vm4863_vm14 = vcmp.eq.f32.partialorder %v4862_v61, 8.507059e+37 }
 0x60a   : > { %5010 = vst.msk [vmem:[%s9098_s11 + $0x14] sm:$0xf] %vm5004_vm1, %v4993_v34  ;;  %v4841_v60 = vmul.f32 %v5345_v4, %v4840_v17  ;;  %v4667_v48 = vadd.f32 %v9086_v13, %v4666_v63 }
 0x60c   : > { %v5347_v7 = vpop.eup %5346  ;;  %v4842_v39 = vadd.f32 %v5345_v4, %v4841_v60  ;;  %v5248_v46 = vmul.f32 -1.442695, %v4667_v48 }
 0x60d   : > { %v5349_v16 = vpop.eup %5348  ;;  %v4740_v29 = vadd.f32 1.0, %v5347_v7 }
 0x60e   : > { %v4846_v47 = vsel %vm4845_vm9, %v5345_v4, %v4842_v39  ;;  %v4854_v56 = vmul.f32 %v5349_v16, %v4739_v0  ;;  %5350 = vpow2.f32 %v5248_v46  ;;  %vm4859_vm11 = vweird.f32 %v5349_v16 }
 0x60f   : > { %v4851_v50 = vsel %vm4848_vm10, %v4850_v8, %v4846_v47  ;;  %5352 = vrcp.f32 %v4740_v29  ;;  %vm4860_vm13 = vmor %vm4858_vm12, %vm4859_vm11  ;;  %v4879_v28 = vand.u32 2147483648, %v4740_v29  ;;  %v4877_v12 = vand.u32 2147483647, %v4740_v29 }
 0x610   : > { %v4994_v49 = vpack.c.bf16 %v4851_v50, %v4851_v50  ;;  %v4855_v26 = vsub.f32 1.0, %v4854_v56  ;;  %vm4873_vm0 = vweird.f32 %v4740_v29 }
 0x611   : > { %v4669_v57 = vpop.f32.mrf.mxu3  ;;  %v4880_v36 = vor.u32 1.1754944e-38, %v4879_v28  ;;  %vm4878_vm3 = vcmp.eq.f32.partialorder %v4877_v12, 8.507059e+37 }
 0x612   : > { %5011 = vst.msk [vmem:[%s9098_s11 + $0x18] sm:$0xf] %vm5004_vm1, %v4994_v49  ;;  %v4856_v25 = vmul.f32 %v5349_v16, %v4855_v26  ;;  %v4670_v30 = vadd.f32 %v9086_v13, %v4669_v57 }
 0x614   : > { %v5351_v31 = vpop.eup %5350  ;;  %v4857_v32 = vadd.f32 %v5349_v16, %v4856_v25  ;;  %v5249_v3 = vmul.f32 -1.442695, %v4670_v30 }
 0x615   : > { %v5353_v62 = vpop.eup %5352  ;;  %v4741_v11 = vadd.f32 1.0, %v5351_v31 }
 0x616   : > { %v4861_v10 = vsel %vm4860_vm13, %v5349_v16, %v4857_v32  ;;  %v4869_v20 = vmul.f32 %v5353_v62, %v4740_v29  ;;  %5354 = vpow2.f32 %v5249_v3  ;;  %vm4874_vm15 = vweird.f32 %v5353_v62 }
 0x617   : > { %v4866_v59 = vsel %vm4863_vm14, %v4865_v6, %v4861_v10  ;;  %5356 = vrcp.f32 %v4741_v11  ;;  %vm4875_vm2 = vmor %vm4873_vm0, %vm4874_vm15  ;;  %v4894_v41 = vand.u32 2147483648, %v4741_v11  ;;  %v4892_v5 = vand.u32 2147483647, %v4741_v11 }
 0x618   : > { %v4995_v24 = vpack.c.bf16 %v4866_v59, %v4866_v59  ;;  %v4870_v44 = vsub.f32 1.0, %v4869_v20  ;;  %vm4888_vm5 = vweird.f32 %v4741_v11 }
 0x619   : > { %v4671_v22 = vpop.f32.mrf.mxu3  ;;  %v4895_v0 = vor.u32 1.1754944e-38, %v4894_v41  ;;  %vm4893_vm7 = vcmp.eq.f32.partialorder %v4892_v5, 8.507059e+37 }
 0x61a   : > { %5012 = vst.msk [vmem:[%s9098_s11 + $0x1c] sm:$0xf] %vm5004_vm1, %v4995_v24  ;;  %v4871_v9 = vmul.f32 %v5353_v62, %v4870_v44  ;;  %v4672_v45 = vadd.f32 %v9086_v13, %v4671_v22 }
 0x61c   : > { %v5355_v52 = vpop.eup %5354  ;;  %v4872_v38 = vadd.f32 %v5353_v62, %v4871_v9  ;;  %v5250_v54 = vmul.f32 -1.442695, %v4672_v45 }
 0x61d   : > { %v5357_v2 = vpop.eup %5356  ;;  %v4742_v43 = vadd.f32 1.0, %v5355_v52 }
 0x61e   : > { %v4876_v55 = vsel %vm4875_vm2, %v5353_v62, %v4872_v38  ;;  %v4884_v40 = vmul.f32 %v5357_v2, %v4741_v11  ;;  %5358 = vpow2.f32 %v5250_v54  ;;  %vm4889_vm4 = vweird.f32 %v5357_v2 }
 0x61f   : > { %v4881_v23 = vsel %vm4878_vm3, %v4880_v36, %v4876_v55  ;;  %5360 = vrcp.f32 %v4742_v43  ;;  %vm4890_vm6 = vmor %vm4888_vm5, %vm4889_vm4  ;;  %v4909_v63 = vand.u32 2147483648, %v4742_v43  ;;  %v4907_v48 = vand.u32 2147483647, %v4742_v43 }
 0x620   : > { %v4996_v53 = vpack.c.bf16 %v4881_v23, %v4881_v23  ;;  %v4885_v15 = vsub.f32 1.0, %v4884_v40  ;;  %vm4903_vm9 = vweird.f32 %v4742_v43 }
 0x621   : > { %v4674_v1 = vpop.f32.mrf.mxu3  ;;  %v4910_v29 = vor.u32 1.1754944e-38, %v4909_v63  ;;  %vm4908_vm11 = vcmp.eq.f32.partialorder %v4907_v48, 8.507059e+37 }
 0x622   : > { %5013 = vst.msk [vmem:[%s9098_s11 + $0x20] sm:$0xf] %vm5004_vm1, %v4996_v53  ;;  %v4886_v58 = vmul.f32 %v5357_v2, %v4885_v15  ;;  %v4675_v19 = vadd.f32 %v9086_v13, %v4674_v1 }
 0x624   : > { %v5359_v21 = vpop.eup %5358  ;;  %v4887_v33 = vadd.f32 %v5357_v2, %v4886_v58  ;;  %v5251_v4 = vmul.f32 -1.442695, %v4675_v19 }
 0x625   : > { %v5361_v42 = vpop.eup %5360  ;;  %v4743_v27 = vadd.f32 1.0, %v5359_v21 }
 0x626   : > { %v4891_v37 = vsel %vm4890_vm6, %v5357_v2, %v4887_v33  ;;  %v4899_v18 = vmul.f32 %v5361_v42, %v4742_v43  ;;  %5362 = vpow2.f32 %v5251_v4  ;;  %vm4904_vm8 = vweird.f32 %v5361_v42 }
 0x627   : > { %v4896_v34 = vsel %vm4893_vm7, %v4895_v0, %v4891_v37  ;;  %5364 = vrcp.f32 %v4743_v27  ;;  %vm4905_vm10 = vmor %vm4903_vm9, %vm4904_vm8  ;;  %v4924_v57 = vand.u32 2147483648, %v4743_v27  ;;  %v4922_v61 = vand.u32 2147483647, %v4743_v27 }
 0x628   : > { %v4997_v17 = vpack.c.bf16 %v4896_v34, %v4896_v34  ;;  %v4900_v14 = vsub.f32 1.0, %v4899_v18  ;;  %vm4918_vm13 = vweird.f32 %v4743_v27 }
 0x629   : > { %v4676_v60 = vpop.f32.mrf.mxu3  ;;  %v4925_v3 = vor.u32 1.1754944e-38, %v4924_v57  ;;  %vm4923_vm15 = vcmp.eq.f32.partialorder %v4922_v61, 8.507059e+37 }
 0x62a   : > { %5014 = vst.msk [vmem:[%s9098_s11 + $0x24] sm:$0xf] %vm5004_vm1, %v4997_v17  ;;  %v4901_v51 = vmul.f32 %v5361_v42, %v4900_v14  ;;  %v4677_v7 = vadd.f32 %v9086_v13, %v4676_v60 }
 0x62c   : > { %v5363_v39 = vpop.eup %5362  ;;  %v4902_v46 = vadd.f32 %v5361_v42, %v4901_v51  ;;  %v5252_v16 = vmul.f32 -1.442695, %v4677_v7 }
 0x62d   : > { %v5365_v8 = vpop.eup %5364  ;;  %v4744_v47 = vadd.f32 1.0, %v5363_v39 }
 0x62e   : > { %v4906_v56 = vsel %vm4905_vm10, %v5361_v42, %v4902_v46  ;;  %v4914_v50 = vmul.f32 %v5365_v8, %v4743_v27  ;;  %5366 = vpow2.f32 %v5252_v16  ;;  %vm4919_vm12 = vweird.f32 %v5365_v8 }
 0x62f   : > { %v4911_v49 = vsel %vm4908_vm11, %v4910_v29, %v4906_v56  ;;  %5368 = vrcp.f32 %v4744_v47  ;;  %vm4920_vm14 = vmor %vm4918_vm13, %vm4919_vm12  ;;  %v4939_v24 = vand.u32 2147483648, %v4744_v47  ;;  %v4937_v28 = vand.u32 2147483647, %v4744_v47 }
 0x630   : > { %v4998_v26 = vpack.c.bf16 %v4911_v49, %v4911_v49  ;;  %v4915_v35 = vsub.f32 1.0, %v4914_v50  ;;  %vm4933_vm2 = vweird.f32 %v4744_v47 }
 0x631   : > { %v4940_v12 = vor.u32 1.1754944e-38, %v4939_v24  ;;  %vm4938_vm4 = vcmp.eq.f32.partialorder %v4937_v28, 8.507059e+37 }
 0x632   : > { %5015 = vst.msk [vmem:[%s9098_s11 + $0x28] sm:$0xf] %vm5004_vm1, %v4998_v26  ;;  %v4916_v25 = vmul.f32 %v5365_v8, %v4915_v35 }
 0x634   : > { %v5367_v30 = vpop.eup %5366  ;;  %v4917_v31 = vadd.f32 %v5365_v8, %v4916_v25 }
 0x635   : > { %v5369_v32 = vpop.eup %5368  ;;  %v4745_v62 = vadd.f32 1.0, %v5367_v30 }
 0x636   : > { %v4921_v6 = vsel %vm4920_vm14, %v5365_v8, %v4917_v31  ;;  %v4929_v11 = vmul.f32 %v5369_v32, %v4744_v47  ;;  %vm4934_vm0 = vweird.f32 %v5369_v32 }
 0x637   : > { %v4926_v10 = vsel %vm4923_vm15, %v4925_v3, %v4921_v6  ;;  %5370 = vrcp.f32 %v4745_v62  ;;  %vm4935_vm3 = vmor %vm4933_vm2, %vm4934_vm0  ;;  %v4954_v36 = vand.u32 2147483648, %v4745_v62  ;;  %v4952_v55 = vand.u32 2147483647, %v4745_v62 }
 0x638   : > { %v4999_v20 = vpack.c.bf16 %v4926_v10, %v4926_v10  ;;  %v4930_v59 = vsub.f32 1.0, %v4929_v11  ;;  %vm4948_vm6 = vweird.f32 %v4745_v62 }
 0x639   : > { %v4955_v23 = vor.u32 1.1754944e-38, %v4954_v36  ;;  %vm4953_vm8 = vcmp.eq.f32.partialorder %v4952_v55, 8.507059e+37 }
 0x63a   : > { %5016 = vst.msk [vmem:[%s9098_s11 + $0x2c] sm:$0xf] %vm5004_vm1, %v4999_v20  ;;  %v4931_v44 = vmul.f32 %v5369_v32, %v4930_v59 }
 0x63c   : > { %v4932_v22 = vadd.f32 %v5369_v32, %v4931_v44 }
 0x63d   : > { %v5371_v9 = vpop.eup %5370 }
 0x63e   : > { %v4936_v45 = vsel %vm4935_vm3, %v5369_v32, %v4932_v22  ;;  %v4944_v52 = vmul.f32 %v5371_v9, %v4745_v62  ;;  %vm4949_vm5 = vweird.f32 %v5371_v9 }
 0x63f   : > { %v4941_v38 = vsel %vm4938_vm4, %v4940_v12, %v4936_v45  ;;  %vm4950_vm7 = vmor %vm4948_vm6, %vm4949_vm5 }
 0x640   : > { %v5000_v54 = vpack.c.bf16 %v4941_v38, %v4941_v38  ;;  %v4945_v2 = vsub.f32 1.0, %v4944_v52 }
 0x642   : > { %5017 = vst.msk [vmem:[%s9098_s11 + $0x30] sm:$0xf] %vm5004_vm1, %v5000_v54  ;;  %v4946_v43 = vmul.f32 %v5371_v9, %v4945_v2 }
 0x644   : > { %v4947_v40 = vadd.f32 %v5371_v9, %v4946_v43 }
 0x645   : > { %v4679_v53 = vpop.f32.mrf.mxu3 }
 0x646   : > { %v4951_v15 = vsel %vm4950_vm7, %v5371_v9, %v4947_v40  ;;  %v4680_v41 = vadd.f32 %v9086_v13, %v4679_v53 }
 0x647   : > { %v4956_v1 = vsel %vm4953_vm8, %v4955_v23, %v4951_v15 }
 0x648   : > { %v5001_v58 = vpack.c.bf16 %v4956_v1, %v4956_v1  ;;  %v5253_v5 = vmul.f32 -1.442695, %v4680_v41 }
 0x64a   : > { %5018 = vst.msk [vmem:[%s9098_s11 + $0x34] sm:$0xf] %vm5004_vm1, %v5001_v58  ;;  %5372 = vpow2.f32 %v5253_v5 }
 0x64d   : > { %v4681_v19 = vpop.f32.mrf.mxu3 }
 0x64e   : > { %v4682_v21 = vadd.f32 %v9086_v13, %v4681_v19 }
 0x650   : > { %v5373_v33 = vpop.eup %5372  ;;  %v5254_v4 = vmul.f32 -1.442695, %v4682_v21 }
 0x651   : > { %v4746_v42 = vadd.f32 1.0, %v5373_v33 }
 0x652   : > { %5374 = vpow2.f32 %v5254_v4 }
 0x653   : > { %5376 = vrcp.f32 %v4746_v42  ;;  %v4969_v17 = vand.u32 2147483648, %v4746_v42  ;;  %v4967_v63 = vand.u32 2147483647, %v4746_v42  ;;  %vm4963_vm10 = vweird.f32 %v4746_v42 }
 0x655   : > { %v4970_v13 = vor.u32 1.1754944e-38, %v4969_v17  ;;  %vm4968_vm12 = vcmp.eq.f32.partialorder %v4967_v63, 8.507059e+37 }
 0x658   : > { %v5375_v0 = vpop.eup %5374 }
 0x659   : > { %v5377_v27 = vpop.eup %5376  ;;  %v4747_v37 = vadd.f32 1.0, %v5375_v0 }
 0x65a   : > { %v4959_v18 = vmul.f32 %v5377_v27, %v4746_v42  ;;  %vm4964_vm9 = vweird.f32 %v5377_v27 }
 0x65b   : > { %5378 = vrcp.f32 %v4747_v37  ;;  %vm4965_vm11 = vmor %vm4963_vm10, %vm4964_vm9  ;;  %v4984_v8 = vand.u32 2147483648, %v4747_v37  ;;  %v4982_v47 = vand.u32 2147483647, %v4747_v37  ;;  %vm4978_vm14 = vweird.f32 %v4747_v37 }
 0x65c   : > { %v4960_v34 = vsub.f32 1.0, %v4959_v18 }
 0x65d   : > { %v4985_v50 = vor.u32 1.1754944e-38, %v4984_v8  ;;  %vm4983_vm0 = vcmp.eq.f32.partialorder %v4982_v47, 8.507059e+37 }
 0x65e   : > { %v4961_v14 = vmul.f32 %v5377_v27, %v4960_v34 }
 0x660   : > { %v4962_v60 = vadd.f32 %v5377_v27, %v4961_v14 }
 0x661   : > { %v5379_v51 = vpop.eup %5378 }
 0x662   : > { %v4966_v48 = vsel %vm4965_vm11, %v5377_v27, %v4962_v60  ;;  %v4974_v7 = vmul.f32 %v5379_v51, %v4747_v37  ;;  %vm4979_vm13 = vweird.f32 %v5379_v51 }
 0x663   : > { %v4971_v39 = vsel %vm4968_vm12, %v4970_v13, %v4966_v48  ;;  %vm4980_vm15 = vmor %vm4978_vm14, %vm4979_vm13 }
 0x664   : > { %v5002_v46 = vpack.c.bf16 %v4971_v39, %v4971_v39  ;;  %v4975_v16 = vsub.f32 1.0, %v4974_v7 }
 0x666   : > { %5019 = vst.msk [vmem:[%s9098_s11 + $0x38] sm:$0xf] %vm5004_vm1, %v5002_v46  ;;  %v4976_v29 = vmul.f32 %v5379_v51, %v4975_v16 }
 0x668   : > { %v4977_v56 = vadd.f32 %v5379_v51, %v4976_v29 }
 0x66a   : > { %v4981_v49 = vsel %vm4980_vm15, %v5379_v51, %v4977_v56 }
 0x66b   : > { %v4986_v26 = vsel %vm4983_vm0, %v4985_v50, %v4981_v49 }
 0x66c   : > { %v5003_v35 = vpack.c.bf16 %v4986_v26, %v4986_v26 }
 0x66e   : > { %5020 = vst.msk [vmem:[%s9098_s11 + $0x3c] sm:$0xf] %vm5004_vm1, %v5003_v35 }
 0x66f PF: > { %s20_s17 = sadd.s32 1, %s5422_s17   ;;  %s10297_s13 = smov %s5414_s15 }
 0x670   : > { %p17_p8 = scmp.ge.s32.totalorder %s20_s17, 6   ;;  %s10298_s14 = smov %s5418_s16 }
 0x671   : > { %s10299_s15 = smov %s10302_s18  ;;  %s10300_s16 = smov %s10306_s19 }
 0x672   :  { %19 = sbr.rel (!%p17_p8) target bundleno = 3 (0x3), region = 123 }

</bundles_post_ra>
